<compile_context>
chip_gen: v6e
topology: v6e:2x2x1
jax: 0.10.0
libtpu: 0.0.40
codegen_flags: <defaults>
</compile_context>

<pallas_src>
import functools
import numpy as np

import jax
import jax.numpy as jnp
from jax.experimental import pallas as pl
from jax.experimental.pallas import tpu as pltpu

EPS = 1e-5
SLOPE = 0.01  # LeakyReLU default negative_slope


# ----------------------------------------------------------------------------
# Pallas kernel: whole DENSE_CR training-branch forward (small shapes -> the
# full problem fits in VMEM, single program, no grid).
# ----------------------------------------------------------------------------
def dense_cr_kernel(
    x_ref,            # (Bh, H, W, C)     f32  NHWC concat = [s1 | s2] on lanes
    w3f_ref,          # (9, C, 2*C8)      bf16 conv3x3 taps (+ downsample 1x1 on tap 4)
    gfused_ref,       # (1, 2*C8)         f32  [bn1 gamma | bn_ds gamma]
    bfused_ref,       # (1, 2*C8)         f32  [bn1 beta  | bn_ds beta ]
    wdiff_ref,        # (C8, C)           f32  wo[:,c] - wo[:,c^1]   (softmax-as-sigmoid)
    bdiff_ref,        # (1, C)            f32
    wdr_ref,          # (C, 2*Ct)         bf16 dim-reduction 1x1, duplicated out lanes
    gdr_ref, bdr_ref,  # (1, 2*Ct)        f32
    w1_ref, b1_ref,   # (2*Ct, 2*Ch), (1, 2*Ch)   block-diag SE squeeze (se_s1 | se_s2)
    w2_ref, b2_ref,   # (2*Ch, 2*Ct), (1, 2*Ct)   block-diag SE excite
    out_ref,          # (Bh, H, W, 2*Ct)  f32  lanes 0:Ct = out_s1, Ct:2Ct = out_s2
    *, Bh, H, W, C, C8, Ct,
):
    BHW = Bh * H * W
    x4 = x_ref[...]                              # (Bh, H, W, C) f32
    x_flat = x4.reshape(BHW, C)

    def bn_train(v, gamma, beta):
        mu = jnp.mean(v, axis=0, keepdims=True)
        var = jnp.mean(v * v, axis=0, keepdims=True) - mu * mu   # single-pass stats
        return (v - mu) * jax.lax.rsqrt(var + EPS) * gamma + beta

    def leaky(v):
        return jnp.where(v >= 0, v, SLOPE * v)

    # ---- non_linear.BasicBlock: conv3x3 + BN fused with downsample 1x1 + BN ----
    # Zero halo built in-kernel; only 3 sublane-shifted copies (kx hoisted).
    zrow = jnp.zeros((Bh, 1, W, C), jnp.float32)
    zcol = jnp.zeros((Bh, H + 2, 1, C), jnp.float32)
    xh = jnp.concatenate([zrow, x4, zrow], axis=1)               # (Bh, H+2, W, C)
    xk_shifted = (
        jnp.concatenate([zcol, xh[:, :, :W - 1, :]], axis=2),    # kx = 0
        xh,                                                      # kx = 1 (centre)
        jnp.concatenate([xh[:, :, 1:, :], zcol], axis=2),        # kx = 2
    )

    acc = jnp.zeros((BHW, 2 * C8), jnp.float32)
    for kx in range(3):
        xkb = xk_shifted[kx].astype(jnp.bfloat16)                # cast once per shift
        for ky in range(3):
            patch = xkb[:, ky:ky + H].reshape(BHW, C)
            acc = acc + jnp.dot(patch, w3f_ref[ky * 3 + kx],
                                preferred_element_type=jnp.float32)

    norm = bn_train(acc, gfused_ref[...], bfused_ref[...])       # joint BN, both halves
    h = leaky(norm[:, :C8] + norm[:, C8:])                       # (BHW, C8)

    # ---- pairwise (N=2) softmax as sigmoid of the within-pair logit difference ----
    # mask[c] = exp(s_c) / (exp(s_c) + exp(s_{c^1})) = sigmoid(s_c - s_{c^1}); the
    # difference is folded into one 1x1 conv in the glue (exact, no permutation).
    mask = jax.nn.sigmoid(
        jnp.dot(h, wdiff_ref[...], preferred_element_type=jnp.float32) + bdiff_ref[...])
    att = jnp.max(x_flat, axis=-1, keepdims=True)                # spatial attention
    masked = mask * att * x_flat                                 # (BHW, C)

    # ---- dimensionality_reduction (output duplicated -> stays 128-lane dense) ----
    dr = jnp.dot(masked.astype(jnp.bfloat16), wdr_ref[...],
                 preferred_element_type=jnp.float32)             # (BHW, 2*Ct)
    dr = leaky(bn_train(dr, gdr_ref[...], bdr_ref[...]))
    dr3 = dr.reshape(Bh, H * W, 2 * Ct)

    # ---- both SE blocks at once (block-diagonal weights), 128-lane scale vector ----
    pooled = jnp.mean(dr3, axis=1)                               # (Bh, 2*Ct)
    z = jnp.maximum(
        jnp.dot(pooled, w1_ref[...], preferred_element_type=jnp.float32) + b1_ref[...],
        0.0)
    sc = jax.nn.sigmoid(
        jnp.dot(z, w2_ref[...], preferred_element_type=jnp.float32) + b2_ref[...])

    out = dr3 * sc[:, None, :] + x4.reshape(Bh, H * W, C)        # residual = [s1 | s2]
    out_ref[...] = out.reshape(Bh, H, W, C)


# ----------------------------------------------------------------------------
# Wrapper (glue): layout conversion + all algebraic folds into the weights.
# ----------------------------------------------------------------------------
def dense_cr_pallas(x_nchw, p, bh, ndb=2):
    assert ndb == 2, "kernel specialised for NUM_OF_DB == 2"
    Ct = x_nchw.shape[1]
    H, W = x_nchw.shape[2], x_nchw.shape[3]
    C = ndb * Ct
    C8 = C // 8
    Ch = p["se1_W1"].shape[0]
    Bh = int(bh)
    f32, bf16 = jnp.float32, jnp.bfloat16

    # NCHW -> NHWC + channel concat (module interface is NCHW).
    # TODO(synk): if the surrounding graph can stay NHWC these transposes vanish.
    s1n = jnp.transpose(x_nchw[:Bh], (0, 2, 3, 1))
    s2n = jnp.transpose(x_nchw[Bh:], (0, 2, 3, 1))
    concat = jnp.concatenate([s1n, s2n], axis=-1)                # (Bh, H, W, C)

    # conv3x3 (taps flattened, HWIO) with the downsample 1x1 fused into the free
    # MXU output columns of the centre tap (tap 4 multiplies the unshifted input).
    w3_hwio = jnp.transpose(p["w3"], (2, 3, 1, 0)).reshape(9, C, C8)
    wd = p["wd"][:, :, 0, 0].T                                   # (C, C8)
    wd_taps = jnp.zeros((9, C, C8), f32).at[4].set(wd)
    w3f = jnp.concatenate([w3_hwio, wd_taps], axis=-1).astype(bf16)   # (9, C, 2*C8)
    g_fused = jnp.concatenate([p["g1"], p["gd"]]).reshape(1, 2 * C8)
    b_fused = jnp.concatenate([p["b1"], p["bd"]]).reshape(1, 2 * C8)

    # pairwise softmax folded into a "difference" 1x1 conv: partner(c) = c ^ 1
    swap = np.arange(C) ^ 1
    wo_t = p["wo"][:, :, 0, 0].T                                 # (C8, C)
    wdiff = wo_t - wo_t[:, swap]
    bdiff = (p["bo"] - p["bo"][swap]).reshape(1, C)

    # dimensionality_reduction duplicated along output lanes (free, N <= 128)
    wdr = p["wdr"][:, :, 0, 0].T                                 # (C, Ct)
    wdr2 = jnp.concatenate([wdr, wdr], axis=1).astype(bf16)      # (C, 2*Ct)
    gdr2 = jnp.concatenate([p["gdr"], p["gdr"]]).reshape(1, 2 * Ct)
    bdr2 = jnp.concatenate([p["bdr"], p["bdr"]]).reshape(1, 2 * Ct)

    # both SE blocks as block-diagonal matmuls producing one 128-lane scale
    z1 = jnp.zeros((Ct, Ch), f32)
    w1blk = jnp.concatenate(
        [jnp.concatenate([p["se1_W1"].T, z1], axis=1),
         jnp.concatenate([z1, p["se2_W1"].T], axis=1)], axis=0)   # (2*Ct, 2*Ch)
    b1cat = jnp.concatenate([p["se1_b1"], p["se2_b1"]]).reshape(1, 2 * Ch)
    z2 = jnp.zeros((Ch, Ct), f32)
    w2blk = jnp.concatenate(
        [jnp.concatenate([p["se1_W2"].T, z2], axis=1),
         jnp.concatenate([z2, p["se2_W2"].T], axis=1)], axis=0)   # (2*Ch, 2*Ct)
    b2cat = jnp.concatenate([p["se1_b2"], p["se2_b2"]]).reshape(1, 2 * Ct)

    args = (concat, w3f, g_fused, b_fused, wdiff, bdiff,
            wdr2, gdr2, bdr2, w1blk, b1cat, w2blk, b2cat)

    kern = functools.partial(dense_cr_kernel, Bh=Bh, H=H, W=W, C=C, C8=C8, Ct=Ct)
    # TODO(synk): for production pcdet BEV sizes add a "parallel" grid (2nd TC on
    # v7x, 64 MiB VMEM budget) with two-pass / cross-tile BN statistics; the
    # gridless whole-problem-in-VMEM design here is sized for the test shapes.
    out = pl.pallas_call(
        kern,
        out_shape=jax.ShapeDtypeStruct((Bh, H, W, C), f32),
        in_specs=[pl.BlockSpec(memory_space=pltpu.MemorySpace.VMEM)] * len(args),
        out_specs=pl.BlockSpec(memory_space=pltpu.MemorySpace.VMEM),
    )(*args)

    # lanes 0:Ct = out_s1, Ct:2Ct = out_s2 ; back to the module's NCHW batch concat.
    out_cat = jnp.concatenate([out[..., :Ct], out[..., Ct:]], axis=0)
    return jnp.transpose(out_cat, (0, 3, 1, 2))


# ----------------------------------------------------------------------------
# Pure-JAX reference (faithful NCHW re-implementation of the PyTorch module)
# ----------------------------------------------------------------------------
def _conv2d(x, w_oihw, pad):
    return jax.lax.conv_general_dilated(
        x, w_oihw, window_strides=(1, 1),
        padding=((pad, pad), (pad, pad)),
        dimension_numbers=("NCHW", "OIHW", "NCHW"))


def reference_forward(x_nchw, p, bh, ndb=2):
    s1, s2 = x_nchw[:bh], x_nchw[bh:]
    concat = jnp.concatenate([s1, s2], axis=1)
    B, C, H, W = concat.shape

    def bn(v, g, b):
        mu = v.mean(axis=(0, 2, 3), keepdims=True)
        var = ((v - mu) ** 2).mean(axis=(0, 2, 3), keepdims=True)
        return (v - mu) * jax.lax.rsqrt(var + EPS) * g[None, :, None, None] + b[None, :, None, None]

    leaky = lambda v: jnp.where(v >= 0, v, SLOPE * v)

    y = bn(_conv2d(concat, p["w3"], 1), p["g1"], p["b1"])
    d = bn(_conv2d(concat, p["wd"], 0), p["gd"], p["bd"])
    shared = _conv2d(leaky(y + d), p["wo"], 0) + p["bo"][None, :, None, None]

    att = jnp.max(concat, axis=1).reshape(B, 1, 1, H, W)
    mask = jax.nn.softmax(shared.reshape(B, C // ndb, ndb, H, W), axis=2) * att
    shared2 = (mask * concat.reshape(B, C // ndb, ndb, H, W)).reshape(B, C, H, W)

    dr = leaky(bn(_conv2d(shared2, p["wdr"], 0), p["gdr"], p["bdr"]))

    def se(v, W1, b1, W2, b2):
        pm = v.mean(axis=(2, 3))
        z = jax.nn.relu(pm @ W1.T + b1)
        s = jax.nn.sigmoid(z @ W2.T + b2)
        return v * s[:, :, None, None]

    out1 = se(dr, p["se1_W1"], p["se1_b1"], p["se1_W2"], p["se1_b2"]) + s1
    out2 = se(dr, p["se2_W1"], p["se2_b1"], p["se2_W2"], p["se2_b2"]) + s2
    return jnp.concatenate([out1, out2], axis=0)


# ----------------------------------------------------------------------------
# Deterministic parameter init + run
# ----------------------------------------------------------------------------
def init_params(key, Ct, ndb, r=32):
    C = ndb * Ct
    C8 = C // 8
    Ch = Ct // r
    ks = jax.random.split(key, 24)
    n = lambda k, s, sc=0.05: sc * jax.random.normal(k, s, jnp.float32)
    return dict(
        w3=n(ks[0], (C8, C, 3, 3)),
        g1=1.0 + n(ks[1], (C8,), 0.1), b1=n(ks[2], (C8,), 0.1),
        wd=n(ks[3], (C8, C, 1, 1)),
        gd=1.0 + n(ks[4], (C8,), 0.1), bd=n(ks[5], (C8,), 0.1),
        wo=n(ks[6], (C, C8, 1, 1)), bo=n(ks[7], (C,), 0.1),
        wdr=n(ks[8], (Ct, C, 1, 1)),
        gdr=1.0 + n(ks[9], (Ct,), 0.1), bdr=n(ks[10], (Ct,), 0.1),
        se1_W1=n(ks[11], (Ch, Ct), 1.0 / np.sqrt(Ct)), se1_b1=n(ks[12], (Ch,), 0.1),
        se1_W2=n(ks[13], (Ct, Ch), 1.0 / np.sqrt(Ch)), se1_b2=n(ks[14], (Ct,), 0.1),
        se2_W1=n(ks[15], (Ch, Ct), 1.0 / np.sqrt(Ct)), se2_b1=n(ks[16], (Ch,), 0.1),
        se2_W2=n(ks[17], (Ct, Ch), 1.0 / np.sqrt(Ch)), se2_b2=n(ks[18], (Ct,), 0.1),
    )


if __name__ == "__main__":
    # NUM_OF_DB=2, INPUT_CONV_CHANNEL=64 -> shared_channels=128, r=32 -> hidden=2
    NDB, Ct, H, W, Bh = 2, 64, 16, 16, 2
    key = jax.random.PRNGKey(0)
    kp, kx = jax.random.split(key)
    params = init_params(kp, Ct, NDB)
    # data_dict['spatial_features_2d']: first Bh batch elems = source 1, rest = source 2
    x = jax.random.normal(kx, (2 * Bh, Ct, H, W), jnp.float32)

    out = dense_cr_pallas(x, params, Bh, NDB)
    out = jax.block_until_ready(out)

    ref = reference_forward(x, params, Bh, NDB)
    np.testing.assert_allclose(np.asarray(out), np.asarray(ref), atol=2e-2, rtol=2e-2)
    print("KERNEL_OK")
</pallas_src>

<mosaic_0001>
module attributes {stable_mosaic.version = 11 : i64} {
  func.func @dense_cr_kernel(%arg0: memref<2x16x16x128xf32, #tpu.memory_space<vmem>>, %arg1: memref<9x128x32xbf16, #tpu.memory_space<vmem>>, %arg2: memref<1x32xf32, #tpu.memory_space<vmem>>, %arg3: memref<1x32xf32, #tpu.memory_space<vmem>>, %arg4: memref<16x128xf32, #tpu.memory_space<vmem>>, %arg5: memref<1x128xf32, #tpu.memory_space<vmem>>, %arg6: memref<128x128xbf16, #tpu.memory_space<vmem>>, %arg7: memref<1x128xf32, #tpu.memory_space<vmem>>, %arg8: memref<1x128xf32, #tpu.memory_space<vmem>>, %arg9: memref<128x4xf32, #tpu.memory_space<vmem>>, %arg10: memref<1x4xf32, #tpu.memory_space<vmem>>, %arg11: memref<4x128xf32, #tpu.memory_space<vmem>>, %arg12: memref<1x128xf32, #tpu.memory_space<vmem>>, %arg13: memref<2x16x16x128xf32, #tpu.memory_space<vmem>>) attributes {dimension_semantics = [], scalar_prefetch = 0 : i64, scratch_operands = 0 : i64, tpu.core_type = #tpu.core_type<tc>} {
    %c0 = arith.constant 0 : index
    %c0_0 = arith.constant 0 : index
    %c0_1 = arith.constant 0 : index
    %c0_2 = arith.constant 0 : index
    %0 = vector.load %arg0[%c0, %c0_0, %c0_1, %c0_2] : memref<2x16x16x128xf32, #tpu.memory_space<vmem>>, vector<2x16x16x128xf32>
    %1 = vector.shape_cast %0 : vector<2x16x16x128xf32> to vector<512x128xf32>
    %cst = arith.constant 0.000000e+00 : f32
    %2 = vector.broadcast %cst : f32 to vector<2x1x16x128xf32>
    %cst_3 = arith.constant 0.000000e+00 : f32
    %3 = vector.broadcast %cst_3 : f32 to vector<2x18x1x128xf32>
    %4 = tpu.concatenate %2, %0, %2 in 1 : vector<2x1x16x128xf32>, vector<2x16x16x128xf32>, vector<2x1x16x128xf32> -> vector<2x18x16x128xf32>
    %5 = vector.extract_strided_slice %4 {offsets = [0, 0, 0, 0], sizes = [2, 18, 15, 128], strides = [1, 1, 1, 1]} : vector<2x18x16x128xf32> to vector<2x18x15x128xf32>
    %6 = tpu.concatenate %3, %5 in 2 : vector<2x18x1x128xf32>, vector<2x18x15x128xf32> -> vector<2x18x16x128xf32>
    %7 = vector.extract_strided_slice %4 {offsets = [0, 0, 1, 0], sizes = [2, 18, 15, 128], strides = [1, 1, 1, 1]} : vector<2x18x16x128xf32> to vector<2x18x15x128xf32>
    %8 = tpu.concatenate %7, %3 in 2 : vector<2x18x15x128xf32>, vector<2x18x1x128xf32> -> vector<2x18x16x128xf32>
    %cst_4 = arith.constant 0.000000e+00 : f32
    %9 = vector.broadcast %cst_4 : f32 to vector<512x32xf32>
    %10 = arith.truncf %6 : vector<2x18x16x128xf32> to vector<2x18x16x128xbf16>
    %11 = vector.extract_strided_slice %10 {offsets = [0, 0, 0, 0], sizes = [2, 16, 16, 128], strides = [1, 1, 1, 1]} : vector<2x18x16x128xbf16> to vector<2x16x16x128xbf16>
    %12 = vector.shape_cast %11 : vector<2x16x16x128xbf16> to vector<512x128xbf16>
    %c0_5 = arith.constant 0 : index
    %c0_6 = arith.constant 0 : index
    %c0_7 = arith.constant 0 : index
    %13 = vector.load %arg1[%c0_5, %c0_6, %c0_7] : memref<9x128x32xbf16, #tpu.memory_space<vmem>>, vector<1x128x32xbf16>
    %14 = vector.shape_cast %13 : vector<1x128x32xbf16> to vector<128x32xbf16>
    %cst_8 = arith.constant dense<0.000000e+00> : vector<512x32xf32>
    %15 = tpu.matmul %12, %14, %cst_8 {dimension_numbers = #tpu.dot_dimension_numbers<[1], [0], [0], [1], [0, 0, 1, 1], [], []>} : vector<512x128xbf16>, vector<128x32xbf16>, vector<512x32xf32> -> vector<512x32xf32>
    %16 = arith.addf %9, %15 : vector<512x32xf32>
    %17 = vector.extract_strided_slice %10 {offsets = [0, 1, 0, 0], sizes = [2, 16, 16, 128], strides = [1, 1, 1, 1]} : vector<2x18x16x128xbf16> to vector<2x16x16x128xbf16>
    %18 = vector.shape_cast %17 : vector<2x16x16x128xbf16> to vector<512x128xbf16>
    %c3 = arith.constant 3 : index
    %c0_9 = arith.constant 0 : index
    %c0_10 = arith.constant 0 : index
    %19 = vector.load %arg1[%c3, %c0_9, %c0_10] : memref<9x128x32xbf16, #tpu.memory_space<vmem>>, vector<1x128x32xbf16>
    %20 = vector.shape_cast %19 : vector<1x128x32xbf16> to vector<128x32xbf16>
    %cst_11 = arith.constant dense<0.000000e+00> : vector<512x32xf32>
    %21 = tpu.matmul %18, %20, %cst_11 {dimension_numbers = #tpu.dot_dimension_numbers<[1], [0], [0], [1], [0, 0, 1, 1], [], []>} : vector<512x128xbf16>, vector<128x32xbf16>, vector<512x32xf32> -> vector<512x32xf32>
    %22 = arith.addf %16, %21 : vector<512x32xf32>
    %23 = vector.extract_strided_slice %10 {offsets = [0, 2, 0, 0], sizes = [2, 16, 16, 128], strides = [1, 1, 1, 1]} : vector<2x18x16x128xbf16> to vector<2x16x16x128xbf16>
    %24 = vector.shape_cast %23 : vector<2x16x16x128xbf16> to vector<512x128xbf16>
    %c6 = arith.constant 6 : index
    %c0_12 = arith.constant 0 : index
    %c0_13 = arith.constant 0 : index
    %25 = vector.load %arg1[%c6, %c0_12, %c0_13] : memref<9x128x32xbf16, #tpu.memory_space<vmem>>, vector<1x128x32xbf16>
    %26 = vector.shape_cast %25 : vector<1x128x32xbf16> to vector<128x32xbf16>
    %cst_14 = arith.constant dense<0.000000e+00> : vector<512x32xf32>
    %27 = tpu.matmul %24, %26, %cst_14 {dimension_numbers = #tpu.dot_dimension_numbers<[1], [0], [0], [1], [0, 0, 1, 1], [], []>} : vector<512x128xbf16>, vector<128x32xbf16>, vector<512x32xf32> -> vector<512x32xf32>
    %28 = arith.addf %22, %27 : vector<512x32xf32>
    %29 = arith.truncf %4 : vector<2x18x16x128xf32> to vector<2x18x16x128xbf16>
    %30 = vector.extract_strided_slice %29 {offsets = [0, 0, 0, 0], sizes = [2, 16, 16, 128], strides = [1, 1, 1, 1]} : vector<2x18x16x128xbf16> to vector<2x16x16x128xbf16>
    %31 = vector.shape_cast %30 : vector<2x16x16x128xbf16> to vector<512x128xbf16>
    %c1 = arith.constant 1 : index
    %c0_15 = arith.constant 0 : index
    %c0_16 = arith.constant 0 : index
    %32 = vector.load %arg1[%c1, %c0_15, %c0_16] : memref<9x128x32xbf16, #tpu.memory_space<vmem>>, vector<1x128x32xbf16>
    %33 = vector.shape_cast %32 : vector<1x128x32xbf16> to vector<128x32xbf16>
    %cst_17 = arith.constant dense<0.000000e+00> : vector<512x32xf32>
    %34 = tpu.matmul %31, %33, %cst_17 {dimension_numbers = #tpu.dot_dimension_numbers<[1], [0], [0], [1], [0, 0, 1, 1], [], []>} : vector<512x128xbf16>, vector<128x32xbf16>, vector<512x32xf32> -> vector<512x32xf32>
    %35 = arith.addf %28, %34 : vector<512x32xf32>
    %36 = vector.extract_strided_slice %29 {offsets = [0, 1, 0, 0], sizes = [2, 16, 16, 128], strides = [1, 1, 1, 1]} : vector<2x18x16x128xbf16> to vector<2x16x16x128xbf16>
    %37 = vector.shape_cast %36 : vector<2x16x16x128xbf16> to vector<512x128xbf16>
    %c4 = arith.constant 4 : index
    %c0_18 = arith.constant 0 : index
    %c0_19 = arith.constant 0 : index
    %38 = vector.load %arg1[%c4, %c0_18, %c0_19] : memref<9x128x32xbf16, #tpu.memory_space<vmem>>, vector<1x128x32xbf16>
    %39 = vector.shape_cast %38 : vector<1x128x32xbf16> to vector<128x32xbf16>
    %cst_20 = arith.constant dense<0.000000e+00> : vector<512x32xf32>
    %40 = tpu.matmul %37, %39, %cst_20 {dimension_numbers = #tpu.dot_dimension_numbers<[1], [0], [0], [1], [0, 0, 1, 1], [], []>} : vector<512x128xbf16>, vector<128x32xbf16>, vector<512x32xf32> -> vector<512x32xf32>
    %41 = arith.addf %35, %40 : vector<512x32xf32>
    %42 = vector.extract_strided_slice %29 {offsets = [0, 2, 0, 0], sizes = [2, 16, 16, 128], strides = [1, 1, 1, 1]} : vector<2x18x16x128xbf16> to vector<2x16x16x128xbf16>
    %43 = vector.shape_cast %42 : vector<2x16x16x128xbf16> to vector<512x128xbf16>
    %c7 = arith.constant 7 : index
    %c0_21 = arith.constant 0 : index
    %c0_22 = arith.constant 0 : index
    %44 = vector.load %arg1[%c7, %c0_21, %c0_22] : memref<9x128x32xbf16, #tpu.memory_space<vmem>>, vector<1x128x32xbf16>
    %45 = vector.shape_cast %44 : vector<1x128x32xbf16> to vector<128x32xbf16>
    %cst_23 = arith.constant dense<0.000000e+00> : vector<512x32xf32>
    %46 = tpu.matmul %43, %45, %cst_23 {dimension_numbers = #tpu.dot_dimension_numbers<[1], [0], [0], [1], [0, 0, 1, 1], [], []>} : vector<512x128xbf16>, vector<128x32xbf16>, vector<512x32xf32> -> vector<512x32xf32>
    %47 = arith.addf %41, %46 : vector<512x32xf32>
    %48 = arith.truncf %8 : vector<2x18x16x128xf32> to vector<2x18x16x128xbf16>
    %49 = vector.extract_strided_slice %48 {offsets = [0, 0, 0, 0], sizes = [2, 16, 16, 128], strides = [1, 1, 1, 1]} : vector<2x18x16x128xbf16> to vector<2x16x16x128xbf16>
    %50 = vector.shape_cast %49 : vector<2x16x16x128xbf16> to vector<512x128xbf16>
    %c2 = arith.constant 2 : index
    %c0_24 = arith.constant 0 : index
    %c0_25 = arith.constant 0 : index
    %51 = vector.load %arg1[%c2, %c0_24, %c0_25] : memref<9x128x32xbf16, #tpu.memory_space<vmem>>, vector<1x128x32xbf16>
    %52 = vector.shape_cast %51 : vector<1x128x32xbf16> to vector<128x32xbf16>
    %cst_26 = arith.constant dense<0.000000e+00> : vector<512x32xf32>
    %53 = tpu.matmul %50, %52, %cst_26 {dimension_numbers = #tpu.dot_dimension_numbers<[1], [0], [0], [1], [0, 0, 1, 1], [], []>} : vector<512x128xbf16>, vector<128x32xbf16>, vector<512x32xf32> -> vector<512x32xf32>
    %54 = arith.addf %47, %53 : vector<512x32xf32>
    %55 = vector.extract_strided_slice %48 {offsets = [0, 1, 0, 0], sizes = [2, 16, 16, 128], strides = [1, 1, 1, 1]} : vector<2x18x16x128xbf16> to vector<2x16x16x128xbf16>
    %56 = vector.shape_cast %55 : vector<2x16x16x128xbf16> to vector<512x128xbf16>
    %c5 = arith.constant 5 : index
    %c0_27 = arith.constant 0 : index
    %c0_28 = arith.constant 0 : index
    %57 = vector.load %arg1[%c5, %c0_27, %c0_28] : memref<9x128x32xbf16, #tpu.memory_space<vmem>>, vector<1x128x32xbf16>
    %58 = vector.shape_cast %57 : vector<1x128x32xbf16> to vector<128x32xbf16>
    %cst_29 = arith.constant dense<0.000000e+00> : vector<512x32xf32>
    %59 = tpu.matmul %56, %58, %cst_29 {dimension_numbers = #tpu.dot_dimension_numbers<[1], [0], [0], [1], [0, 0, 1, 1], [], []>} : vector<512x128xbf16>, vector<128x32xbf16>, vector<512x32xf32> -> vector<512x32xf32>
    %60 = arith.addf %54, %59 : vector<512x32xf32>
    %61 = vector.extract_strided_slice %48 {offsets = [0, 2, 0, 0], sizes = [2, 16, 16, 128], strides = [1, 1, 1, 1]} : vector<2x18x16x128xbf16> to vector<2x16x16x128xbf16>
    %62 = vector.shape_cast %61 : vector<2x16x16x128xbf16> to vector<512x128xbf16>
    %c8 = arith.constant 8 : index
    %c0_30 = arith.constant 0 : index
    %c0_31 = arith.constant 0 : index
    %63 = vector.load %arg1[%c8, %c0_30, %c0_31] : memref<9x128x32xbf16, #tpu.memory_space<vmem>>, vector<1x128x32xbf16>
    %64 = vector.shape_cast %63 : vector<1x128x32xbf16> to vector<128x32xbf16>
    %cst_32 = arith.constant dense<0.000000e+00> : vector<512x32xf32>
    %65 = tpu.matmul %62, %64, %cst_32 {dimension_numbers = #tpu.dot_dimension_numbers<[1], [0], [0], [1], [0, 0, 1, 1], [], []>} : vector<512x128xbf16>, vector<128x32xbf16>, vector<512x32xf32> -> vector<512x32xf32>
    %66 = arith.addf %60, %65 : vector<512x32xf32>
    %c0_33 = arith.constant 0 : index
    %c0_34 = arith.constant 0 : index
    %67 = vector.load %arg2[%c0_33, %c0_34] : memref<1x32xf32, #tpu.memory_space<vmem>>, vector<1x32xf32>
    %c0_35 = arith.constant 0 : index
    %c0_36 = arith.constant 0 : index
    %68 = vector.load %arg3[%c0_35, %c0_36] : memref<1x32xf32, #tpu.memory_space<vmem>>, vector<1x32xf32>
    %cst_37 = arith.constant dense<0.000000e+00> : vector<32xf32>
    %69 = vector.multi_reduction <add>, %66, %cst_37 [0] : vector<512x32xf32> to vector<32xf32>
    %70 = vector.shape_cast %69 : vector<32xf32> to vector<1x32xf32>
    %cst_38 = arith.constant 5.120000e+02 : f32
    %71 = vector.broadcast %cst_38 : f32 to vector<1x32xf32>
    %72 = arith.divf %70, %71 : vector<1x32xf32>
    %73 = arith.mulf %66, %66 : vector<512x32xf32>
    %cst_39 = arith.constant dense<0.000000e+00> : vector<32xf32>
    %74 = vector.multi_reduction <add>, %73, %cst_39 [0] : vector<512x32xf32> to vector<32xf32>
    %75 = vector.shape_cast %74 : vector<32xf32> to vector<1x32xf32>
    %cst_40 = arith.constant 5.120000e+02 : f32
    %76 = vector.broadcast %cst_40 : f32 to vector<1x32xf32>
    %77 = arith.divf %75, %76 : vector<1x32xf32>
    %78 = arith.mulf %72, %72 : vector<1x32xf32>
    %79 = arith.subf %77, %78 : vector<1x32xf32>
    %80 = vector.broadcast %72 : vector<1x32xf32> to vector<512x32xf32>
    %81 = arith.subf %66, %80 : vector<512x32xf32>
    %cst_41 = arith.constant 9.99999974E-6 : f32
    %82 = vector.broadcast %cst_41 : f32 to vector<1x32xf32>
    %83 = arith.addf %79, %82 : vector<1x32xf32>
    %84 = math.rsqrt %83 : vector<1x32xf32>
    %85 = vector.broadcast %84 : vector<1x32xf32> to vector<512x32xf32>
    %86 = arith.mulf %81, %85 : vector<512x32xf32>
    %87 = vector.broadcast %67 : vector<1x32xf32> to vector<512x32xf32>
    %88 = arith.mulf %86, %87 : vector<512x32xf32>
    %89 = vector.broadcast %68 : vector<1x32xf32> to vector<512x32xf32>
    %90 = arith.addf %88, %89 : vector<512x32xf32>
    %91 = vector.extract_strided_slice %90 {offsets = [0, 0], sizes = [512, 16], strides = [1, 1]} : vector<512x32xf32> to vector<512x16xf32>
    %92 = vector.extract_strided_slice %90 {offsets = [0, 16], sizes = [512, 16], strides = [1, 1]} : vector<512x32xf32> to vector<512x16xf32>
    %93 = arith.addf %91, %92 : vector<512x16xf32>
    %cst_42 = arith.constant 0.000000e+00 : f32
    %94 = vector.broadcast %cst_42 : f32 to vector<512x16xf32>
    %95 = arith.cmpf oge, %93, %94 : vector<512x16xf32>
    %cst_43 = arith.constant 0.00999999977 : f32
    %96 = vector.broadcast %cst_43 : f32 to vector<512x16xf32>
    %97 = arith.mulf %96, %93 : vector<512x16xf32>
    %98 = arith.select %95, %93, %97 : vector<512x16xi1>, vector<512x16xf32>
    %c0_44 = arith.constant 0 : index
    %c0_45 = arith.constant 0 : index
    %99 = vector.load %arg4[%c0_44, %c0_45] : memref<16x128xf32, #tpu.memory_space<vmem>>, vector<16x128xf32>
    %cst_46 = arith.constant dense<0.000000e+00> : vector<512x128xf32>
    %100 = tpu.matmul %98, %99, %cst_46 {dimension_numbers = #tpu.dot_dimension_numbers<[1], [0], [0], [1], [0, 0, 1, 1], [], []>} : vector<512x16xf32>, vector<16x128xf32>, vector<512x128xf32> -> vector<512x128xf32>
    %c0_47 = arith.constant 0 : index
    %c0_48 = arith.constant 0 : index
    %101 = vector.load %arg5[%c0_47, %c0_48] : memref<1x128xf32, #tpu.memory_space<vmem>>, vector<1x128xf32>
    %102 = vector.broadcast %101 : vector<1x128xf32> to vector<512x128xf32>
    %103 = arith.addf %100, %102 : vector<512x128xf32>
    %104 = arith.negf %103 : vector<512x128xf32>
    %105 = math.exp %104 : vector<512x128xf32>
    %cst_49 = arith.constant 1.000000e+00 : f32
    %106 = vector.broadcast %cst_49 : f32 to vector<512x128xf32>
    %107 = arith.addf %106, %105 : vector<512x128xf32>
    %108 = arith.divf %106, %107 : vector<512x128xf32>
    %cst_50 = arith.constant dense<0xFF800000> : vector<512xf32>
    %109 = vector.multi_reduction <maximumf>, %1, %cst_50 [1] : vector<512x128xf32> to vector<512xf32>
    %110 = vector.shape_cast %109 : vector<512xf32> to vector<512x1xf32>
    %111 = vector.broadcast %110 : vector<512x1xf32> to vector<512x128xf32>
    %112 = arith.mulf %108, %111 : vector<512x128xf32>
    %113 = arith.mulf %112, %1 : vector<512x128xf32>
    %114 = arith.truncf %113 : vector<512x128xf32> to vector<512x128xbf16>
    %c0_51 = arith.constant 0 : index
    %c0_52 = arith.constant 0 : index
    %115 = vector.load %arg6[%c0_51, %c0_52] : memref<128x128xbf16, #tpu.memory_space<vmem>>, vector<128x128xbf16>
    %cst_53 = arith.constant dense<0.000000e+00> : vector<512x128xf32>
    %116 = tpu.matmul %114, %115, %cst_53 {dimension_numbers = #tpu.dot_dimension_numbers<[1], [0], [0], [1], [0, 0, 1, 1], [], []>} : vector<512x128xbf16>, vector<128x128xbf16>, vector<512x128xf32> -> vector<512x128xf32>
    %c0_54 = arith.constant 0 : index
    %c0_55 = arith.constant 0 : index
    %117 = vector.load %arg7[%c0_54, %c0_55] : memref<1x128xf32, #tpu.memory_space<vmem>>, vector<1x128xf32>
    %c0_56 = arith.constant 0 : index
    %c0_57 = arith.constant 0 : index
    %118 = vector.load %arg8[%c0_56, %c0_57] : memref<1x128xf32, #tpu.memory_space<vmem>>, vector<1x128xf32>
    %cst_58 = arith.constant dense<0.000000e+00> : vector<128xf32>
    %119 = vector.multi_reduction <add>, %116, %cst_58 [0] : vector<512x128xf32> to vector<128xf32>
    %120 = vector.shape_cast %119 : vector<128xf32> to vector<1x128xf32>
    %cst_59 = arith.constant 5.120000e+02 : f32
    %121 = vector.broadcast %cst_59 : f32 to vector<1x128xf32>
    %122 = arith.divf %120, %121 : vector<1x128xf32>
    %123 = arith.mulf %116, %116 : vector<512x128xf32>
    %cst_60 = arith.constant dense<0.000000e+00> : vector<128xf32>
    %124 = vector.multi_reduction <add>, %123, %cst_60 [0] : vector<512x128xf32> to vector<128xf32>
    %125 = vector.shape_cast %124 : vector<128xf32> to vector<1x128xf32>
    %cst_61 = arith.constant 5.120000e+02 : f32
    %126 = vector.broadcast %cst_61 : f32 to vector<1x128xf32>
    %127 = arith.divf %125, %126 : vector<1x128xf32>
    %128 = arith.mulf %122, %122 : vector<1x128xf32>
    %129 = arith.subf %127, %128 : vector<1x128xf32>
    %130 = vector.broadcast %122 : vector<1x128xf32> to vector<512x128xf32>
    %131 = arith.subf %116, %130 : vector<512x128xf32>
    %cst_62 = arith.constant 9.99999974E-6 : f32
    %132 = vector.broadcast %cst_62 : f32 to vector<1x128xf32>
    %133 = arith.addf %129, %132 : vector<1x128xf32>
    %134 = math.rsqrt %133 : vector<1x128xf32>
    %135 = vector.broadcast %134 : vector<1x128xf32> to vector<512x128xf32>
    %136 = arith.mulf %131, %135 : vector<512x128xf32>
    %137 = vector.broadcast %117 : vector<1x128xf32> to vector<512x128xf32>
    %138 = arith.mulf %136, %137 : vector<512x128xf32>
    %139 = vector.broadcast %118 : vector<1x128xf32> to vector<512x128xf32>
    %140 = arith.addf %138, %139 : vector<512x128xf32>
    %cst_63 = arith.constant 0.000000e+00 : f32
    %141 = vector.broadcast %cst_63 : f32 to vector<512x128xf32>
    %142 = arith.cmpf oge, %140, %141 : vector<512x128xf32>
    %cst_64 = arith.constant 0.00999999977 : f32
    %143 = vector.broadcast %cst_64 : f32 to vector<512x128xf32>
    %144 = arith.mulf %143, %140 : vector<512x128xf32>
    %145 = arith.select %142, %140, %144 : vector<512x128xi1>, vector<512x128xf32>
    %146 = vector.shape_cast %145 : vector<512x128xf32> to vector<2x256x128xf32>
    %cst_65 = arith.constant dense<0.000000e+00> : vector<2x128xf32>
    %147 = vector.multi_reduction <add>, %146, %cst_65 [1] : vector<2x256x128xf32> to vector<2x128xf32>
    %cst_66 = arith.constant 2.560000e+02 : f32
    %148 = vector.broadcast %cst_66 : f32 to vector<2x128xf32>
    %149 = arith.divf %147, %148 : vector<2x128xf32>
    %c0_67 = arith.constant 0 : index
    %c0_68 = arith.constant 0 : index
    %150 = vector.load %arg9[%c0_67, %c0_68] : memref<128x4xf32, #tpu.memory_space<vmem>>, vector<128x4xf32>
    %cst_69 = arith.constant dense<0.000000e+00> : vector<2x4xf32>
    %151 = tpu.matmul %149, %150, %cst_69 {dimension_numbers = #tpu.dot_dimension_numbers<[1], [0], [0], [1], [0, 0, 1, 1], [], []>} : vector<2x128xf32>, vector<128x4xf32>, vector<2x4xf32> -> vector<2x4xf32>
    %c0_70 = arith.constant 0 : index
    %c0_71 = arith.constant 0 : index
    %152 = vector.load %arg10[%c0_70, %c0_71] : memref<1x4xf32, #tpu.memory_space<vmem>>, vector<1x4xf32>
    %153 = vector.broadcast %152 : vector<1x4xf32> to vector<2x4xf32>
    %154 = arith.addf %151, %153 : vector<2x4xf32>
    %cst_72 = arith.constant 0.000000e+00 : f32
    %155 = vector.broadcast %cst_72 : f32 to vector<2x4xf32>
    %156 = arith.maximumf %154, %155 : vector<2x4xf32>
    %c0_73 = arith.constant 0 : index
    %c0_74 = arith.constant 0 : index
    %157 = vector.load %arg11[%c0_73, %c0_74] : memref<4x128xf32, #tpu.memory_space<vmem>>, vector<4x128xf32>
    %cst_75 = arith.constant dense<0.000000e+00> : vector<2x128xf32>
    %158 = tpu.matmul %156, %157, %cst_75 {dimension_numbers = #tpu.dot_dimension_numbers<[1], [0], [0], [1], [0, 0, 1, 1], [], []>} : vector<2x4xf32>, vector<4x128xf32>, vector<2x128xf32> -> vector<2x128xf32>
    %c0_76 = arith.constant 0 : index
    %c0_77 = arith.constant 0 : index
    %159 = vector.load %arg12[%c0_76, %c0_77] : memref<1x128xf32, #tpu.memory_space<vmem>>, vector<1x128xf32>
    %160 = vector.broadcast %159 : vector<1x128xf32> to vector<2x128xf32>
    %161 = arith.addf %158, %160 : vector<2x128xf32>
    %162 = arith.negf %161 : vector<2x128xf32>
    %163 = math.exp %162 : vector<2x128xf32>
    %cst_78 = arith.constant 1.000000e+00 : f32
    %164 = vector.broadcast %cst_78 : f32 to vector<2x128xf32>
    %165 = arith.addf %164, %163 : vector<2x128xf32>
    %166 = arith.divf %164, %165 : vector<2x128xf32>
    %167 = vector.shape_cast %166 : vector<2x128xf32> to vector<2x1x128xf32>
    %168 = vector.broadcast %167 : vector<2x1x128xf32> to vector<2x256x128xf32>
    %169 = arith.mulf %146, %168 : vector<2x256x128xf32>
    %170 = vector.shape_cast %0 : vector<2x16x16x128xf32> to vector<2x256x128xf32>
    %171 = arith.addf %169, %170 : vector<2x256x128xf32>
    %172 = vector.shape_cast %171 : vector<2x256x128xf32> to vector<2x16x16x128xf32>
    %c0_79 = arith.constant 0 : index
    %c0_80 = arith.constant 0 : index
    %c0_81 = arith.constant 0 : index
    %c0_82 = arith.constant 0 : index
    %173 = vector.load %arg13[%c0_79, %c0_80, %c0_81, %c0_82] : memref<2x16x16x128xf32, #tpu.memory_space<vmem>>, vector<2x16x16x128xf32>
    tpu.vector_store %arg13[%c0_79, %c0_80, %c0_81, %c0_82], %172 {strides = array<i32>} : memref<2x16x16x128xf32, #tpu.memory_space<vmem>>, vector<2x16x16x128xf32>,
    return
  }
}

</mosaic_0001>

<bundles_post_ra>
// kernel: tpu_custom_call.1
= control target key start
LH: loop header
LB: loop body
LE: loop exit
PB: predicated region body
PF: predicated region fallthrough
CT: control target
= control target key end

     0   :  { %vm175_vm0 = vcmask 1040384   ;;  %vm11296_vm2 = vmmov 1   ;;  %s18043_s0 = inlined_call_operand.vmem [shape: f32[2,16,16,128], index: 0, kind: input, shape index: {}]   ;;  %s18044_s1 = inlined_call_operand.vmem [shape: bf16[9,128,32], index: 1, kind: input, shape index: {}]   ;;  %s18045_s2 = inlined_call_operand.vmem [shape: f32[1,32], index: 2, kind: input, shape index: {}]   ;;  %s18046_s3 = inlined_call_operand.vmem [shape: f32[1,32], index: 3, kind: input, shape index: {}]   ;;  %s18047_s4 = inlined_call_operand.vmem [shape: f32[16,128], index: 4, kind: input, shape index: {}]   ;;  %s18048_s5 = inlined_call_operand.vmem [shape: f32[1,128], index: 5, kind: input, shape index: {}]   ;;  %s18049_s6 = inlined_call_operand.vmem [shape: bf16[128,128], index: 6, kind: input, shape index: {}]   ;;  %s18050_s7 = inlined_call_operand.vmem [shape: f32[1,128], index: 7, kind: input, shape index: {}]   ;;  %s18051_s8 = inlined_call_operand.vmem [shape: f32[1,128], index: 8, kind: input, shape index: {}]   ;;  %s18052_s9 = inlined_call_operand.vmem [shape: f32[128,4], index: 9, kind: input, shape index: {}]   ;;  %s18053_s10 = inlined_call_operand.vmem [shape: f32[1,4], index: 10, kind: input, shape index: {}]   ;;  %s18054_s11 = inlined_call_operand.vmem [shape: f32[4,128], index: 11, kind: input, shape index: {}]   ;;  %s18055_s12 = inlined_call_operand.vmem [shape: f32[1,128], index: 12, kind: input, shape index: {}]   ;;  %s18056_s13 = inlined_call_operand.hbm [shape: f32[2,16,16,128], index: 13, kind: output, shape index: {}]  }
   0x1   :  { %v10682_v0 = vld [vmem:[%s18044_s1 + $0xf8] sm:$0xff]   ;;  %v10683_v1 = vld [vmem:[%s18044_s1 + $0xf0] sm:$0xff]   ;;  %v10684_v2 = vld [vmem:[%s18044_s1 + $0xe8] sm:$0xff]  }
   0x2   :  { %9717 = vmatprep.subr.bf16.mxu0 %v10682_v0  ;;  %10657 = vmatprep.subr.bf16.mxu1 %v10682_v0  ;;  %v10685_v3 = vld [vmem:[%s18044_s1 + $0xe0] sm:$0xff]   ;;  %v47_v5 = vld [vmem:[%s18043_s0 + $0x8] sm:$0xff]  ;;  %vm8238_vm1 = vmneg %vm175_vm0 }
   0x3   :  { %9718 = vmatpush3.bf16.msra.mxu0 %v10682_v0  ;;  %10665 = vmatpush3.bf16.msra.mxu1 %v10682_v0  ;;  %v46_v4 = vld [vmem:[%s18043_s0] sm:$0xff]  ;;  %v179_v7 = vrot.slane %v47_v5, 7  ;;  %v83_v9 = vld [vmem:[%s18043_s0 + $0x128] sm:$0xff]  ;;  %vm11402_vm3 = vmpackc.low %vm11296_vm2, %vm8238_vm1 }
   0x4   :  { %9719 = vmatprep.subr.bf16.mxu0 %v10683_v1  ;;  %10658 = vmatprep.subr.bf16.mxu1 %v10683_v1  ;;  %v178_v6 = vrot.slane %v46_v4, 7  ;;  %v82_v8 = vld [vmem:[%s18043_s0 + $0x120] sm:$0xff]  ;;  %v233_v11 = vrot.slane %v83_v9, 7  ;;  %v10686_v14 = vld [vmem:[%s18044_s1 + $0xd8] sm:$0xff]   ;;  %v10687_v18 = vld [vmem:[%s18044_s1 + $0xd0] sm:$0xff]  }
   0x5   :  { %v232_v10 = vrot.slane %v82_v8, 7  ;;  %v10688_v19 = vld [vmem:[%s18044_s1 + $0xc8] sm:$0xff]   ;;  %v48_v20 = vld [vmem:[%s18043_s0 + $0x10] sm:$0xff]  ;;  %v49_v21 = vld [vmem:[%s18043_s0 + $0x18] sm:$0xff] }
   0x6   :  { %v180_v12 = vsel %vm175_vm0, %v178_v6, %v179_v7  ;;  %v84_v22 = vld [vmem:[%s18043_s0 + $0x130] sm:$0xff]  ;;  %v85_v23 = vld [vmem:[%s18043_s0 + $0x138] sm:$0xff]  ;;  %v50_v24 = vld [vmem:[%s18043_s0 + $0x20] sm:$0xff]  ;;  %v181_v26 = vrot.slane %v48_v20, 7  ;;  %v182_v27 = vrot.slane %v49_v21, 7 }
   0x7   :  { %9720 = vmatpush3.bf16.msra.mxu0 %v10683_v1  ;;  %10666 = vmatpush3.bf16.msra.mxu1 %v10683_v1  ;;  %v11409_v15 = vpack.c.bf16 %v180_v12, %v178_v6  ;;  %v234_v16 = vsel %vm175_vm0, %v232_v10, %v233_v11  ;;  %v51_v25 = vld [vmem:[%s18043_s0 + $0x28] sm:$0xff]  ;;  %v86_v28 = vld [vmem:[%s18043_s0 + $0x140] sm:$0xff]  ;;  %v235_v30 = vrot.slane %v84_v22, 7  ;;  %v236_v31 = vrot.slane %v85_v23, 7  ;;  %v52_v37 = vld [vmem:[%s18043_s0 + $0x30] sm:$0xff] }
   0x8   :  { %9721 = vmatprep.subr.bf16.mxu0 %v10684_v2  ;;  %10659 = vmatprep.subr.bf16.mxu1 %v10684_v2  ;;  %v11412_v17 = vpack.c.bf16 %v234_v16, %v232_v10  ;;  %v87_v29 = vld [vmem:[%s18043_s0 + $0x148] sm:$0xff]  ;;  %v10689_v32 = vld [vmem:[%s18044_s1 + $0xc0] sm:$0xff]   ;;  %v184_v33 = vrot.slane %v50_v24, 7  ;;  %v185_v34 = vrot.slane %v51_v25, 7  ;;  %v238_v35 = vrot.slane %v86_v28, 7  ;;  %v10690_v39 = vld [vmem:[%s18044_s1 + $0x1b8] sm:$0xff]  }
   0x9   :  { %9733 = vmatprep.mubr.msk.bf16.mxu0 %vm11402_vm3, %v11409_v15  ;;  %v239_v36 = vrot.slane %v87_v29, 7  ;;  %v183_v38 = vsel %vm175_vm0, %v181_v26, %v182_v27  ;;  %v11463_v40 = vld [vmem:[%s18043_s0 + $0x38] sm:$0xff]  ;;  %v237_v41 = vsel %vm175_vm0, %v235_v30, %v236_v31  ;;  %v88_v42 = vld [vmem:[%s18043_s0 + $0x150] sm:$0xff]  ;;  %v54_v46 = vld [vmem:[%s18043_s0 + $0x40] sm:$0xff]  ;;  %v187_v50 = vrot.slane %v52_v37, 7 }
   0xa   :  { %9769 = vmatprep.mubr.msk.bf16.mxu1 %vm11402_vm3, %v11412_v17  ;;  %v89_v43 = vld [vmem:[%s18043_s0 + $0x158] sm:$0xff]  ;;  %v186_v44 = vsel %vm175_vm0, %v184_v33, %v185_v34  ;;  %v11482_v47 = vld [vmem:[%s18043_s0 + $0x48] sm:$0xff]  ;;  %v11484_v48 = vpack.c.bf16 %v183_v38, %v181_v26  ;;  %v90_v51 = vld [vmem:[%s18043_s0 + $0x160] sm:$0xff]  ;;  %v11493_v53 = vpack.c.bf16 %v237_v41, %v235_v30  ;;  %v188_v54 = vrot.slane %v11463_v40, 7 }
   0xb   :  { %9722 = vmatpush3.bf16.msra.mxu0 %v10684_v2  ;;  %10667 = vmatpush3.bf16.msra.mxu1 %v10684_v2  ;;  %v10692_v45 = vld [vmem:[%s18044_s1 + $0x38] sm:$0xff]   ;;  %v240_v49 = vsel %vm175_vm0, %v238_v35, %v239_v36  ;;  %v91_v52 = vld [vmem:[%s18043_s0 + $0x168] sm:$0xff]  ;;  %v241_v55 = vrot.slane %v88_v42, 7  ;;  %v242_v56 = vrot.slane %v89_v43, 7  ;;  %v10691_v57 = vld [vmem:[%s18044_s1 + $0x1b0] sm:$0xff]   ;;  %v11499_v58 = vpack.c.bf16 %v186_v44, %v184_v33 }
   0xc   :  { %9723 = vmatprep.subr.bf16.mxu0 %v10685_v3  ;;  %10660 = vmatprep.subr.bf16.mxu1 %v10685_v3  ;;  %v190_v59 = vrot.slane %v54_v46, 7  ;;  %v191_v60 = vrot.slane %v11482_v47, 7  ;;  %v11502_v61 = vpack.c.bf16 %v240_v49, %v238_v35  ;;  %v244_v62 = vrot.slane %v90_v51, 7  ;;  %v11507_v0 = vld [vmem:[%s18043_s0 + $0x50] sm:$0xff]  ;;  %v11512_v1 = vld [vmem:[%s18043_s0 + $0x58] sm:$0xff]  ;;  %v10693_v6 = vld [vmem:[%s18044_s1 + $0x1a8] sm:$0xff]  }
   0xd   :  { %v245_v63 = vrot.slane %v91_v52, 7  ;;  %v11517_v2 = vld [vmem:[%s18043_s0 + $0x170] sm:$0xff]  ;;  %v189_v5 = vsel %vm175_vm0, %v187_v50, %v188_v54  ;;  %v11540_v7 = vld [vmem:[%s18043_s0 + $0x60] sm:$0xff]  ;;  %v11545_v8 = vld [vmem:[%s18043_s0 + $0x68] sm:$0xff]  ;;  %v243_v10 = vsel %vm175_vm0, %v241_v55, %v242_v56  ;;  %v193_v21 = vrot.slane %v11507_v0, 7 }
   0xe   :  { %v10694_v4 = vld [vmem:[%s18044_s1 + $0x30] sm:$0xff]   ;;  %v11550_v9 = vld [vmem:[%s18043_s0 + $0x180] sm:$0xff]  ;;  %v192_v11 = vsel %vm175_vm0, %v190_v59, %v191_v60  ;;  %v95_v12 = vld [vmem:[%s18043_s0 + $0x188] sm:$0xff]  ;;  %v11583_v23 = vpack.c.bf16 %v189_v5, %v187_v50  ;;  %v194_v24 = vrot.slane %v11512_v1, 7  ;;  %v11591_v26 = vpack.c.bf16 %v243_v10, %v241_v55 }
   0xf   :  { %9724 = vmatpush3.bf16.msra.mxu0 %v10685_v3  ;;  %10668 = vmatpush3.bf16.msra.mxu1 %v10685_v3  ;;  %v11522_v3 = vld [vmem:[%s18043_s0 + $0x178] sm:$0xff]  ;;  %v246_v20 = vsel %vm175_vm0, %v244_v62, %v245_v63  ;;  %v11581_v22 = vld [vmem:[%s18043_s0 + $0x190] sm:$0xff]  ;;  %v11593_v27 = vpack.c.bf16 %v192_v11, %v190_v59  ;;  %v247_v28 = vrot.slane %v11517_v2, 7  ;;  %v10696_v30 = vld [vmem:[%s18044_s1 + $0x28] sm:$0xff]   ;;  %v196_v33 = vrot.slane %v11540_v7, 7 }
  0x10   :  { %9725 = vmatprep.subr.bf16.mxu0 %v10686_v14  ;;  %10661 = vmatprep.subr.bf16.mxu1 %v10686_v14  ;;  %v11568_v16 = vld [vmem:[%s18043_s0 + $0x78] sm:$0xff]  ;;  %v248_v29 = vrot.slane %v11522_v3, 7  ;;  %v11603_v31 = vld [vmem:[%s18043_s0 + $0x80] sm:$0xff]  ;;  %v197_v34 = vrot.slane %v11545_v8, 7  ;;  %v250_v35 = vrot.slane %v11550_v9, 7  ;;  %v11616_v37 = vld [vmem:[%s18043_s0 + $0x88] sm:$0xff]  ;;  %v195_v54 = vsel %vm175_vm0, %v193_v21, %v194_v24 }
  0x11   :  { %18256 = vst [vmem:[#allocation5_spill] sm:$0xff] %v11568_v16  ;;  %v11589_v25 = vld [vmem:[%s18043_s0 + $0x198] sm:$0xff]  ;;  %18257 = vst [vmem:[#allocation6_spill] sm:$0xff] %v11603_v31  ;;  %v10695_v36 = vld [vmem:[%s18044_s1 + $0x1a0] sm:$0xff]   ;;  %v251_v41 = vrot.slane %v95_v12, 7  ;;  %v200_v43 = vrot.slane %v11568_v16, 7  ;;  %v11693_v9 = vpack.c.bf16 %v195_v54, %v193_v21 }
  0x12   :  { %18258 = vst [vmem:[#allocation7_spill] sm:$0xff] %v11616_v37  ;;  %v11621_v38 = vld [vmem:[%s18043_s0 + $0x1a0] sm:$0xff]  ;;  %v11633_v44 = vld [vmem:[%s18043_s0 + $0x90] sm:$0xff]  ;;  %v253_v49 = vrot.slane %v11581_v22, 7  ;;  %v254_v50 = vrot.slane %v11589_v25, 7  ;;  %v11650_v51 = vld [vmem:[%s18043_s0 + $0x1b8] sm:$0xff] }
  0x13   :  { %9726 = vmatpush3.bf16.msra.mxu0 %v10686_v14  ;;  %10669 = vmatpush3.bf16.msra.mxu1 %v10686_v14  ;;  %v11563_v14 = vld [vmem:[%s18043_s0 + $0x70] sm:$0xff]  ;;  %v10697_v52 = vld [vmem:[%s18044_s1 + $0x20] sm:$0xff]   ;;  %v202_v55 = vrot.slane %v11603_v31, 7  ;;  %v203_v59 = vrot.slane %v11616_v37, 7  ;;  %v11679_v60 = vld [vmem:[%s18043_s0 + $0xa8] sm:$0xff]  ;;  %v252_v63 = vsel %vm175_vm0, %v250_v35, %v251_v41  ;;  %v256_v2 = vrot.slane %v11621_v38, 7 }
  0x14   :  { %9727 = vmatprep.subr.bf16.mxu0 %v10687_v18  ;;  %10662 = vmatprep.subr.bf16.mxu1 %v10687_v18  ;;  %v199_v42 = vrot.slane %v11563_v14, 7  ;;  %v11643_v46 = vld [vmem:[%s18043_s0 + $0x1b0] sm:$0xff]  ;;  %v11666_v56 = vld [vmem:[%s18043_s0 + $0xa0] sm:$0xff]  ;;  %v11701_v12 = vld [vmem:[%s18043_s0 + $0x1c8] sm:$0xff]  ;;  %v11733_v54 = vpack.c.bf16 %v252_v63, %v250_v35  ;;  %v255_v63 = vsel %vm175_vm0, %v253_v49, %v254_v50  ;;  %v18269_v37 = vrot.slane %v11679_v60, 7 }
  0x15   :  { %v11691_v5 = vld [vmem:[%s18043_s0 + $0x1c0] sm:$0xff]  ;;  %v11711_v21 = vld [vmem:[%s18043_s0 + $0xb8] sm:$0xff]  ;;  %v10700_v11 = vld [vmem:[%s18044_s1 + $0x10] sm:$0xff]   ;;  %v18270_v31 = vrot.slane %v11666_v56, 7 }
  0x16   :  { %v11752_v35 = vld [vmem:[%s18043_s0 + $0xc8] sm:$0xff]  ;;  %v11802_v50 = vld [vmem:[%s18043_s0 + $0xd8] sm:$0xff]  ;;  %v18271_v16 = vrot.slane %v11691_v5, 7 }
  0x17   :  { %9728 = vmatpush3.bf16.msra.mxu0 %v10687_v18  ;;  %10670 = vmatpush3.bf16.msra.mxu1 %v10687_v18  ;;  %v18057_v18 = vmov 0.0   ;;  %18260 = vst [vmem:[#allocation9_spill] sm:$0xff] %v11752_v35  ;;  %18262 = vst [vmem:[#allocation11_spill] sm:$0xff] %v11802_v50  ;;  %v10702_v10 = vld [vmem:[%s18044_s1 + $0x8] sm:$0xff]   ;;  %v218_v38 = vrot.slane %v11802_v50, 7 }
  0x18   :  { %9729 = vmatprep.subr.bf16.mxu0 %v10688_v19  ;;  %10663 = vmatprep.subr.bf16.mxu1 %v10688_v19 }
  0x1b   :  { %9730 = vmatpush3.bf16.msra.mxu0 %v10688_v19  ;;  %10671 = vmatpush3.bf16.msra.mxu1 %v10688_v19  ;;  %v11571_v19 = vrot.slane %v18057_v18, 7  ;;  %v10701_v18 = vld [vmem:[%s18044_s1 + $0x190] sm:$0xff]  }
  0x1c   :  { %9731 = vmatprep.subr.bf16.mxu0 %v10689_v32  ;;  %10664 = vmatprep.subr.bf16.mxu1 %v10689_v32 }
  0x1f   :  { %9732 = vmatpush3.bf16.msra.mxu0 %v10689_v32  ;;  %10672 = vmatpush3.bf16.msra.mxu1 %v10689_v32  ;;  %v11605_v32 = vpack.c.bf16 %v246_v20, %v244_v62  ;;  %v198_v62 = vsel %vm175_vm0, %v196_v33, %v197_v34  ;;  %v11706_v20 = vld [vmem:[%s18043_s0 + $0xb0] sm:$0xff] }
  0x20   :  { %9877 = vmatprep.subr.bf16.mxu0 %v10690_v39  ;;  %9797 = vmatprep.subr.bf16.mxu1 %v10692_v45  ;;  %v11721_v34 = vld [vmem:[%s18043_s0 + $0x1d0] sm:$0xff]  ;;  %v11731_v41 = vpack.c.bf16 %v198_v62, %v196_v33  ;;  %v11747_v33 = vld [vmem:[%s18043_s0 + $0xc0] sm:$0xff] }
  0x21   :  { %v11758_v62 = vld [vmem:[%s18043_s0 + $0x1e0] sm:$0xff] }
  0x22   :  { %9734 = vmatmul.mubr.msk.bf16.vlgmr.msra.gmra.mxu0 %vm11402_vm3, %v11484_v48  ;;  %9770 = vmatmul.mubr.msk.bf16.vlgmr.msra.gmra.mxu1 %vm11402_vm3, %v11493_v53 }
  0x23   :  { %9878 = vmatpush3.bf16.msra.mxu0 %v10690_v39  ;;  %9737 = vmatprep.mubr.msk.bf16.mxu0 %vm11402_vm3, %v11499_v58  ;;  %v11626_v39 = vld [vmem:[%s18043_s0 + $0x1a8] sm:$0xff] }
  0x24   :  { %9773 = vmatprep.mubr.msk.bf16.mxu1 %vm11402_vm3, %v11502_v61  ;;  %9879 = vmatprep.subr.bf16.mxu0 %v10691_v57  ;;  %v257_v3 = vrot.slane %v11626_v39, 7  ;;  %v11726_v39 = vld [vmem:[%s18043_s0 + $0x1d8] sm:$0xff] }
  0x25   :  { %9798 = vmatpush3.bf16.msra.mxu1 %v10692_v45  ;;  %v11638_v45 = vld [vmem:[%s18043_s0 + $0x98] sm:$0xff] }
  0x26   :  { %9799 = vmatprep.subr.bf16.mxu1 %v10694_v4  ;;  %18259 = vst [vmem:[#allocation8_spill] sm:$0xff] %v11638_v45  ;;  %v258_v25 = vsel %vm175_vm0, %v256_v2, %v257_v3  ;;  %v10704_v3 = vld [vmem:[%s18044_s1 + $0x188] sm:$0xff]  }
  0x27   :  { %9880 = vmatpush3.bf16.msra.mxu0 %v10691_v57  ;;  %v249_v57 = vsel %vm175_vm0, %v247_v28, %v248_v29  ;;  %v263_v29 = vrot.slane %v11701_v12, 7  ;;  %v201_v12 = vsel %vm175_vm0, %v199_v42, %v200_v43  ;;  %v11819_v43 = vpack.c.bf16 %v255_v63, %v253_v49 }
  0x28   :  { %9881 = vmatprep.subr.bf16.mxu0 %v10693_v6  ;;  %v11713_v24 = vpack.c.bf16 %v249_v57, %v247_v28  ;;  %v10699_v28 = vld [vmem:[%s18044_s1 + $0x18] sm:$0xff]   ;;  %v204_v57 = vsel %vm175_vm0, %v202_v55, %v203_v59  ;;  %v11808_v59 = vld [vmem:[%s18043_s0 + $0x1f0] sm:$0xff]  ;;  %v11836_v22 = vpack.c.bf16 %v258_v25, %v256_v2  ;;  %v10703_v2 = vld [vmem:[%s18044_s1] sm:$0xff]   ;;  %v18266_v25 = vrot.slane %v11633_v44, 7 }
  0x29   :  { %9800 = vmatpush3.bf16.msra.mxu1 %v10694_v4  ;;  %v10698_v4 = vld [vmem:[%s18044_s1 + $0x198] sm:$0xff]  }
  0x2a   :  { %9738 = vmatmul.mubr.msk.bf16.gmra.mxu0 %vm11402_vm3, %v11583_v23  ;;  %9774 = vmatmul.mubr.msk.bf16.gmra.mxu1 %vm11402_vm3, %v11591_v26 }
  0x2b   :  { %9741 = vmatprep.mubr.msk.bf16.mxu0 %vm11402_vm3, %v11593_v27  ;;  %9777 = vmatprep.mubr.msk.bf16.mxu1 %vm11402_vm3, %v11605_v32 }
  0x2c   :  { %9882 = vmatpush3.bf16.msra.mxu0 %v10693_v6  ;;  %9801 = vmatprep.subr.bf16.mxu1 %v10696_v30  ;;  %v11825_v6 = vld [vmem:[%s18043_s0 + $0x1f8] sm:$0xff] }
  0x2d   :  { %9883 = vmatprep.subr.bf16.mxu0 %v10695_v36  ;;  %9802 = vmatpush3.bf16.msra.mxu1 %v10696_v30  ;;  %v215_v30 = vrot.slane %v11752_v35, 7 }
  0x2e   :  { %9803 = vmatprep.subr.bf16.mxu1 %v10697_v52 }
  0x30   :  { %9884 = vmatpush3.bf16.msra.mxu0 %v10695_v36  ;;  %v11790_v36 = vld [vmem:[%s18043_s0 + $0xd0] sm:$0xff] }
  0x31   :  { %9804 = vmatpush3.bf16.msra.mxu1 %v10697_v52  ;;  %9885 = vmatprep.subr.bf16.mxu0 %v10698_v4  ;;  %v11770_v52 = vld [vmem:[%s18043_s0 + $0x1e8] sm:$0xff]  ;;  %18261 = vst [vmem:[#allocation10_spill] sm:$0xff] %v11790_v36  ;;  %v217_v63 = vrot.slane %v11790_v36, 7  ;;  %v272_v36 = vrot.slane %v11825_v6, 7  ;;  %v11894_v6 = vld [vmem:[%s18044_s1 + $0x138] sm:$0xff]  }
  0x32   :  { %9742 = vmatmul.mubr.msk.bf16.gmra.mxu0 %vm11402_vm3, %v11693_v9  ;;  %9778 = vmatmul.mubr.msk.bf16.gmra.mxu1 %vm11402_vm3, %v11713_v24  ;;  %v269_v49 = vrot.slane %v11770_v52, 7  ;;  %v18267_v52 = vrot.slane %v11650_v51, 7 }
  0x33   :  { %9745 = vmatprep.mubr.msk.bf16.mxu0 %vm11402_vm3, %v11731_v41  ;;  %9781 = vmatprep.mubr.msk.bf16.mxu1 %vm11402_vm3, %v11733_v54 }
  0x34   :  { %9886 = vmatpush3.bf16.msra.mxu0 %v10698_v4  ;;  %9805 = vmatprep.subr.bf16.mxu1 %v10699_v28  ;;  %v11815_v4 = vpack.c.bf16 %v201_v12, %v199_v42  ;;  %v11832_v42 = vpack.c.bf16 %v204_v57, %v202_v55  ;;  %v11848_v12 = vld [vmem:[%s18043_s0 + $0xe8] sm:$0xff]  ;;  %v10705_v55 = vld [vmem:[%s18044_s1 + $0x180] sm:$0xff]  }
  0x35   :  { %9806 = vmatpush3.bf16.msra.mxu1 %v10699_v28  ;;  %9887 = vmatprep.subr.bf16.mxu0 %v10701_v18  ;;  %v268_v28 = vrot.slane %v11758_v62, 7  ;;  %v11842_v62 = vld [vmem:[%s18043_s0 + $0xe0] sm:$0xff]  ;;  %18264 = vst [vmem:[#allocation13_spill] sm:$0xff] %v11848_v12  ;;  %v221_v51 = vrot.slane %v11848_v12, 7  ;;  %v18276_v12 = vrot.slane %v11691_v5, 7  ;;  %v18277_v5 = vrot.slane %v11711_v21, 7 }
  0x36   :  { %9807 = vmatprep.subr.bf16.mxu1 %v10700_v11  ;;  %18263 = vst [vmem:[#allocation12_spill] sm:$0xff] %v11842_v62  ;;  %v220_v35 = vrot.slane %v11842_v62, 7 }
  0x38   :  { %9888 = vmatpush3.bf16.msra.mxu0 %v10701_v18  ;;  %v271_v18 = vrot.slane %v11808_v59, 7  ;;  %v18268_v59 = vrot.slane %v11643_v46, 7 }
  0x39   :  { %9808 = vmatpush3.bf16.msra.mxu1 %v10700_v11  ;;  %9889 = vmatprep.subr.bf16.mxu0 %v10704_v3  ;;  %v18265_v11 = vrot.slane %v11638_v45, 7  ;;  %v210_v45 = vsel %vm175_vm0, %v18270_v31, %v18269_v37  ;;  %v11904_v31 = vld [vmem:[%s18043_s0 + $0xf8] sm:$0xff] }
  0x3a   :  { %9746 = vmatmul.mubr.msk.bf16.gmra.mxu0 %vm11402_vm3, %v11815_v4  ;;  %9782 = vmatmul.mubr.msk.bf16.gmra.mxu1 %vm11402_vm3, %v11819_v43  ;;  %v261_v50 = vsel %vm175_vm0, %v18268_v59, %v18267_v52  ;;  %18272 = vst [vmem:[#allocation14_spill] sm:$0xff] %v11904_v31  ;;  %v18275_v52 = vrot.slane %v11666_v56, 7 }
  0x3b   :  { %9749 = vmatprep.mubr.msk.bf16.mxu0 %vm11402_vm3, %v11832_v42  ;;  %9785 = vmatprep.mubr.msk.bf16.mxu1 %vm11402_vm3, %v11836_v22  ;;  %v207_v57 = vsel %vm175_vm0, %v18266_v25, %v18265_v11  ;;  %v264_v11 = vsel %vm175_vm0, %v18271_v16, %v263_v29  ;;  %v11899_v25 = vld [vmem:[%s18043_s0 + $0xf0] sm:$0xff]  ;;  %v18273_v16 = vrot.slane %v11633_v44, 7  ;;  %v18274_v29 = vmov %v18268_v59 }
  0x3c   :  { %9809 = vmatprep.subr.bf16.mxu1 %v10702_v10  ;;  %9890 = vmatpush3.bf16.msra.mxu0 %v10704_v3  ;;  %v11912_v3 = vpack.c.bf16 %v261_v50, %v18274_v29  ;;  %v11919_v59 = vpack.c.bf16 %v210_v45, %v18275_v52  ;;  %v11923_v62 = vpack.c.bf16 %v264_v11, %v18276_v12  ;;  %v223_v46 = vrot.slane %v11899_v25, 7  ;;  %v11957_v52 = vld [vmem:[%s18043_s0 + $0x100] sm:$0xff] }
  0x3d   :  { %9810 = vmatpush3.bf16.msra.mxu1 %v10702_v10  ;;  %9891 = vmatprep.subr.bf16.mxu0 %v10705_v55  ;;  %v11908_v37 = vpack.c.bf16 %v207_v57, %v18273_v16  ;;  %v10706_v10 = vld [vmem:[%s18044_s1 + $0x78] sm:$0xff]   ;;  %v224_v45 = vrot.slane %v11904_v31, 7  ;;  %v18278_v50 = vrot.slane %v11706_v20, 7  ;;  %v18281_v11 = vrot.slane %v11747_v33, 7 }
  0x3e   :  { %9811 = vmatprep.subr.bf16.mxu1 %v10703_v2  ;;  %v270_v29 = vsel %vm175_vm0, %v268_v28, %v269_v49 }
  0x3f   :  { %v213_v12 = vsel %vm175_vm0, %v18278_v50, %v18277_v5  ;;  %v216_v16 = vsel %vm175_vm0, %v18281_v11, %v215_v30  ;;  %v18282_v5 = vmov %v18278_v50  ;;  %v18284_v49 = vmov %v18281_v11 }
  0x40   :  { %9892 = vmatpush3.bf16.msra.mxu0 %v10705_v55  ;;  %v18279_v55 = vrot.slane %v11726_v39, 7  ;;  %v11962_v39 = vld [vmem:[%s18043_s0 + $0x108] sm:$0xff]  ;;  %v11966_v50 = vpack.c.bf16 %v213_v12, %v18282_v5  ;;  %v11976_v11 = vpack.c.bf16 %v270_v29, %v268_v28  ;;  %v226_v12 = vrot.slane %v11957_v52, 7 }
  0x41   :  { %9812 = vmatpush3.bf16.msra.mxu1 %v10703_v2  ;;  %10037 = vmatprep.subr.bf16.mxu0 %v11894_v6  ;;  %v18280_v2 = vrot.slane %v11721_v34, 7  ;;  %v227_v34 = vrot.slane %v11962_v39, 7  ;;  %v219_v28 = vsel %vm175_vm0, %v217_v63, %v218_v38 }
  0x42   :  { %9750 = vmatmul.mubr.msk.bf16.gmra.mxu0 %vm11402_vm3, %v11908_v37  ;;  %9786 = vmatmul.mubr.msk.bf16.gmra.mxu1 %vm11402_vm3, %v11912_v3  ;;  %v11995_v29 = vpack.c.bf16 %v219_v28, %v217_v63  ;;  %v10708_v28 = vld [vmem:[%s18044_s1 + $0x70] sm:$0xff]  }
  0x43   :  { %9753 = vmatprep.mubr.msk.bf16.mxu0 %vm11402_vm3, %v11919_v59  ;;  %9789 = vmatprep.mubr.msk.bf16.mxu1 %vm11402_vm3, %v11923_v62  ;;  %v267_v57 = vsel %vm175_vm0, %v18280_v2, %v18279_v55  ;;  %v18283_v55 = vmov %v18280_v2  ;;  %v11974_v2 = vpack.c.bf16 %v216_v16, %v18284_v49  ;;  %v222_v16 = vsel %vm175_vm0, %v220_v35, %v221_v51  ;;  %v12007_v49 = vld [vmem:[%s18043_s0 + $0x118] sm:$0xff] }
  0x44   :  { %9957 = vmatprep.subr.bf16.mxu1 %v10706_v10  ;;  %v11970_v30 = vpack.c.bf16 %v267_v57, %v18283_v55  ;;  %v273_v57 = vsel %vm175_vm0, %v271_v18, %v272_v36  ;;  %v12002_v55 = vld [vmem:[%s18043_s0 + $0x110] sm:$0xff]  ;;  %v12009_v31 = vpack.c.bf16 %v222_v16, %v220_v35  ;;  %v12013_v36 = vpack.c.bf16 %v11571_v19, %v11571_v19 }
  0x45   :  { %v11997_v5 = vpack.c.bf16 %v273_v57, %v271_v18  ;;  %v225_v35 = vsel %vm175_vm0, %v223_v46, %v224_v45  ;;  %v229_v19 = vrot.slane %v12002_v55, 7  ;;  %v230_v63 = vrot.slane %v12007_v49, 7 }
  0x46   :  { %v228_v38 = vsel %vm175_vm0, %v226_v12, %v227_v34  ;;  %v12031_v18 = vpack.c.bf16 %v225_v35, %v223_v46 }
  0x47   :  { %v12033_v51 = vpack.c.bf16 %v228_v38, %v226_v12  ;;  %v231_v46 = vsel %vm175_vm0, %v229_v19, %v230_v63 }
  0x4a   :  { %9754 = vmatmul.mubr.msk.bf16.gmra.mxu0 %vm11402_vm3, %v11966_v50  ;;  %9790 = vmatmul.mubr.msk.bf16.gmra.mxu1 %vm11402_vm3, %v11970_v30 }
  0x4b   :  { %9757 = vmatprep.mubr.msk.bf16.mxu0 %vm11402_vm3, %v11974_v2  ;;  %9793 = vmatprep.mubr.msk.bf16.mxu1 %vm11402_vm3, %v11976_v11 }
  0x52   :  { %9758 = vmatmul.mubr.msk.bf16.gmra.mxu0 %vm11402_vm3, %v11995_v29  ;;  %9794 = vmatmul.mubr.msk.bf16.gmra.mxu1 %vm11402_vm3, %v11997_v5 }
  0x53   :  { %9761 = vmatprep.mubr.msk.bf16.mxu0 %vm11402_vm3, %v12009_v31  ;;  %9813 = vmatprep.mubr.msk.bf16.mxu1 %vm11402_vm3, %v12013_v36 }
  0x5a   :  { %9762 = vmatmul.mubr.msk.bf16.gmra.mxu0 %vm11402_vm3, %v12031_v18  ;;  %9814 = vmatmul.mubr.msk.bf16.vlgmr.msra.gmra.mxu1 %vm11402_vm3, %v11409_v15 }
  0x5b   :  { %9765 = vmatprep.mubr.msk.bf16.mxu0 %vm11402_vm3, %v12033_v51  ;;  %9817 = vmatprep.mubr.msk.bf16.mxu1 %vm11402_vm3, %v11484_v48 }
  0x5c   :  { %18 = vsyncpa [#allocation3], 0  ;;  %9958 = vmatpush3.bf16.msra.mxu1 %v10706_v10  ;;  %v10710_v45 = vld [vmem:[%s18044_s1 + $0x68] sm:$0xff]   ;;  %v12054_v12 = vpack.c.bf16 %v231_v46, %v229_v19  ;;  %v10712_v15 = vld [vmem:[%s18044_s1 + $0x60] sm:$0xff]   ;;  %v12380_v19 = vpack.c.bf16 %v11512_v1, %v11507_v0  ;;  %vm373_vm4 = vcmask 1046528   ;;  %vm4305_vm6 = vcmask 261120  }
  0x5d   :  { %9959 = vmatprep.subr.bf16.mxu1 %v10708_v28  ;;  %v10714_v10 = vld [vmem:[%s18044_s1 + $0x58] sm:$0xff]   ;;  %v10709_v34 = vld [vmem:[%s18044_s1 + $0x130] sm:$0xff]   ;;  %v10711_v57 = vld [vmem:[%s18044_s1 + $0x128] sm:$0xff]   ;;  %vm5432_vm8 = vcmask 130048  }
  0x5e   :  { %v10715_v16 = vld [vmem:[%s18044_s1 + $0x118] sm:$0xff]   ;;  %v10719_v35 = vld [vmem:[%s18044_s1 + $0x108] sm:$0xff]   ;;  %v12372_v13 = vld [vmem:[%s18043_s0 + $0x40] sm:$0xff] }
  0x5f   :  { %18288 = vst [vmem:[#allocation18_spill] sm:$0xff] %v12372_v13  ;;  %v10727_v46 = vld [vmem:[%s18044_s1 + $0xa8] sm:$0xff]   ;;  %vm12946_vm5 = vmpackc.low %vm373_vm4, %vm11296_vm2 }
  0x60   :  { %9960 = vmatpush3.bf16.msra.mxu1 %v10708_v28 }
  0x61   :  { %9961 = vmatprep.subr.bf16.mxu1 %v10710_v45 }
  0x62   :  { %9766 = vmatmul.mubr.msk.bf16.gmra.mxu0 %vm11402_vm3, %v12054_v12  ;;  %9818 = vmatmul.mubr.msk.bf16.gmra.mxu1 %vm11402_vm3, %v11499_v58 }
  0x63   :  { %9821 = vmatprep.mubr.msk.bf16.mxu1 %vm11402_vm3, %v11583_v23  ;;  %9893 = vmatprep.mubr.msk.bf16.mxu0 %vm11402_vm3, %v11484_v48  ;;  %v10716_v48 = vld [vmem:[%s18044_s1 + $0x50] sm:$0xff]  }
  0x64   :  { %9962 = vmatpush3.bf16.msra.mxu1 %v10710_v45 }
  0x65   :  { %9963 = vmatprep.subr.bf16.mxu1 %v10712_v15 }
  0x68   :  { %9964 = vmatpush3.bf16.msra.mxu1 %v10712_v15  ;;  %v12414_v15 = vpack.c.bf16 %v11545_v8, %v11540_v7  ;;  %v10729_v7 = vld [vmem:[%s18044_s1 + $0xa0] sm:$0xff]  }
  0x69   :  { %9965 = vmatprep.subr.bf16.mxu1 %v10714_v10 }
  0x6a   :  { %9822 = vmatmul.mubr.msk.bf16.gmra.mxu1 %vm11402_vm3, %v11593_v27  ;;  %9894 = vmatmul.mubr.msk.bf16.vlgmr.msra.gmra.mxu0 %vm11402_vm3, %v11499_v58  ;;  %v10718_v58 = vld [vmem:[%s18044_s1 + $0x48] sm:$0xff]   ;;  %18293 = vst [vmem:[#allocation23_spill] sm:$0xff] %v12414_v15 }
  0x6b   :  { %10038 = vmatpush3.bf16.msra.mxu0 %v11894_v6  ;;  %9825 = vmatprep.mubr.msk.bf16.mxu1 %vm11402_vm3, %v11693_v9  ;;  %v10713_v6 = vld [vmem:[%s18044_s1 + $0x120] sm:$0xff]  }
  0x6c   :  { %9897 = vmatprep.mubr.msk.bf16.mxu0 %vm11402_vm3, %v11583_v23  ;;  %10039 = vmatprep.subr.bf16.mxu0 %v10709_v34  ;;  %v10720_v23 = vld [vmem:[%s18044_s1 + $0x40] sm:$0xff]  }
  0x6d   :  { %9966 = vmatpush3.bf16.msra.mxu1 %v10714_v10  ;;  %v18294_v10 = vld [vmem:[#allocation5_spill] sm:$0xff] }
  0x6e   :  { %9967 = vmatprep.subr.bf16.mxu1 %v10716_v48 }
  0x6f   :  { %10040 = vmatpush3.bf16.msra.mxu0 %v10709_v34  ;;  %v12418_v34 = vpack.c.bf16 %v18294_v10, %v11563_v14  ;;  %v10736_v14 = vld [vmem:[%s18044_s1 + $0x1c0] sm:$0xff]  }
  0x70   :  { %10041 = vmatprep.subr.bf16.mxu0 %v10711_v57 }
  0x71   :  { %9968 = vmatpush3.bf16.msra.mxu1 %v10716_v48  ;;  %18295 = vst [vmem:[#allocation5_spill] sm:$0xff] %v12418_v34 }
  0x72   :  { %9826 = vmatmul.mubr.msk.bf16.gmra.mxu1 %vm11402_vm3, %v11731_v41  ;;  %9898 = vmatmul.mubr.msk.bf16.gmra.mxu0 %vm11402_vm3, %v11593_v27  ;;  %v12123_v27 = vld [vmem:[%s18044_s1 + $0x1f8] sm:$0xff]  }
  0x73   :  { %9829 = vmatprep.mubr.msk.bf16.mxu1 %vm11402_vm3, %v11815_v4  ;;  %9901 = vmatprep.mubr.msk.bf16.mxu0 %vm11402_vm3, %v11693_v9  ;;  %v10717_v9 = vld [vmem:[%s18044_s1 + $0x110] sm:$0xff]  }
  0x74   :  { %10042 = vmatpush3.bf16.msra.mxu0 %v10711_v57  ;;  %9969 = vmatprep.subr.bf16.mxu1 %v10718_v58 }
  0x75   :  { %10043 = vmatprep.subr.bf16.mxu0 %v10713_v6  ;;  %9970 = vmatpush3.bf16.msra.mxu1 %v10718_v58  ;;  %v10734_v58 = vld [vmem:[%s18044_s1 + $0x1c8] sm:$0xff]  }
  0x76   :  { %9971 = vmatprep.subr.bf16.mxu1 %v10720_v23 }
  0x78   :  { %10044 = vmatpush3.bf16.msra.mxu0 %v10713_v6 }
  0x79   :  { %10045 = vmatprep.subr.bf16.mxu0 %v10715_v16  ;;  %9972 = vmatpush3.bf16.msra.mxu1 %v10720_v23 }
  0x7a   :  { %9830 = vmatmul.mubr.msk.bf16.gmra.mxu1 %vm11402_vm3, %v11832_v42  ;;  %9902 = vmatmul.mubr.msk.bf16.gmra.mxu0 %vm11402_vm3, %v11731_v41  ;;  %v10721_v41 = vld [vmem:[%s18044_s1 + $0x100] sm:$0xff]  }
  0x7b   :  { %9833 = vmatprep.mubr.msk.bf16.mxu1 %vm11402_vm3, %v11908_v37  ;;  %9905 = vmatprep.mubr.msk.bf16.mxu0 %vm11402_vm3, %v11815_v4  ;;  %v12162_v4 = vld [vmem:[%s18044_s1 + $0xb8] sm:$0xff]  }
  0x7c   :  { %10046 = vmatpush3.bf16.msra.mxu0 %v10715_v16  ;;  %10117 = vmatprep.subr.bf16.mxu1 %v12123_v27 }
  0x7d   :  { %10047 = vmatprep.subr.bf16.mxu0 %v10717_v9 }
  0x80   :  { %10048 = vmatpush3.bf16.msra.mxu0 %v10717_v9 }
  0x81   :  { %10049 = vmatprep.subr.bf16.mxu0 %v10719_v35 }
  0x82   :  { %9834 = vmatmul.mubr.msk.bf16.gmra.mxu1 %vm11402_vm3, %v11919_v59  ;;  %9906 = vmatmul.mubr.msk.bf16.gmra.mxu0 %vm11402_vm3, %v11832_v42  ;;  %v10726_v42 = vld [vmem:[%s18044_s1 + $0x1e8] sm:$0xff]  }
  0x83   :  { %9837 = vmatprep.mubr.msk.bf16.mxu1 %vm11402_vm3, %v11966_v50  ;;  %9909 = vmatprep.mubr.msk.bf16.mxu0 %vm11402_vm3, %v11908_v37  ;;  %v12340_v37 = vld [vmem:[%s18043_s0 + $0x30] sm:$0xff] }
  0x84   :  { %10050 = vmatpush3.bf16.msra.mxu0 %v10719_v35 }
  0x85   :  { %10051 = vmatprep.subr.bf16.mxu0 %v10721_v41 }
  0x88   :  { %10052 = vmatpush3.bf16.msra.mxu0 %v10721_v41  ;;  %v18300_v41 = vld [vmem:[#allocation6_spill] sm:$0xff] }
  0x89   :  { %10197 = vmatprep.subr.bf16.mxu0 %v12162_v4 }
  0x8a   :  { %9838 = vmatmul.mubr.msk.bf16.gmra.mxu1 %vm11402_vm3, %v11974_v2  ;;  %9910 = vmatmul.mubr.msk.bf16.gmra.mxu0 %vm11402_vm3, %v11919_v59  ;;  %v10728_v59 = vld [vmem:[%s18044_s1 + $0x1e0] sm:$0xff]  }
  0x8b   :  { %9841 = vmatprep.mubr.msk.bf16.mxu1 %vm11402_vm3, %v11995_v29  ;;  %9913 = vmatprep.mubr.msk.bf16.mxu0 %vm11402_vm3, %v11966_v50 }
  0x92   :  { %9842 = vmatmul.mubr.msk.bf16.gmra.mxu1 %vm11402_vm3, %v12009_v31  ;;  %9914 = vmatmul.mubr.msk.bf16.gmra.mxu0 %vm11402_vm3, %v11974_v2 }
  0x93   :  { %9845 = vmatprep.mubr.msk.bf16.mxu1 %vm11402_vm3, %v12013_v36  ;;  %9917 = vmatprep.mubr.msk.bf16.mxu0 %vm11402_vm3, %v11995_v29 }
  0x9a   :  { %9846 = vmatmul.mubr.msk.bf16.gmra.mxu1 %vm11402_vm3, %v12033_v51  ;;  %9918 = vmatmul.mubr.msk.bf16.gmra.mxu0 %vm11402_vm3, %v12009_v31 }
  0x9b   :  { %9849 = vmatprep.mubr.msk.bf16.mxu1 %vm11402_vm3, %v12054_v12  ;;  %9921 = vmatprep.mubr.msk.bf16.mxu0 %vm11402_vm3, %v12031_v18  ;;  %v10725_v18 = vld [vmem:[%s18044_s1 + $0xb0] sm:$0xff]  }
  0xa2   :  { %9850 = vmatmul.mubr.msk.bf16.gmra.mxu1 %vm11402_vm3, %v11412_v17  ;;  %9922 = vmatmul.mubr.msk.bf16.gmra.mxu0 %vm11402_vm3, %v12013_v36 }
  0xa3   :  { %9853 = vmatprep.mubr.msk.bf16.mxu1 %vm11402_vm3, %v11493_v53  ;;  %9925 = vmatprep.mubr.msk.bf16.mxu0 %vm11402_vm3, %v12054_v12 }
  0xaa   :  { %9854 = vmatmul.mubr.msk.bf16.gmra.mxu1 %vm11402_vm3, %v11502_v61  ;;  %9926 = vmatmul.mubr.msk.bf16.gmra.mxu0 %vm11402_vm3, %v11412_v17  ;;  %v18069_v17 = vmov 0.0|0.0  }
  0xab   :  { %9857 = vmatprep.mubr.msk.bf16.mxu1 %vm11402_vm3, %v11591_v26  ;;  %9929 = vmatprep.mubr.msk.bf16.mxu0 %vm11402_vm3, %v11493_v53  ;;  %v12286_v53 = vld [vmem:[%s18043_s0] sm:$0xff] }
  0xb2   :  { %9858 = vmatmul.mubr.msk.bf16.gmra.mxu1 %vm11402_vm3, %v11605_v32  ;;  %9930 = vmatmul.mubr.msk.bf16.gmra.mxu0 %vm11402_vm3, %v11502_v61  ;;  %v12291_v61 = vld [vmem:[%s18043_s0 + $0x8] sm:$0xff] }
  0xb3   :  { %9861 = vmatprep.mubr.msk.bf16.mxu1 %vm11402_vm3, %v11713_v24  ;;  %9933 = vmatprep.mubr.msk.bf16.mxu0 %vm11402_vm3, %v11591_v26  ;;  %v1730_v26 = vpack.c.bf16 %v12291_v61, %v12286_v53 }
  0xba   :  { %9862 = vmatmul.mubr.msk.bf16.gmra.mxu1 %vm11402_vm3, %v11733_v54  ;;  %9934 = vmatmul.mubr.msk.bf16.gmra.mxu0 %vm11402_vm3, %v11605_v32  ;;  %v12298_v32 = vld [vmem:[%s18043_s0 + $0x10] sm:$0xff] }
  0xbb   :  { %9865 = vmatprep.mubr.msk.bf16.mxu1 %vm11402_vm3, %v11819_v43  ;;  %9937 = vmatprep.mubr.msk.bf16.mxu0 %vm11402_vm3, %v11713_v24  ;;  %v12303_v24 = vld [vmem:[%s18043_s0 + $0x18] sm:$0xff] }
  0xc2   :  { %9866 = vmatmul.mubr.msk.bf16.gmra.mxu1 %vm11402_vm3, %v11836_v22  ;;  %9938 = vmatmul.mubr.msk.bf16.gmra.mxu0 %vm11402_vm3, %v11733_v54  ;;  %v12307_v54 = vpack.c.bf16 %v12303_v24, %v12298_v32 }
  0xc3   :  { %9869 = vmatprep.mubr.msk.bf16.mxu1 %vm11402_vm3, %v11912_v3  ;;  %9941 = vmatprep.mubr.msk.bf16.mxu0 %vm11402_vm3, %v11819_v43  ;;  %v10724_v43 = vld [vmem:[%s18044_s1 + $0x1f0] sm:$0xff]  }
  0xca   :  { %9870 = vmatmul.mubr.msk.bf16.gmra.mxu1 %vm11402_vm3, %v11923_v62  ;;  %9942 = vmatmul.mubr.msk.bf16.gmra.mxu0 %vm11402_vm3, %v11836_v22  ;;  %v12326_v22 = vld [vmem:[%s18043_s0 + $0x20] sm:$0xff] }
  0xcb   :  { %9873 = vmatprep.mubr.msk.bf16.mxu1 %vm11402_vm3, %v11970_v30  ;;  %9945 = vmatprep.mubr.msk.bf16.mxu0 %vm11402_vm3, %v11912_v3  ;;  %v12344_v3 = vpack.c.bf16 %v11463_v40, %v12340_v37 }
  0xd2   :  { %9874 = vmatmul.mubr.msk.bf16.gmra.mxu1 %vm11402_vm3, %v11976_v11  ;;  %9946 = vmatmul.mubr.msk.bf16.gmra.mxu0 %vm11402_vm3, %v11923_v62  ;;  %v12331_v62 = vld [vmem:[%s18043_s0 + $0x28] sm:$0xff] }
  0xd3   :  { %9949 = vmatprep.mubr.msk.bf16.mxu0 %vm11402_vm3, %v11970_v30  ;;  %9973 = vmatprep.mubr.bf16.mxu1 %v18069_v17  ;;  %v12335_v31 = vpack.c.bf16 %v12331_v62, %v12326_v22 }
  0xda   :  { %9950 = vmatmul.mubr.msk.bf16.gmra.mxu0 %vm11402_vm3, %v11976_v11  ;;  %9974 = vmatmul.mubr.bf16.vlgmr.msra.gmra.mxu1 %v1730_v26  ;;  %v10730_v11 = vld [vmem:[%s18044_s1 + $0x1d8] sm:$0xff]  }
  0xdb   :  { %9953 = vmatprep.mubr.msk.bf16.mxu0 %vm11402_vm3, %v11997_v5  ;;  %9977 = vmatprep.mubr.bf16.mxu1 %v12307_v54 }
  0xdc   :  { %10118 = vmatpush3.bf16.msra.mxu1 %v12123_v27  ;;  %v10731_v27 = vld [vmem:[%s18044_s1 + $0x98] sm:$0xff]  }
  0xdd   :  { %10119 = vmatprep.subr.bf16.mxu1 %v10724_v43 }
  0xe0   :  { %10120 = vmatpush3.bf16.msra.mxu1 %v10724_v43  ;;  %v18303_v43 = vld [vmem:[#allocation8_spill] sm:$0xff] }
  0xe1   :  { %10121 = vmatprep.subr.bf16.mxu1 %v10726_v42 }
  0xe2   :  { %v12349_v50 = vpop.f32.mrf.mxu0  ;;  %v12351_v30 = vpop.f32.mrf.mxu1  ;;  %9954 = vmatmul.mubr.msk.bf16.gmra.mxu0 %vm11402_vm3, %v12013_v36  ;;  %9978 = vmatmul.mubr.bf16.gmra.mxu1 %v12335_v31  ;;  %v12376_v36 = vpack.c.bf16 %v11482_v47, %v12372_v13  ;;  %v10732_v47 = vld [vmem:[%s18044_s1 + $0x1d0] sm:$0xff]  }
  0xe3   :  { %18285 = vst [vmem:[#allocation15_spill] sm:$0xff] %v12351_v30  ;;  %9981 = vmatprep.mubr.bf16.mxu1 %v12344_v3  ;;  %10053 = vmatprep.mubr.bf16.mxu0 %v1730_v26 }
  0xe4   :  { %v12358_v40 = vpop.f32.mrf.mxu0  ;;  %v12360_v2 = vpop.f32.mrf.mxu1  ;;  %10122 = vmatpush3.bf16.msra.mxu1 %v10726_v42  ;;  %v12458_v42 = vpack.c.bf16 %v18303_v43, %v11633_v44  ;;  %v12498_v43 = vpack.c.bf16 %v11711_v21, %v11706_v20  ;;  %v12522_v20 = vld [vmem:[%s18044_s1 + $0x238] sm:$0xff]  }
  0xe5   :  { %18286 = vst [vmem:[#allocation16_spill] sm:$0xff] %v12360_v2  ;;  %10123 = vmatprep.subr.bf16.mxu1 %v10728_v59  ;;  %18314 = vst [vmem:[#allocation36_spill] sm:$0xff] %v12522_v20 }
  0xe6   :  { %v12365_v29 = vpop.f32.mrf.mxu0  ;;  %v12367_v5 = vpop.f32.mrf.mxu1  ;;  %18310 = vst [vmem:[#allocation32_spill] sm:$0xff] %v12498_v43 }
  0xe7   :  { %18287 = vst [vmem:[#allocation17_spill] sm:$0xff] %v12367_v5  ;;  %v12629_v5 = vld [vmem:[%s18043_s0 + $0x138] sm:$0xff] }
  0xe8   :  { %v12382_v63 = vpop.f32.mrf.mxu0  ;;  %v12384_v38 = vpop.f32.mrf.mxu1  ;;  %10124 = vmatpush3.bf16.msra.mxu1 %v10728_v59  ;;  %18340 = vst [vmem:[#allocation49_spill] sm:$0xff] %v12629_v5 }
  0xe9   :  { %18289 = vst [vmem:[#allocation19_spill] sm:$0xff] %v12384_v38  ;;  %10125 = vmatprep.subr.bf16.mxu1 %v10730_v11 }
  0xea   :  { %v12389_v51 = vpop.f32.mrf.mxu0  ;;  %v12391_v28 = vpop.f32.mrf.mxu1  ;;  %9982 = vmatmul.mubr.bf16.gmra.mxu1 %v12376_v36  ;;  %10054 = vmatmul.mubr.bf16.vlgmr.msra.gmra.mxu0 %v12307_v54 }
  0xeb   :  { %18290 = vst [vmem:[#allocation20_spill] sm:$0xff] %v12391_v28  ;;  %10198 = vmatpush3.bf16.msra.mxu0 %v12162_v4  ;;  %9985 = vmatprep.mubr.bf16.mxu1 %v12380_v19  ;;  %v18301_v4 = vld [vmem:[#allocation7_spill] sm:$0xff] }
  0xec   :  { %v12400_v0 = vpop.f32.mrf.mxu0  ;;  %v12402_v1 = vpop.f32.mrf.mxu1  ;;  %10057 = vmatprep.mubr.bf16.mxu0 %v12335_v31  ;;  %10199 = vmatprep.subr.bf16.mxu0 %v10725_v18  ;;  %v12454_v26 = vpack.c.bf16 %v18301_v4, %v18300_v41  ;;  %18304 = vst [vmem:[#allocation7_spill] sm:$0xff] %v12458_v42  ;;  %v12494_v4 = vpack.c.bf16 %v11679_v60, %v11666_v56 }
  0xed   :  { %18291 = vst [vmem:[#allocation21_spill] sm:$0xff] %v12402_v1  ;;  %10126 = vmatpush3.bf16.msra.mxu1 %v10730_v11 }
  0xee   :  { %v12408_v45 = vpop.f32.mrf.mxu0  ;;  %v12410_v12 = vpop.f32.mrf.mxu1  ;;  %10127 = vmatprep.subr.bf16.mxu1 %v10732_v47  ;;  %18302 = vst [vmem:[#allocation6_spill] sm:$0xff] %v12454_v26  ;;  %18309 = vst [vmem:[#allocation31_spill] sm:$0xff] %v12494_v4 }
  0xef   :  { %18292 = vst [vmem:[#allocation22_spill] sm:$0xff] %v12410_v12  ;;  %10200 = vmatpush3.bf16.msra.mxu0 %v10725_v18  ;;  %v12467_v18 = vld [vmem:[%s18044_s1 + $0x178] sm:$0xff]  }
  0xf0   :  { %v12420_v48 = vpop.f32.mrf.mxu0  ;;  %v12422_v57 = vpop.f32.mrf.mxu1  ;;  %10201 = vmatprep.subr.bf16.mxu0 %v10727_v46 }
  0xf1   :  { %18296 = vst [vmem:[#allocation24_spill] sm:$0xff] %v12422_v57  ;;  %10128 = vmatpush3.bf16.msra.mxu1 %v10732_v47  ;;  %v10733_v47 = vld [vmem:[%s18044_s1 + $0x90] sm:$0xff]  }
  0xf2   :  { %v12430_v8 = vpop.f32.mrf.mxu0  ;;  %v12432_v6 = vpop.f32.mrf.mxu1  ;;  %9986 = vmatmul.mubr.bf16.gmra.mxu1 %v12414_v15  ;;  %10058 = vmatmul.mubr.bf16.gmra.mxu0 %v12344_v3 }
  0xf3   :  { %18297 = vst [vmem:[#allocation25_spill] sm:$0xff] %v12432_v6  ;;  %9989 = vmatprep.mubr.bf16.mxu1 %v12418_v34  ;;  %10061 = vmatprep.mubr.bf16.mxu0 %v12376_v36 }
  0xf4   :  { %v12441_v23 = vpop.f32.mrf.mxu0  ;;  %v12443_v16 = vpop.f32.mrf.mxu1  ;;  %10202 = vmatpush3.bf16.msra.mxu0 %v10727_v46  ;;  %10129 = vmatprep.subr.bf16.mxu1 %v10734_v58 }
  0xf5   :  { %18298 = vst [vmem:[#allocation26_spill] sm:$0xff] %v12443_v16  ;;  %10203 = vmatprep.subr.bf16.mxu0 %v10729_v7  ;;  %10130 = vmatpush3.bf16.msra.mxu1 %v10734_v58 }
  0xf6   :  { %v12448_v9 = vpop.f32.mrf.mxu0  ;;  %v12450_v35 = vpop.f32.mrf.mxu1  ;;  %10131 = vmatprep.subr.bf16.mxu1 %v10736_v14 }
  0xf7   :  { %18299 = vst [vmem:[#allocation27_spill] sm:$0xff] %v12450_v35  ;;  %v18319_v35 = vld [vmem:[#allocation11_spill] sm:$0xff] }
  0xf8   :  { %v12460_v59 = vpop.f32.mrf.mxu0  ;;  %v12462_v11 = vpop.f32.mrf.mxu1  ;;  %10204 = vmatpush3.bf16.msra.mxu0 %v10729_v7  ;;  %v10735_v7 = vld [vmem:[%s18044_s1 + $0x88] sm:$0xff]  }
  0xf9   :  { %18305 = vst [vmem:[#allocation8_spill] sm:$0xff] %v12462_v11  ;;  %10205 = vmatprep.subr.bf16.mxu0 %v10731_v27  ;;  %10132 = vmatpush3.bf16.msra.mxu1 %v10736_v14  ;;  %v18318_v11 = vld [vmem:[#allocation10_spill] sm:$0xff] }
  0xfa   :  { %v12472_v46 = vpop.f32.mrf.mxu0  ;;  %v12474_v44 = vpop.f32.mrf.mxu1  ;;  %9990 = vmatmul.mubr.bf16.gmra.mxu1 %v12454_v26  ;;  %10062 = vmatmul.mubr.bf16.gmra.mxu0 %v12380_v19  ;;  %v12534_v16 = vpack.c.bf16 %v18319_v35, %v18318_v11 }
  0xfb   :  { %18306 = vst [vmem:[#allocation28_spill] sm:$0xff] %v12474_v44  ;;  %9993 = vmatprep.mubr.bf16.mxu1 %v12458_v42  ;;  %10065 = vmatprep.mubr.bf16.mxu0 %v12414_v15 }
  0xfc   :  { %v12480_v10 = vpop.f32.mrf.mxu0  ;;  %v12482_v58 = vpop.f32.mrf.mxu1  ;;  %10206 = vmatpush3.bf16.msra.mxu0 %v10731_v27  ;;  %10277 = vmatprep.subr.bf16.mxu1 %v12467_v18  ;;  %18320 = vst [vmem:[#allocation10_spill] sm:$0xff] %v12534_v16 }
  0xfd   :  { %18307 = vst [vmem:[#allocation29_spill] sm:$0xff] %v12482_v58  ;;  %10207 = vmatprep.subr.bf16.mxu0 %v10733_v47  ;;  %v10737_v58 = vld [vmem:[%s18044_s1 + $0x80] sm:$0xff]  }
  0xfe   :  { %v12488_v14 = vpop.f32.mrf.mxu0  ;;  %v12490_v41 = vpop.f32.mrf.mxu1 }
  0xff   :  { %18308 = vst [vmem:[#allocation30_spill] sm:$0xff] %v12490_v41 }
 0x100   :  { %v12500_v27 = vpop.f32.mrf.mxu0  ;;  %v12502_v17 = vpop.f32.mrf.mxu1  ;;  %10208 = vmatpush3.bf16.msra.mxu0 %v10733_v47 }
 0x101   :  { %18311 = vst [vmem:[#allocation33_spill] sm:$0xff] %v12502_v17  ;;  %10209 = vmatprep.subr.bf16.mxu0 %v10735_v7 }
 0x102   :  { %v12507_v44 = vpop.f32.mrf.mxu0  ;;  %v12509_v41 = vpop.f32.mrf.mxu1  ;;  %9994 = vmatmul.mubr.bf16.gmra.mxu1 %v12494_v4  ;;  %10066 = vmatmul.mubr.bf16.gmra.mxu0 %v12418_v34 }
 0x103   :  { %18312 = vst [vmem:[#allocation34_spill] sm:$0xff] %v12509_v41  ;;  %9997 = vmatprep.mubr.bf16.mxu1 %v12498_v43  ;;  %10069 = vmatprep.mubr.bf16.mxu0 %v12454_v26  ;;  %v18316_v41 = vld [vmem:[#allocation9_spill] sm:$0xff] }
 0x104   :  { %v12515_v56 = vpop.f32.mrf.mxu0  ;;  %v12517_v60 = vpop.f32.mrf.mxu1  ;;  %10210 = vmatpush3.bf16.msra.mxu0 %v10735_v7  ;;  %v12530_v17 = vpack.c.bf16 %v18316_v41, %v11747_v33  ;;  %v18325_v41 = vld [vmem:[#allocation12_spill] sm:$0xff] }
 0x105   :  { %18313 = vst [vmem:[#allocation35_spill] sm:$0xff] %v12517_v60  ;;  %10211 = vmatprep.subr.bf16.mxu0 %v10737_v58 }
 0x106   :  { %v12524_v21 = vpop.f32.mrf.mxu0  ;;  %v12526_v47 = vpop.f32.mrf.mxu1  ;;  %18317 = vst [vmem:[#allocation9_spill] sm:$0xff] %v12530_v17 }
 0x107   :  { %18315 = vst [vmem:[#allocation37_spill] sm:$0xff] %v12526_v47 }
 0x108   :  { %v12536_v60 = vpop.f32.mrf.mxu0  ;;  %v12538_v7 = vpop.f32.mrf.mxu1  ;;  %10212 = vmatpush3.bf16.msra.mxu0 %v10737_v58 }
 0x109   :  { %18321 = vst [vmem:[#allocation11_spill] sm:$0xff] %v12538_v7  ;;  %10357 = vmatprep.subr.bf16.mxu0 %v12522_v20  ;;  %v18326_v7 = vld [vmem:[#allocation13_spill] sm:$0xff] }
 0x10a   :  { %v12541_v6 = vpop.f32.mrf.mxu0  ;;  %v12543_v57 = vpop.f32.mrf.mxu1  ;;  %9998 = vmatmul.mubr.bf16.gmra.mxu1 %v12530_v17  ;;  %10070 = vmatmul.mubr.bf16.gmra.mxu0 %v12458_v42  ;;  %v12559_v47 = vpack.c.bf16 %v18326_v7, %v18325_v41 }
 0x10b   :  { %18322 = vst [vmem:[#allocation38_spill] sm:$0xff] %v12543_v57  ;;  %10001 = vmatprep.mubr.bf16.mxu1 %v12534_v16  ;;  %10073 = vmatprep.mubr.bf16.mxu0 %v12494_v4 }
 0x10c   :  { %v12549_v33 = vpop.f32.mrf.mxu0  ;;  %v12551_v35 = vpop.f32.mrf.mxu1  ;;  %18327 = vst [vmem:[#allocation12_spill] sm:$0xff] %v12559_v47 }
 0x10d   :  { %18323 = vst [vmem:[#allocation39_spill] sm:$0xff] %v12551_v35  ;;  %v18330_v35 = vmov 0.0|0.0  }
 0x10e   :  { %v12553_v11 = vpop.f32.mrf.mxu0  ;;  %v12555_v58 = vpop.f32.mrf.mxu1 }
 0x10f   :  { %18324 = vst [vmem:[#allocation40_spill] sm:$0xff] %v12555_v58 }
 0x110   :  { %v12561_v57 = vpop.f32.mrf.mxu0  ;;  %v12563_v12 = vpop.f32.mrf.mxu1 }
 0x111   :  { %18328 = vst [vmem:[#allocation13_spill] sm:$0xff] %v12563_v12  ;;  %v1746_v12 = vpack.c.bf16 %v11962_v39, %v11957_v52 }
 0x112   :  { %v12565_v1 = vpop.f32.mrf.mxu0  ;;  %v12567_v28 = vpop.f32.mrf.mxu1  ;;  %10002 = vmatmul.mubr.bf16.gmra.mxu1 %v12559_v47  ;;  %10074 = vmatmul.mubr.bf16.gmra.mxu0 %v12498_v43 }
 0x113   :  { %18329 = vst [vmem:[#allocation41_spill] sm:$0xff] %v12567_v28  ;;  %10005 = vmatprep.mubr.bf16.mxu1 %v18330_v35  ;;  %10077 = vmatprep.mubr.bf16.mxu0 %v12530_v17  ;;  %v12585_v28 = vpack.c.bf16 %v12007_v49, %v12002_v55 }
 0x114   :  { %v12573_v58 = vpop.f32.mrf.mxu0  ;;  %v12575_v7 = vpop.f32.mrf.mxu1 }
 0x115   :  { %18331 = vst [vmem:[#allocation42_spill] sm:$0xff] %v12575_v7  ;;  %18333 = vst [vmem:[#allocation44_spill] sm:$0xff] %v12585_v28 }
 0x116   :  { %v12577_v41 = vpop.f32.mrf.mxu0  ;;  %v12579_v4 = vpop.f32.mrf.mxu1 }
 0x117   :  { %18332 = vst [vmem:[#allocation43_spill] sm:$0xff] %v12579_v4  ;;  %v12605_v4 = vld [vmem:[%s18043_s0 + $0x120] sm:$0xff] }
 0x118   :  { %v12587_v43 = vpop.f32.mrf.mxu0  ;;  %v12589_v35 = vpop.f32.mrf.mxu1  ;;  %18335 = vst [vmem:[#allocation46_spill] sm:$0xff] %v12605_v4 }
 0x119   :  { %18334 = vst [vmem:[#allocation45_spill] sm:$0xff] %v12589_v35 }
 0x11a   :  { %v12591_v17 = vpop.f32.mrf.mxu0  ;;  %v9815_v38 = vpop.f32.mrf.mxu1  ;;  %10006 = vmatmul.mubr.bf16.gmra.mxu1 %v1746_v12  ;;  %10078 = vmatmul.mubr.bf16.gmra.mxu0 %v12534_v16  ;;  %v12624_v16 = vld [vmem:[%s18043_s0 + $0x130] sm:$0xff] }
 0x11b   :  { %v1065_v7 = vadd.f32 %v9815_v38, %v12349_v50  ;;  %10009 = vmatprep.mubr.bf16.mxu1 %v12585_v28  ;;  %10081 = vmatprep.mubr.bf16.mxu0 %v12559_v47  ;;  %v12610_v50 = vld [vmem:[%s18043_s0 + $0x128] sm:$0xff]  ;;  %18339 = vst [vmem:[#allocation48_spill] sm:$0xff] %v12624_v16 }
 0x11c   :  { %v12597_v52 = vpop.f32.mrf.mxu0  ;;  %v1056_v39 = vpop.f32.mrf.mxu1  ;;  %18336 = vst [vmem:[#allocation47_spill] sm:$0xff] %v12610_v50  ;;  %v12614_v38 = vpack.c.bf16 %v12610_v50, %v12605_v4  ;;  %v18337_v47 = vld [vmem:[#allocation14_spill] sm:$0xff]  ;;  %v12633_v50 = vpack.c.bf16 %v12629_v5, %v12624_v16 }
 0x11d   :  { %v1057_v55 = vadd.f32 %v1056_v39, %v12358_v40  ;;  %v12618_v40 = vpack.c.bf16 %v18337_v47, %v11899_v25 }
 0x11e   :  { %v12600_v49 = vpop.f32.mrf.mxu0  ;;  %v9816_v35 = vpop.f32.mrf.mxu1 }
 0x11f   :  { %18338 = vst [vmem:[#allocation14_spill] sm:$0xff] %v12618_v40  ;;  %v1068_v39 = vadd.f32 %v9816_v35, %v12365_v29 }
 0x120   :  { %v12635_v4 = vpop.f32.mrf.mxu0  ;;  %v1059_v25 = vpop.f32.mrf.mxu1 }
 0x121   :  { %v1060_v47 = vadd.f32 %v1059_v25, %v12382_v63  ;;  %v12652_v25 = vld [vmem:[%s18043_s0 + $0x140] sm:$0xff] }
 0x122   :  { %v12638_v29 = vpop.f32.mrf.mxu0  ;;  %v9819_v35 = vpop.f32.mrf.mxu1  ;;  %10010 = vmatmul.mubr.bf16.gmra.mxu1 %v12614_v38  ;;  %10082 = vmatmul.mubr.bf16.gmra.mxu0 %v12618_v40  ;;  %18341 = vst [vmem:[#allocation50_spill] sm:$0xff] %v12652_v25 }
 0x123   :  { %v1081_v42 = vadd.f32 %v9819_v35, %v12389_v51  ;;  %10013 = vmatprep.mubr.bf16.mxu1 %v12633_v50  ;;  %10085 = vmatprep.mubr.bf16.mxu0 %v1746_v12  ;;  %v12657_v51 = vld [vmem:[%s18043_s0 + $0x148] sm:$0xff] }
 0x124   :  { %v12644_v2 = vpop.f32.mrf.mxu0  ;;  %v1072_v5 = vpop.f32.mrf.mxu1  ;;  %18342 = vst [vmem:[#allocation51_spill] sm:$0xff] %v12657_v51  ;;  %v12661_v12 = vpack.c.bf16 %v12657_v51, %v12652_v25 }
 0x125   :  { %v1073_v16 = vadd.f32 %v1072_v5, %v12400_v0  ;;  %v12667_v5 = vld [vmem:[%s18043_s0 + $0x150] sm:$0xff]  ;;  %v12672_v0 = vld [vmem:[%s18043_s0 + $0x158] sm:$0xff] }
 0x126   :  { %v12647_v26 = vpop.f32.mrf.mxu0  ;;  %v9820_v63 = vpop.f32.mrf.mxu1  ;;  %18343 = vst [vmem:[#allocation52_spill] sm:$0xff] %v12667_v5  ;;  %18344 = vst [vmem:[#allocation53_spill] sm:$0xff] %v12672_v0  ;;  %v12676_v40 = vpack.c.bf16 %v12672_v0, %v12667_v5 }
 0x127   :  { %v1084_v35 = vadd.f32 %v9820_v63, %v12408_v45 }
 0x128   :  { %v12678_v30 = vpop.f32.mrf.mxu0  ;;  %v1075_v51 = vpop.f32.mrf.mxu1 }
 0x129   :  { %v1076_v25 = vadd.f32 %v1075_v51, %v12420_v48 }
 0x12a   :  { %v9823_v45 = vpop.f32.mrf.mxu1  ;;  %v9895_v63 = vpop.f32.mrf.mxu0  ;;  %10014 = vmatmul.mubr.bf16.gmra.mxu1 %v12661_v12  ;;  %10086 = vmatmul.mubr.bf16.gmra.mxu0 %v12585_v28  ;;  %v12694_v28 = vld [vmem:[%s18043_s0 + $0x160] sm:$0xff] }
 0x12b   :  { %v1097_v13 = vadd.f32 %v9823_v45, %v12430_v8  ;;  %v12684_v34 = vadd.f32 %v9895_v63, %v1065_v7  ;;  %10017 = vmatprep.mubr.bf16.mxu1 %v12676_v40  ;;  %10089 = vmatprep.mubr.bf16.mxu0 %v12614_v38  ;;  %18345 = vst [vmem:[#allocation54_spill] sm:$0xff] %v12694_v28  ;;  %v12699_v8 = vld [vmem:[%s18043_s0 + $0x168] sm:$0xff] }
 0x12c   :  { %v1088_v0 = vpop.f32.mrf.mxu1  ;;  %v1410_v5 = vpop.f32.mrf.mxu0  ;;  %18346 = vst [vmem:[#allocation55_spill] sm:$0xff] %v12699_v8  ;;  %v12703_v7 = vpack.c.bf16 %v12699_v8, %v12694_v28 }
 0x12d   :  { %v1089_v20 = vadd.f32 %v1088_v0, %v12441_v23  ;;  %v12689_v15 = vadd.f32 %v1410_v5, %v1057_v55  ;;  %v12711_v5 = vld [vmem:[%s18043_s0 + $0x170] sm:$0xff]  ;;  %v12716_v0 = vld [vmem:[%s18043_s0 + $0x178] sm:$0xff] }
 0x12e   :  { %v9824_v48 = vpop.f32.mrf.mxu1  ;;  %v9896_v51 = vpop.f32.mrf.mxu0  ;;  %18348 = vst [vmem:[#allocation57_spill] sm:$0xff] %v12711_v5  ;;  %18349 = vst [vmem:[#allocation58_spill] sm:$0xff] %v12716_v0  ;;  %v12720_v45 = vpack.c.bf16 %v12716_v0, %v12711_v5 }
 0x12f   :  { %v1100_v23 = vadd.f32 %v9824_v48, %v12448_v9  ;;  %v12706_v55 = vadd.f32 %v9896_v51, %v1068_v39 }
 0x130   :  { %v1091_v63 = vpop.f32.mrf.mxu1  ;;  %v1413_v8 = vpop.f32.mrf.mxu0 }
 0x131   :  { %18347 = vst [vmem:[#allocation56_spill] sm:$0xff] %v12706_v55  ;;  %v1092_v9 = vadd.f32 %v1091_v63, %v12460_v59  ;;  %v12723_v39 = vadd.f32 %v1413_v8, %v1060_v47 }
 0x132   :  { %v9827_v48 = vpop.f32.mrf.mxu1  ;;  %v9899_v51 = vpop.f32.mrf.mxu0  ;;  %10018 = vmatmul.mubr.bf16.gmra.mxu1 %v12703_v7  ;;  %10090 = vmatmul.mubr.bf16.gmra.mxu0 %v12633_v50 }
 0x133   :  { %18350 = vst [vmem:[#allocation59_spill] sm:$0xff] %v12723_v39  ;;  %v1113_v28 = vadd.f32 %v9827_v48, %v12472_v46  ;;  %v12728_v55 = vadd.f32 %v9899_v51, %v1081_v42  ;;  %10021 = vmatprep.mubr.bf16.mxu1 %v12720_v45  ;;  %10093 = vmatprep.mubr.bf16.mxu0 %v12661_v12  ;;  %v12738_v39 = vld [vmem:[%s18043_s0 + $0x180] sm:$0xff]  ;;  %v12743_v42 = vld [vmem:[%s18043_s0 + $0x188] sm:$0xff] }
 0x134   :  { %v1104_v0 = vpop.f32.mrf.mxu1  ;;  %v1426_v5 = vpop.f32.mrf.mxu0  ;;  %18351 = vst [vmem:[#allocation60_spill] sm:$0xff] %v12738_v39  ;;  %18352 = vst [vmem:[#allocation61_spill] sm:$0xff] %v12743_v42  ;;  %v12747_v46 = vpack.c.bf16 %v12743_v42, %v12738_v39 }
 0x135   :  { %v1105_v59 = vadd.f32 %v1104_v0, %v12480_v10  ;;  %v12733_v47 = vadd.f32 %v1426_v5, %v1073_v16  ;;  %v12755_v5 = vld [vmem:[%s18043_s0 + $0x190] sm:$0xff]  ;;  %v12760_v0 = vld [vmem:[%s18043_s0 + $0x198] sm:$0xff] }
 0x136   :  { %v9828_v8 = vpop.f32.mrf.mxu1  ;;  %v9900_v63 = vpop.f32.mrf.mxu0  ;;  %18354 = vst [vmem:[#allocation63_spill] sm:$0xff] %v12755_v5  ;;  %18355 = vst [vmem:[#allocation64_spill] sm:$0xff] %v12760_v0  ;;  %v12764_v48 = vpack.c.bf16 %v12760_v0, %v12755_v5 }
 0x137   :  { %v1116_v10 = vadd.f32 %v9828_v8, %v12488_v14  ;;  %v12750_v16 = vadd.f32 %v9900_v63, %v1084_v35 }
 0x138   :  { %v1107_v51 = vpop.f32.mrf.mxu1  ;;  %v1429_v42 = vpop.f32.mrf.mxu0 }
 0x139   :  { %18353 = vst [vmem:[#allocation62_spill] sm:$0xff] %v12750_v16  ;;  %v1108_v14 = vadd.f32 %v1107_v51, %v12500_v27  ;;  %v12767_v35 = vadd.f32 %v1429_v42, %v1076_v25 }
 0x13a   :  { %v9831_v8 = vpop.f32.mrf.mxu1  ;;  %v9903_v63 = vpop.f32.mrf.mxu0  ;;  %10022 = vmatmul.mubr.bf16.gmra.mxu1 %v12747_v46  ;;  %10094 = vmatmul.mubr.bf16.gmra.mxu0 %v12676_v40 }
 0x13b   :  { %18356 = vst [vmem:[#allocation65_spill] sm:$0xff] %v12767_v35  ;;  %v1129_v39 = vadd.f32 %v9831_v8, %v12507_v44  ;;  %v12772_v16 = vadd.f32 %v9903_v63, %v1097_v13  ;;  %10025 = vmatprep.mubr.bf16.mxu1 %v12764_v48  ;;  %10097 = vmatprep.mubr.bf16.mxu0 %v12703_v7  ;;  %v12782_v35 = vld [vmem:[%s18043_s0 + $0x1a0] sm:$0xff]  ;;  %v12787_v13 = vld [vmem:[%s18043_s0 + $0x1a8] sm:$0xff] }
 0x13c   :  { %v1120_v0 = vpop.f32.mrf.mxu1  ;;  %v1442_v5 = vpop.f32.mrf.mxu0  ;;  %18357 = vst [vmem:[#allocation66_spill] sm:$0xff] %v12782_v35  ;;  %18358 = vst [vmem:[#allocation67_spill] sm:$0xff] %v12787_v13  ;;  %v12791_v44 = vpack.c.bf16 %v12787_v13, %v12782_v35 }
 0x13d   :  { %v1121_v27 = vadd.f32 %v1120_v0, %v12515_v56  ;;  %v12777_v25 = vadd.f32 %v1442_v5, %v1089_v20  ;;  %v12799_v5 = vld [vmem:[%s18043_s0 + $0x1b0] sm:$0xff]  ;;  %v12804_v0 = vld [vmem:[%s18043_s0 + $0x1b8] sm:$0xff] }
 0x13e   :  { %v9832_v42 = vpop.f32.mrf.mxu1  ;;  %v9904_v51 = vpop.f32.mrf.mxu0  ;;  %18359 = vst [vmem:[#allocation68_spill] sm:$0xff] %v12791_v44  ;;  %18361 = vst [vmem:[#allocation70_spill] sm:$0xff] %v12799_v5  ;;  %v12808_v8 = vpack.c.bf16 %v12804_v0, %v12799_v5 }
 0x13f   :  { %v1132_v56 = vadd.f32 %v9832_v42, %v12524_v21  ;;  %v12794_v20 = vadd.f32 %v9904_v51, %v1100_v23  ;;  %18362 = vst [vmem:[#allocation71_spill] sm:$0xff] %v12804_v0 }
 0x140   :  { %v1123_v63 = vpop.f32.mrf.mxu1  ;;  %v1445_v13 = vpop.f32.mrf.mxu0 }
 0x141   :  { %18360 = vst [vmem:[#allocation69_spill] sm:$0xff] %v12794_v20  ;;  %v1124_v21 = vadd.f32 %v1123_v63, %v12536_v60  ;;  %v12811_v23 = vadd.f32 %v1445_v13, %v1092_v9 }
 0x142   :  { %v9835_v42 = vpop.f32.mrf.mxu1  ;;  %v9907_v51 = vpop.f32.mrf.mxu0  ;;  %10026 = vmatmul.mubr.bf16.gmra.mxu1 %v12791_v44  ;;  %10098 = vmatmul.mubr.bf16.gmra.mxu0 %v12720_v45 }
 0x143   :  { %18363 = vst [vmem:[#allocation72_spill] sm:$0xff] %v12811_v23  ;;  %v1145_v35 = vadd.f32 %v9835_v42, %v12541_v6  ;;  %v12816_v20 = vadd.f32 %v9907_v51, %v1113_v28  ;;  %10029 = vmatprep.mubr.bf16.mxu1 %v12808_v8  ;;  %10101 = vmatprep.mubr.bf16.mxu0 %v12747_v46  ;;  %v12826_v23 = vld [vmem:[%s18043_s0 + $0x1c0] sm:$0xff]  ;;  %v12831_v28 = vld [vmem:[%s18043_s0 + $0x1c8] sm:$0xff] }
 0x144   :  { %v1136_v0 = vpop.f32.mrf.mxu1  ;;  %v1458_v5 = vpop.f32.mrf.mxu0  ;;  %18364 = vst [vmem:[#allocation73_spill] sm:$0xff] %v12826_v23  ;;  %18365 = vst [vmem:[#allocation74_spill] sm:$0xff] %v12831_v28  ;;  %v12835_v6 = vpack.c.bf16 %v12831_v28, %v12826_v23 }
 0x145   :  { %v1137_v60 = vadd.f32 %v1136_v0, %v12549_v33  ;;  %v12821_v9 = vadd.f32 %v1458_v5, %v1105_v59  ;;  %v12843_v5 = vld [vmem:[%s18043_s0 + $0x1d0] sm:$0xff]  ;;  %v12848_v0 = vld [vmem:[%s18043_s0 + $0x1d8] sm:$0xff] }
 0x146   :  { %v9836_v13 = vpop.f32.mrf.mxu1  ;;  %v9908_v63 = vpop.f32.mrf.mxu0  ;;  %18367 = vst [vmem:[#allocation76_spill] sm:$0xff] %v12843_v5  ;;  %18368 = vst [vmem:[#allocation77_spill] sm:$0xff] %v12848_v0  ;;  %v12852_v42 = vpack.c.bf16 %v12848_v0, %v12843_v5 }
 0x147   :  { %v1148_v33 = vadd.f32 %v9836_v13, %v12553_v11  ;;  %v12838_v59 = vadd.f32 %v9908_v63, %v1116_v10 }
 0x148   :  { %v1139_v51 = vpop.f32.mrf.mxu1  ;;  %v1461_v28 = vpop.f32.mrf.mxu0 }
 0x149   :  { %18366 = vst [vmem:[#allocation75_spill] sm:$0xff] %v12838_v59  ;;  %v1140_v11 = vadd.f32 %v1139_v51, %v12561_v57  ;;  %v12855_v10 = vadd.f32 %v1461_v28, %v1108_v14 }
 0x14a   :  { %v9839_v13 = vpop.f32.mrf.mxu1  ;;  %v9911_v63 = vpop.f32.mrf.mxu0  ;;  %10030 = vmatmul.mubr.bf16.gmra.mxu1 %v12835_v6  ;;  %10102 = vmatmul.mubr.bf16.gmra.mxu0 %v12764_v48 }
 0x14b   :  { %18369 = vst [vmem:[#allocation78_spill] sm:$0xff] %v12855_v10  ;;  %v1161_v23 = vadd.f32 %v9839_v13, %v12565_v1  ;;  %v12860_v59 = vadd.f32 %v9911_v63, %v1129_v39  ;;  %10033 = vmatprep.mubr.bf16.mxu1 %v12852_v42  ;;  %10105 = vmatprep.mubr.bf16.mxu0 %v12791_v44  ;;  %v12870_v10 = vld [vmem:[%s18043_s0 + $0x1e0] sm:$0xff]  ;;  %v12875_v1 = vld [vmem:[%s18043_s0 + $0x1e8] sm:$0xff] }
 0x14c   :  { %v1152_v0 = vpop.f32.mrf.mxu1  ;;  %v1474_v5 = vpop.f32.mrf.mxu0  ;;  %18372 = vst [vmem:[#allocation81_spill] sm:$0xff] %v12870_v10  ;;  %18373 = vst [vmem:[#allocation82_spill] sm:$0xff] %v12875_v1  ;;  %v12879_v39 = vpack.c.bf16 %v12875_v1, %v12870_v10 }
 0x14d   :  { %18370 = vst [vmem:[#allocation79_spill] sm:$0xff] %v12860_v59  ;;  %v1153_v57 = vadd.f32 %v1152_v0, %v12573_v58  ;;  %v12865_v14 = vadd.f32 %v1474_v5, %v1121_v27 }
 0x14e   :  { %v9840_v28 = vpop.f32.mrf.mxu1  ;;  %v9912_v51 = vpop.f32.mrf.mxu0 }
 0x14f   :  { %18371 = vst [vmem:[#allocation80_spill] sm:$0xff] %v12865_v14  ;;  %v1164_v58 = vadd.f32 %v9840_v28, %v12577_v41  ;;  %v12882_v27 = vadd.f32 %v9912_v51, %v1132_v56 }
 0x150   :  { %v1155_v5 = vpop.f32.mrf.mxu1  ;;  %v1477_v0 = vpop.f32.mrf.mxu0 }
 0x151   :  { %v1156_v13 = vadd.f32 %v1155_v5, %v12587_v43  ;;  %v12885_v63 = vadd.f32 %v1477_v0, %v1124_v21 }
 0x152   :  { %v9843_v14 = vpop.f32.mrf.mxu1  ;;  %v9915_v59 = vpop.f32.mrf.mxu0  ;;  %10034 = vmatmul.mubr.bf16.gmra.mxu1 %v12879_v39  ;;  %10106 = vmatmul.mubr.bf16.gmra.mxu0 %v12808_v8 }
 0x153   :  { %v1177_v44 = vadd.f32 %v9843_v14, %v12591_v17  ;;  %v12890_v1 = vadd.f32 %v9915_v59, %v1145_v35  ;;  %10109 = vmatprep.mubr.bf16.mxu0 %v12835_v6  ;;  %10133 = vmatprep.mubr.bf16.mxu1 %v12307_v54  ;;  %v10740_v54 = vld [vmem:[%s18044_s1 + $0x170] sm:$0xff]  }
 0x154   :  { %v1168_v41 = vpop.f32.mrf.mxu1  ;;  %v1490_v56 = vpop.f32.mrf.mxu0 }
 0x155   :  { %v1169_v43 = vadd.f32 %v1168_v41, %v12597_v52  ;;  %v12895_v21 = vadd.f32 %v1490_v56, %v1137_v60 }
 0x156   :  { %v9844_v28 = vpop.f32.mrf.mxu1  ;;  %v9916_v51 = vpop.f32.mrf.mxu0 }
 0x157   :  { %v1180_v5 = vadd.f32 %v9844_v28, %v12600_v49  ;;  %v12898_v0 = vadd.f32 %v9916_v51, %v1148_v33  ;;  %v11060_v28 = vld [vmem:[%s18043_s0 + $0x1f0] sm:$0xff] }
 0x158   :  { %v1171_v10 = vpop.f32.mrf.mxu1  ;;  %v1493_v17 = vpop.f32.mrf.mxu0 }
 0x159   :  { %v12901_v35 = vadd.f32 %v1171_v10, %v12635_v4  ;;  %v12903_v59 = vadd.f32 %v1493_v17, %v1140_v11  ;;  %v18374_v4 = vmov 0.0  }
 0x15a   :  { %v9847_v52 = vpop.f32.mrf.mxu1  ;;  %v9919_v60 = vpop.f32.mrf.mxu0  ;;  %10110 = vmatmul.mubr.bf16.gmra.mxu0 %v12852_v42  ;;  %10134 = vmatmul.mubr.bf16.vlgmr.msra.gmra.mxu1 %v12335_v31  ;;  %v374_v11 = vrot.slane %v18374_v4, 1  ;;  %v10742_v31 = vld [vmem:[%s18044_s1 + $0x168] sm:$0xff]  }
 0x15b   :  { %v12911_v49 = vadd.f32 %v9847_v52, %v12638_v29  ;;  %v12913_v33 = vadd.f32 %v9919_v60, %v1161_v23  ;;  %10113 = vmatprep.mubr.bf16.mxu0 %v12879_v39  ;;  %10137 = vmatprep.mubr.bf16.mxu1 %v12344_v3  ;;  %v376_v29 = vrot.slane %v12286_v53, 1 }
 0x15c   :  { %v1184_v10 = vpop.f32.mrf.mxu1  ;;  %v1506_v14 = vpop.f32.mrf.mxu0  ;;  %10278 = vmatpush3.bf16.msra.mxu1 %v12467_v18  ;;  %v12942_v53 = vpack.c.bf16 %v374_v11, %v374_v11  ;;  %v10744_v11 = vld [vmem:[%s18044_s1 + $0x160] sm:$0xff]  }
 0x15d   :  { %v12920_v41 = vadd.f32 %v1184_v10, %v12644_v2  ;;  %v12922_v56 = vadd.f32 %v1506_v14, %v1153_v57  ;;  %10279 = vmatprep.subr.bf16.mxu1 %v10740_v54  ;;  %v11061_v2 = vld [vmem:[%s18043_s0 + $0x1f8] sm:$0xff]  ;;  %v377_v57 = vrot.slane %v12291_v61, 1 }
 0x15e   :  { %v9848_v3 = vpop.f32.mrf.mxu1  ;;  %v9920_v23 = vpop.f32.mrf.mxu0  ;;  %v12934_v18 = vpack.c.bf16 %v11061_v2, %v11060_v28  ;;  %18375 = vst [vmem:[#allocation83_spill] sm:$0xff] %v12942_v53 }
 0x15f   :  { %v12938_v51 = vadd.f32 %v9848_v3, %v12647_v26  ;;  %v12940_v17 = vadd.f32 %v9920_v23, %v1164_v58  ;;  %v379_v26 = vrot.slane %v12298_v32, 1  ;;  %v380_v58 = vrot.slane %v12303_v24, 1 }
 0x160   :  { %v1187_v52 = vpop.f32.mrf.mxu1  ;;  %v1509_v60 = vpop.f32.mrf.mxu0  ;;  %10280 = vmatpush3.bf16.msra.mxu1 %v10740_v54  ;;  %v378_v32 = vsel %vm373_vm4, %v376_v29, %v377_v57  ;;  %v382_v29 = vrot.slane %v12326_v22, 1 }
 0x161   :  { %v12951_v14 = vadd.f32 %v1187_v52, %v12678_v30  ;;  %v12953_v61 = vadd.f32 %v1509_v60, %v1156_v13  ;;  %10281 = vmatprep.subr.bf16.mxu1 %v10742_v31  ;;  %v381_v28 = vsel %vm373_vm4, %v379_v26, %v380_v58  ;;  %v12981_v2 = vpack.c.bf16 %v377_v57, %v378_v32 }
 0x162   :  { %v12960_v3 = vpop.f32.mrf.mxu1  ;;  %v9923_v23 = vpop.f32.mrf.mxu0  ;;  %10114 = vmatmul.mubr.bf16.gmra.mxu0 %v12934_v18  ;;  %10138 = vmatmul.mubr.bf16.gmra.mxu1 %v12376_v36  ;;  %v10746_v36 = vld [vmem:[%s18044_s1 + $0x158] sm:$0xff]   ;;  %v12989_v26 = vpack.c.bf16 %v380_v58, %v381_v28  ;;  %v18382_v58 = vld [vmem:[#allocation23_spill] sm:$0xff] }
 0x163   :  { %v12964_v30 = vadd.f32 %v9923_v23, %v1177_v44  ;;  %10141 = vmatprep.mubr.bf16.mxu1 %v12380_v19  ;;  %10213 = vmatprep.mubr.msk.bf16.mxu0 %vm12946_vm5, %v12942_v53  ;;  %v385_v23 = vrot.slane %v12340_v37, 1  ;;  %v10748_v37 = vld [vmem:[%s18044_s1 + $0x150] sm:$0xff]  }
 0x164   :  { %v12971_v24 = vpop.f32.mrf.mxu1  ;;  %v1522_v13 = vpop.f32.mrf.mxu0  ;;  %10282 = vmatpush3.bf16.msra.mxu1 %v10742_v31  ;;  %v383_v31 = vrot.slane %v12331_v62, 1  ;;  %18380 = vst [vmem:[#allocation86_spill] sm:$0xff] %v12989_v26 }
 0x165   :  { %v12973_v54 = vadd.f32 %v1522_v13, %v1169_v43  ;;  %10283 = vmatprep.subr.bf16.mxu1 %v10744_v11  ;;  %v11062_v13 = vld [vmem:[%s18043_s0 + $0x38] sm:$0xff] }
 0x166   :  { %v12979_v19 = vpop.f32.mrf.mxu1  ;;  %v9924_v44 = vpop.f32.mrf.mxu0  ;;  %v386_v4 = vrot.slane %v11062_v13, 1  ;;  %v384_v28 = vsel %vm373_vm4, %v382_v29, %v383_v31 }
 0x167   :  { %18378 = vst [vmem:[#allocation84_spill] sm:$0xff] %v12973_v54  ;;  %v12983_v52 = vadd.f32 %v9924_v44, %v1180_v5  ;;  %v10741_v5 = vld [vmem:[%s18044_s1 + $0x230] sm:$0xff]  }
 0x168   :  { %v12987_v43 = vpop.f32.mrf.mxu1  ;;  %v1525_v60 = vpop.f32.mrf.mxu0  ;;  %10284 = vmatpush3.bf16.msra.mxu1 %v10744_v11  ;;  %v18384_v11 = vld [vmem:[#allocation36_spill] sm:$0xff]  ;;  %v387_v13 = vsel %vm373_vm4, %v385_v23, %v386_v4  ;;  %v18390_v23 = vld [vmem:[#allocation18_spill] sm:$0xff] }
 0x169   :  { %18379 = vst [vmem:[#allocation85_spill] sm:$0xff] %v12983_v52  ;;  %v12999_v22 = vadd.f32 %v1525_v60, %v12901_v35  ;;  %10285 = vmatprep.subr.bf16.mxu1 %v10746_v36  ;;  %v18385_v35 = vld [vmem:[#allocation5_spill] sm:$0xff] }
 0x16a   :  { %v13001_v62 = vpop.f32.mrf.mxu1  ;;  %v9927_v57 = vpop.f32.mrf.mxu0  ;;  %10142 = vmatmul.mubr.bf16.gmra.mxu1 %v18382_v58  ;;  %10214 = vmatmul.mubr.msk.bf16.vlgmr.msra.gmra.mxu0 %vm12946_vm5, %v12981_v2  ;;  %v18397_v52 = vld [vmem:[#allocation17_spill] sm:$0xff] }
 0x16b   :  { %18381 = vst [vmem:[#allocation87_spill] sm:$0xff] %v12999_v22  ;;  %v13011_v32 = vadd.f32 %v9927_v57, %v12911_v49  ;;  %10358 = vmatpush3.bf16.msra.mxu0 %v18384_v11  ;;  %10145 = vmatprep.mubr.bf16.mxu1 %v18385_v35  ;;  %v10743_v49 = vld [vmem:[%s18044_s1 + $0x228] sm:$0xff]   ;;  %v13030_v11 = vpack.c.bf16 %v383_v31, %v384_v28  ;;  %v11064_v31 = vld [vmem:[%s18043_s0 + $0x50] sm:$0xff] }
 0x16c   :  { %v13016_v44 = vpop.f32.mrf.mxu1  ;;  %v1538_v60 = vpop.f32.mrf.mxu0  ;;  %10217 = vmatprep.mubr.msk.bf16.mxu0 %vm12946_vm5, %v12989_v26  ;;  %10359 = vmatprep.subr.bf16.mxu0 %v10741_v5  ;;  %v388_v26 = vrot.slane %v18390_v23, 1  ;;  %v11063_v22 = vld [vmem:[%s18043_s0 + $0x48] sm:$0xff]  ;;  %v391_v28 = vrot.slane %v11064_v31, 1  ;;  %v10745_v23 = vld [vmem:[%s18044_s1 + $0x220] sm:$0xff]  }
 0x16d   :  { %18383 = vst [vmem:[#allocation23_spill] sm:$0xff] %v13011_v32  ;;  %v13026_v57 = vadd.f32 %v1538_v60, %v12920_v41  ;;  %10286 = vmatpush3.bf16.msra.mxu1 %v10746_v36  ;;  %18387 = vst [vmem:[#allocation5_spill] sm:$0xff] %v13030_v11  ;;  %v13035_v32 = vpack.c.bf16 %v386_v4, %v387_v13  ;;  %v389_v41 = vrot.slane %v11063_v22, 1  ;;  %v11065_v4 = vld [vmem:[%s18043_s0 + $0x58] sm:$0xff]  ;;  %v10750_v13 = vld [vmem:[%s18044_s1 + $0x148] sm:$0xff]  }
 0x16e   :  { %v13028_v58 = vpop.f32.mrf.mxu1  ;;  %v9928_v29 = vpop.f32.mrf.mxu0  ;;  %10287 = vmatprep.subr.bf16.mxu1 %v10748_v37  ;;  %v18391_v22 = vld [vmem:[#allocation15_spill] sm:$0xff] }
 0x16f   :  { %18386 = vst [vmem:[#allocation36_spill] sm:$0xff] %v13026_v57  ;;  %v13033_v35 = vadd.f32 %v9928_v29, %v12938_v51  ;;  %18389 = vst [vmem:[#allocation89_spill] sm:$0xff] %v13035_v32  ;;  %10360 = vmatpush3.bf16.msra.mxu0 %v10741_v5  ;;  %v392_v51 = vrot.slane %v11065_v4, 1  ;;  %v1209_v5 = vadd.f32 %v12960_v3, %v18391_v22  ;;  %v18393_v4 = vld [vmem:[#allocation6_spill] sm:$0xff]  ;;  %v10752_v3 = vld [vmem:[%s18044_s1 + $0x140] sm:$0xff]  }
 0x170   :  { %v13041_v36 = vpop.f32.mrf.mxu1  ;;  %v1541_v60 = vpop.f32.mrf.mxu0  ;;  %10361 = vmatprep.subr.bf16.mxu0 %v10743_v49 }
 0x171   :  { %18388 = vst [vmem:[#allocation88_spill] sm:$0xff] %v13033_v35  ;;  %v13055_v29 = vadd.f32 %v1541_v60, %v12951_v14  ;;  %10288 = vmatpush3.bf16.msra.mxu1 %v10748_v37  ;;  %v18394_v14 = vld [vmem:[#allocation16_spill] sm:$0xff]  ;;  %v390_v37 = vsel %vm373_vm4, %v388_v26, %v389_v41 }
 0x172   :  { %v13060_v31 = vpop.f32.mrf.mxu1  ;;  %v9931_v35 = vpop.f32.mrf.mxu0  ;;  %10146 = vmatmul.mubr.bf16.gmra.mxu1 %v18393_v4  ;;  %10218 = vmatmul.mubr.msk.bf16.gmra.mxu0 %vm12946_vm5, %v13030_v11  ;;  %v1201_v60 = vadd.f32 %v12971_v24, %v18394_v14  ;;  %v393_v11 = vsel %vm373_vm4, %v391_v28, %v392_v51  ;;  %v1212_v24 = vadd.f32 %v12979_v19, %v18397_v52  ;;  %v18400_v19 = vld [vmem:[#allocation19_spill] sm:$0xff] }
 0x173   :  { %18392 = vst [vmem:[#allocation18_spill] sm:$0xff] %v13055_v29  ;;  %v13071_v22 = vadd.f32 %v9931_v35, %v1209_v5  ;;  %v18396_v29 = vld [vmem:[#allocation7_spill] sm:$0xff]  ;;  %10221 = vmatprep.mubr.msk.bf16.mxu0 %vm12946_vm5, %v13035_v32  ;;  %10362 = vmatpush3.bf16.msra.mxu0 %v10743_v49  ;;  %v10747_v5 = vld [vmem:[%s18044_s1 + $0x218] sm:$0xff]   ;;  %v13090_v14 = vpack.c.bf16 %v389_v41, %v390_v37  ;;  %v11066_v49 = vld [vmem:[%s18043_s0 + $0x60] sm:$0xff] }
 0x174   :  { %10149 = vmatprep.mubr.bf16.mxu1 %v18396_v29  ;;  %v13078_v4 = vpop.f32.mrf.mxu1  ;;  %v1554_v57 = vpop.f32.mrf.mxu0  ;;  %10289 = vmatprep.subr.bf16.mxu1 %v10750_v13  ;;  %v394_v28 = vrot.slane %v11066_v49, 1  ;;  %v1204_v52 = vadd.f32 %v12987_v43, %v18400_v19  ;;  %v11068_v49 = vld [vmem:[%s18043_s0 + $0x70] sm:$0xff]  ;;  %v11069_v43 = vld [vmem:[%s18043_s0 + $0x78] sm:$0xff] }
 0x175   :  { %18395 = vst [vmem:[#allocation15_spill] sm:$0xff] %v13071_v22  ;;  %v13083_v35 = vadd.f32 %v1554_v57, %v1201_v60  ;;  %10363 = vmatprep.subr.bf16.mxu0 %v10745_v23  ;;  %10290 = vmatpush3.bf16.msra.mxu1 %v10750_v13  ;;  %18399 = vst [vmem:[#allocation16_spill] sm:$0xff] %v13090_v14  ;;  %v13099_v60 = vpack.c.bf16 %v392_v51, %v393_v11  ;;  %v11067_v13 = vld [vmem:[%s18043_s0 + $0x68] sm:$0xff]  ;;  %v397_v22 = vrot.slane %v11068_v49, 1  ;;  %v18403_v11 = vld [vmem:[#allocation20_spill] sm:$0xff] }
 0x176   :  { %v13088_v29 = vpop.f32.mrf.mxu1  ;;  %v9932_v26 = vpop.f32.mrf.mxu0  ;;  %10291 = vmatprep.subr.bf16.mxu1 %v10752_v3  ;;  %v1225_v51 = vadd.f32 %v13001_v62, %v18403_v11  ;;  %v10749_v19 = vld [vmem:[%s18044_s1 + $0x210] sm:$0xff]  }
 0x177   :  { %18398 = vst [vmem:[#allocation6_spill] sm:$0xff] %v13083_v35  ;;  %v13097_v57 = vadd.f32 %v9932_v26, %v1212_v24  ;;  %18402 = vst [vmem:[#allocation17_spill] sm:$0xff] %v13099_v60  ;;  %v395_v35 = vrot.slane %v11067_v13, 1  ;;  %v398_v24 = vrot.slane %v11069_v43, 1  ;;  %10364 = vmatpush3.bf16.msra.mxu0 %v10745_v23  ;;  %v18406_v23 = vld [vmem:[#allocation21_spill] sm:$0xff] }
 0x178   :  { %v13104_v41 = vpop.f32.mrf.mxu1  ;;  %v1557_v37 = vpop.f32.mrf.mxu0  ;;  %10365 = vmatprep.subr.bf16.mxu0 %v10747_v5  ;;  %v1217_v62 = vadd.f32 %v13016_v44, %v18406_v23 }
 0x179   :  { %18401 = vst [vmem:[#allocation7_spill] sm:$0xff] %v13097_v57  ;;  %v13114_v26 = vadd.f32 %v1557_v37, %v1204_v52  ;;  %10292 = vmatpush3.bf16.msra.mxu1 %v10752_v3  ;;  %v18405_v57 = vld [vmem:[#allocation31_spill] sm:$0xff]  ;;  %v18408_v37 = vld [vmem:[#allocation32_spill] sm:$0xff]  ;;  %v396_v3 = vsel %vm373_vm4, %v394_v28, %v395_v35  ;;  %v399_v11 = vsel %vm373_vm4, %v397_v22, %v398_v24  ;;  %v11070_v22 = vld [vmem:[%s18043_s0 + $0x80] sm:$0xff] }
 0x17a   :  { %v13119_v13 = vpop.f32.mrf.mxu1  ;;  %v9935_v49 = vpop.f32.mrf.mxu0  ;;  %10150 = vmatmul.mubr.bf16.gmra.mxu1 %v18405_v57  ;;  %10222 = vmatmul.mubr.msk.bf16.gmra.mxu0 %vm12946_vm5, %v13090_v14  ;;  %v13146_v28 = vpack.c.bf16 %v395_v35, %v396_v3  ;;  %v11072_v3 = vld [vmem:[%s18043_s0 + $0x90] sm:$0xff] }
 0x17b   :  { %18404 = vst [vmem:[#allocation19_spill] sm:$0xff] %v13114_v26  ;;  %v13127_v52 = vadd.f32 %v9935_v49, %v1225_v51  ;;  %10153 = vmatprep.mubr.bf16.mxu1 %v18408_v37  ;;  %10225 = vmatprep.mubr.msk.bf16.mxu0 %vm12946_vm5, %v13099_v60  ;;  %v18409_v26 = vld [vmem:[#allocation22_spill] sm:$0xff]  ;;  %v18412_v37 = vld [vmem:[#allocation24_spill] sm:$0xff]  ;;  %v18421_v60 = vld [vmem:[#allocation27_spill] sm:$0xff] }
 0x17c   :  { %v13134_v43 = vpop.f32.mrf.mxu1  ;;  %v1570_v57 = vpop.f32.mrf.mxu0  ;;  %10366 = vmatpush3.bf16.msra.mxu0 %v10747_v5  ;;  %v1228_v14 = vadd.f32 %v13028_v58, %v18409_v26  ;;  %v10751_v51 = vld [vmem:[%s18044_s1 + $0x208] sm:$0xff]   ;;  %18411 = vst [vmem:[#allocation21_spill] sm:$0xff] %v13146_v28  ;;  %v400_v5 = vrot.slane %v11070_v22, 1  ;;  %v1220_v58 = vadd.f32 %v13041_v36, %v18412_v37  ;;  %v403_v22 = vrot.slane %v11072_v3, 1  ;;  %v11073_v36 = vld [vmem:[%s18043_s0 + $0x98] sm:$0xff]  ;;  %v10753_v37 = vld [vmem:[%s18044_s1 + $0x200] sm:$0xff]  }
 0x17d   :  { %18407 = vst [vmem:[#allocation20_spill] sm:$0xff] %v13127_v52  ;;  %v13139_v44 = vadd.f32 %v1570_v57, %v1217_v62  ;;  %10367 = vmatprep.subr.bf16.mxu0 %v10749_v19  ;;  %v13155_v62 = vpack.c.bf16 %v398_v24, %v399_v11  ;;  %v11071_v57 = vld [vmem:[%s18043_s0 + $0x88] sm:$0xff]  ;;  %v18415_v24 = vld [vmem:[#allocation25_spill] sm:$0xff] }
 0x17e   :  { %v13144_v49 = vpop.f32.mrf.mxu1  ;;  %v9936_v23 = vpop.f32.mrf.mxu0  ;;  %v1241_v11 = vadd.f32 %v13060_v31, %v18415_v24  ;;  %v18417_v3 = vld [vmem:[#allocation9_spill] sm:$0xff] }
 0x17f   :  { %18410 = vst [vmem:[#allocation31_spill] sm:$0xff] %v13139_v44  ;;  %v13153_v26 = vadd.f32 %v9936_v23, %v1228_v14  ;;  %18414 = vst [vmem:[#allocation22_spill] sm:$0xff] %v13155_v62  ;;  %v401_v44 = vrot.slane %v11071_v57, 1  ;;  %v404_v14 = vrot.slane %v11073_v36, 1 }
 0x180   :  { %v13160_v52 = vpop.f32.mrf.mxu1  ;;  %v1573_v35 = vpop.f32.mrf.mxu0  ;;  %10368 = vmatpush3.bf16.msra.mxu0 %v10749_v19  ;;  %v18418_v19 = vld [vmem:[#allocation26_spill] sm:$0xff] }
 0x181   :  { %18413 = vst [vmem:[#allocation32_spill] sm:$0xff] %v13153_v26  ;;  %v13170_v23 = vadd.f32 %v1573_v35, %v1220_v58  ;;  %10369 = vmatprep.subr.bf16.mxu0 %v10751_v51  ;;  %v1233_v36 = vadd.f32 %v13078_v4, %v18418_v19  ;;  %v18420_v58 = vld [vmem:[#allocation10_spill] sm:$0xff]  ;;  %v402_v35 = vsel %vm373_vm4, %v400_v5, %v401_v44  ;;  %v11074_v5 = vld [vmem:[%s18043_s0 + $0xa0] sm:$0xff] }
 0x182   :  { %v13175_v57 = vpop.f32.mrf.mxu1  ;;  %v9939_v26 = vpop.f32.mrf.mxu0  ;;  %10154 = vmatmul.mubr.bf16.gmra.mxu1 %v18417_v3  ;;  %10226 = vmatmul.mubr.msk.bf16.gmra.mxu0 %vm12946_vm5, %v13146_v28  ;;  %v405_v3 = vsel %vm373_vm4, %v403_v22, %v404_v14  ;;  %v1244_v28 = vadd.f32 %v13088_v29, %v18421_v60  ;;  %v406_v19 = vrot.slane %v11074_v5, 1  ;;  %v11075_v29 = vld [vmem:[%s18043_s0 + $0xa8] sm:$0xff] }
 0x183   :  { %18416 = vst [vmem:[#allocation24_spill] sm:$0xff] %v13170_v23  ;;  %v13183_v31 = vadd.f32 %v9939_v26, %v1241_v11  ;;  %10157 = vmatprep.mubr.bf16.mxu1 %v18420_v58  ;;  %10229 = vmatprep.mubr.msk.bf16.mxu0 %vm12946_vm5, %v13155_v62  ;;  %v13197_v11 = vpack.c.bf16 %v401_v44, %v402_v35  ;;  %v18424_v58 = vld [vmem:[#allocation8_spill] sm:$0xff]  ;;  %v407_v60 = vrot.slane %v11075_v29, 1 }
 0x184   :  { %v1264_v24 = vpop.f32.mrf.mxu1  ;;  %v1586_v23 = vpop.f32.mrf.mxu0  ;;  %10370 = vmatpush3.bf16.msra.mxu0 %v10751_v51  ;;  %v1236_v22 = vadd.f32 %v13104_v41, %v18424_v58  ;;  %v11077_v41 = vld [vmem:[%s18043_s0 + $0xb8] sm:$0xff] }
 0x185   :  { %18419 = vst [vmem:[#allocation25_spill] sm:$0xff] %v13183_v31  ;;  %v13193_v32 = vadd.f32 %v1586_v23, %v1233_v36  ;;  %10371 = vmatprep.subr.bf16.mxu0 %v10753_v37  ;;  %18423 = vst [vmem:[#allocation26_spill] sm:$0xff] %v13197_v11  ;;  %v13206_v31 = vpack.c.bf16 %v404_v14, %v405_v3  ;;  %v11076_v36 = vld [vmem:[%s18043_s0 + $0xb0] sm:$0xff]  ;;  %v18427_v14 = vld [vmem:[#allocation28_spill] sm:$0xff] }
 0x186   :  { %v13195_v4 = vpop.f32.mrf.mxu1  ;;  %v9940_v26 = vpop.f32.mrf.mxu0  ;;  %v409_v35 = vrot.slane %v11076_v36, 1  ;;  %v1257_v3 = vadd.f32 %v13119_v13, %v18427_v14  ;;  %v18429_v29 = vld [vmem:[#allocation12_spill] sm:$0xff]  ;;  %v18430_v36 = vld [vmem:[#allocation29_spill] sm:$0xff]  ;;  %v408_v13 = vsel %vm373_vm4, %v406_v19, %v407_v60  ;;  %v18433_v14 = vld [vmem:[#allocation30_spill] sm:$0xff] }
 0x187   :  { %18422 = vst [vmem:[#allocation9_spill] sm:$0xff] %v13193_v32  ;;  %v13204_v51 = vadd.f32 %v9940_v26, %v1244_v28  ;;  %18426 = vst [vmem:[#allocation27_spill] sm:$0xff] %v13206_v31  ;;  %v410_v28 = vrot.slane %v11077_v41, 1  ;;  %v18432_v41 = vld [vmem:[#allocation14_spill] sm:$0xff] }
 0x188   :  { %v1267_v23 = vpop.f32.mrf.mxu1  ;;  %v1589_v44 = vpop.f32.mrf.mxu0  ;;  %10372 = vmatpush3.bf16.msra.mxu0 %v10753_v37 }
 0x189   :  { %18425 = vst [vmem:[#allocation10_spill] sm:$0xff] %v13204_v51  ;;  %v13219_v26 = vadd.f32 %v1589_v44, %v1236_v22  ;;  %v1249_v51 = vadd.f32 %v13134_v43, %v18430_v36  ;;  %v411_v44 = vsel %vm373_vm4, %v409_v35, %v410_v28  ;;  %v11078_v36 = vld [vmem:[%s18043_s0 + $0xc0] sm:$0xff] }
 0x18a   :  { %v9871_v5 = vpop.f32.mrf.mxu1  ;;  %v9943_v58 = vpop.f32.mrf.mxu0  ;;  %10158 = vmatmul.mubr.bf16.gmra.mxu1 %v18429_v29  ;;  %10230 = vmatmul.mubr.msk.bf16.gmra.mxu0 %vm12946_vm5, %v13197_v11  ;;  %v1260_v29 = vadd.f32 %v13144_v49, %v18433_v14  ;;  %v13248_v35 = vpack.c.bf16 %v410_v28, %v411_v44  ;;  %v11079_v49 = vld [vmem:[%s18043_s0 + $0xc8] sm:$0xff]  ;;  %v18444_v11 = vld [vmem:[#allocation44_spill] sm:$0xff] }
 0x18b   :  { %18428 = vst [vmem:[#allocation8_spill] sm:$0xff] %v13219_v26  ;;  %v13227_v32 = vadd.f32 %v9943_v58, %v1257_v3  ;;  %10161 = vmatprep.mubr.bf16.mxu1 %v18432_v41  ;;  %10233 = vmatprep.mubr.msk.bf16.mxu0 %vm12946_vm5, %v13206_v31  ;;  %v13239_v58 = vpack.c.bf16 %v407_v60, %v408_v13  ;;  %v412_v41 = vrot.slane %v11078_v36, 1  ;;  %v11080_v13 = vld [vmem:[%s18043_s0 + $0xd0] sm:$0xff] }
 0x18c   :  { %v1280_v37 = vpop.f32.mrf.mxu1  ;;  %v1602_v22 = vpop.f32.mrf.mxu0  ;;  %18438 = vst [vmem:[#allocation30_spill] sm:$0xff] %v13248_v35  ;;  %v415_v14 = vrot.slane %v11080_v13, 1 }
 0x18d   :  { %18431 = vst [vmem:[#allocation28_spill] sm:$0xff] %v13227_v32  ;;  %v13237_v26 = vadd.f32 %v1602_v22, %v1249_v51  ;;  %18435 = vst [vmem:[#allocation29_spill] sm:$0xff] %v13239_v58  ;;  %v18436_v32 = vld [vmem:[#allocation33_spill] sm:$0xff]  ;;  %v413_v51 = vrot.slane %v11079_v49, 1  ;;  %v18441_v49 = vmov 0.0|0.0  }
 0x18e   :  { %v9872_v43 = vpop.f32.mrf.mxu1  ;;  %v9944_v3 = vpop.f32.mrf.mxu0  ;;  %v1252_v19 = vadd.f32 %v13160_v52, %v18436_v32  ;;  %v11081_v32 = vld [vmem:[%s18043_s0 + $0xd8] sm:$0xff] }
 0x18f   :  { %18434 = vst [vmem:[#allocation12_spill] sm:$0xff] %v13237_v26  ;;  %v13246_v31 = vadd.f32 %v9944_v3, %v1260_v29  ;;  %v416_v52 = vrot.slane %v11081_v32, 1  ;;  %v18439_v29 = vld [vmem:[#allocation34_spill] sm:$0xff] }
 0x190   :  { %v1283_v22 = vpop.f32.mrf.mxu1  ;;  %v1605_v60 = vpop.f32.mrf.mxu0  ;;  %v1273_v28 = vadd.f32 %v13175_v57, %v18439_v29  ;;  %v414_v57 = vsel %vm373_vm4, %v412_v41, %v413_v51  ;;  %v18445_v29 = vld [vmem:[#allocation37_spill] sm:$0xff]  ;;  %v11083_v41 = vld [vmem:[%s18043_s0 + $0xe8] sm:$0xff] }
 0x191   :  { %18437 = vst [vmem:[#allocation14_spill] sm:$0xff] %v13246_v31  ;;  %v13261_v44 = vadd.f32 %v1605_v60, %v1252_v19  ;;  %v18442_v31 = vld [vmem:[#allocation35_spill] sm:$0xff]  ;;  %v417_v32 = vsel %vm373_vm4, %v415_v14, %v416_v52 }
 0x192   :  { %v9875_v3 = vpop.f32.mrf.mxu1  ;;  %v9947_v36 = vpop.f32.mrf.mxu0  ;;  %10162 = vmatmul.mubr.bf16.gmra.mxu1 %v18441_v49  ;;  %10234 = vmatmul.mubr.msk.bf16.gmra.mxu0 %vm12946_vm5, %v13239_v58  ;;  %v1265_v13 = vadd.f32 %v1264_v24, %v18442_v31  ;;  %v18447_v14 = vld [vmem:[#allocation11_spill] sm:$0xff] }
 0x193   :  { %18440 = vst [vmem:[#allocation33_spill] sm:$0xff] %v13261_v44  ;;  %v13268_v26 = vadd.f32 %v9947_v36, %v1273_v28  ;;  %10165 = vmatprep.mubr.bf16.mxu1 %v18444_v11  ;;  %10237 = vmatprep.mubr.msk.bf16.mxu0 %vm12946_vm5, %v13248_v35  ;;  %v1276_v44 = vadd.f32 %v13195_v4, %v18445_v29  ;;  %v11082_v11 = vld [vmem:[%s18043_s0 + $0xe0] sm:$0xff] }
 0x194   :  { %v1296_v19 = vpop.f32.mrf.mxu1  ;;  %v1618_v60 = vpop.f32.mrf.mxu0  ;;  %v13280_v28 = vpack.c.bf16 %v413_v51, %v414_v57  ;;  %v418_v36 = vrot.slane %v11082_v11, 1  ;;  %v1268_v35 = vadd.f32 %v1267_v23, %v18447_v14  ;;  %v13291_v4 = vpack.c.bf16 %v416_v52, %v417_v32  ;;  %v18448_v51 = vld [vmem:[#allocation38_spill] sm:$0xff] }
 0x195   :  { %18443 = vst [vmem:[#allocation34_spill] sm:$0xff] %v13268_v26  ;;  %v13278_v58 = vadd.f32 %v1618_v60, %v1265_v13  ;;  %v419_v26 = vrot.slane %v11083_v41, 1  ;;  %v1289_v57 = vadd.f32 %v9871_v5, %v18448_v51 }
 0x196   :  { %v9876_v31 = vpop.f32.mrf.mxu1  ;;  %v9948_v24 = vpop.f32.mrf.mxu0 }
 0x197   :  { %18446 = vst [vmem:[#allocation35_spill] sm:$0xff] %v13278_v58  ;;  %v13289_v62 = vadd.f32 %v9948_v24, %v1276_v44  ;;  %v420_v23 = vsel %vm373_vm4, %v418_v36, %v419_v26  ;;  %v18449_v44 = vld [vmem:[#allocation39_spill] sm:$0xff] }
 0x198   :  { %v1299_v13 = vpop.f32.mrf.mxu1  ;;  %v1621_v60 = vpop.f32.mrf.mxu0  ;;  %v1281_v24 = vadd.f32 %v1280_v37, %v18449_v44  ;;  %v13317_v14 = vpack.c.bf16 %v419_v26, %v420_v23  ;;  %v11086_v26 = vld [vmem:[%s18043_s0 + $0x110] sm:$0xff] }
 0x199   :  { %v13294_v29 = vadd.f32 %v1621_v60, %v1268_v35  ;;  %v18450_v35 = vld [vmem:[#allocation40_spill] sm:$0xff]  ;;  %v427_v23 = vrot.slane %v11086_v26, 1 }
 0x19a   :  { %v9951_v58 = vpop.f32.mrf.mxu0  ;;  %v9975_v54 = vpop.f32.mrf.mxu1  ;;  %10166 = vmatmul.mubr.bf16.gmra.mxu1 %v12614_v38  ;;  %10238 = vmatmul.mubr.msk.bf16.gmra.mxu0 %vm12946_vm5, %v13280_v28  ;;  %v1292_v11 = vadd.f32 %v9872_v43, %v18450_v35  ;;  %18452 = vst [vmem:[#allocation37_spill] sm:$0xff] %v13317_v14  ;;  %v18453_v43 = vld [vmem:[#allocation13_spill] sm:$0xff] }
 0x19b   :  { %v13302_v52 = vadd.f32 %v9951_v58, %v1289_v57  ;;  %v13305_v32 = vadd.f32 %v9975_v54, %v12684_v34  ;;  %10169 = vmatprep.mubr.bf16.mxu1 %v12633_v50  ;;  %10241 = vmatprep.mubr.msk.bf16.mxu0 %vm12946_vm5, %v13291_v4  ;;  %v11084_v34 = vld [vmem:[%s18043_s0 + $0x100] sm:$0xff]  ;;  %v11085_v54 = vld [vmem:[%s18043_s0 + $0x108] sm:$0xff]  ;;  %v1284_v51 = vadd.f32 %v1283_v22, %v18453_v43  ;;  %v18458_v22 = vld [vmem:[#allocation59_spill] sm:$0xff] }
 0x19c   :  { %v1634_v38 = vpop.f32.mrf.mxu0  ;;  %v1861_v5 = vpop.f32.mrf.mxu1  ;;  %v424_v50 = vrot.slane %v11084_v34, 1  ;;  %v425_v60 = vrot.slane %v11085_v54, 1  ;;  %v18456_v34 = vld [vmem:[#allocation41_spill] sm:$0xff] }
 0x19d   :  { %v13312_v41 = vadd.f32 %v1634_v38, %v1281_v24  ;;  %v13315_v36 = vadd.f32 %v1861_v5, %v12689_v15  ;;  %v18455_v15 = vld [vmem:[#allocation56_spill] sm:$0xff]  ;;  %v1305_v54 = vadd.f32 %v9875_v3, %v18456_v34 }
 0x19e   :  { %v9952_v37 = vpop.f32.mrf.mxu0  ;;  %v9976_v58 = vpop.f32.mrf.mxu1  ;;  %v11087_v5 = vld [vmem:[%s18043_s0 + $0x118] sm:$0xff]  ;;  %v426_v43 = vsel %vm373_vm4, %v424_v50, %v425_v60 }
 0x19f   :  { %18451 = vst [vmem:[#allocation44_spill] sm:$0xff] %v13312_v41  ;;  %v13326_v57 = vadd.f32 %v9952_v37, %v1292_v11  ;;  %v2119_v44 = vadd.f32 %v9976_v58, %v18455_v15  ;;  %v428_v35 = vrot.slane %v11087_v5, 1  ;;  %v18459_v15 = vld [vmem:[#allocation42_spill] sm:$0xff] }
 0x1a0   :  { %v1637_v24 = vpop.f32.mrf.mxu0  ;;  %v1864_v38 = vpop.f32.mrf.mxu1  ;;  %v1297_v26 = vadd.f32 %v1296_v19, %v18459_v15  ;;  %v18465_v15 = vld [vmem:[#allocation45_spill] sm:$0xff] }
 0x1a1   :  { %18454 = vst [vmem:[#allocation11_spill] sm:$0xff] %v13326_v57  ;;  %v13336_v41 = vadd.f32 %v1637_v24, %v1284_v51  ;;  %v2117_v11 = vadd.f32 %v1864_v38, %v18458_v22  ;;  %v429_v24 = vsel %vm373_vm4, %v427_v23, %v428_v35  ;;  %v18461_v38 = vld [vmem:[#allocation43_spill] sm:$0xff]  ;;  %v13357_v22 = vpack.c.bf16 %v425_v60, %v426_v43  ;;  %v18469_v43 = vld [vmem:[#allocation65_spill] sm:$0xff] }
 0x1a2   :  { %v9955_v37 = vpop.f32.mrf.mxu0  ;;  %v9979_v58 = vpop.f32.mrf.mxu1  ;;  %10170 = vmatmul.mubr.bf16.gmra.mxu1 %v12661_v12  ;;  %10242 = vmatmul.mubr.msk.bf16.gmra.mxu0 %vm12946_vm5, %v13317_v14  ;;  %v1308_v5 = vadd.f32 %v9876_v31, %v18461_v38  ;;  %v13365_v14 = vpack.c.bf16 %v428_v35, %v429_v24 }
 0x1a3   :  { %18457 = vst [vmem:[#allocation38_spill] sm:$0xff] %v13336_v41  ;;  %v13345_v57 = vadd.f32 %v9955_v37, %v1305_v54  ;;  %v2122_v3 = vadd.f32 %v9979_v58, %v12728_v55  ;;  %10173 = vmatprep.mubr.bf16.mxu1 %v12676_v40  ;;  %10245 = vmatprep.mubr.msk.bf16.mxu0 %vm12946_vm5, %v12942_v53  ;;  %v18463_v55 = vld [vmem:[#allocation46_spill] sm:$0xff]  ;;  %v18464_v37 = vld [vmem:[#allocation47_spill] sm:$0xff] }
 0x1a4   :  { %v1650_v51 = vpop.f32.mrf.mxu0  ;;  %v1877_v12 = vpop.f32.mrf.mxu1  ;;  %v430_v40 = vrot.slane %v18463_v55, 1  ;;  %v431_v58 = vrot.slane %v18464_v37, 1  ;;  %v1300_v53 = vadd.f32 %v1299_v13, %v18465_v15  ;;  %v18466_v41 = vld [vmem:[#allocation62_spill] sm:$0xff]  ;;  %v18472_v15 = vld [vmem:[#allocation69_spill] sm:$0xff] }
 0x1a5   :  { %18460 = vst [vmem:[#allocation39_spill] sm:$0xff] %v13345_v57  ;;  %v13354_v34 = vadd.f32 %v1650_v51, %v1297_v26  ;;  %v2120_v19 = vadd.f32 %v1877_v12, %v12733_v47  ;;  %v18467_v51 = vld [vmem:[#allocation48_spill] sm:$0xff]  ;;  %v18468_v12 = vld [vmem:[#allocation49_spill] sm:$0xff] }
 0x1a6   :  { %v9956_v50 = vpop.f32.mrf.mxu0  ;;  %v9980_v54 = vpop.f32.mrf.mxu1  ;;  %v433_v47 = vrot.slane %v18467_v51, 1  ;;  %v434_v38 = vrot.slane %v18468_v12, 1  ;;  %v18474_v51 = vld [vmem:[#allocation51_spill] sm:$0xff] }
 0x1a7   :  { %18462 = vst [vmem:[#allocation40_spill] sm:$0xff] %v13354_v34  ;;  %v13362_v57 = vadd.f32 %v9956_v50, %v1308_v5  ;;  %v2123_v23 = vadd.f32 %v9980_v54, %v18466_v41  ;;  %v437_v12 = vrot.slane %v18474_v51, 1 }
 0x1a8   :  { %v1653_v31 = vpop.f32.mrf.mxu0  ;;  %v1880_v26 = vpop.f32.mrf.mxu1 }
 0x1a9   :  { %v13369_v60 = vadd.f32 %v1653_v31, %v1300_v53  ;;  %v2121_v55 = vadd.f32 %v1880_v26, %v18469_v43  ;;  %v432_v53 = vsel %vm373_vm4, %v430_v40, %v431_v58 }
 0x1aa   :  { %v9983_v34 = vpop.f32.mrf.mxu1  ;;  %v10055_v37 = vpop.f32.mrf.mxu0  ;;  %10174 = vmatmul.mubr.bf16.gmra.mxu1 %v12703_v7  ;;  %10246 = vmatmul.mubr.msk.bf16.gmra.mxu0 %vm12946_vm5, %v13357_v22  ;;  %v435_v7 = vsel %vm373_vm4, %v433_v47, %v434_v38 }
 0x1ab   :  { %v2126_v13 = vadd.f32 %v9983_v34, %v12772_v16  ;;  %v13378_v41 = vadd.f32 %v10055_v37, %v13305_v32  ;;  %10177 = vmatprep.mubr.bf16.mxu1 %v12720_v45  ;;  %10249 = vmatprep.mubr.msk.bf16.mxu0 %vm12946_vm5, %v13365_v14  ;;  %v13390_v34 = vpack.c.bf16 %v431_v58, %v432_v53  ;;  %v18471_v45 = vld [vmem:[#allocation50_spill] sm:$0xff] }
 0x1ac   :  { %v1893_v35 = vpop.f32.mrf.mxu1  ;;  %v2279_v24 = vpop.f32.mrf.mxu0  ;;  %v436_v54 = vrot.slane %v18471_v45, 1  ;;  %v13396_v40 = vpack.c.bf16 %v434_v38, %v435_v7 }
 0x1ad   :  { %v2124_v5 = vadd.f32 %v1893_v35, %v12777_v25  ;;  %v13388_v50 = vadd.f32 %v2279_v24, %v13315_v36  ;;  %v18475_v25 = vld [vmem:[#allocation52_spill] sm:$0xff]  ;;  %v18476_v36 = vld [vmem:[#allocation53_spill] sm:$0xff] }
 0x1ae   :  { %v9984_v16 = vpop.f32.mrf.mxu1  ;;  %v10056_v32 = vpop.f32.mrf.mxu0  ;;  %18473 = vst [vmem:[#allocation56_spill] sm:$0xff] %v13396_v40  ;;  %v439_v37 = vrot.slane %v18475_v25, 1  ;;  %v440_v35 = vrot.slane %v18476_v36, 1  ;;  %v18477_v24 = vld [vmem:[#allocation72_spill] sm:$0xff] }
 0x1af   :  { %18470 = vst [vmem:[#allocation13_spill] sm:$0xff] %v13388_v50  ;;  %v2127_v31 = vadd.f32 %v9984_v16, %v18472_v15  ;;  %v13394_v26 = vadd.f32 %v10056_v32, %v2119_v44 }
 0x1b0   :  { %v1896_v47 = vpop.f32.mrf.mxu1  ;;  %v2282_v43 = vpop.f32.mrf.mxu0 }
 0x1b1   :  { %v2125_v50 = vadd.f32 %v1896_v47, %v18477_v24  ;;  %v13402_v58 = vadd.f32 %v2282_v43, %v2117_v11  ;;  %v438_v11 = vsel %vm373_vm4, %v436_v54, %v437_v12  ;;  %v18480_v47 = vld [vmem:[#allocation54_spill] sm:$0xff]  ;;  %v18481_v43 = vld [vmem:[#allocation75_spill] sm:$0xff] }
 0x1b2   :  { %v9987_v53 = vpop.f32.mrf.mxu1  ;;  %v10059_v45 = vpop.f32.mrf.mxu0  ;;  %10178 = vmatmul.mubr.bf16.gmra.mxu1 %v12747_v46  ;;  %10250 = vmatmul.mubr.msk.bf16.gmra.mxu0 %vm12946_vm5, %v13390_v34  ;;  %v441_v46 = vsel %vm373_vm4, %v439_v37, %v440_v35  ;;  %v18483_v54 = vld [vmem:[#allocation55_spill] sm:$0xff] }
 0x1b3   :  { %v2130_v44 = vadd.f32 %v9987_v53, %v12816_v20  ;;  %v13409_v38 = vadd.f32 %v10059_v45, %v2122_v3  ;;  %10181 = vmatprep.mubr.bf16.mxu1 %v12764_v48  ;;  %10253 = vmatprep.mubr.msk.bf16.mxu0 %vm12946_vm5, %v13396_v40  ;;  %v13420_v3 = vpack.c.bf16 %v437_v12, %v438_v11  ;;  %v442_v48 = vrot.slane %v18480_v47, 1  ;;  %v18487_v40 = vld [vmem:[#allocation68_spill] sm:$0xff] }
 0x1b4   :  { %v1909_v7 = vpop.f32.mrf.mxu1  ;;  %v2295_v16 = vpop.f32.mrf.mxu0  ;;  %v13426_v24 = vpack.c.bf16 %v440_v35, %v441_v46  ;;  %v443_v53 = vrot.slane %v18483_v54, 1 }
 0x1b5   :  { %18478 = vst [vmem:[#allocation41_spill] sm:$0xff] %v13409_v38  ;;  %v2128_v32 = vadd.f32 %v1909_v7, %v12821_v9  ;;  %v13418_v15 = vadd.f32 %v2295_v16, %v2120_v19  ;;  %v18484_v38 = vld [vmem:[#allocation57_spill] sm:$0xff]  ;;  %v18485_v19 = vld [vmem:[#allocation58_spill] sm:$0xff] }
 0x1b6   :  { %v9988_v51 = vpop.f32.mrf.mxu1  ;;  %v10060_v20 = vpop.f32.mrf.mxu0  ;;  %18482 = vst [vmem:[#allocation42_spill] sm:$0xff] %v13426_v24  ;;  %v445_v9 = vrot.slane %v18484_v38, 1  ;;  %v446_v7 = vrot.slane %v18485_v19, 1  ;;  %v18486_v16 = vld [vmem:[#allocation78_spill] sm:$0xff]  ;;  %v18491_v19 = vld [vmem:[#allocation60_spill] sm:$0xff] }
 0x1b7   :  { %18479 = vst [vmem:[#allocation59_spill] sm:$0xff] %v13418_v15  ;;  %v2131_v25 = vadd.f32 %v9988_v51, %v18481_v43  ;;  %v13424_v36 = vadd.f32 %v10060_v20, %v2123_v23  ;;  %v18488_v23 = vld [vmem:[#allocation79_spill] sm:$0xff]  ;;  %v18490_v20 = vld [vmem:[#allocation80_spill] sm:$0xff] }
 0x1b8   :  { %v1912_v45 = vpop.f32.mrf.mxu1  ;;  %v2298_v37 = vpop.f32.mrf.mxu0 }
 0x1b9   :  { %v2129_v15 = vadd.f32 %v1912_v45, %v18486_v16  ;;  %v13432_v12 = vadd.f32 %v2298_v37, %v2121_v55  ;;  %v444_v55 = vsel %vm373_vm4, %v442_v48, %v443_v53  ;;  %v18492_v48 = vld [vmem:[#allocation61_spill] sm:$0xff] }
 0x1ba   :  { %v9991_v11 = vpop.f32.mrf.mxu1  ;;  %v10063_v47 = vpop.f32.mrf.mxu0  ;;  %10182 = vmatmul.mubr.bf16.gmra.mxu1 %v18487_v40  ;;  %10254 = vmatmul.mubr.msk.bf16.gmra.mxu0 %vm12946_vm5, %v13420_v3  ;;  %v447_v40 = vsel %vm373_vm4, %v445_v9, %v446_v7 }
 0x1bb   :  { %v2134_v35 = vadd.f32 %v9991_v11, %v18488_v23  ;;  %v13439_v46 = vadd.f32 %v10063_v47, %v2126_v13  ;;  %10185 = vmatprep.mubr.bf16.mxu1 %v12808_v8  ;;  %10257 = vmatprep.mubr.msk.bf16.mxu0 %vm12946_vm5, %v13426_v24  ;;  %v13450_v13 = vpack.c.bf16 %v443_v53, %v444_v55  ;;  %v448_v8 = vrot.slane %v18491_v19, 1  ;;  %v18493_v24 = vld [vmem:[#allocation63_spill] sm:$0xff] }
 0x1bc   :  { %v1925_v38 = vpop.f32.mrf.mxu1  ;;  %v2311_v51 = vpop.f32.mrf.mxu0  ;;  %v13456_v47 = vpack.c.bf16 %v446_v7, %v447_v40  ;;  %v449_v23 = vrot.slane %v18492_v48, 1 }
 0x1bd   :  { %18489 = vst [vmem:[#allocation43_spill] sm:$0xff] %v13439_v46  ;;  %v2132_v43 = vadd.f32 %v1925_v38, %v18490_v20  ;;  %v13448_v54 = vadd.f32 %v2311_v51, %v2124_v5  ;;  %v451_v38 = vrot.slane %v18493_v24, 1  ;;  %v18494_v5 = vld [vmem:[#allocation64_spill] sm:$0xff] }
 0x1be   :  { %v9992_v45 = vpop.f32.mrf.mxu1  ;;  %v10064_v37 = vpop.f32.mrf.mxu0  ;;  %v452_v51 = vrot.slane %v18494_v5, 1 }
 0x1bf   :  { %v2135_v16 = vadd.f32 %v9992_v45, %v12882_v27  ;;  %v13454_v11 = vadd.f32 %v10064_v37, %v2127_v31  ;;  %v18495_v45 = vld [vmem:[#allocation66_spill] sm:$0xff] }
 0x1c0   :  { %v1928_v46 = vpop.f32.mrf.mxu1  ;;  %v2314_v9 = vpop.f32.mrf.mxu0 }
 0x1c1   :  { %v2133_v20 = vadd.f32 %v1928_v46, %v12885_v63  ;;  %v13462_v53 = vadd.f32 %v2314_v9, %v2125_v50  ;;  %v450_v63 = vsel %vm373_vm4, %v448_v8, %v449_v23  ;;  %v18496_v8 = vld [vmem:[#allocation67_spill] sm:$0xff] }
 0x1c2   :  { %v9995_v55 = vpop.f32.mrf.mxu1  ;;  %v10067_v19 = vpop.f32.mrf.mxu0  ;;  %10186 = vmatmul.mubr.bf16.gmra.mxu1 %v12835_v6  ;;  %10258 = vmatmul.mubr.msk.bf16.gmra.mxu0 %vm12946_vm5, %v13450_v13  ;;  %v453_v6 = vsel %vm373_vm4, %v451_v38, %v452_v51  ;;  %v455_v5 = vrot.slane %v18496_v8, 1  ;;  %v18500_v8 = vld [vmem:[#allocation73_spill] sm:$0xff] }
 0x1c3   :  { %v2138_v27 = vadd.f32 %v9995_v55, %v12890_v1  ;;  %v13469_v31 = vadd.f32 %v10067_v19, %v2130_v44  ;;  %10189 = vmatprep.mubr.bf16.mxu1 %v12852_v42  ;;  %10261 = vmatprep.mubr.msk.bf16.mxu0 %vm12946_vm5, %v13456_v47  ;;  %v13480_v44 = vpack.c.bf16 %v449_v23, %v450_v63  ;;  %v454_v42 = vrot.slane %v18495_v45, 1  ;;  %v18497_v19 = vld [vmem:[#allocation70_spill] sm:$0xff] }
 0x1c4   :  { %v1941_v50 = vpop.f32.mrf.mxu1  ;;  %v2327_v24 = vpop.f32.mrf.mxu0  ;;  %v13486_v9 = vpack.c.bf16 %v452_v51, %v453_v6 }
 0x1c5   :  { %v2136_v7 = vadd.f32 %v1941_v50, %v12895_v21  ;;  %v13478_v46 = vadd.f32 %v2327_v24, %v2128_v32  ;;  %v457_v21 = vrot.slane %v18497_v19, 1  ;;  %v18498_v32 = vld [vmem:[#allocation71_spill] sm:$0xff] }
 0x1c6   :  { %v9996_v40 = vpop.f32.mrf.mxu1  ;;  %v10068_v1 = vpop.f32.mrf.mxu0  ;;  %v458_v50 = vrot.slane %v18498_v32, 1 }
 0x1c7   :  { %v2139_v37 = vadd.f32 %v9996_v40, %v12898_v0  ;;  %v13484_v48 = vadd.f32 %v10068_v1, %v2131_v25 }
 0x1c8   :  { %v1944_v55 = vpop.f32.mrf.mxu1  ;;  %v2330_v38 = vpop.f32.mrf.mxu0 }
 0x1c9   :  { %v2137_v24 = vadd.f32 %v1944_v55, %v12903_v59  ;;  %v13492_v23 = vadd.f32 %v2330_v38, %v2129_v15  ;;  %v456_v59 = vsel %vm373_vm4, %v454_v42, %v455_v5  ;;  %v18501_v42 = vld [vmem:[#allocation74_spill] sm:$0xff] }
 0x1ca   :  { %v9999_v63 = vpop.f32.mrf.mxu1  ;;  %v10071_v45 = vpop.f32.mrf.mxu0  ;;  %10190 = vmatmul.mubr.bf16.gmra.mxu1 %v12879_v39  ;;  %10262 = vmatmul.mubr.msk.bf16.gmra.mxu0 %vm12946_vm5, %v13480_v44  ;;  %v459_v39 = vsel %vm373_vm4, %v457_v21, %v458_v50  ;;  %v461_v32 = vrot.slane %v18501_v42, 1 }
 0x1cb   :  { %v2142_v0 = vadd.f32 %v9999_v63, %v12913_v33  ;;  %v13499_v25 = vadd.f32 %v10071_v45, %v2134_v35  ;;  %10193 = vmatprep.mubr.bf16.mxu1 %v12934_v18  ;;  %10265 = vmatprep.mubr.msk.bf16.mxu0 %vm12946_vm5, %v13486_v9  ;;  %v13510_v35 = vpack.c.bf16 %v455_v5, %v456_v59  ;;  %v460_v18 = vrot.slane %v18500_v8, 1  ;;  %v18502_v45 = vld [vmem:[#allocation76_spill] sm:$0xff] }
 0x1cc   :  { %v1957_v15 = vpop.f32.mrf.mxu1  ;;  %v2343_v51 = vpop.f32.mrf.mxu0  ;;  %v13516_v19 = vpack.c.bf16 %v458_v50, %v459_v39  ;;  %v18505_v39 = vld [vmem:[#allocation84_spill] sm:$0xff] }
 0x1cd   :  { %v2140_v6 = vadd.f32 %v1957_v15, %v12922_v56  ;;  %v13508_v40 = vadd.f32 %v2343_v51, %v2132_v43  ;;  %v463_v56 = vrot.slane %v18502_v45, 1  ;;  %v18503_v43 = vld [vmem:[#allocation77_spill] sm:$0xff] }
 0x1ce   :  { %v10000_v1 = vpop.f32.mrf.mxu1  ;;  %v10072_v33 = vpop.f32.mrf.mxu0  ;;  %v464_v15 = vrot.slane %v18503_v43, 1  ;;  %v18508_v45 = vld [vmem:[#allocation85_spill] sm:$0xff] }
 0x1cf   :  { %18499 = vst [vmem:[#allocation46_spill] sm:$0xff] %v13508_v40  ;;  %v2143_v55 = vadd.f32 %v10000_v1, %v12940_v17  ;;  %v13514_v38 = vadd.f32 %v10072_v33, %v2135_v16  ;;  %v18512_v40 = vld [vmem:[#allocation87_spill] sm:$0xff] }
 0x1d0   :  { %v1960_v63 = vpop.f32.mrf.mxu1  ;;  %v2346_v21 = vpop.f32.mrf.mxu0  ;;  %v465_v50 = vsel %vm373_vm4, %v463_v56, %v464_v15 }
 0x1d1   :  { %v2141_v51 = vadd.f32 %v1960_v63, %v12953_v61  ;;  %v13522_v5 = vadd.f32 %v2346_v21, %v2133_v20  ;;  %v462_v61 = vsel %vm373_vm4, %v460_v18, %v461_v32  ;;  %v18507_v63 = vld [vmem:[#allocation81_spill] sm:$0xff]  ;;  %v18511_v18 = vld [vmem:[#allocation82_spill] sm:$0xff] }
 0x1d2   :  { %v10003_v59 = vpop.f32.mrf.mxu1  ;;  %v10075_v8 = vpop.f32.mrf.mxu0  ;;  %10194 = vmatmul.mubr.bf16.gmra.mxu1 %v18441_v49  ;;  %10266 = vmatmul.mubr.msk.bf16.gmra.mxu0 %vm12946_vm5, %v13510_v35  ;;  %v13542_v42 = vpack.c.bf16 %v461_v32, %v462_v61  ;;  %v466_v21 = vrot.slane %v18507_v63, 1  ;;  %v18514_v32 = vld [vmem:[#allocation86_spill] sm:$0xff] }
 0x1d3   :  { %18504 = vst [vmem:[#allocation47_spill] sm:$0xff] %v13522_v5  ;;  %v2146_v17 = vadd.f32 %v10003_v59, %v12964_v30  ;;  %v13529_v16 = vadd.f32 %v10075_v8, %v2138_v27  ;;  %10269 = vmatprep.mubr.msk.bf16.mxu0 %vm12946_vm5, %v13516_v19  ;;  %10293 = vmatprep.mubr.msk.bf16.mxu1 %vm12946_vm5, %v12981_v2  ;;  %v467_v8 = vrot.slane %v18511_v18, 1 }
 0x1d4   :  { %v1973_v20 = vpop.f32.mrf.mxu1  ;;  %v2359_v49 = vpop.f32.mrf.mxu0  ;;  %v13548_v2 = vpack.c.bf16 %v464_v15, %v465_v50 }
 0x1d5   :  { %v2144_v1 = vadd.f32 %v1973_v20, %v18505_v39  ;;  %v13540_v33 = vadd.f32 %v2359_v49, %v2136_v7 }
 0x1d6   :  { %v10004_v30 = vpop.f32.mrf.mxu1  ;;  %v10076_v27 = vpop.f32.mrf.mxu0  ;;  %18510 = vst [vmem:[#allocation48_spill] sm:$0xff] %v13548_v2 }
 0x1d7   :  { %18506 = vst [vmem:[#allocation45_spill] sm:$0xff] %v13540_v33  ;;  %v2147_v43 = vadd.f32 %v10004_v30, %v18508_v45  ;;  %v13546_v59 = vadd.f32 %v10076_v27, %v2139_v37  ;;  %v18515_v37 = vld [vmem:[#allocation23_spill] sm:$0xff]  ;;  %v18518_v30 = vld [vmem:[#allocation36_spill] sm:$0xff]  ;;  %v18522_v33 = vld [vmem:[#allocation18_spill] sm:$0xff] }
 0x1d8   :  { %v1976_v5 = vpop.f32.mrf.mxu1  ;;  %v2362_v56 = vpop.f32.mrf.mxu0 }
 0x1d9   :  { %18509 = vst [vmem:[#allocation62_spill] sm:$0xff] %v13546_v59  ;;  %v2145_v20 = vadd.f32 %v1976_v5, %v18512_v40  ;;  %v13552_v7 = vadd.f32 %v2362_v56, %v2137_v24  ;;  %v18517_v24 = vld [vmem:[#allocation5_spill] sm:$0xff]  ;;  %v468_v40 = vsel %vm373_vm4, %v466_v21, %v467_v8  ;;  %v18520_v56 = vld [vmem:[#allocation88_spill] sm:$0xff] }
 0x1da   :  { %v10007_v49 = vpop.f32.mrf.mxu1  ;;  %v10079_v39 = vpop.f32.mrf.mxu0  ;;  %10270 = vmatmul.mubr.msk.bf16.gmra.mxu0 %vm12946_vm5, %v13542_v42  ;;  %10294 = vmatmul.mubr.msk.bf16.vlgmr.msra.gmra.mxu1 %vm12946_vm5, %v18514_v32 }
 0x1db   :  { %18513 = vst [vmem:[#allocation49_spill] sm:$0xff] %v13552_v7  ;;  %v2150_v15 = vadd.f32 %v10007_v49, %v18515_v37  ;;  %v13561_v61 = vadd.f32 %v10079_v39, %v2142_v0  ;;  %10273 = vmatprep.mubr.msk.bf16.mxu0 %vm12946_vm5, %v13548_v2  ;;  %10297 = vmatprep.mubr.msk.bf16.mxu1 %vm12946_vm5, %v18517_v24 }
 0x1dc   :  { %v1989_v5 = vpop.f32.mrf.mxu1  ;;  %v2375_v50 = vpop.f32.mrf.mxu0  ;;  %v13573_v0 = vpack.c.bf16 %v467_v8, %v468_v40  ;;  %v18525_v8 = vld [vmem:[#allocation15_spill] sm:$0xff] }
 0x1dd   :  { %18516 = vst [vmem:[#allocation65_spill] sm:$0xff] %v13561_v61  ;;  %v2148_v27 = vadd.f32 %v1989_v5, %v18518_v30  ;;  %v13571_v63 = vadd.f32 %v2375_v50, %v2140_v6  ;;  %v18524_v6 = vld [vmem:[#allocation89_spill] sm:$0xff]  ;;  %v18527_v5 = vld [vmem:[#allocation16_spill] sm:$0xff] }
 0x1de   :  { %v10008_v45 = vpop.f32.mrf.mxu1  ;;  %v10080_v18 = vpop.f32.mrf.mxu0 }
 0x1df   :  { %18519 = vst [vmem:[#allocation50_spill] sm:$0xff] %v13571_v63  ;;  %v2151_v49 = vadd.f32 %v10008_v45, %v18520_v56  ;;  %v13576_v39 = vadd.f32 %v10080_v18, %v2143_v55  ;;  %v18530_v56 = vld [vmem:[#allocation7_spill] sm:$0xff] }
 0x1e0   :  { %v1992_v37 = vpop.f32.mrf.mxu1  ;;  %v2378_v7 = vpop.f32.mrf.mxu0 }
 0x1e1   :  { %18521 = vst [vmem:[#allocation69_spill] sm:$0xff] %v13576_v39  ;;  %v2149_v61 = vadd.f32 %v1992_v37, %v18522_v33  ;;  %v13579_v2 = vadd.f32 %v2378_v7, %v2141_v51  ;;  %v18528_v7 = vld [vmem:[#allocation6_spill] sm:$0xff]  ;;  %v18534_v39 = vld [vmem:[#allocation17_spill] sm:$0xff] }
 0x1e2   :  { %v10011_v21 = vpop.f32.mrf.mxu1  ;;  %v10083_v59 = vpop.f32.mrf.mxu0  ;;  %10274 = vmatmul.mubr.msk.bf16.gmra.mxu0 %vm12946_vm5, %v13573_v0  ;;  %10298 = vmatmul.mubr.msk.bf16.gmra.mxu1 %vm12946_vm5, %v18524_v6 }
 0x1e3   :  { %18523 = vst [vmem:[#allocation51_spill] sm:$0xff] %v13579_v2  ;;  %v2154_v40 = vadd.f32 %v10011_v21, %v18525_v8  ;;  %v13588_v55 = vadd.f32 %v10083_v59, %v2146_v17  ;;  %10301 = vmatprep.mubr.msk.bf16.mxu1 %vm12946_vm5, %v18527_v5  ;;  %10373 = vmatprep.mubr.msk.bf16.mxu0 %vm12946_vm5, %v18514_v32  ;;  %v18532_v8 = vld [vmem:[#allocation19_spill] sm:$0xff] }
 0x1e4   :  { %v2005_v51 = vpop.f32.mrf.mxu1  ;;  %v2391_v33 = vpop.f32.mrf.mxu0 }
 0x1e5   :  { %18526 = vst [vmem:[#allocation52_spill] sm:$0xff] %v13588_v55  ;;  %v2152_v50 = vadd.f32 %v2005_v51, %v18528_v7  ;;  %v13597_v30 = vadd.f32 %v2391_v33, %v2144_v1  ;;  %v18535_v1 = vld [vmem:[#allocation20_spill] sm:$0xff]  ;;  %v18537_v33 = vld [vmem:[#allocation21_spill] sm:$0xff] }
 0x1e6   :  { %v10012_v45 = vpop.f32.mrf.mxu1  ;;  %v10084_v18 = vpop.f32.mrf.mxu0 }
 0x1e7   :  { %18529 = vst [vmem:[#allocation53_spill] sm:$0xff] %v13597_v30  ;;  %v2155_v37 = vadd.f32 %v10012_v45, %v18530_v56  ;;  %v13600_v17 = vadd.f32 %v10084_v18, %v2147_v43  ;;  %v18538_v45 = vld [vmem:[#allocation31_spill] sm:$0xff] }
 0x1e8   :  { %v2008_v59 = vpop.f32.mrf.mxu1  ;;  %v2394_v21 = vpop.f32.mrf.mxu0 }
 0x1e9   :  { %18531 = vst [vmem:[#allocation72_spill] sm:$0xff] %v13600_v17  ;;  %v2153_v2 = vadd.f32 %v2008_v59, %v18532_v8  ;;  %v13603_v63 = vadd.f32 %v2394_v21, %v2145_v20  ;;  %v18540_v21 = vld [vmem:[#allocation32_spill] sm:$0xff]  ;;  %v18544_v17 = vld [vmem:[#allocation22_spill] sm:$0xff] }
 0x1ea   :  { %v10015_v55 = vpop.f32.mrf.mxu1  ;;  %v10087_v32 = vpop.f32.mrf.mxu0  ;;  %10302 = vmatmul.mubr.msk.bf16.gmra.mxu1 %vm12946_vm5, %v18534_v39  ;;  %10374 = vmatmul.mubr.msk.bf16.vlgmr.msra.gmra.mxu0 %vm12946_vm5, %v18517_v24 }
 0x1eb   :  { %18533 = vst [vmem:[#allocation54_spill] sm:$0xff] %v13603_v63  ;;  %v2158_v51 = vadd.f32 %v10015_v55, %v18535_v1  ;;  %v13612_v43 = vadd.f32 %v10087_v32, %v2150_v15  ;;  %10305 = vmatprep.mubr.msk.bf16.mxu1 %vm12946_vm5, %v18537_v33  ;;  %10377 = vmatprep.mubr.msk.bf16.mxu0 %vm12946_vm5, %v18524_v6  ;;  %v18542_v1 = vld [vmem:[#allocation24_spill] sm:$0xff] }
 0x1ec   :  { %v2021_v20 = vpop.f32.mrf.mxu1  ;;  %v2407_v7 = vpop.f32.mrf.mxu0 }
 0x1ed   :  { %18536 = vst [vmem:[#allocation75_spill] sm:$0xff] %v13612_v43  ;;  %v2156_v18 = vadd.f32 %v2021_v20, %v18538_v45  ;;  %v13621_v56 = vadd.f32 %v2407_v7, %v2148_v27  ;;  %v18545_v27 = vld [vmem:[#allocation25_spill] sm:$0xff]  ;;  %v18547_v7 = vld [vmem:[#allocation26_spill] sm:$0xff] }
 0x1ee   :  { %v10016_v59 = vpop.f32.mrf.mxu1  ;;  %v10088_v24 = vpop.f32.mrf.mxu0 }
 0x1ef   :  { %18539 = vst [vmem:[#allocation55_spill] sm:$0xff] %v13621_v56  ;;  %v2159_v55 = vadd.f32 %v10016_v59, %v18540_v21  ;;  %v13624_v15 = vadd.f32 %v10088_v24, %v2151_v49  ;;  %v18548_v59 = vld [vmem:[#allocation9_spill] sm:$0xff] }
 0x1f0   :  { %v2024_v8 = vpop.f32.mrf.mxu1  ;;  %v2410_v32 = vpop.f32.mrf.mxu0 }
 0x1f1   :  { %18541 = vst [vmem:[#allocation57_spill] sm:$0xff] %v13624_v15  ;;  %v2157_v63 = vadd.f32 %v2024_v8, %v18542_v1  ;;  %v13627_v30 = vadd.f32 %v2410_v32, %v2149_v61  ;;  %v18550_v32 = vld [vmem:[#allocation10_spill] sm:$0xff]  ;;  %v18554_v15 = vld [vmem:[#allocation27_spill] sm:$0xff] }
 0x1f2   :  { %v10019_v43 = vpop.f32.mrf.mxu1  ;;  %v10091_v6 = vpop.f32.mrf.mxu0  ;;  %10306 = vmatmul.mubr.msk.bf16.gmra.mxu1 %vm12946_vm5, %v18544_v17  ;;  %10378 = vmatmul.mubr.msk.bf16.gmra.mxu0 %vm12946_vm5, %v18527_v5 }
 0x1f3   :  { %18543 = vst [vmem:[#allocation58_spill] sm:$0xff] %v13627_v30  ;;  %v2162_v20 = vadd.f32 %v10019_v43, %v18545_v27  ;;  %v13636_v49 = vadd.f32 %v10091_v6, %v2154_v40  ;;  %10309 = vmatprep.mubr.msk.bf16.mxu1 %vm12946_vm5, %v18547_v7  ;;  %10381 = vmatprep.mubr.msk.bf16.mxu0 %vm12946_vm5, %v18534_v39  ;;  %v18552_v27 = vld [vmem:[#allocation8_spill] sm:$0xff] }
 0x1f4   :  { %v2037_v61 = vpop.f32.mrf.mxu1  ;;  %v2423_v45 = vpop.f32.mrf.mxu0 }
 0x1f5   :  { %18546 = vst [vmem:[#allocation78_spill] sm:$0xff] %v13636_v49  ;;  %v2160_v24 = vadd.f32 %v2037_v61, %v18548_v59  ;;  %v13645_v21 = vadd.f32 %v2423_v45, %v2152_v50  ;;  %v18555_v50 = vld [vmem:[#allocation28_spill] sm:$0xff]  ;;  %v18557_v45 = vld [vmem:[#allocation29_spill] sm:$0xff] }
 0x1f6   :  { %v10020_v8 = vpop.f32.mrf.mxu1  ;;  %v10092_v5 = vpop.f32.mrf.mxu0 }
 0x1f7   :  { %18549 = vst [vmem:[#allocation68_spill] sm:$0xff] %v13645_v21  ;;  %v2163_v43 = vadd.f32 %v10020_v8, %v18550_v32  ;;  %v13648_v40 = vadd.f32 %v10092_v5, %v2155_v37  ;;  %v18558_v8 = vld [vmem:[#allocation12_spill] sm:$0xff] }
 0x1f8   :  { %v2040_v1 = vpop.f32.mrf.mxu1  ;;  %v2426_v6 = vpop.f32.mrf.mxu0 }
 0x1f9   :  { %18551 = vst [vmem:[#allocation79_spill] sm:$0xff] %v13648_v40  ;;  %v2161_v30 = vadd.f32 %v2040_v1, %v18552_v27  ;;  %v13651_v56 = vadd.f32 %v2426_v6, %v2153_v2  ;;  %v18560_v6 = vld [vmem:[#allocation14_spill] sm:$0xff] }
 0x1fa   :  { %v10023_v49 = vpop.f32.mrf.mxu1  ;;  %v10095_v39 = vpop.f32.mrf.mxu0  ;;  %10310 = vmatmul.mubr.msk.bf16.gmra.mxu1 %vm12946_vm5, %v18554_v15  ;;  %10382 = vmatmul.mubr.msk.bf16.gmra.mxu0 %vm12946_vm5, %v18537_v33  ;;  %v18563_v40 = vld [vmem:[#allocation30_spill] sm:$0xff] }
 0x1fb   :  { %18553 = vst [vmem:[#allocation80_spill] sm:$0xff] %v13651_v56  ;;  %v2166_v61 = vadd.f32 %v10023_v49, %v18555_v50  ;;  %v13660_v37 = vadd.f32 %v10095_v39, %v2158_v51  ;;  %10313 = vmatprep.mubr.msk.bf16.mxu1 %vm12946_vm5, %v18557_v45  ;;  %10385 = vmatprep.mubr.msk.bf16.mxu0 %vm12946_vm5, %v18544_v17  ;;  %v18561_v50 = vld [vmem:[#allocation33_spill] sm:$0xff] }
 0x1fc   :  { %v2053_v2 = vpop.f32.mrf.mxu1  ;;  %v2439_v59 = vpop.f32.mrf.mxu0 }
 0x1fd   :  { %18556 = vst [vmem:[#allocation60_spill] sm:$0xff] %v13660_v37  ;;  %v2164_v5 = vadd.f32 %v2053_v2, %v18558_v8  ;;  %v13669_v32 = vadd.f32 %v2439_v59, %v2156_v18  ;;  %v18564_v18 = vld [vmem:[#allocation34_spill] sm:$0xff]  ;;  %v18565_v8 = vld [vmem:[#allocation35_spill] sm:$0xff] }
 0x1fe   :  { %v10024_v1 = vpop.f32.mrf.mxu1  ;;  %v10096_v33 = vpop.f32.mrf.mxu0 }
 0x1ff   :  { %18559 = vst [vmem:[#allocation61_spill] sm:$0xff] %v13669_v32  ;;  %v2167_v49 = vadd.f32 %v10024_v1, %v18560_v6  ;;  %v13672_v51 = vadd.f32 %v10096_v33, %v2159_v55 }
 0x200   :  { %v2056_v27 = vpop.f32.mrf.mxu1  ;;  %v2442_v39 = vpop.f32.mrf.mxu0 }
 0x201   :  { %v2165_v56 = vadd.f32 %v2056_v27, %v18561_v50  ;;  %v13675_v21 = vadd.f32 %v2442_v39, %v2157_v63  ;;  %v11088_v27 = vld [vmem:[%s18043_s0 + $0xf0] sm:$0xff] }
 0x202   :  { %v10027_v37 = vpop.f32.mrf.mxu1  ;;  %v10099_v17 = vpop.f32.mrf.mxu0  ;;  %10314 = vmatmul.mubr.msk.bf16.gmra.mxu1 %vm12946_vm5, %v18563_v40  ;;  %10386 = vmatmul.mubr.msk.bf16.gmra.mxu0 %vm12946_vm5, %v18547_v7  ;;  %v421_v39 = vrot.slane %v11088_v27, 1  ;;  %v18570_v27 = vld [vmem:[#allocation44_spill] sm:$0xff] }
 0x203   :  { %18562 = vst [vmem:[#allocation63_spill] sm:$0xff] %v13675_v21  ;;  %v2170_v2 = vadd.f32 %v10027_v37, %v18564_v18  ;;  %v13684_v55 = vadd.f32 %v10099_v17, %v2162_v20  ;;  %10317 = vmatprep.mubr.msk.bf16.mxu1 %vm12946_vm5, %v13280_v28  ;;  %10389 = vmatprep.mubr.msk.bf16.mxu0 %vm12946_vm5, %v18554_v15  ;;  %v11089_v15 = vld [vmem:[%s18043_s0 + $0xf8] sm:$0xff] }
 0x204   :  { %v2069_v63 = vpop.f32.mrf.mxu1  ;;  %v2455_v59 = vpop.f32.mrf.mxu0  ;;  %v422_v50 = vrot.slane %v11089_v15, 1 }
 0x205   :  { %v2168_v1 = vadd.f32 %v2069_v63, %v18565_v8  ;;  %v13693_v33 = vadd.f32 %v2455_v59, %v2160_v24 }
 0x206   :  { %v10028_v6 = vpop.f32.mrf.mxu1  ;;  %v10100_v7 = vpop.f32.mrf.mxu0 }
 0x207   :  { %18566 = vst [vmem:[#allocation64_spill] sm:$0xff] %v13693_v33  ;;  %v2171_v37 = vadd.f32 %v10028_v6, %v13289_v62  ;;  %v13696_v20 = vadd.f32 %v10100_v7, %v2163_v43  ;;  %v18569_v6 = vld [vmem:[#allocation37_spill] sm:$0xff]  ;;  %v18572_v33 = vld [vmem:[#allocation38_spill] sm:$0xff] }
 0x208   :  { %v2072_v17 = vpop.f32.mrf.mxu1  ;;  %v2458_v18 = vpop.f32.mrf.mxu0 }
 0x209   :  { %v2169_v24 = vadd.f32 %v2072_v17, %v13294_v29  ;;  %v13705_v63 = vadd.f32 %v2458_v18, %v2161_v30  ;;  %v423_v29 = vsel %vm373_vm4, %v421_v39, %v422_v50  ;;  %v18571_v18 = vld [vmem:[#allocation11_spill] sm:$0xff] }
 0x20a   :  { %v10031_v59 = vpop.f32.mrf.mxu1  ;;  %v10103_v62 = vpop.f32.mrf.mxu0  ;;  %10318 = vmatmul.mubr.msk.bf16.gmra.mxu1 %vm12946_vm5, %v13291_v4  ;;  %10390 = vmatmul.mubr.msk.bf16.gmra.mxu0 %vm12946_vm5, %v18557_v45 }
 0x20b   :  { %18567 = vst [vmem:[#allocation66_spill] sm:$0xff] %v13705_v63  ;;  %v2174_v43 = vadd.f32 %v10031_v59, %v13302_v52  ;;  %v13714_v8 = vadd.f32 %v10103_v62, %v2166_v61  ;;  %10321 = vmatprep.mubr.msk.bf16.mxu1 %vm12946_vm5, %v18569_v6  ;;  %10393 = vmatprep.mubr.msk.bf16.mxu0 %vm12946_vm5, %v18563_v40 }
 0x20c   :  { %v2085_v30 = vpop.f32.mrf.mxu1  ;;  %v2471_v7 = vpop.f32.mrf.mxu0  ;;  %v8916_v61 = vpack.c.bf16 %v422_v50, %v423_v29 }
 0x20d   :  { %18568 = vst [vmem:[#allocation67_spill] sm:$0xff] %v13714_v8  ;;  %v2172_v15 = vadd.f32 %v2085_v30, %v18570_v27  ;;  %v13724_v17 = vadd.f32 %v2471_v7, %v2164_v5  ;;  %v18574_v5 = vld [vmem:[#allocation39_spill] sm:$0xff] }
 0x20e   :  { %v10032_v45 = vpop.f32.mrf.mxu1  ;;  %v10104_v52 = vpop.f32.mrf.mxu0 }
 0x20f   :  { %v2175_v59 = vadd.f32 %v10032_v45, %v18571_v18  ;;  %v13727_v62 = vadd.f32 %v10104_v52, %v2167_v49  ;;  %v18575_v49 = vld [vmem:[#allocation40_spill] sm:$0xff]  ;;  %v18577_v18 = vld [vmem:[#allocation13_spill] sm:$0xff] }
 0x210   :  { %v2088_v63 = vpop.f32.mrf.mxu1  ;;  %v2474_v21 = vpop.f32.mrf.mxu0 }
 0x211   :  { %v2173_v8 = vadd.f32 %v2088_v63, %v18572_v33  ;;  %v13730_v40 = vadd.f32 %v2474_v21, %v2165_v56 }
 0x212   :  { %v10035_v39 = vpop.f32.mrf.mxu1  ;;  %v10107_v32 = vpop.f32.mrf.mxu0  ;;  %10322 = vmatmul.mubr.msk.bf16.gmra.mxu1 %vm12946_vm5, %v8916_v61  ;;  %10394 = vmatmul.mubr.msk.bf16.gmra.mxu0 %vm12946_vm5, %v13280_v28 }
 0x213   :  { %18573 = vst [vmem:[#allocation70_spill] sm:$0xff] %v13730_v40  ;;  %v2178_v50 = vadd.f32 %v10035_v39, %v18574_v5  ;;  %v13738_v29 = vadd.f32 %v10107_v32, %v2170_v2  ;;  %10325 = vmatprep.mubr.msk.bf16.mxu1 %vm12946_vm5, %v13357_v22  ;;  %10397 = vmatprep.mubr.msk.bf16.mxu0 %vm12946_vm5, %v13291_v4 }
 0x214   :  { %v2101_v56 = vpop.f32.mrf.mxu1  ;;  %v2487_v21 = vpop.f32.mrf.mxu0 }
 0x215   :  { %v2176_v33 = vadd.f32 %v2101_v56, %v18575_v49  ;;  %v13747_v63 = vadd.f32 %v2487_v21, %v2168_v1 }
 0x216   :  { %v10036_v30 = vpop.f32.mrf.mxu1  ;;  %v10108_v28 = vpop.f32.mrf.mxu0 }
 0x217   :  { %v2179_v7 = vadd.f32 %v10036_v30, %v13362_v57  ;;  %v13750_v32 = vadd.f32 %v10108_v28, %v2171_v37 }
 0x218   :  { %v2104_v2 = vpop.f32.mrf.mxu1  ;;  %v2490_v27 = vpop.f32.mrf.mxu0 }
 0x219   :  { %v2177_v22 = vadd.f32 %v2104_v2, %v13369_v60  ;;  %v13753_v45 = vadd.f32 %v2490_v27, %v2169_v24  ;;  %v18579_v2 = vld [vmem:[#allocation56_spill] sm:$0xff]  ;;  %v18581_v27 = vld [vmem:[#allocation41_spill] sm:$0xff] }
 0x21a   :  { %v10111_v52 = vpop.f32.mrf.mxu0  ;;  %v10135_v4 = vpop.f32.mrf.mxu1  ;;  %10326 = vmatmul.mubr.msk.bf16.gmra.mxu1 %vm12946_vm5, %v13365_v14  ;;  %10398 = vmatmul.mubr.msk.bf16.gmra.mxu0 %vm12946_vm5, %v18569_v6 }
 0x21b   :  { %18576 = vst [vmem:[#allocation71_spill] sm:$0xff] %v13753_v45  ;;  %v13761_v1 = vadd.f32 %v10111_v52, %v2174_v43  ;;  %v2954_v57 = vadd.f32 %v10135_v4, %v13378_v41  ;;  %10329 = vmatprep.mubr.msk.bf16.mxu1 %vm12946_vm5, %v13390_v34  ;;  %10401 = vmatprep.mubr.msk.bf16.mxu0 %vm12946_vm5, %v8916_v61  ;;  %v18582_v4 = vld [vmem:[#allocation59_spill] sm:$0xff] }
 0x21c   :  { %v2503_v60 = vpop.f32.mrf.mxu0  ;;  %v2697_v37 = vpop.f32.mrf.mxu1 }
 0x21d   :  { %v13769_v24 = vadd.f32 %v2503_v60, %v2172_v15  ;;  %v2952_v39 = vadd.f32 %v2697_v37, %v18577_v18  ;;  %v18580_v15 = vld [vmem:[#allocation83_spill] sm:$0xff] }
 0x21e   :  { %v10112_v5 = vpop.f32.mrf.mxu0  ;;  %v10136_v56 = vpop.f32.mrf.mxu1 }
 0x21f   :  { %v13772_v6 = vadd.f32 %v10112_v5, %v2175_v59  ;;  %v2955_v43 = vadd.f32 %v10136_v56, %v13394_v26 }
 0x220   :  { %v2506_v41 = vpop.f32.mrf.mxu0  ;;  %v2700_v21 = vpop.f32.mrf.mxu1 }
 0x221   :  { %v13775_v49 = vadd.f32 %v2506_v41, %v2173_v8  ;;  %v2953_v30 = vadd.f32 %v2700_v21, %v13402_v58 }
 0x222   :  { %v10115_v28 = vpop.f32.mrf.mxu0  ;;  %v10139_v61 = vpop.f32.mrf.mxu1  ;;  %10330 = vmatmul.mubr.msk.bf16.gmra.mxu1 %vm12946_vm5, %v18579_v2  ;;  %10402 = vmatmul.mubr.msk.bf16.gmra.mxu0 %vm12946_vm5, %v18580_v15 }
 0x223   :  { %18578 = vst [vmem:[#allocation73_spill] sm:$0xff] %v13775_v49  ;;  %v13784_v59 = vadd.f32 %v10115_v28, %v2178_v50  ;;  %v2958_v26 = vadd.f32 %v10139_v61, %v18581_v27  ;;  %10333 = vmatprep.mubr.msk.bf16.mxu1 %vm12946_vm5, %v13420_v3  ;;  %10405 = vmatprep.mubr.msk.bf16.mxu0 %vm12946_vm5, %v13365_v14  ;;  %v18584_v27 = vld [vmem:[#allocation42_spill] sm:$0xff]  ;;  %v18594_v49 = vld [vmem:[#allocation72_spill] sm:$0xff] }
 0x224   :  { %v2519_v58 = vpop.f32.mrf.mxu0  ;;  %v2713_v8 = vpop.f32.mrf.mxu1 }
 0x225   :  { %v13793_v52 = vadd.f32 %v2519_v58, %v2176_v33  ;;  %v2956_v60 = vadd.f32 %v2713_v8, %v18582_v4  ;;  %v18585_v33 = vld [vmem:[#allocation43_spill] sm:$0xff] }
 0x226   :  { %v10116_v37 = vpop.f32.mrf.mxu0  ;;  %v10140_v18 = vpop.f32.mrf.mxu1 }
 0x227   :  { %v13796_v50 = vadd.f32 %v10116_v37, %v2179_v7  ;;  %v2959_v5 = vadd.f32 %v10140_v18, %v13424_v36 }
 0x228   :  { %v2522_v56 = vpop.f32.mrf.mxu0  ;;  %v2716_v41 = vpop.f32.mrf.mxu1 }
 0x229   :  { %v13799_v21 = vadd.f32 %v2522_v56, %v2177_v22  ;;  %v2957_v28 = vadd.f32 %v2716_v41, %v13432_v12 }
 0x22a   :  { %v10143_v61 = vpop.f32.mrf.mxu1  ;;  %v10215_v14 = vpop.f32.mrf.mxu0  ;;  %10334 = vmatmul.mubr.msk.bf16.gmra.mxu1 %vm12946_vm5, %v18584_v27  ;;  %10406 = vmatmul.mubr.msk.bf16.gmra.mxu0 %vm12946_vm5, %v13390_v34 }
 0x22b   :  { %18583 = vst [vmem:[#allocation74_spill] sm:$0xff] %v13799_v21  ;;  %v2962_v7 = vadd.f32 %v10143_v61, %v18585_v33  ;;  %v13809_v58 = vadd.f32 %v10215_v14, %v2954_v57  ;;  %10337 = vmatprep.mubr.msk.bf16.mxu1 %vm12946_vm5, %v13450_v13  ;;  %10409 = vmatprep.mubr.msk.bf16.mxu0 %vm12946_vm5, %v18579_v2 }
 0x22c   :  { %v2729_v36 = vpop.f32.mrf.mxu1  ;;  %v3148_v12 = vpop.f32.mrf.mxu0 }
 0x22d   :  { %v2960_v22 = vadd.f32 %v2729_v36, %v13448_v54  ;;  %v13818_v8 = vadd.f32 %v3148_v12, %v2952_v39 }
 0x22e   :  { %v10144_v4 = vpop.f32.mrf.mxu1  ;;  %v10216_v34 = vpop.f32.mrf.mxu0 }
 0x22f   :  { %v2963_v37 = vadd.f32 %v10144_v4, %v13454_v11  ;;  %v13821_v57 = vadd.f32 %v10216_v34, %v2955_v43 }
 0x230   :  { %v2732_v18 = vpop.f32.mrf.mxu1  ;;  %v3151_v56 = vpop.f32.mrf.mxu0 }
 0x231   :  { %v2961_v41 = vadd.f32 %v2732_v18, %v13462_v53  ;;  %v13824_v61 = vadd.f32 %v3151_v56, %v2953_v30 }
 0x232   :  { %v10147_v14 = vpop.f32.mrf.mxu1  ;;  %v10219_v2 = vpop.f32.mrf.mxu0  ;;  %10338 = vmatmul.mubr.msk.bf16.gmra.mxu1 %vm12946_vm5, %v13456_v47  ;;  %10410 = vmatmul.mubr.msk.bf16.gmra.mxu0 %vm12946_vm5, %v13420_v3 }
 0x233   :  { %v2966_v54 = vadd.f32 %v10147_v14, %v13469_v31  ;;  %v13833_v11 = vadd.f32 %v10219_v2, %v2958_v26  ;;  %10341 = vmatprep.mubr.msk.bf16.mxu1 %vm12946_vm5, %v13480_v44  ;;  %10413 = vmatprep.mubr.msk.bf16.mxu0 %vm12946_vm5, %v18584_v27 }
 0x234   :  { %v2745_v53 = vpop.f32.mrf.mxu1  ;;  %v3164_v39 = vpop.f32.mrf.mxu0 }
 0x235   :  { %v2964_v43 = vadd.f32 %v2745_v53, %v13478_v46  ;;  %v13842_v30 = vadd.f32 %v3164_v39, %v2956_v60 }
 0x236   :  { %v10148_v33 = vpop.f32.mrf.mxu1  ;;  %v10220_v3 = vpop.f32.mrf.mxu0 }
 0x237   :  { %v2967_v31 = vadd.f32 %v10148_v33, %v13484_v48  ;;  %v13845_v26 = vadd.f32 %v10220_v3, %v2959_v5 }
 0x238   :  { %v2748_v36 = vpop.f32.mrf.mxu1  ;;  %v3167_v12 = vpop.f32.mrf.mxu0 }
 0x239   :  { %v2965_v4 = vadd.f32 %v2748_v36, %v13492_v23  ;;  %v13848_v34 = vadd.f32 %v3167_v12, %v2957_v28  ;;  %v18586_v12 = vld [vmem:[#allocation62_spill] sm:$0xff] }
 0x23a   :  { %v10151_v18 = vpop.f32.mrf.mxu1  ;;  %v10223_v27 = vpop.f32.mrf.mxu0  ;;  %10342 = vmatmul.mubr.msk.bf16.gmra.mxu1 %vm12946_vm5, %v13486_v9  ;;  %10414 = vmatmul.mubr.msk.bf16.gmra.mxu0 %vm12946_vm5, %v13450_v13 }
 0x23b   :  { %v2970_v46 = vadd.f32 %v10151_v18, %v13499_v25  ;;  %v13857_v48 = vadd.f32 %v10223_v27, %v2962_v7  ;;  %10345 = vmatprep.mubr.msk.bf16.mxu1 %vm12946_vm5, %v13510_v35  ;;  %10417 = vmatprep.mubr.msk.bf16.mxu0 %vm12946_vm5, %v13456_v47 }
 0x23c   :  { %v2761_v23 = vpop.f32.mrf.mxu1  ;;  %v3180_v60 = vpop.f32.mrf.mxu0 }
 0x23d   :  { %v13865_v5 = vadd.f32 %v3180_v60, %v2960_v22 }
 0x23e   :  { %v10152_v28 = vpop.f32.mrf.mxu1  ;;  %v10224_v56 = vpop.f32.mrf.mxu0 }
 0x23f   :  { %v2971_v13 = vadd.f32 %v10152_v28, %v13514_v38  ;;  %v13868_v14 = vadd.f32 %v10224_v56, %v2963_v37 }
 0x240   :  { %v13870_v25 = vpop.f32.mrf.mxu1  ;;  %v3183_v7 = vpop.f32.mrf.mxu0 }
 0x241   :  { %v13872_v2 = vadd.f32 %v3183_v7, %v2961_v41  ;;  %v18587_v7 = vld [vmem:[#allocation48_spill] sm:$0xff] }
 0x242   :  { %v10155_v53 = vpop.f32.mrf.mxu1  ;;  %v10227_v39 = vpop.f32.mrf.mxu0  ;;  %10346 = vmatmul.mubr.msk.bf16.gmra.mxu1 %vm12946_vm5, %v13516_v19  ;;  %10418 = vmatmul.mubr.msk.bf16.gmra.mxu0 %vm12946_vm5, %v13480_v44  ;;  %v11090_v44 = vld [vmem:[%s18043_s0 + $0x1f0] sm:$0xff] }
 0x243   :  { %v2974_v47 = vadd.f32 %v10155_v53, %v13529_v16  ;;  %v13881_v38 = vadd.f32 %v10227_v39, %v2966_v54  ;;  %10349 = vmatprep.mubr.msk.bf16.mxu1 %vm12946_vm5, %v13542_v42  ;;  %10421 = vmatprep.mubr.msk.bf16.mxu0 %vm12946_vm5, %v13486_v9  ;;  %v469_v16 = vrot.slane %v11090_v44, 1  ;;  %v11091_v54 = vld [vmem:[%s18043_s0 + $0x1f8] sm:$0xff]  ;;  %v18588_v39 = vld [vmem:[#allocation46_spill] sm:$0xff] }
 0x244   :  { %v2777_v22 = vpop.f32.mrf.mxu1  ;;  %v3196_v37 = vpop.f32.mrf.mxu0  ;;  %v470_v36 = vrot.slane %v11091_v54, 1 }
 0x245   :  { %v13889_v41 = vadd.f32 %v3196_v37, %v2964_v43  ;;  %v18589_v37 = vld [vmem:[#allocation65_spill] sm:$0xff] }
 0x246   :  { %v10156_v33 = vpop.f32.mrf.mxu1  ;;  %v10228_v3 = vpop.f32.mrf.mxu0  ;;  %v471_v53 = vsel %vm373_vm4, %v469_v16, %v470_v36 }
 0x247   :  { %v2975_v18 = vadd.f32 %v10156_v33, %v18586_v12  ;;  %v13898_v27 = vadd.f32 %v10228_v3, %v2967_v31  ;;  %v2968_v31 = vadd.f32 %v2761_v23, %v18588_v39  ;;  %v8964_v12 = vpack.c.bf16 %v470_v36, %v471_v53  ;;  %v18590_v23 = vld [vmem:[#allocation69_spill] sm:$0xff]  ;;  %v18593_v36 = vld [vmem:[#allocation52_spill] sm:$0xff] }
 0x248   :  { %v13900_v9 = vpop.f32.mrf.mxu1  ;;  %v3199_v43 = vpop.f32.mrf.mxu0 }
 0x249   :  { %v13902_v60 = vadd.f32 %v3199_v43, %v2965_v4 }
 0x24a   :  { %v10159_v28 = vpop.f32.mrf.mxu1  ;;  %v10231_v56 = vpop.f32.mrf.mxu0  ;;  %10350 = vmatmul.mubr.msk.bf16.gmra.mxu1 %vm12946_vm5, %v18587_v7  ;;  %10422 = vmatmul.mubr.msk.bf16.gmra.mxu0 %vm12946_vm5, %v13510_v35 }
 0x24b   :  { %v2978_v33 = vadd.f32 %v10159_v28, %v18589_v37  ;;  %v13913_v3 = vadd.f32 %v10231_v56, %v2970_v46  ;;  %10353 = vmatprep.mubr.msk.bf16.mxu1 %vm12946_vm5, %v13573_v0  ;;  %10425 = vmatprep.mubr.msk.bf16.mxu0 %vm12946_vm5, %v13516_v19  ;;  %v18592_v19 = vld [vmem:[#allocation45_spill] sm:$0xff] }
 0x24c   :  { %v2793_v4 = vpop.f32.mrf.mxu1  ;;  %v3212_v44 = vpop.f32.mrf.mxu0 }
 0x24d   :  { %v13921_v54 = vadd.f32 %v3212_v44, %v2968_v31  ;;  %v2972_v31 = vadd.f32 %v2777_v22, %v18592_v19  ;;  %v18598_v19 = vld [vmem:[#allocation75_spill] sm:$0xff] }
 0x24e   :  { %v10160_v35 = vpop.f32.mrf.mxu1  ;;  %v10232_v16 = vpop.f32.mrf.mxu0 }
 0x24f   :  { %v2979_v43 = vadd.f32 %v10160_v35, %v18590_v23  ;;  %v13924_v28 = vadd.f32 %v10232_v16, %v2971_v13 }
 0x250   :  { %v13926_v46 = vpop.f32.mrf.mxu1  ;;  %v13928_v56 = vpop.f32.mrf.mxu0 }
 0x251   :  { %18591 = vst [vmem:[#allocation76_spill] sm:$0xff] %v13926_v46 }
 0x252   :  { %v10163_v39 = vpop.f32.mrf.mxu1  ;;  %v10235_v37 = vpop.f32.mrf.mxu0  ;;  %10354 = vmatmul.mubr.msk.bf16.gmra.mxu1 %vm12946_vm5, %v8964_v12  ;;  %10426 = vmatmul.mubr.msk.bf16.gmra.mxu0 %vm12946_vm5, %v13542_v42 }
 0x253   :  { %v2982_v53 = vadd.f32 %v10163_v39, %v18593_v36  ;;  %v13937_v44 = vadd.f32 %v10235_v37, %v2974_v47  ;;  %10429 = vmatprep.mubr.msk.bf16.mxu0 %vm12946_vm5, %v18587_v7  ;;  %v18597_v7 = vld [vmem:[#allocation50_spill] sm:$0xff] }
 0x254   :  { %v2809_v13 = vpop.f32.mrf.mxu1  ;;  %v3228_v35 = vpop.f32.mrf.mxu0  ;;  %v2976_v37 = vadd.f32 %v2793_v4, %v18597_v7  ;;  %v18605_v7 = vld [vmem:[#allocation78_spill] sm:$0xff] }
 0x255   :  { %v13942_v16 = vadd.f32 %v3228_v35, %v2972_v31 }
 0x256   :  { %v10164_v23 = vpop.f32.mrf.mxu1  ;;  %v10236_v21 = vpop.f32.mrf.mxu0 }
 0x257   :  { %v2983_v45 = vadd.f32 %v10164_v23, %v18594_v49  ;;  %v13945_v40 = vadd.f32 %v10236_v21, %v2975_v18 }
 0x258   :  { %v13947_v42 = vpop.f32.mrf.mxu1  ;;  %v13949_v22 = vpop.f32.mrf.mxu0 }
 0x259   :  { %18595 = vst [vmem:[#allocation77_spill] sm:$0xff] %v13945_v40  ;;  %18596 = vst [vmem:[#allocation84_spill] sm:$0xff] %v13947_v42  ;;  %v18600_v42 = vld [vmem:[#allocation57_spill] sm:$0xff] }
 0x25a   :  { %v10167_v47 = vpop.f32.mrf.mxu1  ;;  %v10239_v39 = vpop.f32.mrf.mxu0  ;;  %10430 = vmatmul.mubr.msk.bf16.gmra.mxu0 %vm12946_vm5, %v13573_v0 }
 0x25b   :  { %v2986_v31 = vadd.f32 %v10167_v47, %v18598_v19  ;;  %v13956_v36 = vadd.f32 %v10239_v39, %v2978_v33  ;;  %10433 = vmatprep.mubr.msk.bf16.mxu0 %vm12946_vm5, %v8964_v12  ;;  %v18604_v12 = vld [vmem:[#allocation53_spill] sm:$0xff] }
 0x25c   :  { %v2825_v49 = vpop.f32.mrf.mxu1  ;;  %v3244_v21 = vpop.f32.mrf.mxu0  ;;  %v2980_v39 = vadd.f32 %v2809_v13, %v18604_v12  ;;  %v18611_v12 = vld [vmem:[#allocation55_spill] sm:$0xff] }
 0x25d   :  { %18599 = vst [vmem:[#allocation81_spill] sm:$0xff] %v13956_v36  ;;  %v13960_v18 = vadd.f32 %v3244_v21, %v2976_v37 }
 0x25e   :  { %v10168_v35 = vpop.f32.mrf.mxu1  ;;  %v10240_v23 = vpop.f32.mrf.mxu0 }
 0x25f   :  { %v2987_v46 = vadd.f32 %v10168_v35, %v18600_v42  ;;  %v13963_v40 = vadd.f32 %v10240_v23, %v2979_v43 }
 0x260   :  { %v13965_v0 = vpop.f32.mrf.mxu1  ;;  %v13967_v4 = vpop.f32.mrf.mxu0 }
 0x261   :  { %18601 = vst [vmem:[#allocation85_spill] sm:$0xff] %v13963_v40  ;;  %18602 = vst [vmem:[#allocation82_spill] sm:$0xff] %v13965_v0  ;;  %v18608_v0 = vld [vmem:[#allocation79_spill] sm:$0xff] }
 0x262   :  { %18603 = vst [vmem:[#allocation87_spill] sm:$0xff] %v13967_v4  ;;  %v10171_v47 = vpop.f32.mrf.mxu1  ;;  %v10243_v33 = vpop.f32.mrf.mxu0  ;;  %10434 = vmatmul.mubr.msk.bf16.gmra.mxu0 %vm12946_vm5, %v18580_v15 }
 0x263   :  { %v2990_v37 = vadd.f32 %v10171_v47, %v18605_v7  ;;  %v13974_v19 = vadd.f32 %v10243_v33, %v2982_v53  ;;  %v2984_v47 = vadd.f32 %v2825_v49, %v18611_v12  ;;  %v18612_v53 = vld [vmem:[#allocation60_spill] sm:$0xff] }
 0x264   :  { %v2841_v21 = vpop.f32.mrf.mxu1  ;;  %v3260_v42 = vpop.f32.mrf.mxu0  ;;  %v18616_v12 = vld [vmem:[#allocation68_spill] sm:$0xff] }
 0x265   :  { %18606 = vst [vmem:[#allocation86_spill] sm:$0xff] %v13974_v19  ;;  %v13976_v43 = vadd.f32 %v3260_v42, %v2980_v39 }
 0x266   :  { %v10172_v35 = vpop.f32.mrf.mxu1  ;;  %v10244_v23 = vpop.f32.mrf.mxu0 }
 0x267   :  { %18607 = vst [vmem:[#allocation23_spill] sm:$0xff] %v13976_v43  ;;  %v2991_v40 = vadd.f32 %v10172_v35, %v18608_v0  ;;  %v13979_v36 = vadd.f32 %v10244_v23, %v2983_v45 }
 0x268   :  { %v13981_v4 = vpop.f32.mrf.mxu1  ;;  %v13983_v10 = vpop.f32.mrf.mxu0 }
 0x269   :  { %18609 = vst [vmem:[#allocation5_spill] sm:$0xff] %v13979_v36  ;;  %18610 = vst [vmem:[#allocation36_spill] sm:$0xff] %v13981_v4 }
 0x26a   :  { %v10175_v15 = vpop.f32.mrf.mxu1  ;;  %v10247_v13 = vpop.f32.mrf.mxu0 }
 0x26b   :  { %v2994_v33 = vadd.f32 %v10175_v15, %v18612_v53  ;;  %v13987_v7 = vadd.f32 %v10247_v13, %v2986_v31  ;;  %v2988_v15 = vadd.f32 %v2841_v21, %v18616_v12  ;;  %v18621_v12 = vld [vmem:[#allocation61_spill] sm:$0xff] }
 0x26c   :  { %v2857_v39 = vpop.f32.mrf.mxu1  ;;  %v3276_v42 = vpop.f32.mrf.mxu0 }
 0x26d   :  { %18613 = vst [vmem:[#allocation88_spill] sm:$0xff] %v13987_v7  ;;  %v13989_v19 = vadd.f32 %v3276_v42, %v2984_v47 }
 0x26e   :  { %v10176_v43 = vpop.f32.mrf.mxu1  ;;  %v10248_v0 = vpop.f32.mrf.mxu0 }
 0x26f   :  { %v2995_v45 = vadd.f32 %v10176_v43, %v13672_v51  ;;  %v13992_v35 = vadd.f32 %v10248_v0, %v2987_v46 }
 0x270   :  { %v13994_v23 = vpop.f32.mrf.mxu1  ;;  %v13996_v4 = vpop.f32.mrf.mxu0 }
 0x271   :  { %18614 = vst [vmem:[#allocation18_spill] sm:$0xff] %v13992_v35  ;;  %18615 = vst [vmem:[#allocation89_spill] sm:$0xff] %v13994_v23 }
 0x272   :  { %v10179_v36 = vpop.f32.mrf.mxu1  ;;  %v10251_v49 = vpop.f32.mrf.mxu0 }
 0x273   :  { %v2998_v31 = vadd.f32 %v10179_v36, %v13684_v55  ;;  %v14000_v13 = vadd.f32 %v10251_v49, %v2990_v37  ;;  %v2992_v55 = vadd.f32 %v2857_v39, %v18621_v12  ;;  %v18622_v36 = vld [vmem:[#allocation67_spill] sm:$0xff]  ;;  %v18626_v12 = vld [vmem:[#allocation64_spill] sm:$0xff] }
 0x274   :  { %v2873_v47 = vpop.f32.mrf.mxu1  ;;  %v3292_v53 = vpop.f32.mrf.mxu0 }
 0x275   :  { %18617 = vst [vmem:[#allocation15_spill] sm:$0xff] %v14000_v13  ;;  %v14002_v42 = vadd.f32 %v3292_v53, %v2988_v15 }
 0x276   :  { %v10180_v7 = vpop.f32.mrf.mxu1  ;;  %v10252_v51 = vpop.f32.mrf.mxu0 }
 0x277   :  { %18618 = vst [vmem:[#allocation16_spill] sm:$0xff] %v14002_v42  ;;  %v2999_v46 = vadd.f32 %v10180_v7, %v13696_v20  ;;  %v14005_v43 = vadd.f32 %v10252_v51, %v2991_v40 }
 0x278   :  { %v14007_v0 = vpop.f32.mrf.mxu1  ;;  %v14009_v23 = vpop.f32.mrf.mxu0 }
 0x279   :  { %18619 = vst [vmem:[#allocation6_spill] sm:$0xff] %v14005_v43  ;;  %18620 = vst [vmem:[#allocation7_spill] sm:$0xff] %v14007_v0 }
 0x27a   :  { %v10183_v35 = vpop.f32.mrf.mxu1  ;;  %v10255_v21 = vpop.f32.mrf.mxu0 }
 0x27b   :  { %v3002_v37 = vadd.f32 %v10183_v35, %v18622_v36  ;;  %v14013_v49 = vadd.f32 %v10255_v21, %v2994_v33  ;;  %v2996_v35 = vadd.f32 %v2873_v47, %v18626_v12 }
 0x27c   :  { %v2889_v15 = vpop.f32.mrf.mxu1  ;;  %v3308_v53 = vpop.f32.mrf.mxu0 }
 0x27d   :  { %18623 = vst [vmem:[#allocation19_spill] sm:$0xff] %v14013_v49  ;;  %v14015_v13 = vadd.f32 %v3308_v53, %v2992_v55 }
 0x27e   :  { %v10184_v42 = vpop.f32.mrf.mxu1  ;;  %v10256_v20 = vpop.f32.mrf.mxu0 }
 0x27f   :  { %v3003_v40 = vadd.f32 %v10184_v42, %v13727_v62  ;;  %v14018_v7 = vadd.f32 %v10256_v20, %v2995_v45 }
 0x280   :  { %v14020_v51 = vpop.f32.mrf.mxu1  ;;  %v14022_v0 = vpop.f32.mrf.mxu0 }
 0x281   :  { %18624 = vst [vmem:[#allocation17_spill] sm:$0xff] %v14018_v7  ;;  %18625 = vst [vmem:[#allocation20_spill] sm:$0xff] %v14020_v51 }
 0x282   :  { %v10187_v43 = vpop.f32.mrf.mxu1  ;;  %v10259_v39 = vpop.f32.mrf.mxu0 }
 0x283   :  { %v3006_v33 = vadd.f32 %v10187_v43, %v13738_v29  ;;  %v14026_v21 = vadd.f32 %v10259_v39, %v2998_v31  ;;  %v3000_v29 = vadd.f32 %v2889_v15, %v13724_v17 }
 0x284   :  { %v2905_v55 = vpop.f32.mrf.mxu1  ;;  %v3324_v36 = vpop.f32.mrf.mxu0 }
 0x285   :  { %v14028_v53 = vadd.f32 %v3324_v36, %v2996_v35 }
 0x286   :  { %v10188_v49 = vpop.f32.mrf.mxu1  ;;  %v10260_v62 = vpop.f32.mrf.mxu0 }
 0x287   :  { %v3007_v45 = vadd.f32 %v10188_v49, %v13750_v32  ;;  %v14031_v42 = vadd.f32 %v10260_v62, %v2999_v46 }
 0x288   :  { %v14033_v20 = vpop.f32.mrf.mxu1  ;;  %v14035_v51 = vpop.f32.mrf.mxu0 }
 0x289   :  { %18627 = vst [vmem:[#allocation21_spill] sm:$0xff] %v14031_v42  ;;  %18628 = vst [vmem:[#allocation31_spill] sm:$0xff] %v14033_v20 }
 0x28a   :  { %v10191_v7 = vpop.f32.mrf.mxu1  ;;  %v10263_v47 = vpop.f32.mrf.mxu0 }
 0x28b   :  { %v3010_v31 = vadd.f32 %v10191_v7, %v13761_v1  ;;  %v14039_v43 = vadd.f32 %v10263_v47, %v3002_v37  ;;  %v3004_v1 = vadd.f32 %v2905_v55, %v13747_v63 }
 0x28c   :  { %v2921_v39 = vpop.f32.mrf.mxu1  ;;  %v3340_v12 = vpop.f32.mrf.mxu0 }
 0x28d   :  { %v14041_v35 = vadd.f32 %v3340_v12, %v3000_v29 }
 0x28e   :  { %v10192_v36 = vpop.f32.mrf.mxu1  ;;  %v10264_v32 = vpop.f32.mrf.mxu0 }
 0x28f   :  { %v3011_v46 = vadd.f32 %v10192_v36, %v13772_v6  ;;  %v14044_v49 = vadd.f32 %v10264_v32, %v3003_v40 }
 0x290   :  { %v14046_v62 = vpop.f32.mrf.mxu1  ;;  %v14048_v20 = vpop.f32.mrf.mxu0 }
 0x291   :  { %18629 = vst [vmem:[#allocation32_spill] sm:$0xff] %v14044_v49  ;;  %18630 = vst [vmem:[#allocation24_spill] sm:$0xff] %v14046_v62 }
 0x292   :  { %v10195_v42 = vpop.f32.mrf.mxu1  ;;  %v10267_v17 = vpop.f32.mrf.mxu0 }
 0x293   :  { %v3014_v37 = vadd.f32 %v10195_v42, %v13784_v59  ;;  %v14052_v15 = vadd.f32 %v10267_v17, %v3006_v33  ;;  %v3008_v59 = vadd.f32 %v2921_v39, %v13769_v24 }
 0x294   :  { %v2937_v7 = vpop.f32.mrf.mxu1  ;;  %v3356_v47 = vpop.f32.mrf.mxu0 }
 0x295   :  { %18631 = vst [vmem:[#allocation22_spill] sm:$0xff] %v14052_v15  ;;  %v14054_v29 = vadd.f32 %v3356_v47, %v3004_v1 }
 0x296   :  { %v10196_v12 = vpop.f32.mrf.mxu1  ;;  %v10268_v6 = vpop.f32.mrf.mxu0 }
 0x297   :  { %v3015_v40 = vadd.f32 %v10196_v12, %v13796_v50  ;;  %v14057_v36 = vadd.f32 %v10268_v6, %v3007_v45 }
 0x298   :  { %v14059_v32 = vpop.f32.mrf.mxu1  ;;  %v14061_v62 = vpop.f32.mrf.mxu0 }
 0x299   :  { %18632 = vst [vmem:[#allocation25_spill] sm:$0xff] %v14057_v36  ;;  %18633 = vst [vmem:[#allocation26_spill] sm:$0xff] %v14059_v32  ;;  %v3012_v32 = vadd.f32 %v2937_v7, %v13793_v52 }
 0x29a   :  { %18634 = vst [vmem:[#allocation9_spill] sm:$0xff] %v14061_v62  ;;  %v10271_v49 = vpop.f32.mrf.mxu0  ;;  %v10295_v63 = vpop.f32.mrf.mxu1 }
 0x29b   :  { %v14064_v33 = vadd.f32 %v10271_v49, %v3010_v31 }
 0x29c   :  { %v3372_v55 = vpop.f32.mrf.mxu0  ;;  %v3566_v42 = vpop.f32.mrf.mxu1 }
 0x29d   :  { %18635 = vst [vmem:[#allocation10_spill] sm:$0xff] %v14064_v33  ;;  %v14066_v17 = vadd.f32 %v3372_v55, %v3008_v59 }
 0x29e   :  { %v10272_v1 = vpop.f32.mrf.mxu0  ;;  %v10296_v47 = vpop.f32.mrf.mxu1 }
 0x29f   :  { %18636 = vst [vmem:[#allocation8_spill] sm:$0xff] %v14066_v17  ;;  %v14068_v15 = vadd.f32 %v10272_v1, %v3011_v46 }
 0x2a0   :  { %v14070_v50 = vpop.f32.mrf.mxu0  ;;  %v3569_v45 = vpop.f32.mrf.mxu1 }
 0x2a1   :  { %18637 = vst [vmem:[#allocation27_spill] sm:$0xff] %v14068_v15  ;;  %18638 = vst [vmem:[#allocation28_spill] sm:$0xff] %v14070_v50  ;;  %v3821_v50 = vadd.f32 %v3566_v42, %v13818_v8 }
 0x2a2   :  { %v10275_v12 = vpop.f32.mrf.mxu0  ;;  %v10299_v6 = vpop.f32.mrf.mxu1 }
 0x2a3   :  { %v14073_v36 = vadd.f32 %v10275_v12, %v3014_v37  ;;  %v3823_v37 = vadd.f32 %v10295_v63, %v13809_v58 }
 0x2a4   :  { %v3388_v24 = vpop.f32.mrf.mxu0  ;;  %v3582_v31 = vpop.f32.mrf.mxu1 }
 0x2a5   :  { %18639 = vst [vmem:[#allocation29_spill] sm:$0xff] %v14073_v36  ;;  %v14075_v39 = vadd.f32 %v3388_v24, %v3012_v32  ;;  %v3822_v24 = vadd.f32 %v3569_v45, %v13824_v61  ;;  %v3827_v45 = vadd.f32 %v10299_v6, %v13833_v11 }
 0x2a6   :  { %v10276_v49 = vpop.f32.mrf.mxu0  ;;  %v10300_v59 = vpop.f32.mrf.mxu1 }
 0x2a7   :  { %18640 = vst [vmem:[#allocation12_spill] sm:$0xff] %v14075_v39  ;;  %v14077_v55 = vadd.f32 %v10276_v49, %v3015_v40  ;;  %v3824_v40 = vadd.f32 %v10296_v47, %v13821_v57 }
 0x2a8   :  { %v14079_v33 = vpop.f32.mrf.mxu0  ;;  %v3585_v46 = vpop.f32.mrf.mxu1 }
 0x2a9   :  { %18641 = vst [vmem:[#allocation14_spill] sm:$0xff] %v14077_v55  ;;  %18642 = vst [vmem:[#allocation33_spill] sm:$0xff] %v14079_v33 }
 0x2aa   :  { %v14081_v1 = vpop.f32.mrf.mxu1  ;;  %v10375_v15 = vpop.f32.mrf.mxu0 }
 0x2ab   :  { %v14091_v49 = vadd.f32 %v10375_v15, %v3823_v37 }
 0x2ac   :  { %v3598_v17 = vpop.f32.mrf.mxu1  ;;  %v3984_v52 = vpop.f32.mrf.mxu0 }
 0x2ad   :  { %v14085_v7 = vadd.f32 %v3984_v52, %v3821_v50  ;;  %18644 = vst [vmem:[#allocation34_spill] sm:$0xff] %v14091_v49  ;;  %v4443_v57 = vmul.f32 %v14091_v49, %v14091_v49 }
 0x2ae   :  { %v14087_v32 = vpop.f32.mrf.mxu1  ;;  %v10376_v12 = vpop.f32.mrf.mxu0 }
 0x2af   :  { %18643 = vst [vmem:[#allocation30_spill] sm:$0xff] %v14085_v7  ;;  %v4441_v8 = vmul.f32 %v14085_v7, %v14085_v7  ;;  %v14097_v42 = vadd.f32 %v10376_v12, %v3824_v40  ;;  %v4306_v61 = vsel %vm4305_vm6, %v14085_v7, 0.0  ;;  %v4309_v40 = vsel %vm4305_vm6, %v14091_v49, 0.0 }
 0x2b0   :  { %v14093_v55 = vpop.f32.mrf.mxu1  ;;  %v3987_v36 = vpop.f32.mrf.mxu0 }
 0x2b1   :  { %v14099_v58 = vadd.f32 %v3987_v36, %v3822_v24  ;;  %v3825_v36 = vadd.f32 %v3582_v31, %v13842_v30  ;;  %v4505_v24 = vsel %vm4305_vm6, %v4441_v8, 0.0  ;;  %v4444_v7 = vmul.f32 %v14097_v42, %v14097_v42 }
 0x2b2   :  { %v14101_v63 = vpop.f32.mrf.mxu1  ;;  %v10379_v50 = vpop.f32.mrf.mxu0  ;;  %v4311_v8 = vsel %vm4305_vm6, %v14097_v42, 0.0 }
 0x2b3   :  { %18645 = vst [vmem:[#allocation35_spill] sm:$0xff] %v14099_v58  ;;  %v4307_v15 = vsel %vm4305_vm6, %v14099_v58, 0.0  ;;  %v4442_v47 = vmul.f32 %v14099_v58, %v14099_v58  ;;  %v3828_v58 = vadd.f32 %v10300_v59, %v13845_v26  ;;  %v14130_v49 = vadd.f32 %v10379_v50, %v3827_v45 }
 0x2b4   :  { %v4308_v52 = vadd.f32 %v4307_v15, %v4306_v61  ;;  %v14113_v37 = vpop.f32.mrf.mxu1  ;;  %v4000_v12 = vpop.f32.mrf.mxu0  ;;  %v3826_v61 = vadd.f32 %v3585_v46, %v13848_v34  ;;  %v4508_v15 = vsel %vm4305_vm6, %v4443_v57, 0.0  ;;  %v3829_v50 = vadd.f32 %v3598_v17, %v13865_v5 }
 0x2b5   :  { %v4506_v33 = vsel %vm4305_vm6, %v4442_v47, 0.0  ;;  %v14122_v6 = vadd.f32 %v4000_v12, %v3825_v36  ;;  %v4510_v36 = vsel %vm4305_vm6, %v4444_v7, 0.0 }
 0x2b6   :  { %v4310_v39 = vadd.f32 %v4309_v40, %v4308_v52  ;;  %v4507_v11 = vadd.f32 %v4506_v33, %v4505_v24  ;;  %v14124_v30 = vpop.f32.mrf.mxu1  ;;  %v10380_v31 = vpop.f32.mrf.mxu0  ;;  %v4447_v40 = vmul.f32 %v14130_v49, %v14130_v49 }
 0x2b7   :  { %v4445_v26 = vmul.f32 %v14122_v6, %v14122_v6  ;;  %v4313_v34 = vsel %vm4305_vm6, %v14122_v6, 0.0  ;;  %v14139_v46 = vadd.f32 %v10380_v31, %v3828_v58 }
 0x2b8   :  { %v4509_v62 = vadd.f32 %v4508_v15, %v4507_v11  ;;  %v4312_v47 = vadd.f32 %v4311_v8, %v4310_v39  ;;  %v14134_v33 = vpop.f32.mrf.mxu1  ;;  %v4003_v59 = vpop.f32.mrf.mxu0 }
 0x2b9   :  { %18646 = vst [vmem:[#allocation37_spill] sm:$0xff] %v14139_v46  ;;  %v14141_v57 = vadd.f32 %v4003_v59, %v3826_v61  ;;  %v4512_v24 = vsel %vm4305_vm6, %v4445_v26, 0.0  ;;  %v4448_v17 = vmul.f32 %v14139_v46, %v14139_v46 }
 0x2ba   :  { %v4314_v45 = vadd.f32 %v4313_v34, %v4312_v47  ;;  %v4511_v52 = vadd.f32 %v4510_v36, %v4509_v62  ;;  %v14144_v39 = vpop.f32.mrf.mxu1  ;;  %v10383_v12 = vpop.f32.mrf.mxu0  ;;  %v4317_v62 = vsel %vm4305_vm6, %v14130_v49, 0.0  ;;  %v3831_v47 = vadd.f32 %v14081_v1, %v13857_v48 }
 0x2bb   :  { %18647 = vst [vmem:[#allocation44_spill] sm:$0xff] %v14141_v57  ;;  %v4315_v7 = vsel %vm4305_vm6, %v14141_v57, 0.0  ;;  %v4446_v58 = vmul.f32 %v14141_v57, %v14141_v57 }
 0x2bc   :  { %v4513_v11 = vadd.f32 %v4512_v24, %v4511_v52  ;;  %v4316_v31 = vadd.f32 %v4315_v7, %v4314_v45  ;;  %v14153_v61 = vpop.f32.mrf.mxu1  ;;  %v4016_v5 = vpop.f32.mrf.mxu0  ;;  %v3832_v45 = vadd.f32 %v14087_v32, %v13868_v14  ;;  %v4516_v52 = vsel %vm4305_vm6, %v4447_v40, 0.0 }
 0x2bd   :  { %v4514_v15 = vsel %vm4305_vm6, %v4446_v58, 0.0  ;;  %v14160_v8 = vadd.f32 %v4016_v5, %v3829_v50  ;;  %v4319_v24 = vsel %vm4305_vm6, %v14139_v46, 0.0  ;;  %v3830_v7 = vadd.f32 %v14093_v55, %v13872_v2 }
 0x2be   :  { %v4318_v26 = vadd.f32 %v4317_v62, %v4316_v31  ;;  %v4515_v59 = vadd.f32 %v4514_v15, %v4513_v11  ;;  %v14164_v36 = vpop.f32.mrf.mxu1  ;;  %v10384_v34 = vpop.f32.mrf.mxu0  ;;  %v14175_v1 = vadd.f32 %v10383_v12, %v3831_v47  ;;  %v4518_v14 = vsel %vm4305_vm6, %v4448_v17, 0.0 }
 0x2bf   :  { %v4449_v50 = vmul.f32 %v14160_v8, %v14160_v8  ;;  %v4321_v32 = vsel %vm4305_vm6, %v14160_v8, 0.0  ;;  %v14182_v62 = vadd.f32 %v10384_v34, %v3832_v45  ;;  %v3833_v55 = vadd.f32 %v14113_v37, %v13889_v41 }
 0x2c0   :  { %v4517_v48 = vadd.f32 %v4516_v52, %v4515_v59  ;;  %v4320_v58 = vadd.f32 %v4319_v24, %v4318_v26  ;;  %v14177_v11 = vpop.f32.mrf.mxu1  ;;  %v4019_v31 = vpop.f32.mrf.mxu0  ;;  %v4451_v17 = vmul.f32 %v14175_v1, %v14175_v1  ;;  %v3835_v52 = vadd.f32 %v14101_v63, %v13881_v38 }
 0x2c1   :  { %v14184_v15 = vadd.f32 %v4019_v31, %v3830_v7  ;;  %v4520_v12 = vsel %vm4305_vm6, %v4449_v50, 0.0  ;;  %v4325_v41 = vsel %vm4305_vm6, %v14175_v1, 0.0  ;;  %v4452_v37 = vmul.f32 %v14182_v62, %v14182_v62 }
 0x2c2   :  { %v4322_v40 = vadd.f32 %v4321_v32, %v4320_v58  ;;  %v4519_v5 = vadd.f32 %v4518_v14, %v4517_v48  ;;  %v14186_v46 = vpop.f32.mrf.mxu1  ;;  %v10387_v2 = vpop.f32.mrf.mxu0  ;;  %v3836_v31 = vadd.f32 %v14124_v30, %v13898_v27  ;;  %v3834_v38 = vadd.f32 %v14134_v33, %v13902_v60  ;;  %v18650_v60 = vld [vmem:[#allocation47_spill] sm:$0xff] }
 0x2c3   :  { %18648 = vst [vmem:[#allocation11_spill] sm:$0xff] %v14184_v15  ;;  %v4323_v26 = vsel %vm4305_vm6, %v14184_v15, 0.0  ;;  %v4450_v59 = vmul.f32 %v14184_v15, %v14184_v15  ;;  %v4524_v32 = vsel %vm4305_vm6, %v4451_v17, 0.0  ;;  %v2969_v33 = vadd.f32 %v13870_v25, %v18650_v60 }
 0x2c4   :  { %v4521_v47 = vadd.f32 %v4520_v12, %v4519_v5  ;;  %v14197_v34 = vpop.f32.mrf.mxu1  ;;  %v4032_v45 = vpop.f32.mrf.mxu0  ;;  %v4324_v24 = vadd.f32 %v4323_v26, %v4322_v40  ;;  %v4327_v40 = vsel %vm4305_vm6, %v14182_v62, 0.0  ;;  %v14217_v5 = vadd.f32 %v10387_v2, %v3835_v52 }
 0x2c5   :  { %v4522_v50 = vsel %vm4305_vm6, %v4450_v59, 0.0  ;;  %v14206_v7 = vadd.f32 %v4032_v45, %v3833_v55  ;;  %v4526_v17 = vsel %vm4305_vm6, %v4452_v37, 0.0  ;;  %v3837_v25 = vadd.f32 %v14153_v61, %v13921_v54 }
 0x2c6   :  { %v14208_v48 = vpop.f32.mrf.mxu1  ;;  %v10388_v58 = vpop.f32.mrf.mxu0  ;;  %v4326_v63 = vadd.f32 %v4325_v41, %v4324_v24  ;;  %v4523_v14 = vadd.f32 %v4522_v50, %v4521_v47  ;;  %v4455_v37 = vmul.f32 %v14217_v5, %v14217_v5  ;;  %v4333_v54 = vsel %vm4305_vm6, %v14217_v5, 0.0 }
 0x2c7   :  { %v4453_v55 = vmul.f32 %v14206_v7, %v14206_v7  ;;  %v4329_v47 = vsel %vm4305_vm6, %v14206_v7, 0.0  ;;  %v14230_v2 = vadd.f32 %v10388_v58, %v3836_v31 }
 0x2c8   :  { %v14221_v12 = vpop.f32.mrf.mxu1  ;;  %v4035_v26 = vpop.f32.mrf.mxu0  ;;  %v4525_v59 = vadd.f32 %v4524_v32, %v4523_v14  ;;  %v4328_v27 = vadd.f32 %v4327_v40, %v4326_v63  ;;  %v3420_v14 = vadd.f32 %v13928_v56, %v2969_v33  ;;  %v3840_v56 = vadd.f32 %v14164_v36, %v13924_v28 }
 0x2c9   :  { %v14223_v30 = vadd.f32 %v4035_v26, %v3834_v38  ;;  %v4528_v58 = vsel %vm4305_vm6, %v4453_v55, 0.0  ;;  %v4456_v61 = vmul.f32 %v14230_v2, %v14230_v2 }
 0x2ca   :  { %v14232_v45 = vpop.f32.mrf.mxu1  ;;  %v10391_v52 = vpop.f32.mrf.mxu0  ;;  %v4330_v24 = vadd.f32 %v4329_v47, %v4328_v27  ;;  %v4527_v41 = vadd.f32 %v4526_v17, %v4525_v59  ;;  %v3839_v59 = vadd.f32 %v14144_v39, %v13913_v3  ;;  %v3838_v33 = vadd.f32 %v14177_v11, %v3420_v14  ;;  %v18651_v14 = vld [vmem:[#allocation49_spill] sm:$0xff] }
 0x2cb   :  { %18649 = vst [vmem:[#allocation38_spill] sm:$0xff] %v14223_v30  ;;  %v4331_v50 = vsel %vm4305_vm6, %v14223_v30, 0.0  ;;  %v4454_v38 = vmul.f32 %v14223_v30, %v14223_v30  ;;  %v4532_v3 = vsel %vm4305_vm6, %v4455_v37, 0.0  ;;  %v4335_v39 = vsel %vm4305_vm6, %v14230_v2, 0.0  ;;  %v18658_v30 = vld [vmem:[#allocation85_spill] sm:$0xff] }
 0x2cc   :  { %v14243_v31 = vpop.f32.mrf.mxu1  ;;  %v4048_v63 = vpop.f32.mrf.mxu0  ;;  %v4529_v32 = vadd.f32 %v4528_v58, %v4527_v41  ;;  %v4332_v40 = vadd.f32 %v4331_v50, %v4330_v24  ;;  %v14263_v24 = vadd.f32 %v10391_v52, %v3839_v59  ;;  %v4534_v28 = vsel %vm4305_vm6, %v4456_v61, 0.0 }
 0x2cd   :  { %v4530_v26 = vsel %vm4305_vm6, %v4454_v38, 0.0  ;;  %v14253_v27 = vadd.f32 %v4048_v63, %v3837_v25 }
 0x2ce   :  { %v14255_v55 = vpop.f32.mrf.mxu1  ;;  %v10392_v60 = vpop.f32.mrf.mxu0  ;;  %v4334_v17 = vadd.f32 %v4333_v54, %v4332_v40  ;;  %v4531_v47 = vadd.f32 %v4530_v26, %v4529_v32  ;;  %v2973_v32 = vadd.f32 %v13900_v9, %v18651_v14  ;;  %v3841_v40 = vadd.f32 %v14197_v34, %v13942_v16 }
 0x2cf   :  { %v4457_v41 = vmul.f32 %v14253_v27, %v14253_v27  ;;  %v4337_v36 = vsel %vm4305_vm6, %v14253_v27, 0.0  ;;  %v14272_v11 = vadd.f32 %v10392_v60, %v3840_v56  ;;  %v4459_v54 = vmul.f32 %v14263_v24, %v14263_v24 }
 0x2d0   :  { %v14267_v50 = vpop.f32.mrf.mxu1  ;;  %v4051_v38 = vpop.f32.mrf.mxu0  ;;  %v4533_v25 = vadd.f32 %v4532_v3, %v4531_v47  ;;  %v4336_v58 = vadd.f32 %v4335_v39, %v4334_v17  ;;  %v3424_v9 = vadd.f32 %v13949_v22, %v2973_v32  ;;  %v3843_v3 = vadd.f32 %v14186_v46, %v13937_v44 }
 0x2d1   :  { %v14274_v37 = vadd.f32 %v4051_v38, %v3838_v33  ;;  %v4536_v61 = vsel %vm4305_vm6, %v4457_v41, 0.0  ;;  %v4341_v39 = vsel %vm4305_vm6, %v14263_v24, 0.0  ;;  %v4460_v41 = vmul.f32 %v14272_v11, %v14272_v11 }
 0x2d2   :  { %v14276_v63 = vpop.f32.mrf.mxu1  ;;  %v10395_v52 = vpop.f32.mrf.mxu0  ;;  %v4338_v26 = vadd.f32 %v4337_v36, %v4336_v58  ;;  %v4535_v59 = vadd.f32 %v4534_v28, %v4533_v25  ;;  %v18652_v28 = vld [vmem:[#allocation77_spill] sm:$0xff]  ;;  %v3842_v36 = vadd.f32 %v14221_v12, %v3424_v9  ;;  %v4540_v44 = vsel %vm4305_vm6, %v4459_v54, 0.0 }
 0x2d3   :  { %v4339_v60 = vsel %vm4305_vm6, %v14274_v37, 0.0  ;;  %v4458_v56 = vmul.f32 %v14274_v37, %v14274_v37  ;;  %v3844_v22 = vadd.f32 %v14208_v48, %v18652_v28  ;;  %v4343_v46 = vsel %vm4305_vm6, %v14272_v11, 0.0 }
 0x2d4   :  { %v14289_v33 = vpop.f32.mrf.mxu1  ;;  %v4064_v17 = vpop.f32.mrf.mxu0  ;;  %v4537_v47 = vadd.f32 %v4536_v61, %v4535_v59  ;;  %v4340_v16 = vadd.f32 %v4339_v60, %v4338_v26  ;;  %v4542_v48 = vsel %vm4305_vm6, %v4460_v41, 0.0 }
 0x2d5   :  { %v14292_v34 = vadd.f32 %v4064_v17, %v3841_v40  ;;  %v4538_v38 = vsel %vm4305_vm6, %v4458_v56, 0.0  ;;  %v14309_v40 = vadd.f32 %v10395_v52, %v3843_v3 }
 0x2d6   :  { %v14301_v25 = vpop.f32.mrf.mxu1  ;;  %v10396_v58 = vpop.f32.mrf.mxu0  ;;  %v4342_v14 = vadd.f32 %v4341_v39, %v4340_v16  ;;  %v4539_v32 = vadd.f32 %v4538_v38, %v4537_v47  ;;  %v18653_v47 = vld [vmem:[#allocation51_spill] sm:$0xff]  ;;  %v18654_v16 = vld [vmem:[#allocation76_spill] sm:$0xff]  ;;  %v3845_v39 = vadd.f32 %v14243_v31, %v13960_v18 }
 0x2d7   :  { %v4461_v26 = vmul.f32 %v14292_v34, %v14292_v34  ;;  %v4345_v12 = vsel %vm4305_vm6, %v14292_v34, 0.0  ;;  %v14318_v17 = vadd.f32 %v10396_v58, %v3844_v22  ;;  %v2977_v3 = vadd.f32 %v18654_v16, %v18653_v47 }
 0x2d8   :  { %v14313_v59 = vpop.f32.mrf.mxu1  ;;  %v4067_v61 = vpop.f32.mrf.mxu0  ;;  %v4541_v60 = vadd.f32 %v4540_v44, %v4539_v32  ;;  %v4344_v56 = vadd.f32 %v4343_v46, %v4342_v14  ;;  %v4463_v41 = vmul.f32 %v14309_v40, %v14309_v40  ;;  %v18655_v44 = vld [vmem:[#allocation87_spill] sm:$0xff] }
 0x2d9   :  { %v14320_v54 = vadd.f32 %v4067_v61, %v3842_v36  ;;  %v4544_v14 = vsel %vm4305_vm6, %v4461_v26, 0.0  ;;  %v3428_v46 = vadd.f32 %v18655_v44, %v2977_v3  ;;  %v18656_v61 = vld [vmem:[#allocation81_spill] sm:$0xff]  ;;  %v4464_v26 = vmul.f32 %v14318_v17, %v14318_v17 }
 0x2da   :  { %v14322_v9 = vpop.f32.mrf.mxu1  ;;  %v10399_v52 = vpop.f32.mrf.mxu0  ;;  %v4346_v38 = vadd.f32 %v4345_v12, %v4344_v56  ;;  %v4543_v28 = vadd.f32 %v4542_v48, %v4541_v60  ;;  %v3847_v18 = vadd.f32 %v14232_v45, %v18656_v61  ;;  %v4349_v56 = vsel %vm4305_vm6, %v14309_v40, 0.0 }
 0x2db   :  { %v4347_v58 = vsel %vm4305_vm6, %v14320_v54, 0.0  ;;  %v4462_v22 = vmul.f32 %v14320_v54, %v14320_v54  ;;  %v3848_v3 = vadd.f32 %v14255_v55, %v18658_v30  ;;  %v3846_v45 = vadd.f32 %v14267_v50, %v3428_v46  ;;  %v18661_v55 = vld [vmem:[#allocation54_spill] sm:$0xff]  ;;  %v18662_v50 = vld [vmem:[#allocation84_spill] sm:$0xff] }
 0x2dc   :  { %v14335_v36 = vpop.f32.mrf.mxu1  ;;  %v4080_v32 = vpop.f32.mrf.mxu0  ;;  %v4545_v31 = vadd.f32 %v4544_v14, %v4543_v28  ;;  %v4348_v60 = vadd.f32 %v4347_v58, %v4346_v38  ;;  %v4548_v14 = vsel %vm4305_vm6, %v4463_v41, 0.0  ;;  %v4351_v58 = vsel %vm4305_vm6, %v14318_v17, 0.0 }
 0x2dd   :  { %v4546_v48 = vsel %vm4305_vm6, %v4462_v22, 0.0  ;;  %v14345_v12 = vadd.f32 %v4080_v32, %v3845_v39  ;;  %v14355_v44 = vadd.f32 %v10399_v52, %v3847_v18  ;;  %v2981_v46 = vadd.f32 %v18662_v50, %v18661_v55 }
 0x2de   :  { %v14347_v47 = vpop.f32.mrf.mxu1  ;;  %v10400_v16 = vpop.f32.mrf.mxu0  ;;  %v4350_v28 = vadd.f32 %v4349_v56, %v4348_v60  ;;  %v4547_v38 = vadd.f32 %v4546_v48, %v4545_v31  ;;  %v4550_v41 = vsel %vm4305_vm6, %v4464_v26, 0.0  ;;  %v5424_v26 = vld [vmem:[%s18047_s4 + $0x8] sm:$0xff] }
 0x2df   :  { %18657 = vst [vmem:[#allocation39_spill] sm:$0xff] %v14345_v12  ;;  %18659 = vst [vmem:[#allocation40_spill] sm:$0xff] %v14355_v44  ;;  %v4465_v39 = vmul.f32 %v14345_v12, %v14345_v12  ;;  %v4353_v31 = vsel %vm4305_vm6, %v14345_v12, 0.0  ;;  %v14368_v52 = vadd.f32 %v10400_v16, %v3848_v3  ;;  %v4467_v16 = vmul.f32 %v14355_v44, %v14355_v44 }
 0x2e0   :  { %v14359_v22 = vpop.f32.mrf.mxu1  ;;  %v4083_v32 = vpop.f32.mrf.mxu0  ;;  %v4549_v61 = vadd.f32 %v4548_v14, %v4547_v38  ;;  %v4352_v15 = vadd.f32 %v4351_v58, %v4350_v28  ;;  %v18663_v38 = vld [vmem:[#allocation23_spill] sm:$0xff]  ;;  %10437 = vmatprep.subr.mxu1 %v5424_v26 }
 0x2e1   :  { %v14361_v30 = vadd.f32 %v4083_v32, %v3846_v45  ;;  %v3849_v14 = vadd.f32 %v14289_v33, %v18663_v38  ;;  %v4552_v3 = vsel %vm4305_vm6, %v4465_v39, 0.0  ;;  %v3432_v32 = vadd.f32 %v13983_v10, %v2981_v46  ;;  %10438 = vmatpush3.msra.mxu1 %v5424_v26  ;;  %v18665_v10 = vld [vmem:[#allocation5_spill] sm:$0xff] }
 0x2e2   :  { %v14370_v18 = vpop.f32.mrf.mxu1  ;;  %v10403_v60 = vpop.f32.mrf.mxu0  ;;  %v4354_v56 = vadd.f32 %v4353_v31, %v4352_v15  ;;  %v4551_v48 = vadd.f32 %v4550_v41, %v4549_v61  ;;  %v18664_v41 = vld [vmem:[#allocation86_spill] sm:$0xff]  ;;  %v4357_v33 = vsel %vm4305_vm6, %v14355_v44, 0.0  ;;  %v4468_v39 = vmul.f32 %v14368_v52, %v14368_v52 }
 0x2e3   :  { %18660 = vst [vmem:[#allocation13_spill] sm:$0xff] %v14361_v30  ;;  %v4355_v28 = vsel %vm4305_vm6, %v14361_v30, 0.0  ;;  %v4466_v45 = vmul.f32 %v14361_v30, %v14361_v30  ;;  %v3851_v31 = vadd.f32 %v14276_v63, %v18664_v41  ;;  %v3852_v46 = vadd.f32 %v14301_v25, %v18665_v10 }
 0x2e4   :  { %v14384_v15 = vpop.f32.mrf.mxu1  ;;  %v4096_v58 = vpop.f32.mrf.mxu0  ;;  %v4553_v61 = vadd.f32 %v4552_v3, %v4551_v48  ;;  %v4356_v55 = vadd.f32 %v4355_v28, %v4354_v56  ;;  %v3850_v56 = vadd.f32 %v14313_v59, %v3432_v32  ;;  %v4556_v63 = vsel %vm4305_vm6, %v4467_v16, 0.0 }
 0x2e5   :  { %v4554_v50 = vsel %vm4305_vm6, %v4466_v45, 0.0  ;;  %v14394_v38 = vadd.f32 %v4096_v58, %v3849_v14  ;;  %v4359_v45 = vsel %vm4305_vm6, %v14368_v52, 0.0  ;;  %v14404_v26 = vadd.f32 %v10403_v60, %v3851_v31 }
 0x2e6   :  { %v14396_v30 = vpop.f32.mrf.mxu1  ;;  %v10404_v12 = vpop.f32.mrf.mxu0  ;;  %v4358_v48 = vadd.f32 %v4357_v33, %v4356_v55  ;;  %v4555_v28 = vadd.f32 %v4554_v50, %v4553_v61  ;;  %v4558_v25 = vsel %vm4305_vm6, %v4468_v39, 0.0  ;;  %v18668_v55 = vld [vmem:[#allocation58_spill] sm:$0xff]  ;;  %v3853_v33 = vadd.f32 %v14335_v36, %v13989_v19 }
 0x2e7   :  { %18666 = vst [vmem:[#allocation56_spill] sm:$0xff] %v14404_v26  ;;  %v4469_v14 = vmul.f32 %v14394_v38, %v14394_v38  ;;  %v4361_v59 = vsel %vm4305_vm6, %v14394_v38, 0.0  ;;  %v14413_v32 = vadd.f32 %v10404_v12, %v3852_v46  ;;  %v18669_v50 = vld [vmem:[#allocation82_spill] sm:$0xff]  ;;  %v4471_v39 = vmul.f32 %v14404_v26, %v14404_v26 }
 0x2e8   :  { %v14408_v3 = vpop.f32.mrf.mxu1  ;;  %v4099_v58 = vpop.f32.mrf.mxu0  ;;  %v4557_v41 = vadd.f32 %v4556_v63, %v4555_v28  ;;  %v4360_v44 = vadd.f32 %v4359_v45, %v4358_v48  ;;  %v2985_v31 = vadd.f32 %v18669_v50, %v18668_v55 }
 0x2e9   :  { %v14415_v16 = vadd.f32 %v4099_v58, %v3850_v56  ;;  %v4560_v28 = vsel %vm4305_vm6, %v4469_v14, 0.0  ;;  %v4365_v14 = vsel %vm4305_vm6, %v14404_v26, 0.0 }
 0x2ea   :  { %v14417_v61 = vpop.f32.mrf.mxu1  ;;  %v10407_v60 = vpop.f32.mrf.mxu0  ;;  %v4362_v10 = vadd.f32 %v4361_v59, %v4360_v44  ;;  %v4559_v48 = vadd.f32 %v4558_v25, %v4557_v41  ;;  %v3436_v45 = vadd.f32 %v13996_v4, %v2985_v31  ;;  %v18671_v44 = vld [vmem:[#allocation88_spill] sm:$0xff]  ;;  %v4472_v25 = vmul.f32 %v14413_v32, %v14413_v32 }
 0x2eb   :  { %18667 = vst [vmem:[#allocation83_spill] sm:$0xff] %v14415_v16  ;;  %v4363_v12 = vsel %vm4305_vm6, %v14415_v16, 0.0  ;;  %v4470_v46 = vmul.f32 %v14415_v16, %v14415_v16  ;;  %v3855_v41 = vadd.f32 %v14322_v9, %v18671_v44  ;;  %v18672_v16 = vld [vmem:[#allocation18_spill] sm:$0xff]  ;;  %v4564_v9 = vsel %vm4305_vm6, %v4471_v39, 0.0 }
 0x2ec   :  { %v14430_v56 = vpop.f32.mrf.mxu1  ;;  %v4112_v63 = vpop.f32.mrf.mxu0  ;;  %v4561_v58 = vadd.f32 %v4560_v28, %v4559_v48  ;;  %v4364_v19 = vadd.f32 %v4363_v12, %v4362_v10  ;;  %v3856_v4 = vadd.f32 %v14347_v47, %v18672_v16  ;;  %v3854_v31 = vadd.f32 %v14359_v22, %v3436_v45 }
 0x2ed   :  { %v14433_v36 = vadd.f32 %v4112_v63, %v3853_v33  ;;  %v4562_v59 = vsel %vm4305_vm6, %v4470_v46, 0.0  ;;  %v4367_v48 = vsel %vm4305_vm6, %v14413_v32, 0.0  ;;  %v14450_v28 = vadd.f32 %v10407_v60, %v3855_v41 }
 0x2ee   :  { %v14442_v55 = vpop.f32.mrf.mxu1  ;;  %v10408_v50 = vpop.f32.mrf.mxu0  ;;  %v4366_v33 = vadd.f32 %v4365_v14, %v4364_v19  ;;  %v4563_v10 = vadd.f32 %v4562_v59, %v4561_v58  ;;  %v4566_v47 = vsel %vm4305_vm6, %v4472_v25, 0.0  ;;  %v18675_v58 = vld [vmem:[#allocation80_spill] sm:$0xff] }
 0x2ef   :  { %18670 = vst [vmem:[#allocation41_spill] sm:$0xff] %v14433_v36  ;;  %18673 = vst [vmem:[#allocation59_spill] sm:$0xff] %v14450_v28  ;;  %v4473_v12 = vmul.f32 %v14433_v36, %v14433_v36  ;;  %v4369_v22 = vsel %vm4305_vm6, %v14433_v36, 0.0  ;;  %v14459_v16 = vadd.f32 %v10408_v50, %v3856_v4  ;;  %v18676_v19 = vld [vmem:[#allocation36_spill] sm:$0xff]  ;;  %v4475_v25 = vmul.f32 %v14450_v28, %v14450_v28  ;;  %v18679_v36 = vld [vmem:[#allocation6_spill] sm:$0xff] }
 0x2f0   :  { %v14454_v46 = vpop.f32.mrf.mxu1  ;;  %v4115_v63 = vpop.f32.mrf.mxu0  ;;  %v4565_v44 = vadd.f32 %v4564_v9, %v4563_v10  ;;  %v4368_v26 = vadd.f32 %v4367_v48, %v4366_v33  ;;  %v2989_v41 = vadd.f32 %v18676_v19, %v18675_v58  ;;  %v18677_v14 = vld [vmem:[#allocation16_spill] sm:$0xff]  ;;  %v18678_v58 = vld [vmem:[#allocation15_spill] sm:$0xff] }
 0x2f1   :  { %v14461_v39 = vadd.f32 %v4115_v63, %v3854_v31  ;;  %v3857_v59 = vadd.f32 %v14384_v15, %v18677_v14  ;;  %v4568_v9 = vsel %vm4305_vm6, %v4473_v12, 0.0  ;;  %v3859_v15 = vadd.f32 %v14370_v18, %v18678_v58 }
 0x2f2   :  { %v14463_v45 = vpop.f32.mrf.mxu1  ;;  %v10411_v60 = vpop.f32.mrf.mxu0  ;;  %v4370_v10 = vadd.f32 %v4369_v22, %v4368_v26  ;;  %v4567_v33 = vadd.f32 %v4566_v47, %v4565_v44  ;;  %v3440_v63 = vadd.f32 %v14009_v23, %v2989_v41  ;;  %v4373_v47 = vsel %vm4305_vm6, %v14450_v28, 0.0 }
 0x2f3   :  { %18674 = vst [vmem:[#allocation42_spill] sm:$0xff] %v14461_v39  ;;  %v4371_v50 = vsel %vm4305_vm6, %v14461_v39, 0.0  ;;  %v4474_v4 = vmul.f32 %v14461_v39, %v14461_v39  ;;  %v4476_v12 = vmul.f32 %v14459_v16, %v14459_v16  ;;  %v3860_v23 = vadd.f32 %v14396_v30, %v18679_v36  ;;  %v18683_v36 = vld [vmem:[#allocation89_spill] sm:$0xff] }
 0x2f4   :  { %v14476_v31 = vpop.f32.mrf.mxu1  ;;  %v4128_v48 = vpop.f32.mrf.mxu0  ;;  %v4569_v26 = vadd.f32 %v4568_v9, %v4567_v33  ;;  %v4372_v44 = vadd.f32 %v4371_v50, %v4370_v10  ;;  %v3858_v18 = vadd.f32 %v14408_v3, %v3440_v63  ;;  %v4572_v33 = vsel %vm4305_vm6, %v4475_v25, 0.0  ;;  %v18682_v3 = vld [vmem:[#allocation63_spill] sm:$0xff] }
 0x2f5   :  { %v4570_v22 = vsel %vm4305_vm6, %v4474_v4, 0.0  ;;  %v14486_v19 = vadd.f32 %v4128_v48, %v3857_v59  ;;  %v4375_v9 = vsel %vm4305_vm6, %v14459_v16, 0.0  ;;  %v14496_v50 = vadd.f32 %v10411_v60, %v3859_v15 }
 0x2f6   :  { %v14488_v14 = vpop.f32.mrf.mxu1  ;;  %v10412_v39 = vpop.f32.mrf.mxu0  ;;  %v4374_v41 = vadd.f32 %v4373_v47, %v4372_v44  ;;  %v4571_v10 = vadd.f32 %v4570_v22, %v4569_v26  ;;  %v2993_v63 = vadd.f32 %v18683_v36, %v18682_v3  ;;  %v4574_v25 = vsel %vm4305_vm6, %v4476_v12, 0.0  ;;  %v18684_v3 = vld [vmem:[#allocation19_spill] sm:$0xff] }
 0x2f7   :  { %18680 = vst [vmem:[#allocation43_spill] sm:$0xff] %v14496_v50  ;;  %v4477_v59 = vmul.f32 %v14486_v19, %v14486_v19  ;;  %v4377_v26 = vsel %vm4305_vm6, %v14486_v19, 0.0  ;;  %v14509_v60 = vadd.f32 %v10412_v39, %v3860_v23  ;;  %v4479_v12 = vmul.f32 %v14496_v50, %v14496_v50 }
 0x2f8   :  { %v14500_v4 = vpop.f32.mrf.mxu1  ;;  %v4131_v48 = vpop.f32.mrf.mxu0  ;;  %v4573_v58 = vadd.f32 %v4572_v33, %v4571_v10  ;;  %v4376_v28 = vadd.f32 %v4375_v9, %v4374_v41  ;;  %v3861_v10 = vadd.f32 %v14430_v56, %v14015_v13  ;;  %v3863_v36 = vadd.f32 %v14417_v61, %v18684_v3 }
 0x2f9   :  { %v14502_v30 = vadd.f32 %v4131_v48, %v3858_v18  ;;  %v4576_v39 = vsel %vm4305_vm6, %v4477_v59, 0.0  ;;  %v4381_v13 = vsel %vm4305_vm6, %v14496_v50, 0.0  ;;  %v4480_v56 = vmul.f32 %v14509_v60, %v14509_v60 }
 0x2fa   :  { %v14511_v15 = vpop.f32.mrf.mxu1  ;;  %v10415_v44 = vpop.f32.mrf.mxu0  ;;  %v4378_v47 = vadd.f32 %v4377_v26, %v4376_v28  ;;  %v4575_v22 = vadd.f32 %v4574_v25, %v4573_v58  ;;  %v3444_v28 = vadd.f32 %v14022_v0, %v2993_v63  ;;  %v4580_v61 = vsel %vm4305_vm6, %v4479_v12, 0.0 }
 0x2fb   :  { %18681 = vst [vmem:[#allocation62_spill] sm:$0xff] %v14502_v30  ;;  %v4379_v41 = vsel %vm4305_vm6, %v14502_v30, 0.0  ;;  %v4478_v18 = vmul.f32 %v14502_v30, %v14502_v30  ;;  %v18685_v30 = vld [vmem:[#allocation17_spill] sm:$0xff] }
 0x2fc   :  { %v14522_v23 = vpop.f32.mrf.mxu1  ;;  %v4144_v33 = vpop.f32.mrf.mxu0  ;;  %v4577_v9 = vadd.f32 %v4576_v39, %v4575_v22  ;;  %v4380_v48 = vadd.f32 %v4379_v41, %v4378_v47  ;;  %v3864_v0 = vadd.f32 %v14442_v55, %v18685_v30  ;;  %v3862_v63 = vadd.f32 %v14454_v46, %v3444_v28 }
 0x2fd   :  { %v4578_v58 = vsel %vm4305_vm6, %v4478_v18, 0.0  ;;  %v14532_v25 = vadd.f32 %v4144_v33, %v3861_v10  ;;  %v4383_v41 = vsel %vm4305_vm6, %v14509_v60, 0.0  ;;  %v14542_v18 = vadd.f32 %v10415_v44, %v3863_v36 }
 0x2fe   :  { %v14534_v59 = vpop.f32.mrf.mxu1  ;;  %v10416_v26 = vpop.f32.mrf.mxu0  ;;  %v4382_v47 = vadd.f32 %v4381_v13, %v4380_v48  ;;  %v4579_v22 = vadd.f32 %v4578_v58, %v4577_v9  ;;  %v4582_v55 = vsel %vm4305_vm6, %v4480_v56, 0.0  ;;  %v18689_v9 = vld [vmem:[#allocation66_spill] sm:$0xff]  ;;  %v18690_v48 = vld [vmem:[#allocation7_spill] sm:$0xff]  ;;  %v3865_v36 = vadd.f32 %v14476_v31, %v14028_v53 }
 0x2ff   :  { %18686 = vst [vmem:[#allocation48_spill] sm:$0xff] %v14542_v18  ;;  %v4481_v10 = vmul.f32 %v14532_v25, %v14532_v25  ;;  %v4385_v46 = vsel %vm4305_vm6, %v14532_v25, 0.0  ;;  %v14551_v30 = vadd.f32 %v10416_v26, %v3864_v0  ;;  %v2997_v58 = vadd.f32 %v18690_v48, %v18689_v9  ;;  %v18692_v48 = vld [vmem:[#allocation21_spill] sm:$0xff] }
 0x300   :  { %v14546_v39 = vpop.f32.mrf.mxu1  ;;  %v4147_v33 = vpop.f32.mrf.mxu0  ;;  %v4581_v3 = vadd.f32 %v4580_v61, %v4579_v22  ;;  %v4384_v50 = vadd.f32 %v4383_v41, %v4382_v47  ;;  %v4483_v56 = vmul.f32 %v14542_v18, %v14542_v18 }
 0x301   :  { %18687 = vst [vmem:[#allocation46_spill] sm:$0xff] %v14551_v30  ;;  %v14553_v12 = vadd.f32 %v4147_v33, %v3862_v63  ;;  %v4584_v22 = vsel %vm4305_vm6, %v4481_v10, 0.0  ;;  %v3448_v41 = vadd.f32 %v14035_v51, %v2997_v58  ;;  %v4389_v10 = vsel %vm4305_vm6, %v14542_v18, 0.0 }
 0x302   :  { %v14555_v28 = vpop.f32.mrf.mxu1  ;;  %v10419_v44 = vpop.f32.mrf.mxu0  ;;  %v4386_v13 = vadd.f32 %v4385_v46, %v4384_v50  ;;  %v4583_v47 = vadd.f32 %v4582_v55, %v4581_v3  ;;  %v3867_v50 = vadd.f32 %v14463_v45, %v14026_v21  ;;  %v4484_v3 = vmul.f32 %v14551_v30, %v14551_v30 }
 0x303   :  { %18688 = vst [vmem:[#allocation65_spill] sm:$0xff] %v14553_v12  ;;  %v4387_v26 = vsel %vm4305_vm6, %v14553_v12, 0.0  ;;  %v4482_v0 = vmul.f32 %v14553_v12, %v14553_v12  ;;  %v3868_v51 = vadd.f32 %v14488_v14, %v18692_v48  ;;  %v3866_v58 = vadd.f32 %v14500_v4, %v3448_v41 }
 0x304   :  { %v14568_v63 = vpop.f32.mrf.mxu1  ;;  %v4160_v61 = vpop.f32.mrf.mxu0  ;;  %v4585_v33 = vadd.f32 %v4584_v22, %v4583_v47  ;;  %v4388_v53 = vadd.f32 %v4387_v26, %v4386_v13  ;;  %v4588_v21 = vsel %vm4305_vm6, %v4483_v56, 0.0  ;;  %v4391_v45 = vsel %vm4305_vm6, %v14551_v30, 0.0 }
 0x305   :  { %v14571_v31 = vadd.f32 %v4160_v61, %v3865_v36  ;;  %v4586_v55 = vsel %vm4305_vm6, %v4482_v0, 0.0  ;;  %v14588_v47 = vadd.f32 %v10419_v44, %v3867_v50  ;;  %v4590_v14 = vsel %vm4305_vm6, %v4484_v3, 0.0  ;;  %v18697_v50 = vld [vmem:[#allocation20_spill] sm:$0xff] }
 0x306   :  { %v14580_v46 = vpop.f32.mrf.mxu1  ;;  %v10420_v9 = vpop.f32.mrf.mxu0  ;;  %v4390_v36 = vadd.f32 %v4389_v10, %v4388_v53  ;;  %v4587_v13 = vadd.f32 %v4586_v55, %v4585_v33  ;;  %v18696_v53 = vld [vmem:[#allocation70_spill] sm:$0xff]  ;;  %v3869_v55 = vadd.f32 %v14522_v23, %v14041_v35  ;;  %v3871_v35 = vadd.f32 %v14511_v15, %v14039_v43 }
 0x307   :  { %18691 = vst [vmem:[#allocation69_spill] sm:$0xff] %v14571_v31  ;;  %18693 = vst [vmem:[#allocation45_spill] sm:$0xff] %v14588_v47  ;;  %v4485_v22 = vmul.f32 %v14571_v31, %v14571_v31  ;;  %v4393_v4 = vsel %vm4305_vm6, %v14571_v31, 0.0  ;;  %v14597_v41 = vadd.f32 %v10420_v9, %v3868_v51  ;;  %v3001_v10 = vadd.f32 %v18697_v50, %v18696_v53  ;;  %v18698_v53 = vld [vmem:[#allocation32_spill] sm:$0xff]  ;;  %v18718_v31 = vld [vmem:[#allocation14_spill] sm:$0xff] }
 0x308   :  { %v14592_v26 = vpop.f32.mrf.mxu1  ;;  %v4163_v0 = vpop.f32.mrf.mxu0  ;;  %v4589_v61 = vadd.f32 %v4588_v21, %v4587_v13  ;;  %v4392_v18 = vadd.f32 %v4391_v45, %v4390_v36  ;;  %v4487_v3 = vmul.f32 %v14588_v47, %v14588_v47  ;;  %v3872_v50 = vadd.f32 %v14534_v59, %v18698_v53 }
 0x309   :  { %18694 = vst [vmem:[#allocation52_spill] sm:$0xff] %v14597_v41  ;;  %v14599_v56 = vadd.f32 %v4163_v0, %v3866_v58  ;;  %v4592_v13 = vsel %vm4305_vm6, %v4485_v22, 0.0  ;;  %v3452_v45 = vadd.f32 %v14048_v20, %v3001_v10  ;;  %v4397_v0 = vsel %vm4305_vm6, %v14588_v47, 0.0 }
 0x30a   :  { %v14601_v33 = vpop.f32.mrf.mxu1  ;;  %v10423_v44 = vpop.f32.mrf.mxu0  ;;  %v4394_v48 = vadd.f32 %v4393_v4, %v4392_v18  ;;  %v4591_v36 = vadd.f32 %v4590_v14, %v4589_v61  ;;  %v4488_v22 = vmul.f32 %v14597_v41, %v14597_v41  ;;  %v4596_v15 = vsel %vm4305_vm6, %v4487_v3, 0.0 }
 0x30b   :  { %18695 = vst [vmem:[#allocation72_spill] sm:$0xff] %v14599_v56  ;;  %v4395_v9 = vsel %vm4305_vm6, %v14599_v56, 0.0  ;;  %v4486_v51 = vmul.f32 %v14599_v56, %v14599_v56  ;;  %v3870_v20 = vadd.f32 %v14546_v39, %v3452_v45  ;;  %v18700_v39 = vld [vmem:[#allocation71_spill] sm:$0xff] }
 0x30c   :  { %v14614_v58 = vpop.f32.mrf.mxu1  ;;  %v4176_v21 = vpop.f32.mrf.mxu0  ;;  %v4593_v23 = vadd.f32 %v4592_v13, %v4591_v36  ;;  %v4396_v18 = vadd.f32 %v4395_v9, %v4394_v48  ;;  %v4399_v48 = vsel %vm4305_vm6, %v14597_v41, 0.0  ;;  %v14632_v36 = vadd.f32 %v10423_v44, %v3871_v35  ;;  %v18701_v45 = vld [vmem:[#allocation31_spill] sm:$0xff] }
 0x30d   :  { %v4594_v61 = vsel %vm4305_vm6, %v4486_v51, 0.0  ;;  %v14624_v14 = vadd.f32 %v4176_v21, %v3869_v55  ;;  %v4598_v3 = vsel %vm4305_vm6, %v4488_v22, 0.0 }
 0x30e   :  { %v10424_v4 = vpop.f32.mrf.mxu0  ;;  %v4398_v10 = vadd.f32 %v4397_v0, %v4396_v18  ;;  %v4595_v43 = vadd.f32 %v4594_v61, %v4593_v23  ;;  %18699 = vst [vmem:[#allocation50_spill] sm:$0xff] %v14632_v36  ;;  %v14636_v55 = vpop.f32.mrf.mxu1  ;;  %v3005_v23 = vadd.f32 %v18701_v45, %v18700_v39  ;;  %v4491_v22 = vmul.f32 %v14632_v36, %v14632_v36  ;;  %v18703_v39 = vld [vmem:[#allocation22_spill] sm:$0xff] }
 0x30f   :  { %v4489_v13 = vmul.f32 %v14624_v14, %v14624_v14  ;;  %v4401_v18 = vsel %vm4305_vm6, %v14624_v14, 0.0  ;;  %v14645_v44 = vadd.f32 %v10424_v4, %v3872_v50  ;;  %v18702_v50 = vld [vmem:[#allocation9_spill] sm:$0xff]  ;;  %v3875_v45 = vadd.f32 %v14555_v28, %v18703_v39 }
 0x310   :  { %v4179_v9 = vpop.f32.mrf.mxu0  ;;  %v4597_v51 = vadd.f32 %v4596_v15, %v4595_v43  ;;  %v4400_v21 = vadd.f32 %v4399_v48, %v4398_v10  ;;  %v3873_v10 = vadd.f32 %v14568_v63, %v14054_v29  ;;  %v3793_v15 = vpop.f32.mrf.mxu1  ;;  %v3456_v48 = vadd.f32 %v18702_v50, %v3005_v23 }
 0x311   :  { %v14638_v59 = vadd.f32 %v4179_v9, %v3870_v20  ;;  %v4600_v43 = vsel %vm4305_vm6, %v4489_v13, 0.0  ;;  %v4492_v29 = vmul.f32 %v14645_v44, %v14645_v44  ;;  %v4407_v28 = vsel %vm4305_vm6, %v14645_v44, 0.0 }
 0x312   :  { %v10427_v35 = vpop.f32.mrf.mxu0  ;;  %v4402_v0 = vadd.f32 %v4401_v18, %v4400_v21  ;;  %v4599_v61 = vadd.f32 %v4598_v3, %v4597_v51  ;;  %v4405_v3 = vsel %vm4305_vm6, %v14632_v36, 0.0  ;;  %v18704_v18 = vld [vmem:[#allocation25_spill] sm:$0xff]  ;;  %v3874_v23 = vadd.f32 %v14592_v26, %v3456_v48 }
 0x313   :  { %v4403_v53 = vsel %vm4305_vm6, %v14638_v59, 0.0  ;;  %v4490_v20 = vmul.f32 %v14638_v59, %v14638_v59  ;;  %v3876_v41 = vadd.f32 %v14580_v46, %v18704_v18  ;;  %v4606_v46 = vsel %vm4305_vm6, %v4492_v29, 0.0 }
 0x314   :  { %v4192_v4 = vpop.f32.mrf.mxu0  ;;  %v4601_v9 = vadd.f32 %v4600_v43, %v4599_v61  ;;  %v4404_v51 = vadd.f32 %v4403_v53, %v4402_v0  ;;  %v4604_v53 = vsel %vm4305_vm6, %v4491_v22, 0.0  ;;  %v14672_v43 = vadd.f32 %v10427_v35, %v3875_v45  ;;  %v18707_v45 = vld [vmem:[#allocation8_spill] sm:$0xff] }
 0x315   :  { %v4602_v21 = vsel %vm4305_vm6, %v4490_v20, 0.0  ;;  %v14664_v63 = vadd.f32 %v4192_v4, %v3873_v10  ;;  %v10355_v20 = vpop.f32.mrf.mxu1 }
 0x316   :  { %v10428_v13 = vpop.f32.mrf.mxu0  ;;  %v4406_v0 = vadd.f32 %v4405_v3, %v4404_v51  ;;  %v4603_v61 = vadd.f32 %v4602_v21, %v4601_v9  ;;  %v18705_v51 = vld [vmem:[#allocation73_spill] sm:$0xff]  ;;  %v18706_v21 = vld [vmem:[#allocation24_spill] sm:$0xff]  ;;  %v3877_v3 = vadd.f32 %v14614_v58, %v18707_v45  ;;  %v18710_v45 = vld [vmem:[#allocation27_spill] sm:$0xff] }
 0x317   :  { %v4493_v10 = vmul.f32 %v14664_v63, %v14664_v63  ;;  %v4409_v26 = vsel %vm4305_vm6, %v14664_v63, 0.0  ;;  %v14679_v48 = vadd.f32 %v10428_v13, %v3876_v41  ;;  %v3009_v35 = vadd.f32 %v18706_v21, %v18705_v51  ;;  %v3806_v29 = vpop.f32.mrf.mxu1 }
 0x318   :  { %v4195_v4 = vpop.f32.mrf.mxu0  ;;  %v4605_v50 = vadd.f32 %v4604_v53, %v4603_v61  ;;  %v4408_v39 = vadd.f32 %v4407_v28, %v4406_v0  ;;  %v4495_v0 = vmul.f32 %v14672_v43, %v14672_v43  ;;  %v18708_v53 = vld [vmem:[#allocation28_spill] sm:$0xff]  ;;  %v3880_v47 = vadd.f32 %v14636_v55, %v18710_v45  ;;  %v5423_v55 = vld [vmem:[%s18047_s4] sm:$0xff]  ;;  %s11302_s4 = smov [#allocation2]  }
 0x319   :  { %v14681_v22 = vadd.f32 %v4195_v4, %v3874_v23  ;;  %v4608_v61 = vsel %vm4305_vm6, %v4493_v10, 0.0  ;;  %v3460_v28 = vadd.f32 %v18708_v53, %v3009_v35  ;;  %v18709_v4 = vld [vmem:[#allocation10_spill] sm:$0xff]  ;;  %v4496_v10 = vmul.f32 %v14679_v48, %v14679_v48  ;;  %10439 = vmatprep.subr.mxu1 %v5423_v55  ;;  %s17985_s22 = sshll.u32 %s11302_s4, 4  ;;  %s8204_s22 = int_to_ptr.vmem [resolvable:$true] %s17985_s22 }
 0x31a   :  { %v10431_v9 = vpop.f32.mrf.mxu0  ;;  %v4410_v18 = vadd.f32 %v4409_v26, %v4408_v39  ;;  %v4607_v36 = vadd.f32 %v4606_v46, %v4605_v50  ;;  %v3879_v58 = vadd.f32 %v14601_v33, %v18709_v4  ;;  %v4413_v46 = vsel %vm4305_vm6, %v14672_v43, 0.0  ;;  %10440 = vmatpush3.msra.mxu1 %v5423_v55  ;;  %s11274_s21 = scalar_lea.vmem %s8204_s22, 8192  ;;  %p11279_p1 = scmp.lt.s32.totalorder %s8204_s22, %s8204_s22 }
 0x31b   :  { %v4411_v41 = vsel %vm4305_vm6, %v14681_v22, 0.0  ;;  %v4494_v13 = vmul.f32 %v14681_v22, %v14681_v22  ;;  %v3878_v35 = vadd.f32 %v3793_v15, %v3460_v28  ;;  %v4612_v33 = vsel %vm4305_vm6, %v4495_v0, 0.0  ;;  %p11275_p0 = scmp.ne.s32.totalorder %s8204_s22, %s11274_s21  ;;  %p11280_p2 = scmp.lt.s32.totalorder %s11274_s21, %s11274_s21 }
 0x31c   :  { %v4208_v23 = vpop.f32.mrf.mxu0  ;;  %v4609_v39 = vadd.f32 %v4608_v61, %v4607_v36  ;;  %v4412_v50 = vadd.f32 %v4411_v41, %v4410_v18  ;;  %v10356_v36 = vpop.f32.mrf.mxu1  ;;  %v4415_v18 = vsel %vm4305_vm6, %v14679_v48, 0.0  ;;  %v14709_v61 = vadd.f32 %v10431_v9, %v3879_v58  ;;  %v18711_v58 = vld [vmem:[#allocation74_spill] sm:$0xff] }
 0x31d   :  { %v4610_v26 = vsel %vm4305_vm6, %v4494_v13, 0.0  ;;  %v14702_v51 = vadd.f32 %v4208_v23, %v3877_v3  ;;  %v4614_v15 = vsel %vm4305_vm6, %v4496_v10, 0.0  ;;  %v3884_v30 = vadd.f32 %v10356_v36, %v18718_v31  ;;  %p11281_p3 = por %p11280_p2, %p11279_p1 }
 0x31e   :  { %v10432_v21 = vpop.f32.mrf.mxu0  ;;  %v4414_v53 = vadd.f32 %v4413_v46, %v4412_v50  ;;  %v4611_v56 = vadd.f32 %v4610_v26, %v4609_v39  ;;  %v18712_v39 = vld [vmem:[#allocation26_spill] sm:$0xff]  ;;  %v4499_v10 = vmul.f32 %v14709_v61, %v14709_v61 }
 0x31f   :  { %v4497_v41 = vmul.f32 %v14702_v51, %v14702_v51  ;;  %v4417_v0 = vsel %vm4305_vm6, %v14702_v51, 0.0  ;;  %v14719_v28 = vadd.f32 %v10432_v21, %v3880_v47  ;;  %v3013_v50 = vadd.f32 %v18712_v39, %v18711_v58  ;;  %p11282_p4 = pnand %p11281_p3, %p11275_p0 }
 0x320   :  { %v4211_v3 = vpop.f32.mrf.mxu0  ;;  %v4613_v13 = vadd.f32 %v4612_v33, %v4611_v56  ;;  %v4416_v23 = vadd.f32 %v4415_v18, %v4414_v53  ;;  %v18713_v56 = vld [vmem:[#allocation12_spill] sm:$0xff]  ;;  %v3809_v53 = vpop.f32.mrf.mxu1  ;;  %v18714_v18 = vmov 0.0  }
 0x321   :  { %v14721_v4 = vadd.f32 %v4211_v3, %v3878_v35  ;;  %v3881_v46 = vadd.f32 %v3806_v29, %v18713_v56  ;;  %v4616_v33 = vsel %vm4305_vm6, %v4497_v41, 0.0  ;;  %10617 = vmatprep.subr.mxu1 %v18714_v18  ;;  %v18715_v3 = vld [vmem:[#allocation33_spill] sm:$0xff]  ;;  %v4500_v41 = vmul.f32 %v14719_v28, %v14719_v28 }
 0x322   :  { %v10435_v9 = vpop.f32.mrf.mxu0  ;;  %v4418_v26 = vadd.f32 %v4417_v0, %v4416_v23  ;;  %v4615_v45 = vadd.f32 %v4614_v15, %v4613_v13  ;;  %v3464_v29 = vadd.f32 %v18715_v3, %v3013_v50  ;;  %v18716_v23 = vld [vmem:[#allocation29_spill] sm:$0xff]  ;;  %v4421_v0 = vsel %vm4305_vm6, %v14709_v61, 0.0 }
 0x323   :  { %v4419_v47 = vsel %vm4305_vm6, %v14721_v4, 0.0  ;;  %v4498_v21 = vmul.f32 %v14721_v4, %v14721_v4  ;;  %v3883_v13 = vadd.f32 %v10355_v20, %v18716_v23  ;;  %v4620_v20 = vsel %vm4305_vm6, %v4499_v10, 0.0 }
 0x324   :  { %v4224_v35 = vpop.f32.mrf.mxu0  ;;  %v4617_v55 = vadd.f32 %v4616_v33, %v4615_v45  ;;  %v4420_v15 = vadd.f32 %v4419_v47, %v4418_v26  ;;  %v3882_v18 = vadd.f32 %v3809_v53, %v3464_v29  ;;  %v4423_v26 = vsel %vm4305_vm6, %v14719_v28, 0.0 }
 0x325   :  { %v4618_v58 = vsel %vm4305_vm6, %v4498_v21, 0.0  ;;  %v14741_v39 = vadd.f32 %v4224_v35, %v3881_v46  ;;  %v14747_v45 = vadd.f32 %v10435_v9, %v3883_v13  ;;  %v4622_v35 = vsel %vm4305_vm6, %v4500_v41, 0.0 }
 0x326   :  { %v10436_v56 = vpop.f32.mrf.mxu0  ;;  %v4422_v12 = vadd.f32 %v4421_v0, %v4420_v15  ;;  %v4619_v50 = vadd.f32 %v4618_v58, %v4617_v55 }
 0x327   :  { %18717 = vst [vmem:[#allocation75_spill] sm:$0xff] %v14741_v39  ;;  %18719 = vst [vmem:[#allocation57_spill] sm:$0xff] %v14747_v45  ;;  %v4501_v33 = vmul.f32 %v14741_v39, %v14741_v39  ;;  %v4425_v31 = vsel %vm4305_vm6, %v14741_v39, 0.0  ;;  %v14754_v36 = vadd.f32 %v10436_v56, %v3884_v30  ;;  %v4503_v9 = vmul.f32 %v14747_v45, %v14747_v45 }
 0x328   :  { %v4227_v47 = vpop.f32.mrf.mxu0  ;;  %v4621_v21 = vadd.f32 %v4620_v20, %v4619_v50  ;;  %v4424_v46 = vadd.f32 %v4423_v26, %v4422_v12  ;;  %v4429_v30 = vsel %vm4305_vm6, %v14747_v45, 0.0  ;;  %v18742_v45 = vld [vmem:[#allocation50_spill] sm:$0xff] }
 0x329   :  { %18720 = vst [vmem:[#allocation53_spill] sm:$0xff] %v14754_v36  ;;  %v14756_v53 = vadd.f32 %v4227_v47, %v3882_v18  ;;  %v4624_v29 = vsel %vm4305_vm6, %v4501_v33, 0.0  ;;  %v4504_v18 = vmul.f32 %v14754_v36, %v14754_v36  ;;  %v4628_v58 = vsel %vm4305_vm6, %v4503_v9, 0.0 }
 0x32a   :  { %v4426_v10 = vadd.f32 %v4425_v31, %v4424_v46  ;;  %v4623_v3 = vadd.f32 %v4622_v35, %v4621_v21  ;;  %v4431_v56 = vsel %vm4305_vm6, %v14754_v36, 0.0  ;;  %v18741_v36 = vld [vmem:[#allocation52_spill] sm:$0xff] }
 0x32b   :  { %v4427_v23 = vsel %vm4305_vm6, %v14756_v53, 0.0  ;;  %v4502_v12 = vmul.f32 %v14756_v53, %v14756_v53  ;;  %v4630_v26 = vsel %vm4305_vm6, %v4504_v18, 0.0 }
 0x32c   :  { %v4625_v13 = vadd.f32 %v4624_v29, %v4623_v3  ;;  %v4428_v55 = vadd.f32 %v4427_v23, %v4426_v10 }
 0x32d   :  { %v4626_v15 = vsel %vm4305_vm6, %v4502_v12, 0.0 }
 0x32e   :  { %v4430_v0 = vadd.f32 %v4429_v30, %v4428_v55  ;;  %v4627_v41 = vadd.f32 %v4626_v15, %v4625_v13 }
 0x330   :  { %v4432_v50 = vadd.f32 %v4431_v56, %v4430_v0  ;;  %v4629_v20 = vadd.f32 %v4628_v58, %v4627_v41  ;;  %v18734_v56 = vld [vmem:[#allocation43_spill] sm:$0xff] }
 0x332   :  { %v4433_v33 = vrot.slane %v4432_v50, 4  ;;  %v4631_v47 = vadd.f32 %v4630_v26, %v4629_v20  ;;  %v18740_v26 = vld [vmem:[#allocation45_spill] sm:$0xff] }
 0x334   :  { %v4434_v21 = vadd.f32 %v4433_v33, %v4432_v50  ;;  %v4632_v46 = vrot.slane %v4631_v47, 4 }
 0x336   :  { %v4435_v35 = vrot.slane %v4434_v21, 2  ;;  %v4633_v31 = vadd.f32 %v4632_v46, %v4631_v47 }
 0x338   :  { %v4436_v10 = vadd.f32 %v4435_v35, %v4434_v21  ;;  %v4634_v3 = vrot.slane %v4633_v31, 2 }
 0x33a   :  { %v4437_v29 = vrot.slane %v4436_v10, 1  ;;  %v4635_v23 = vadd.f32 %v4634_v3, %v4633_v31  ;;  %v18724_v31 = vld [vmem:[#allocation37_spill] sm:$0xff] }
 0x33c   :  { %v4438_v12 = vadd.f32 %v4437_v29, %v4436_v10  ;;  %v4636_v13 = vrot.slane %v4635_v23, 1 }
 0x33e   :  { %v14774_v9 = vmul.f32 0.001953125, %v4438_v12  ;;  %v4637_v55 = vadd.f32 %v4636_v13, %v4635_v23 }
 0x340   :  { %v4638_v30 = vmul.f32 0.001953125, %v4637_v55  ;;  %v4639_v15 = vmul.f32 %v14774_v9, %v14774_v9  ;;  %v4644_v47 = vsub.f32 %v14097_v42, %v14774_v9  ;;  %v4645_v21 = vsub.f32 %v14122_v6, %v14774_v9 }
 0x341   :  { %v4647_v35 = vsub.f32 %v14130_v49, %v14774_v9  ;;  %v4648_v10 = vsub.f32 %v18724_v31, %v14774_v9  ;;  %v4649_v3 = vsub.f32 %v14160_v8, %v14774_v9  ;;  %v4651_v29 = vsub.f32 %v14175_v1, %v14774_v9  ;;  %v18730_v31 = vld [vmem:[#allocation41_spill] sm:$0xff] }
 0x342   :  { %v4640_v0 = vsub.f32 %v4638_v30, %v4639_v15  ;;  %v4652_v42 = vsub.f32 %v14182_v62, %v14774_v9  ;;  %v4653_v6 = vsub.f32 %v14206_v7, %v14774_v9  ;;  %v4655_v23 = vsub.f32 %v14217_v5, %v14774_v9 }
 0x343   :  { %v4656_v49 = vsub.f32 %v14230_v2, %v14774_v9  ;;  %v4657_v12 = vsub.f32 %v14253_v27, %v14774_v9  ;;  %v4658_v8 = vsub.f32 %v14274_v37, %v14774_v9  ;;  %v4659_v1 = vsub.f32 %v14263_v24, %v14774_v9  ;;  %v18725_v37 = vld [vmem:[#allocation39_spill] sm:$0xff]  ;;  %v18726_v24 = vld [vmem:[#allocation13_spill] sm:$0xff] }
 0x344   :  { %v4705_v41 = vadd.f32 1e-05, %v4640_v0  ;;  %v4660_v62 = vsub.f32 %v14272_v11, %v14774_v9  ;;  %v4661_v7 = vsub.f32 %v14292_v34, %v14774_v9  ;;  %v4662_v5 = vsub.f32 %v14320_v54, %v14774_v9  ;;  %v18727_v11 = vld [vmem:[#allocation40_spill] sm:$0xff] }
 0x345   :  { %v4663_v2 = vsub.f32 %v14309_v40, %v14774_v9  ;;  %v4664_v27 = vsub.f32 %v14318_v17, %v14774_v9  ;;  %v4665_v13 = vsub.f32 %v18725_v37, %v14774_v9  ;;  %v4666_v55 = vsub.f32 %v18726_v24, %v14774_v9  ;;  %v18728_v40 = vld [vmem:[#allocation83_spill] sm:$0xff]  ;;  %v18729_v17 = vld [vmem:[#allocation56_spill] sm:$0xff]  ;;  %v18731_v24 = vld [vmem:[#allocation42_spill] sm:$0xff] }
 0x346   :  { %10762 = vrsqrt.f32 %v4705_v41  ;;  %v4667_v30 = vsub.f32 %v18727_v11, %v14774_v9  ;;  %v4668_v34 = vsub.f32 %v14368_v52, %v14774_v9  ;;  %v4669_v54 = vsub.f32 %v14394_v38, %v14774_v9  ;;  %v18732_v52 = vld [vmem:[#allocation59_spill] sm:$0xff] }
 0x347   :  { %v4670_v15 = vsub.f32 %v18728_v40, %v14774_v9  ;;  %v4671_v0 = vsub.f32 %v18729_v17, %v14774_v9  ;;  %v4672_v41 = vsub.f32 %v14413_v32, %v14774_v9  ;;  %v4673_v37 = vsub.f32 %v18730_v31, %v14774_v9  ;;  %v18733_v31 = vld [vmem:[#allocation62_spill] sm:$0xff] }
 0x348   :  { %v4674_v11 = vsub.f32 %v18731_v24, %v14774_v9  ;;  %v4675_v46 = vsub.f32 %v18732_v52, %v14774_v9  ;;  %v4676_v38 = vsub.f32 %v14459_v16, %v14774_v9  ;;  %v4677_v40 = vsub.f32 %v14486_v19, %v14774_v9  ;;  %v18735_v52 = vld [vmem:[#allocation65_spill] sm:$0xff]  ;;  %v18736_v16 = vld [vmem:[#allocation48_spill] sm:$0xff]  ;;  %v18737_v19 = vld [vmem:[#allocation46_spill] sm:$0xff] }
 0x349   :  { %v4678_v20 = vsub.f32 %v18733_v31, %v14774_v9  ;;  %v4679_v32 = vsub.f32 %v18734_v56, %v14774_v9  ;;  %v4680_v33 = vsub.f32 %v14509_v60, %v14774_v9  ;;  %v4681_v31 = vsub.f32 %v14532_v25, %v14774_v9  ;;  %v18738_v56 = vld [vmem:[#allocation69_spill] sm:$0xff]  ;;  %v18739_v60 = vld [vmem:[#allocation72_spill] sm:$0xff] }
 0x34a   :  { %v4682_v17 = vsub.f32 %v18735_v52, %v14774_v9  ;;  %v4683_v18 = vsub.f32 %v18736_v16, %v14774_v9  ;;  %v4684_v57 = vsub.f32 %v18737_v19, %v14774_v9  ;;  %v4685_v50 = vsub.f32 %v18738_v56, %v14774_v9 }
 0x34b   :  { %v4686_v25 = vsub.f32 %v18739_v60, %v14774_v9  ;;  %v4687_v24 = vsub.f32 %v18740_v26, %v14774_v9  ;;  %v4688_v52 = vsub.f32 %v18741_v36, %v14774_v9  ;;  %v4691_v16 = vsub.f32 %v18742_v45, %v14774_v9 }
 0x34c   :  { %v18743_v19 = vsub.f32 %v14756_v53, %v14774_v9 }
 0x353   :  { %v14894_v58 = vpop.eup %10762 }
 0x354   :  { %v14908_v39 = vmul.f32 %v14894_v58, %v18743_v19  ;;  %v14911_v56 = vmul.f32 %v14894_v58, %v4644_v47  ;;  %v14914_v60 = vmul.f32 %v14894_v58, %v4645_v21  ;;  %v14917_v26 = vmul.f32 %v14894_v58, %v4647_v35 }
 0x355   :  { %v14920_v36 = vmul.f32 %v14894_v58, %v4648_v10  ;;  %v14923_v45 = vmul.f32 %v14894_v58, %v4649_v3  ;;  %v14926_v53 = vmul.f32 %v14894_v58, %v4651_v29  ;;  %v14929_v19 = vmul.f32 %v14894_v58, %v4652_v42 }
 0x356   :  { %v14932_v47 = vmul.f32 %v14894_v58, %v4653_v6  ;;  %v14935_v21 = vmul.f32 %v14894_v58, %v4655_v23  ;;  %v14938_v35 = vmul.f32 %v14894_v58, %v4656_v49  ;;  %v14941_v10 = vmul.f32 %v14894_v58, %v4657_v12 }
 0x357   :  { %v14944_v3 = vmul.f32 %v14894_v58, %v4658_v8  ;;  %v14947_v29 = vmul.f32 %v14894_v58, %v4659_v1  ;;  %v14950_v42 = vmul.f32 %v14894_v58, %v4660_v62  ;;  %v14953_v6 = vmul.f32 %v14894_v58, %v4661_v7 }
 0x358   :  { %v14956_v23 = vmul.f32 %v14894_v58, %v4662_v5  ;;  %v14959_v49 = vmul.f32 %v14894_v58, %v4663_v2  ;;  %v14962_v12 = vmul.f32 %v14894_v58, %v4664_v27  ;;  %v14965_v8 = vmul.f32 %v14894_v58, %v4665_v13 }
 0x359   :  { %18744 = vst [vmem:[#allocation78_spill] sm:$0xff] %v14947_v29  ;;  %18745 = vst [vmem:[#allocation79_spill] sm:$0xff] %v14953_v6  ;;  %v14968_v1 = vmul.f32 %v14894_v58, %v4666_v55  ;;  %v14971_v62 = vmul.f32 %v14894_v58, %v4667_v30  ;;  %v14974_v7 = vmul.f32 %v14894_v58, %v4668_v34  ;;  %v18783_v6 = vld [vmem:[#allocation38_spill] sm:$0xff] }
 0x35a   :  { %18746 = vst [vmem:[#allocation55_spill] sm:$0xff] %v14956_v23  ;;  %18747 = vst [vmem:[#allocation60_spill] sm:$0xff] %v14959_v49  ;;  %v14977_v5 = vmul.f32 %v14894_v58, %v4669_v54  ;;  %v14980_v2 = vmul.f32 %v14894_v58, %v4670_v15  ;;  %v14983_v27 = vmul.f32 %v14894_v58, %v4671_v0 }
 0x35b   :  { %18748 = vst [vmem:[#allocation68_spill] sm:$0xff] %v14962_v12  ;;  %18749 = vst [vmem:[#allocation61_spill] sm:$0xff] %v14965_v8  ;;  %v14986_v13 = vmul.f32 %v14894_v58, %v4672_v41  ;;  %v14989_v55 = vmul.f32 %v14894_v58, %v4673_v37  ;;  %v14992_v30 = vmul.f32 %v14894_v58, %v4674_v11 }
 0x35c   :  { %18750 = vst [vmem:[#allocation67_spill] sm:$0xff] %v14968_v1  ;;  %18751 = vst [vmem:[#allocation64_spill] sm:$0xff] %v14971_v62  ;;  %v14995_v34 = vmul.f32 %v14894_v58, %v4675_v46  ;;  %v14998_v54 = vmul.f32 %v14894_v58, %v4676_v38  ;;  %v15001_v15 = vmul.f32 %v14894_v58, %v4677_v40  ;;  %v18776_v62 = vld [vmem:[#allocation30_spill] sm:$0xff]  ;;  %v18780_v1 = vld [vmem:[#allocation44_spill] sm:$0xff] }
 0x35d   :  { %18752 = vst [vmem:[#allocation47_spill] sm:$0xff] %v14974_v7  ;;  %18753 = vst [vmem:[#allocation49_spill] sm:$0xff] %v14977_v5  ;;  %v15004_v0 = vmul.f32 %v14894_v58, %v4678_v20  ;;  %v15007_v41 = vmul.f32 %v14894_v58, %v4679_v32  ;;  %v15010_v37 = vmul.f32 %v14894_v58, %v4680_v33 }
 0x35e   :  { %18754 = vst [vmem:[#allocation77_spill] sm:$0xff] %v14980_v2  ;;  %18755 = vst [vmem:[#allocation51_spill] sm:$0xff] %v14983_v27  ;;  %v15013_v11 = vmul.f32 %v14894_v58, %v4681_v31  ;;  %v15016_v46 = vmul.f32 %v14894_v58, %v4682_v17  ;;  %v15019_v38 = vmul.f32 %v14894_v58, %v4683_v18 }
 0x35f   :  { %18756 = vst [vmem:[#allocation76_spill] sm:$0xff] %v14986_v13  ;;  %v15022_v40 = vmul.f32 %v14894_v58, %v4684_v57  ;;  %v15025_v20 = vmul.f32 %v14894_v58, %v4685_v50  ;;  %v15028_v32 = vmul.f32 %v14894_v58, %v4686_v25  ;;  %v15031_v33 = vmul.f32 %v14894_v58, %v4687_v24 }
 0x360   :  { %v15034_v31 = vmul.f32 %v14894_v58, %v4688_v52  ;;  %v18757_v17 = vsub.f32 %v14624_v14, %v14774_v9  ;;  %v18758_v57 = vsub.f32 %v14638_v59, %v14774_v9  ;;  %v15049_v25 = vmul.f32 %v14894_v58, %v4691_v16 }
 0x361   :  { %v18759_v24 = vsub.f32 %v14645_v44, %v14774_v9  ;;  %v18760_v14 = vsub.f32 %v14664_v63, %v14774_v9  ;;  %v18761_v59 = vsub.f32 %v14681_v22, %v14774_v9  ;;  %v18762_v16 = vsub.f32 %v14672_v43, %v14774_v9 }
 0x362   :  { %v15040_v18 = vmul.f32 %v14894_v58, %v18757_v17  ;;  %v15046_v50 = vmul.f32 %v14894_v58, %v18758_v57  ;;  %v18777_v7 = vsub.f32 %v18776_v62, %v14774_v9  ;;  %v4654_v23 = vsub.f32 %v18783_v6, %v14774_v9 }
 0x363   :  { %v15055_v52 = vmul.f32 %v14894_v58, %v18759_v24  ;;  %v15061_v17 = vmul.f32 %v14894_v58, %v18760_v14  ;;  %v15067_v57 = vmul.f32 %v14894_v58, %v18761_v59  ;;  %v15073_v44 = vmul.f32 %v14894_v58, %v18762_v16 }
 0x364   :  { %v18763_v24 = vsub.f32 %v14679_v48, %v14774_v9  ;;  %v18764_v14 = vsub.f32 %v14702_v51, %v14774_v9  ;;  %v18765_v59 = vsub.f32 %v14721_v4, %v14774_v9  ;;  %v18766_v16 = vsub.f32 %v14709_v61, %v14774_v9  ;;  %v18770_v61 = vld [vmem:[#allocation57_spill] sm:$0xff] }
 0x365   :  { %v4707_v8 = vmul.f32 %v14894_v58, %v18777_v7  ;;  %v18782_v7 = vld [vmem:[#allocation11_spill] sm:$0xff] }
 0x366   :  { %v15079_v63 = vmul.f32 %v14894_v58, %v18763_v24  ;;  %v15085_v22 = vmul.f32 %v14894_v58, %v18764_v14  ;;  %v15091_v43 = vmul.f32 %v14894_v58, %v18765_v59  ;;  %v15097_v48 = vmul.f32 %v14894_v58, %v18766_v16  ;;  %v18768_v14 = vld [vmem:[#allocation75_spill] sm:$0xff]  ;;  %v15114_v59 = vld [vmem:[%s18045_s2] ss:$0 sm:$0xff] }
 0x367   :  { %v18767_v24 = vsub.f32 %v14719_v28, %v14774_v9  ;;  %v18769_v27 = vsub.f32 %v18768_v14, %v14774_v9  ;;  %v18771_v16 = vsub.f32 %v18770_v61, %v14774_v9  ;;  %v18772_v28 = vld [vmem:[#allocation53_spill] sm:$0xff]  ;;  %v18774_v14 = vld [vmem:[#allocation34_spill] sm:$0xff]  ;;  %v4777_v62 = vmul.f32 %v15114_v59, %v4707_v8 }
 0x368   :  { %v15139_v61 = vld [vmem:[%s18046_s3] ss:$0 sm:$0xff]  ;;  %v4650_v12 = vsub.f32 %v18782_v7, %v14774_v9  ;;  %s11299_s3 = smov 112   ;;  %v4781_v6 = vmul.f32 %v15114_v59, %v14914_v60  ;;  %v4783_v60 = vmul.f32 %v15114_v59, %v14917_v26  ;;  %v4792_v26 = vmul.f32 %v15114_v59, %v14938_v35 }
 0x369   :  { %v15103_v51 = vmul.f32 %v14894_v58, %v18767_v24  ;;  %v15109_v4 = vmul.f32 %v14894_v58, %v18769_v27  ;;  %v15120_v13 = vmul.f32 %v14894_v58, %v18771_v16  ;;  %v18773_v24 = vsub.f32 %v18772_v28, %v14774_v9  ;;  %v18778_v16 = vld [vmem:[#allocation35_spill] sm:$0xff] }
 0x36a   :  { %v18775_v27 = vsub.f32 %v18774_v14, %v14774_v9  ;;  %v18779_v28 = vsub.f32 %v18778_v16, %v14774_v9  ;;  %v18781_v14 = vsub.f32 %v18780_v1, %v14774_v9  ;;  %v15159_v16 = vadd.f32 %v15139_v61, %v4777_v62 }
 0x36b   :  { %v15126_v5 = vmul.f32 %v14894_v58, %v18773_v24  ;;  %v4780_v1 = vmul.f32 %v15114_v59, %v14911_v56  ;;  %v4720_v9 = vmul.f32 %v14894_v58, %v4654_v23  ;;  %v15184_v8 = vadd.f32 %v15139_v61, %v4781_v6 }
 0x36c   :  { %v4709_v2 = vmul.f32 %v14894_v58, %v18775_v27  ;;  %v4708_v24 = vmul.f32 %v14894_v58, %v18779_v28  ;;  %v4712_v27 = vmul.f32 %v14894_v58, %v18781_v14  ;;  %4975 = vrot.lane.b32.xlu0 %v15159_v16, %s11299_s3  ;;  %v4788_v14 = vmul.f32 %v15114_v59, %v14929_v19 }
 0x36d   :  { %v4791_v19 = vmul.f32 %v15114_v59, %v14935_v21  ;;  %v15215_v7 = vadd.f32 %v15139_v61, %v4783_v60  ;;  %v15253_v60 = vmul.f32 %v15114_v59, %v14941_v10  ;;  %v4816_v10 = vmul.f32 %v15114_v59, %v15010_v37 }
 0x36e   :  { %v4779_v49 = vmul.f32 %v15114_v59, %v4709_v2  ;;  %v4778_v28 = vmul.f32 %v15114_v59, %v4708_v24  ;;  %v4716_v2 = vmul.f32 %v14894_v58, %v4650_v12  ;;  %v4782_v12 = vmul.f32 %v15114_v59, %v4712_v27 }
 0x36f   :  { %v4784_v58 = vmul.f32 %v15114_v59, %v14920_v36  ;;  %v4785_v24 = vmul.f32 %v15114_v59, %v14923_v45  ;;  %v4787_v27 = vmul.f32 %v15114_v59, %v14926_v53  ;;  %v4789_v36 = vmul.f32 %v15114_v59, %v14932_v47 }
 0x370   :  { %v15156_v29 = vadd.f32 %v15139_v61, %v4779_v49  ;;  %v15173_v49 = vadd.f32 %v15139_v61, %v4780_v1  ;;  %v15176_v56 = vadd.f32 %v15139_v61, %v4778_v28  ;;  %v15191_v23 = vadd.f32 %v15139_v61, %v4782_v12 }
 0x371   :  { %v4786_v62 = vmul.f32 %v15114_v59, %v4716_v2  ;;  %v4790_v45 = vmul.f32 %v15114_v59, %v4720_v9  ;;  %v15212_v53 = vadd.f32 %v15139_v61, %v4784_v58  ;;  %v15218_v47 = vadd.f32 %v15139_v61, %v4785_v24 }
 0x372   :  { %4979 = vrot.lane.b32.xlu1 %v15156_v29, %s11299_s3  ;;  %4977 = vrot.lane.b32.xlu0 %v15176_v56, %s11299_s3  ;;  %v15221_v35 = vadd.f32 %v15139_v61, %v4788_v14  ;;  %v15224_v1 = vadd.f32 %v15139_v61, %v4787_v27  ;;  %v15230_v21 = vadd.f32 %v15139_v61, %v4789_v36 }
 0x373   :  { %v15227_v28 = vadd.f32 %v15139_v61, %v4786_v62  ;;  %v15233_v2 = vadd.f32 %v15139_v61, %v4792_v26  ;;  %v4810_v9 = vmul.f32 %v15114_v59, %v14992_v30  ;;  %v15242_v6 = vadd.f32 %v15139_v61, %v4790_v45 }
 0x374   :  { %v15245_v12 = vadd.f32 %v15139_v61, %v4791_v19  ;;  %v15249_v58 = vmul.f32 %v15114_v59, %v14944_v3  ;;  %v4809_v24 = vmul.f32 %v15114_v59, %v14989_v55  ;;  %v4812_v14 = vmul.f32 %v15114_v59, %v14998_v54 }
 0x375   :  { %v15256_v30 = vadd.f32 %v15139_v61, %v4810_v9  ;;  %v4811_v27 = vmul.f32 %v15114_v59, %v14995_v34  ;;  %v4814_v3 = vmul.f32 %v15114_v59, %v15004_v0  ;;  %v4813_v62 = vmul.f32 %v15114_v59, %v15001_v15 }
 0x376   :  { %4981 = vrot.lane.b32.xlu1 %v15173_v49, %s11299_s3  ;;  %4983 = vrot.lane.b32.xlu0 %v15184_v8, %s11299_s3  ;;  %v15271_v36 = vadd.f32 %v15139_v61, %v4809_v24  ;;  %v15274_v55 = vadd.f32 %v15139_v61, %v4812_v14  ;;  %v4815_v54 = vmul.f32 %v15114_v59, %v15007_v41 }
 0x377   :  { %v4818_v34 = vmul.f32 %v15114_v59, %v15016_v46  ;;  %v15285_v15 = vadd.f32 %v15139_v61, %v4811_v27  ;;  %v15288_v0 = vadd.f32 %v15139_v61, %v4814_v3  ;;  %v15291_v37 = vadd.f32 %v15139_v61, %v4813_v62 }
 0x378   :  { %v15294_v41 = vadd.f32 %v15139_v61, %v4816_v10  ;;  %v15297_v46 = vadd.f32 %v15139_v61, %v4815_v54  ;;  %v4817_v45 = vmul.f32 %v15114_v59, %v15013_v11  ;;  %v4820_v19 = vmul.f32 %v15114_v59, %v15022_v40 }
 0x379   :  { %v15300_v26 = vadd.f32 %v15139_v61, %v4818_v34  ;;  %v4819_v9 = vmul.f32 %v15114_v59, %v15019_v38  ;;  %v4822_v24 = vmul.f32 %v15114_v59, %v15028_v32  ;;  %v4821_v14 = vmul.f32 %v15114_v59, %v15025_v20 }
 0x37a   :  { %4985 = vrot.lane.b32.xlu1 %v15191_v23, %s11299_s3  ;;  %4987 = vrot.lane.b32.xlu0 %v15215_v7, %s11299_s3  ;;  %v15313_v27 = vadd.f32 %v15139_v61, %v4817_v45  ;;  %v4824_v3 = vmul.f32 %v15114_v59, %v15034_v31  ;;  %v4823_v11 = vmul.f32 %v15114_v59, %v15031_v33 }
 0x37b   :  { %v4826_v40 = vmul.f32 %v15114_v59, %v15046_v50  ;;  %v15326_v38 = vadd.f32 %v15139_v61, %v4820_v19  ;;  %v15329_v20 = vadd.f32 %v15139_v61, %v4819_v9  ;;  %v15332_v32 = vadd.f32 %v15139_v61, %v4822_v24 }
 0x37c   :  { %v15335_v33 = vadd.f32 %v15139_v61, %v4821_v14  ;;  %v15338_v31 = vadd.f32 %v15139_v61, %v4824_v3  ;;  %v15341_v50 = vadd.f32 %v15139_v61, %v4823_v11  ;;  %v4825_v10 = vmul.f32 %v15114_v59, %v15040_v18 }
 0x37d   :  { %v15344_v62 = vadd.f32 %v15139_v61, %v4826_v40  ;;  %v4828_v54 = vmul.f32 %v15114_v59, %v15055_v52  ;;  %v4827_v34 = vmul.f32 %v15114_v59, %v15049_v25  ;;  %v4830_v45 = vmul.f32 %v15114_v59, %v15067_v57 }
 0x37e   :  { %4989 = vrot.lane.b32.xlu1 %v15212_v53, %s11299_s3  ;;  %4991 = vrot.lane.b32.xlu0 %v15218_v47, %s11299_s3  ;;  %v4829_v19 = vmul.f32 %v15114_v59, %v15061_v17  ;;  %v4832_v9 = vmul.f32 %v15114_v59, %v15079_v63  ;;  %v4831_v24 = vmul.f32 %v15114_v59, %v15073_v44 }
 0x37f   :  { %v4834_v18 = vmul.f32 %v15114_v59, %v15091_v43  ;;  %v15367_v25 = vadd.f32 %v15139_v61, %v4825_v10  ;;  %v15370_v52 = vadd.f32 %v15139_v61, %v4828_v54  ;;  %v15373_v17 = vadd.f32 %v15139_v61, %v4827_v34 }
 0x380   :  { %v15376_v57 = vadd.f32 %v15139_v61, %v4830_v45  ;;  %v15379_v44 = vadd.f32 %v15139_v61, %v4829_v19  ;;  %v15382_v63 = vadd.f32 %v15139_v61, %v4832_v9  ;;  %v15385_v43 = vadd.f32 %v15139_v61, %v4831_v24 }
 0x381   :  { %v15388_v14 = vadd.f32 %v15139_v61, %v4834_v18  ;;  %v4833_v3 = vmul.f32 %v15114_v59, %v15085_v22  ;;  %v4836_v11 = vmul.f32 %v15114_v59, %v15103_v51  ;;  %v4835_v40 = vmul.f32 %v15114_v59, %v15097_v48  ;;  %v18789_v18 = vld [vmem:[#allocation78_spill] sm:$0xff] }
 0x382   :  { %4993 = vrot.lane.b32.xlu1 %v15227_v28, %s11299_s3  ;;  %4995 = vrot.lane.b32.xlu0 %v15224_v1, %s11299_s3  ;;  %18784 = vst [vmem:[#allocation87_spill] sm:$0xff] %v15382_v63  ;;  %v4838_v10 = vmul.f32 %v15114_v59, %v14908_v39  ;;  %v4837_v54 = vmul.f32 %v15114_v59, %v15109_v4 }
 0x383   :  { %18785 = vst [vmem:[#allocation81_spill] sm:$0xff] %v15388_v14  ;;  %v4840_v34 = vmul.f32 %v15114_v59, %v15126_v5  ;;  %v4839_v45 = vmul.f32 %v15114_v59, %v15120_v13  ;;  %v15409_v22 = vadd.f32 %v15139_v61, %v4833_v3  ;;  %v15412_v39 = vadd.f32 %v15139_v61, %v4836_v11 }
 0x384   :  { %v15415_v48 = vadd.f32 %v15139_v61, %v4835_v40  ;;  %v15418_v5 = vadd.f32 %v15139_v61, %v4838_v10  ;;  %v15421_v13 = vadd.f32 %v15139_v61, %v4837_v54  ;;  %v15431_v19 = vadd.f32 %v15139_v61, %v15249_v58  ;;  %v18792_v10 = vld [vmem:[#allocation79_spill] sm:$0xff] }
 0x385   :  { %18786 = vst [vmem:[#allocation85_spill] sm:$0xff] %v15409_v22  ;;  %v15424_v51 = vadd.f32 %v15139_v61, %v4840_v34  ;;  %v15427_v4 = vadd.f32 %v15139_v61, %v4839_v45  ;;  %v15435_v9 = vadd.f32 %v15139_v61, %v15253_v60  ;;  %v4796_v24 = vmul.f32 %v15114_v59, %v14950_v42  ;;  %v18791_v60 = vld [vmem:[#allocation55_spill] sm:$0xff]  ;;  %v18795_v45 = vld [vmem:[#allocation68_spill] sm:$0xff] }
 0x386   :  { %4997 = vrot.lane.b32.xlu1 %v15221_v35, %s11299_s3  ;;  %4999 = vrot.lane.b32.xlu0 %v15230_v21, %s11299_s3  ;;  %v4795_v3 = vmul.f32 %v15114_v59, %v18789_v18  ;;  %v4798_v40 = vmul.f32 %v15114_v59, %v18791_v60  ;;  %v4797_v42 = vmul.f32 %v15114_v59, %v18792_v10  ;;  %v18796_v18 = vld [vmem:[#allocation60_spill] sm:$0xff]  ;;  %v18799_v10 = vld [vmem:[#allocation67_spill] sm:$0xff] }
 0x387   :  { %18787 = vst [vmem:[#allocation54_spill] sm:$0xff] %v15424_v51  ;;  %18788 = vst [vmem:[#allocation84_spill] sm:$0xff] %v15427_v4  ;;  %v15446_v11 = vadd.f32 %v15139_v61, %v4796_v24  ;;  %v4800_v24 = vmul.f32 %v15114_v59, %v18795_v45 }
 0x388   :  { %v15449_v58 = vadd.f32 %v15139_v61, %v4795_v3  ;;  %v15460_v54 = vadd.f32 %v15139_v61, %v4798_v40  ;;  %v15463_v34 = vadd.f32 %v15139_v61, %v4797_v42  ;;  %v4799_v3 = vmul.f32 %v15114_v59, %v18796_v18 }
 0x389   :  { %18790 = vst [vmem:[#allocation23_spill] sm:$0xff] %v15446_v11  ;;  %v15474_v60 = vadd.f32 %v15139_v61, %v4800_v24  ;;  %v4802_v42 = vmul.f32 %v15114_v59, %v18799_v10 }
 0x38a   :  { %5001 = vrot.lane.b32.xlu1 %v15242_v6, %s11299_s3  ;;  %5003 = vrot.lane.b32.xlu0 %v15245_v12, %s11299_s3  ;;  %18793 = vst [vmem:[#allocation86_spill] sm:$0xff] %v15460_v54  ;;  %18794 = vst [vmem:[#allocation5_spill] sm:$0xff] %v15463_v34  ;;  %v15477_v40 = vadd.f32 %v15139_v61, %v4799_v3  ;;  %v18803_v3 = vld [vmem:[#allocation47_spill] sm:$0xff] }
 0x38b   :  { %18797 = vst [vmem:[#allocation58_spill] sm:$0xff] %v15474_v60  ;;  %v15488_v18 = vadd.f32 %v15139_v61, %v4802_v42 }
 0x38c   :  { %18798 = vst [vmem:[#allocation82_spill] sm:$0xff] %v15477_v40 }
 0x38d   :  { %18801 = vst [vmem:[#allocation88_spill] sm:$0xff] %v15488_v18 }
 0x38e   :  { %5005 = vrot.lane.b32.xlu1 %v15233_v2, %s11299_s3  ;;  %5007 = vrot.lane.b32.xlu0 %v15435_v9, %s11299_s3 }
 0x392   :  { %5009 = vrot.lane.b32.xlu1 %v15431_v19, %s11299_s3  ;;  %5011 = vrot.lane.b32.xlu0 %v15449_v58, %s11299_s3 }
 0x396   :  { %5013 = vrot.lane.b32.xlu1 %v15446_v11, %s11299_s3  ;;  %5015 = vrot.lane.b32.xlu0 %v15463_v34, %s11299_s3  ;;  %v18800_v11 = vld [vmem:[#allocation61_spill] sm:$0xff]  ;;  %v18804_v34 = vld [vmem:[#allocation64_spill] sm:$0xff] }
 0x397   :  { %v4801_v45 = vmul.f32 %v15114_v59, %v18800_v11  ;;  %v4803_v10 = vmul.f32 %v15114_v59, %v18804_v34 }
 0x399   :  { %v15491_v24 = vadd.f32 %v15139_v61, %v4801_v45  ;;  %v15505_v42 = vadd.f32 %v15139_v61, %v4803_v10  ;;  %v18805_v45 = vld [vmem:[#allocation77_spill] sm:$0xff]  ;;  %v18807_v10 = vld [vmem:[#allocation76_spill] sm:$0xff] }
 0x39a   :  { %5017 = vrot.lane.b32.xlu1 %v15460_v54, %s11299_s3  ;;  %5019 = vrot.lane.b32.xlu0 %v15477_v40, %s11299_s3  ;;  %v4804_v54 = vmul.f32 %v15114_v59, %v18803_v3  ;;  %v18806_v40 = vld [vmem:[#allocation49_spill] sm:$0xff] }
 0x39b   :  { %18802 = vst [vmem:[#allocation18_spill] sm:$0xff] %v15491_v24  ;;  %v4805_v3 = vmul.f32 %v15114_v59, %v18806_v40 }
 0x39c   :  { %v15502_v11 = vadd.f32 %v15139_v61, %v4804_v54 }
 0x39d   :  { %v15519_v54 = vadd.f32 %v15139_v61, %v4805_v3 }
 0x39e   :  { %5021 = vrot.lane.b32.xlu1 %v15474_v60, %s11299_s3  ;;  %5023 = vrot.lane.b32.xlu0 %v15491_v24, %s11299_s3  ;;  %v4806_v60 = vmul.f32 %v15114_v59, %v18805_v45  ;;  %v18808_v24 = vld [vmem:[#allocation51_spill] sm:$0xff] }
 0x39f   :  { %v4807_v45 = vmul.f32 %v15114_v59, %v18808_v24 }
 0x3a0   :  { %v15516_v34 = vadd.f32 %v15139_v61, %v4806_v60 }
 0x3a1   :  { %v15533_v60 = vadd.f32 %v15139_v61, %v4807_v45 }
 0x3a2   :  { %5025 = vrot.lane.b32.xlu1 %v15488_v18, %s11299_s3  ;;  %5027 = vrot.lane.b32.xlu0 %v15505_v42, %s11299_s3  ;;  %v4808_v18 = vmul.f32 %v15114_v59, %v18807_v10  ;;  %v10754_v59 = vld [vmem:[%s18049_s6 + $0x38] sm:$0xff]  }
 0x3a3   :  { %10537 = vmatprep.subr.bf16.mxu0 %v10754_v59 }
 0x3a4   :  { %v15530_v40 = vadd.f32 %v15139_v61, %v4808_v18  ;;  %10538 = vmatpush3.bf16.msra.mxu0 %v10754_v59 }
 0x3a6   :  { %5029 = vrot.lane.b32.xlu1 %v15502_v11, %s11299_s3  ;;  %5031 = vrot.lane.b32.xlu0 %v15519_v54, %s11299_s3 }
 0x3aa   :  { %5033 = vrot.lane.b32.xlu1 %v15516_v34, %s11299_s3  ;;  %5035 = vrot.lane.b32.xlu0 %v15533_v60, %s11299_s3 }
 0x3ae   :  { %5037 = vrot.lane.b32.xlu1 %v15530_v40, %s11299_s3  ;;  %5039 = vrot.lane.b32.xlu0 %v15271_v36, %s11299_s3 }
 0x3b2   :  { %5041 = vrot.lane.b32.xlu1 %v15256_v30, %s11299_s3  ;;  %5043 = vrot.lane.b32.xlu0 %v15285_v15, %s11299_s3 }
 0x3b6   :  { %5045 = vrot.lane.b32.xlu1 %v15274_v55, %s11299_s3  ;;  %5047 = vrot.lane.b32.xlu0 %v15291_v37, %s11299_s3 }
 0x3ba   :  { %5049 = vrot.lane.b32.xlu1 %v15288_v0, %s11299_s3  ;;  %5051 = vrot.lane.b32.xlu0 %v15297_v46, %s11299_s3 }
 0x3be   :  { %5053 = vrot.lane.b32.xlu1 %v15294_v41, %s11299_s3  ;;  %5055 = vrot.lane.b32.xlu0 %v15313_v27, %s11299_s3 }
 0x3c2   :  { %5057 = vrot.lane.b32.xlu1 %v15300_v26, %s11299_s3  ;;  %5059 = vrot.lane.b32.xlu0 %v15329_v20, %s11299_s3 }
 0x3c6   :  { %5061 = vrot.lane.b32.xlu1 %v15326_v38, %s11299_s3  ;;  %5063 = vrot.lane.b32.xlu0 %v15335_v33, %s11299_s3 }
 0x3ca   :  { %5065 = vrot.lane.b32.xlu1 %v15332_v32, %s11299_s3  ;;  %5067 = vrot.lane.b32.xlu0 %v15341_v50, %s11299_s3 }
 0x3ce   :  { %5069 = vrot.lane.b32.xlu1 %v15338_v31, %s11299_s3  ;;  %5071 = vrot.lane.b32.xlu0 %v15367_v25, %s11299_s3 }
 0x3d2   :  { %5073 = vrot.lane.b32.xlu1 %v15344_v62, %s11299_s3  ;;  %5075 = vrot.lane.b32.xlu0 %v15373_v17, %s11299_s3 }
 0x3d6   :  { %5077 = vrot.lane.b32.xlu1 %v15370_v52, %s11299_s3  ;;  %5079 = vrot.lane.b32.xlu0 %v15379_v44, %s11299_s3 }
 0x3da   :  { %5081 = vrot.lane.b32.xlu1 %v15376_v57, %s11299_s3  ;;  %5083 = vrot.lane.b32.xlu0 %v15385_v43, %s11299_s3 }
 0x3de   :  { %5085 = vrot.lane.b32.xlu1 %v15382_v63, %s11299_s3  ;;  %5087 = vrot.lane.b32.xlu0 %v15409_v22, %s11299_s3  ;;  %v4976_v18 = vpop.permute.xlu0 %4975 }
 0x3df   :  { %v5167_v24 = vadd.f32 %v4976_v18, %v15159_v16 }
 0x3e1   :  { %v5295_v10 = vmul.f32 0.01, %v5167_v24  ;;  %vm5231_vm7 = vcmp.ge.f32.partialorder %v5167_v24, 0.0 }
 0x3e2   :  { %5089 = vrot.lane.b32.xlu1 %v15388_v14, %s11299_s3  ;;  %5091 = vrot.lane.b32.xlu0 %v15415_v48, %s11299_s3 }
 0x3e3   :  { %v5359_v63 = vsel %vm5231_vm7, %v5167_v24, %v5295_v10  ;;  %v10756_v24 = vld [vmem:[%s18049_s6 + $0x28] sm:$0xff]  }
 0x3e4   :  { %v4980_v61 = vpop.permute.xlu1 %4979  ;;  %v4978_v14 = vpop.permute.xlu0 %4977  ;;  %10441 = vmatprep.mubr.msk.f32.mxu1 %vm5432_vm8, %v5359_v63 }
 0x3e5   :  { %v5169_v3 = vadd.f32 %v4980_v61, %v15156_v29  ;;  %v5168_v22 = vadd.f32 %v4978_v14, %v15176_v56  ;;  %v10755_v56 = vld [vmem:[%s18049_s6 + $0x30] sm:$0xff]  }
 0x3e6   :  { %5093 = vrot.lane.b32.xlu1 %v15412_v39, %s11299_s3  ;;  %5095 = vrot.lane.b32.xlu0 %v15421_v13, %s11299_s3 }
 0x3e7   :  { %v5297_v16 = vmul.f32 0.01, %v5169_v3  ;;  %vm5232_vm9 = vcmp.ge.f32.partialorder %v5168_v22, 0.0  ;;  %v5296_v18 = vmul.f32 0.01, %v5168_v22  ;;  %vm5233_vm10 = vcmp.ge.f32.partialorder %v5169_v3, 0.0  ;;  %10539 = vmatprep.subr.bf16.mxu0 %v10755_v56 }
 0x3e8   :  { %v4982_v45 = vpop.permute.xlu1 %4981  ;;  %v4984_v61 = vpop.permute.xlu0 %4983  ;;  %10540 = vmatpush3.bf16.msra.mxu0 %v10755_v56 }
 0x3e9   :  { %v5170_v59 = vadd.f32 %v4982_v45, %v15173_v49  ;;  %v5360_v14 = vsel %vm5232_vm9, %v5168_v22, %v5296_v18  ;;  %v5171_v49 = vadd.f32 %v4984_v61, %v15184_v8  ;;  %v5361_v22 = vsel %vm5233_vm10, %v5169_v3, %v5297_v16  ;;  %10541 = vmatprep.subr.bf16.mxu0 %v10756_v24  ;;  %v10757_v61 = vld [vmem:[%s18049_s6 + $0x20] sm:$0xff]  }
 0x3ea   :  { %5097 = vrot.lane.b32.xlu1 %v15418_v5, %s11299_s3  ;;  %5099 = vrot.lane.b32.xlu0 %v15427_v4, %s11299_s3 }
 0x3eb   :  { %v5298_v10 = vmul.f32 0.01, %v5170_v59  ;;  %vm5234_vm11 = vcmp.ge.f32.partialorder %v5170_v59, 0.0  ;;  %v5299_v63 = vmul.f32 0.01, %v5171_v49  ;;  %10442 = vmatmul.mubr.msk.f32.vlgmr.msra.gmra.mxu1 %vm5432_vm8, %v5360_v14  ;;  %vm5235_vm12 = vcmp.ge.f32.partialorder %v5171_v49, 0.0 }
 0x3ec   :  { %v4986_v29 = vpop.permute.xlu1 %4985  ;;  %10444 = vmatprep.mubr.msk.f32.mxu1 %vm5432_vm8, %v5361_v22  ;;  %v4988_v18 = vpop.permute.xlu0 %4987  ;;  %10542 = vmatpush3.bf16.msra.mxu0 %v10756_v24 }
 0x3ed   :  { %v5172_v45 = vadd.f32 %v4986_v29, %v15191_v23  ;;  %v5173_v23 = vadd.f32 %v4988_v18, %v15215_v7  ;;  %v5363_v29 = vsel %vm5235_vm12, %v5171_v49, %v5299_v63  ;;  %v5362_v3 = vsel %vm5234_vm11, %v5170_v59, %v5298_v10  ;;  %10543 = vmatprep.subr.bf16.mxu0 %v10757_v61 }
 0x3ee   :  { %5101 = vrot.lane.b32.xlu1 %v15424_v51, %s11299_s3 }
 0x3ef   :  { %v5300_v51 = vmul.f32 0.01, %v5172_v45  ;;  %vm5236_vm13 = vcmp.ge.f32.partialorder %v5172_v45, 0.0  ;;  %v5301_v16 = vmul.f32 0.01, %v5173_v23  ;;  %10445 = vmatmul.mubr.msk.f32.gmra.mxu1 %vm5432_vm8, %v5362_v3  ;;  %vm5237_vm14 = vcmp.ge.f32.partialorder %v5173_v23, 0.0 }
 0x3f0   :  { %v4990_v8 = vpop.permute.xlu1 %4989  ;;  %10447 = vmatprep.mubr.msk.f32.mxu1 %vm5432_vm8, %v5363_v29  ;;  %v4992_v7 = vpop.permute.xlu0 %4991  ;;  %10544 = vmatpush3.bf16.msra.mxu0 %v10757_v61 }
 0x3f1   :  { %v5174_v4 = vadd.f32 %v4990_v8, %v15212_v53  ;;  %v5175_v14 = vadd.f32 %v4992_v7, %v15218_v47  ;;  %v5365_v49 = vsel %vm5237_vm14, %v5173_v23, %v5301_v16  ;;  %v10758_v53 = vld [vmem:[%s18049_s6 + $0x18] sm:$0xff]   ;;  %v5364_v10 = vsel %vm5236_vm13, %v5172_v45, %v5300_v51  ;;  %v10759_v23 = vld [vmem:[%s18049_s6 + $0x10] sm:$0xff]  }
 0x3f2   :  { %10545 = vmatprep.subr.bf16.mxu0 %v10758_v53 }
 0x3f3   :  { %v5302_v63 = vmul.f32 0.01, %v5174_v4  ;;  %vm5238_vm15 = vcmp.ge.f32.partialorder %v5174_v4, 0.0  ;;  %v5303_v22 = vmul.f32 0.01, %v5175_v14  ;;  %10448 = vmatmul.mubr.msk.f32.gmra.mxu1 %vm5432_vm8, %v5364_v10  ;;  %vm5239_vm0 = vcmp.ge.f32.partialorder %v5175_v14, 0.0 }
 0x3f4   :  { %v4994_v56 = vpop.permute.xlu1 %4993  ;;  %10450 = vmatprep.mubr.msk.f32.mxu1 %vm5432_vm8, %v5365_v49  ;;  %v4996_v8 = vpop.permute.xlu0 %4995  ;;  %10546 = vmatpush3.bf16.msra.mxu0 %v10758_v53 }
 0x3f5   :  { %v5176_v59 = vadd.f32 %v4994_v56, %v15227_v28  ;;  %v5177_v47 = vadd.f32 %v4996_v8, %v15224_v1  ;;  %v5367_v18 = vsel %vm5239_vm0, %v5175_v14, %v5303_v22  ;;  %v5366_v45 = vsel %vm5238_vm15, %v5174_v4, %v5302_v63  ;;  %10547 = vmatprep.subr.bf16.mxu0 %v10759_v23 }
 0x3f7   :  { %v5304_v28 = vmul.f32 0.01, %v5176_v59  ;;  %vm5240_vm1 = vcmp.ge.f32.partialorder %v5176_v59, 0.0  ;;  %v5305_v29 = vmul.f32 0.01, %v5177_v47  ;;  %10451 = vmatmul.mubr.msk.f32.gmra.mxu1 %vm5432_vm8, %v5366_v45  ;;  %vm5241_vm2 = vcmp.ge.f32.partialorder %v5177_v47, 0.0 }
 0x3f8   :  { %v4998_v24 = vpop.permute.xlu1 %4997  ;;  %10453 = vmatprep.mubr.msk.f32.mxu1 %vm5432_vm8, %v5367_v18  ;;  %v5000_v3 = vpop.permute.xlu0 %4999  ;;  %10548 = vmatpush3.bf16.msra.mxu0 %v10759_v23 }
 0x3f9   :  { %v5178_v51 = vadd.f32 %v4998_v24, %v15221_v35  ;;  %v5179_v1 = vadd.f32 %v5000_v3, %v15230_v21  ;;  %v5369_v16 = vsel %vm5241_vm2, %v5177_v47, %v5305_v29  ;;  %v5368_v14 = vsel %vm5240_vm1, %v5176_v59, %v5304_v28  ;;  %v18809_v3 = vld [vmem:[#allocation23_spill] sm:$0xff] }
 0x3fb   :  { %v5306_v56 = vmul.f32 0.01, %v5178_v51  ;;  %vm5242_vm3 = vcmp.ge.f32.partialorder %v5178_v51, 0.0  ;;  %v5307_v35 = vmul.f32 0.01, %v5179_v1  ;;  %10454 = vmatmul.mubr.msk.f32.gmra.mxu1 %vm5432_vm8, %v5368_v14  ;;  %vm5243_vm4 = vcmp.ge.f32.partialorder %v5179_v1, 0.0 }
 0x3fc   :  { %v5002_v61 = vpop.permute.xlu1 %5001  ;;  %10456 = vmatprep.mubr.msk.f32.mxu1 %vm5432_vm8, %v5369_v16  ;;  %v5004_v49 = vpop.permute.xlu0 %5003 }
 0x3fd   :  { %v5180_v7 = vadd.f32 %v5002_v61, %v15242_v6  ;;  %v5181_v53 = vadd.f32 %v5004_v49, %v15245_v12  ;;  %v5371_v63 = vsel %vm5243_vm4, %v5179_v1, %v5307_v35  ;;  %v5370_v22 = vsel %vm5242_vm3, %v5178_v51, %v5306_v56  ;;  %v18811_v49 = vld [vmem:[#allocation86_spill] sm:$0xff] }
 0x3ff   :  { %v5308_v21 = vmul.f32 0.01, %v5180_v7  ;;  %vm5244_vm5 = vcmp.ge.f32.partialorder %v5180_v7, 0.0  ;;  %v5309_v6 = vmul.f32 0.01, %v5181_v53  ;;  %10457 = vmatmul.mubr.msk.f32.gmra.mxu1 %vm5432_vm8, %v5370_v22  ;;  %vm5245_vm6 = vcmp.ge.f32.partialorder %v5181_v53, 0.0 }
 0x400   :  { %v5006_v4 = vpop.permute.xlu1 %5005  ;;  %10459 = vmatprep.mubr.msk.f32.mxu1 %vm5432_vm8, %v5371_v63  ;;  %v5008_v24 = vpop.permute.xlu0 %5007 }
 0x401   :  { %v5182_v10 = vadd.f32 %v5006_v4, %v15233_v2  ;;  %v5183_v8 = vadd.f32 %v5008_v24, %v15435_v9  ;;  %v5373_v47 = vsel %vm5245_vm6, %v5181_v53, %v5309_v6  ;;  %v5372_v23 = vsel %vm5244_vm5, %v5180_v7, %v5308_v21  ;;  %v18810_v7 = vld [vmem:[#allocation5_spill] sm:$0xff]  ;;  %v18812_v6 = vld [vmem:[#allocation82_spill] sm:$0xff] }
 0x403   :  { %v5310_v18 = vmul.f32 0.01, %v5182_v10  ;;  %vm5246_vm7 = vcmp.ge.f32.partialorder %v5182_v10, 0.0  ;;  %v5311_v28 = vmul.f32 0.01, %v5183_v8  ;;  %10460 = vmatmul.mubr.msk.f32.gmra.mxu1 %vm5432_vm8, %v5372_v23  ;;  %vm5247_vm9 = vcmp.ge.f32.partialorder %v5183_v8, 0.0 }
 0x404   :  { %v5010_v59 = vpop.permute.xlu1 %5009  ;;  %10462 = vmatprep.mubr.msk.f32.mxu1 %vm5432_vm8, %v5373_v47  ;;  %v5012_v51 = vpop.permute.xlu0 %5011 }
 0x405   :  { %v5184_v12 = vadd.f32 %v5010_v59, %v15431_v19  ;;  %v5185_v45 = vadd.f32 %v5012_v51, %v15449_v58  ;;  %v5375_v29 = vsel %vm5247_vm9, %v5183_v8, %v5311_v28  ;;  %v5374_v1 = vsel %vm5246_vm7, %v5182_v10, %v5310_v18  ;;  %v15663_v58 = vld [vmem:[%s18043_s0] sm:$0xff]  ;;  %v15673_v8 = vld [vmem:[%s18043_s0 + $0x10] sm:$0xff]  ;;  %v18813_v18 = vld [vmem:[#allocation58_spill] sm:$0xff] }
 0x406   :  { %v15680_v28 = vld [vmem:[%s18043_s0 + $0x8] sm:$0xff] }
 0x407   :  { %v5312_v61 = vmul.f32 0.01, %v5184_v12  ;;  %vm5248_vm10 = vcmp.ge.f32.partialorder %v5184_v12, 0.0  ;;  %v5313_v16 = vmul.f32 0.01, %v5185_v45  ;;  %10463 = vmatmul.mubr.msk.f32.gmra.mxu1 %vm5432_vm8, %v5374_v1  ;;  %vm5249_vm11 = vcmp.ge.f32.partialorder %v5185_v45, 0.0 }
 0x408   :  { %v5014_v2 = vpop.permute.xlu1 %5013  ;;  %10465 = vmatprep.mubr.msk.f32.mxu1 %vm5432_vm8, %v5375_v29  ;;  %v5016_v56 = vpop.permute.xlu0 %5015  ;;  %v18814_v29 = vld [vmem:[#allocation18_spill] sm:$0xff] }
 0x409   :  { %v5186_v9 = vadd.f32 %v5014_v2, %v18809_v3  ;;  %v5187_v14 = vadd.f32 %v5016_v56, %v18810_v7  ;;  %v5377_v35 = vsel %vm5249_vm11, %v5185_v45, %v5313_v16  ;;  %6394 = vmax.xlane.f32.xlu0 %v15663_v58  ;;  %v5376_v63 = vsel %vm5248_vm10, %v5184_v12, %v5312_v61  ;;  %v18815_v16 = vld [vmem:[#allocation88_spill] sm:$0xff]  ;;  %v15696_v7 = vld [vmem:[%s18043_s0 + $0x20] sm:$0xff] }
 0x40b   :  { %v5314_v4 = vmul.f32 0.01, %v5186_v9  ;;  %vm5250_vm12 = vcmp.ge.f32.partialorder %v5186_v9, 0.0  ;;  %v5315_v21 = vmul.f32 0.01, %v5187_v14  ;;  %10466 = vmatmul.mubr.msk.f32.gmra.mxu1 %vm5432_vm8, %v5376_v63  ;;  %vm5251_vm13 = vcmp.ge.f32.partialorder %v5187_v14, 0.0 }
 0x40c   :  { %v5018_v19 = vpop.permute.xlu1 %5017  ;;  %10468 = vmatprep.mubr.msk.f32.mxu1 %vm5432_vm8, %v5377_v35  ;;  %v5020_v22 = vpop.permute.xlu0 %5019 }
 0x40d   :  { %v5188_v53 = vadd.f32 %v5018_v19, %v18811_v49  ;;  %v5189_v59 = vadd.f32 %v5020_v22, %v18812_v6  ;;  %v5379_v24 = vsel %vm5251_vm13, %v5187_v14, %v5315_v21  ;;  %6398 = vmax.xlane.f32.xlu0 %v15673_v8  ;;  %v5378_v23 = vsel %vm5250_vm12, %v5186_v9, %v5314_v4  ;;  %v15689_v9 = vld [vmem:[%s18043_s0 + $0x18] sm:$0xff]  ;;  %v15712_v6 = vld [vmem:[%s18043_s0 + $0x30] sm:$0xff] }
 0x40f   :  { %v5316_v47 = vmul.f32 0.01, %v5188_v53  ;;  %vm5252_vm14 = vcmp.ge.f32.partialorder %v5188_v53, 0.0  ;;  %v5317_v2 = vmul.f32 0.01, %v5189_v59  ;;  %10469 = vmatmul.mubr.msk.f32.gmra.mxu1 %vm5432_vm8, %v5378_v23  ;;  %vm5253_vm15 = vcmp.ge.f32.partialorder %v5189_v59, 0.0 }
 0x410   :  { %v5022_v10 = vpop.permute.xlu1 %5021  ;;  %10471 = vmatprep.mubr.msk.f32.mxu1 %vm5432_vm8, %v5379_v24  ;;  %v5024_v45 = vpop.permute.xlu0 %5023 }
 0x411   :  { %v5190_v12 = vadd.f32 %v5022_v10, %v18813_v18  ;;  %v5191_v61 = vadd.f32 %v5024_v45, %v18814_v29  ;;  %v5381_v3 = vsel %vm5253_vm15, %v5189_v59, %v5317_v2  ;;  %6400 = vmax.xlane.f32.xlu0 %v15689_v9  ;;  %v5380_v56 = vsel %vm5252_vm14, %v5188_v53, %v5316_v47  ;;  %v15705_v53 = vld [vmem:[%s18043_s0 + $0x28] sm:$0xff]  ;;  %v15721_v18 = vld [vmem:[%s18043_s0 + $0x38] sm:$0xff] }
 0x412   :  { %6396 = vmax.xlane.f32.xlu1 %v15680_v28 }
 0x413   :  { %v5318_v1 = vmul.f32 0.01, %v5190_v12  ;;  %vm5254_vm0 = vcmp.ge.f32.partialorder %v5190_v12, 0.0  ;;  %v5319_v14 = vmul.f32 0.01, %v5191_v61  ;;  %10472 = vmatmul.mubr.msk.f32.gmra.mxu1 %vm5432_vm8, %v5380_v56  ;;  %vm5255_vm1 = vcmp.ge.f32.partialorder %v5191_v61, 0.0 }
 0x414   :  { %v5026_v51 = vpop.permute.xlu1 %5025  ;;  %10474 = vmatprep.mubr.msk.f32.mxu1 %vm5432_vm8, %v5381_v3  ;;  %v5028_v4 = vpop.permute.xlu0 %5027  ;;  %v15737_v3 = vld [vmem:[%s18043_s0 + $0x48] sm:$0xff]  ;;  %v11102_v56 = vld [vmem:[%s18043_s0 + $0x50] sm:$0xff] }
 0x415   :  { %v5192_v19 = vadd.f32 %v5026_v51, %v18815_v16  ;;  %v5193_v49 = vadd.f32 %v5028_v4, %v15505_v42  ;;  %v5383_v63 = vsel %vm5255_vm1, %v5191_v61, %v5319_v14  ;;  %6404 = vmax.xlane.f32.xlu0 %v15705_v53  ;;  %v5382_v22 = vsel %vm5254_vm0, %v5190_v12, %v5318_v1  ;;  %v15728_v51 = vld [vmem:[%s18043_s0 + $0x40] sm:$0xff] }
 0x416   :  { %6402 = vmax.xlane.f32.xlu1 %v15696_v7 }
 0x417   :  { %v5320_v21 = vmul.f32 0.01, %v5192_v19  ;;  %vm5256_vm2 = vcmp.ge.f32.partialorder %v5192_v19, 0.0  ;;  %v5321_v42 = vmul.f32 0.01, %v5193_v49  ;;  %10475 = vmatmul.mubr.msk.f32.gmra.mxu1 %vm5432_vm8, %v5382_v22  ;;  %vm5257_vm3 = vcmp.ge.f32.partialorder %v5193_v49, 0.0 }
 0x418   :  { %v5030_v35 = vpop.permute.xlu1 %5029  ;;  %10477 = vmatprep.mubr.msk.f32.mxu1 %vm5432_vm8, %v5383_v63  ;;  %v5032_v24 = vpop.permute.xlu0 %5031  ;;  %v11104_v22 = vld [vmem:[%s18043_s0 + $0x60] sm:$0xff] }
 0x419   :  { %v5194_v10 = vadd.f32 %v5030_v35, %v15502_v11  ;;  %v5195_v47 = vadd.f32 %v5032_v24, %v15519_v54  ;;  %v5385_v11 = vsel %vm5257_vm3, %v5193_v49, %v5321_v42  ;;  %6408 = vmax.xlane.f32.xlu0 %v15721_v18  ;;  %v5384_v2 = vsel %vm5256_vm2, %v5192_v19, %v5320_v21 }
 0x41a   :  { %6406 = vmax.xlane.f32.xlu1 %v15712_v6 }
 0x41b   :  { %v5322_v12 = vmul.f32 0.01, %v5194_v10  ;;  %vm5258_vm4 = vcmp.ge.f32.partialorder %v5194_v10, 0.0  ;;  %v5323_v54 = vmul.f32 0.01, %v5195_v47  ;;  %10478 = vmatmul.mubr.msk.f32.gmra.mxu1 %vm5432_vm8, %v5384_v2  ;;  %vm5259_vm5 = vcmp.ge.f32.partialorder %v5195_v47, 0.0 }
 0x41c   :  { %v5034_v59 = vpop.permute.xlu1 %5033  ;;  %10480 = vmatprep.mubr.msk.f32.mxu1 %vm5432_vm8, %v5385_v11  ;;  %v5036_v29 = vpop.permute.xlu0 %5035  ;;  %v11106_v2 = vld [vmem:[%s18043_s0 + $0x70] sm:$0xff] }
 0x41d   :  { %v5196_v23 = vadd.f32 %v5034_v59, %v15516_v34  ;;  %v5197_v61 = vadd.f32 %v5036_v29, %v15533_v60  ;;  %v5387_v34 = vsel %vm5259_vm5, %v5195_v47, %v5323_v54  ;;  %6412 = vmax.xlane.f32.xlu0 %v15737_v3  ;;  %v5386_v19 = vsel %vm5258_vm4, %v5194_v10, %v5322_v12 }
 0x41e   :  { %6410 = vmax.xlane.f32.xlu1 %v15728_v51 }
 0x41f   :  { %v5324_v1 = vmul.f32 0.01, %v5196_v23  ;;  %vm5260_vm6 = vcmp.ge.f32.partialorder %v5196_v23, 0.0  ;;  %v5325_v14 = vmul.f32 0.01, %v5197_v61  ;;  %10481 = vmatmul.mubr.msk.f32.gmra.mxu1 %vm5432_vm8, %v5386_v19  ;;  %vm5261_vm7 = vcmp.ge.f32.partialorder %v5197_v61, 0.0 }
 0x420   :  { %v5038_v45 = vpop.permute.xlu1 %5037  ;;  %10483 = vmatprep.mubr.msk.f32.mxu1 %vm5432_vm8, %v5387_v34  ;;  %v5040_v35 = vpop.permute.xlu0 %5039  ;;  %v11108_v19 = vld [vmem:[%s18043_s0 + $0x80] sm:$0xff] }
 0x421   :  { %v5198_v16 = vadd.f32 %v5038_v45, %v15530_v40  ;;  %v5199_v4 = vadd.f32 %v5040_v35, %v15271_v36  ;;  %v5389_v49 = vsel %vm5261_vm7, %v5197_v61, %v5325_v14  ;;  %v15750_v40 = vld [vmem:[%s18043_s0 + $0x58] sm:$0xff]  ;;  %v5388_v63 = vsel %vm5260_vm6, %v5196_v23, %v5324_v1 }
 0x422   :  { %6414 = vmax.xlane.f32.xlu1 %v11102_v56  ;;  %6416 = vmax.xlane.f32.xlu0 %v15750_v40 }
 0x423   :  { %v5326_v21 = vmul.f32 0.01, %v5198_v16  ;;  %vm5262_vm9 = vcmp.ge.f32.partialorder %v5198_v16, 0.0  ;;  %vm5263_vm10 = vcmp.ge.f32.partialorder %v5199_v4, 0.0  ;;  %v5327_v36 = vmul.f32 0.01, %v5199_v4  ;;  %10484 = vmatmul.mubr.msk.f32.gmra.mxu1 %vm5432_vm8, %v5388_v63 }
 0x424   :  { %v5042_v60 = vpop.permute.xlu1 %5041  ;;  %10486 = vmatprep.mubr.msk.f32.mxu1 %vm5432_vm8, %v5389_v49  ;;  %v5044_v59 = vpop.permute.xlu0 %5043 }
 0x425   :  { %v5200_v10 = vadd.f32 %v5042_v60, %v15256_v30  ;;  %v5201_v24 = vadd.f32 %v5044_v59, %v15285_v15  ;;  %v5391_v47 = vsel %vm5263_vm10, %v5199_v4, %v5327_v36  ;;  %v11105_v30 = vld [vmem:[%s18043_s0 + $0x68] sm:$0xff]  ;;  %v5390_v11 = vsel %vm5262_vm9, %v5198_v16, %v5326_v21  ;;  %v11110_v21 = vld [vmem:[%s18043_s0 + $0x90] sm:$0xff] }
 0x426   :  { %6418 = vmax.xlane.f32.xlu1 %v11104_v22  ;;  %6420 = vmax.xlane.f32.xlu0 %v11105_v30  ;;  %v11112_v30 = vld [vmem:[%s18043_s0 + $0xa0] sm:$0xff] }
 0x427   :  { %v5328_v12 = vmul.f32 0.01, %v5200_v10  ;;  %vm5264_vm11 = vcmp.ge.f32.partialorder %v5200_v10, 0.0  ;;  %vm5265_vm12 = vcmp.ge.f32.partialorder %v5201_v24, 0.0  ;;  %v5329_v54 = vmul.f32 0.01, %v5201_v24  ;;  %10487 = vmatmul.mubr.msk.f32.gmra.mxu1 %vm5432_vm8, %v5390_v11 }
 0x428   :  { %v5046_v42 = vpop.permute.xlu1 %5045  ;;  %10489 = vmatprep.mubr.msk.f32.mxu1 %vm5432_vm8, %v5391_v47  ;;  %v5048_v45 = vpop.permute.xlu0 %5047 }
 0x429   :  { %v5202_v23 = vadd.f32 %v5046_v42, %v15274_v55  ;;  %v5203_v29 = vadd.f32 %v5048_v45, %v15291_v37  ;;  %v5393_v61 = vsel %vm5265_vm12, %v5201_v24, %v5329_v54  ;;  %v11107_v55 = vld [vmem:[%s18043_s0 + $0x78] sm:$0xff]  ;;  %v5392_v34 = vsel %vm5264_vm11, %v5200_v10, %v5328_v12 }
 0x42a   :  { %6422 = vmax.xlane.f32.xlu1 %v11106_v2  ;;  %6424 = vmax.xlane.f32.xlu0 %v11107_v55 }
 0x42b   :  { %v5330_v1 = vmul.f32 0.01, %v5202_v23  ;;  %vm5266_vm13 = vcmp.ge.f32.partialorder %v5202_v23, 0.0  ;;  %vm5267_vm14 = vcmp.ge.f32.partialorder %v5203_v29, 0.0  ;;  %v5331_v56 = vmul.f32 0.01, %v5203_v29  ;;  %10490 = vmatmul.mubr.msk.f32.gmra.mxu1 %vm5432_vm8, %v5392_v34 }
 0x42c   :  { %v5050_v15 = vpop.permute.xlu1 %5049  ;;  %10492 = vmatprep.mubr.msk.f32.mxu1 %vm5432_vm8, %v5393_v61  ;;  %v5052_v14 = vpop.permute.xlu0 %5051 }
 0x42d   :  { %v5204_v16 = vadd.f32 %v5050_v15, %v15288_v0  ;;  %v5205_v60 = vadd.f32 %v5052_v14, %v15297_v46  ;;  %v5395_v35 = vsel %vm5267_vm14, %v5203_v29, %v5331_v56  ;;  %v11109_v0 = vld [vmem:[%s18043_s0 + $0x88] sm:$0xff]  ;;  %v5394_v4 = vsel %vm5266_vm13, %v5202_v23, %v5330_v1  ;;  %v11114_v29 = vld [vmem:[%s18043_s0 + $0xb0] sm:$0xff] }
 0x42e   :  { %6426 = vmax.xlane.f32.xlu1 %v11108_v19  ;;  %6428 = vmax.xlane.f32.xlu0 %v11109_v0 }
 0x42f   :  { %v5332_v49 = vmul.f32 0.01, %v5204_v16  ;;  %vm5268_vm15 = vcmp.ge.f32.partialorder %v5204_v16, 0.0  ;;  %vm5269_vm0 = vcmp.ge.f32.partialorder %v5205_v60, 0.0  ;;  %v5333_v10 = vmul.f32 0.01, %v5205_v60  ;;  %10493 = vmatmul.mubr.msk.f32.gmra.mxu1 %vm5432_vm8, %v5394_v4 }
 0x430   :  { %v5054_v37 = vpop.permute.xlu1 %5053  ;;  %10495 = vmatprep.mubr.msk.f32.mxu1 %vm5432_vm8, %v5395_v35  ;;  %v5056_v22 = vpop.permute.xlu0 %5055 }
 0x431   :  { %v5206_v63 = vadd.f32 %v5054_v37, %v15294_v41  ;;  %v5207_v36 = vadd.f32 %v5056_v22, %v15313_v27  ;;  %v5397_v42 = vsel %vm5269_vm0, %v5205_v60, %v5333_v10  ;;  %v11111_v41 = vld [vmem:[%s18043_s0 + $0x98] sm:$0xff]  ;;  %v5396_v59 = vsel %vm5268_vm15, %v5204_v16, %v5332_v49  ;;  %v11116_v37 = vld [vmem:[%s18043_s0 + $0xc0] sm:$0xff] }
 0x432   :  { %6430 = vmax.xlane.f32.xlu1 %v11110_v21  ;;  %6432 = vmax.xlane.f32.xlu0 %v11111_v41  ;;  %v11118_v21 = vld [vmem:[%s18043_s0 + $0xd0] sm:$0xff] }
 0x433   :  { %v5334_v24 = vmul.f32 0.01, %v5206_v63  ;;  %vm5270_vm1 = vcmp.ge.f32.partialorder %v5206_v63, 0.0  ;;  %vm5271_vm2 = vcmp.ge.f32.partialorder %v5207_v36, 0.0  ;;  %v5335_v11 = vmul.f32 0.01, %v5207_v36  ;;  %10496 = vmatmul.mubr.msk.f32.gmra.mxu1 %vm5432_vm8, %v5396_v59 }
 0x434   :  { %v5058_v46 = vpop.permute.xlu1 %5057  ;;  %10498 = vmatprep.mubr.msk.f32.mxu1 %vm5432_vm8, %v5397_v42  ;;  %v5060_v12 = vpop.permute.xlu0 %5059 }
 0x435   :  { %v5208_v47 = vadd.f32 %v5058_v46, %v15300_v26  ;;  %v5209_v23 = vadd.f32 %v5060_v12, %v15329_v20  ;;  %v5399_v2 = vsel %vm5271_vm2, %v5207_v36, %v5335_v11  ;;  %v11113_v26 = vld [vmem:[%s18043_s0 + $0xa8] sm:$0xff]  ;;  %v5398_v54 = vsel %vm5270_vm1, %v5206_v63, %v5334_v24  ;;  %v11120_v24 = vld [vmem:[%s18043_s0 + $0xe0] sm:$0xff] }
 0x436   :  { %6434 = vmax.xlane.f32.xlu1 %v11112_v30  ;;  %6436 = vmax.xlane.f32.xlu0 %v11113_v26  ;;  %v11122_v26 = vld [vmem:[%s18043_s0 + $0xf0] sm:$0xff] }
 0x437   :  { %v5336_v15 = vmul.f32 0.01, %v5208_v47  ;;  %vm5272_vm3 = vcmp.ge.f32.partialorder %v5208_v47, 0.0  ;;  %vm5273_vm4 = vcmp.ge.f32.partialorder %v5209_v23, 0.0  ;;  %v5337_v61 = vmul.f32 0.01, %v5209_v23  ;;  %10499 = vmatmul.mubr.msk.f32.gmra.mxu1 %vm5432_vm8, %v5398_v54 }
 0x438   :  { %v5062_v27 = vpop.permute.xlu1 %5061  ;;  %10501 = vmatprep.mubr.msk.f32.mxu1 %vm5432_vm8, %v5399_v2  ;;  %v5064_v55 = vpop.permute.xlu0 %5063 }
 0x439   :  { %v5210_v45 = vadd.f32 %v5062_v27, %v15326_v38  ;;  %v5211_v34 = vadd.f32 %v5064_v55, %v15335_v33  ;;  %v5401_v1 = vsel %vm5273_vm4, %v5209_v23, %v5337_v61  ;;  %v11115_v38 = vld [vmem:[%s18043_s0 + $0xb8] sm:$0xff]  ;;  %v5400_v16 = vsel %vm5272_vm3, %v5208_v47, %v5336_v15 }
 0x43a   :  { %6438 = vmax.xlane.f32.xlu1 %v11114_v29  ;;  %6440 = vmax.xlane.f32.xlu0 %v11115_v38 }
 0x43b   :  { %v5338_v19 = vmul.f32 0.01, %v5210_v45  ;;  %vm5274_vm5 = vcmp.ge.f32.partialorder %v5210_v45, 0.0  ;;  %vm5275_vm6 = vcmp.ge.f32.partialorder %v5211_v34, 0.0  ;;  %v5339_v14 = vmul.f32 0.01, %v5211_v34  ;;  %10502 = vmatmul.mubr.msk.f32.gmra.mxu1 %vm5432_vm8, %v5400_v16 }
 0x43c   :  { %v5066_v20 = vpop.permute.xlu1 %5065  ;;  %10504 = vmatprep.mubr.msk.f32.mxu1 %vm5432_vm8, %v5401_v1  ;;  %v5068_v60 = vpop.permute.xlu0 %5067 }
 0x43d   :  { %v5212_v56 = vadd.f32 %v5066_v20, %v15332_v32  ;;  %v5213_v35 = vadd.f32 %v5068_v60, %v15341_v50  ;;  %v5403_v0 = vsel %vm5275_vm6, %v5211_v34, %v5339_v14  ;;  %v11117_v32 = vld [vmem:[%s18043_s0 + $0xc8] sm:$0xff]  ;;  %v5402_v4 = vsel %vm5274_vm5, %v5210_v45, %v5338_v19  ;;  %v11124_v34 = vld [vmem:[%s18043_s0 + $0x100] sm:$0xff]  ;;  %v18816_v14 = vld [vmem:[#allocation87_spill] sm:$0xff] }
 0x43e   :  { %6442 = vmax.xlane.f32.xlu1 %v11116_v37  ;;  %6444 = vmax.xlane.f32.xlu0 %v11117_v32  ;;  %v11126_v60 = vld [vmem:[%s18043_s0 + $0x110] sm:$0xff] }
 0x43f   :  { %v5340_v49 = vmul.f32 0.01, %v5212_v56  ;;  %vm5276_vm7 = vcmp.ge.f32.partialorder %v5212_v56, 0.0  ;;  %vm5277_vm9 = vcmp.ge.f32.partialorder %v5213_v35, 0.0  ;;  %v5341_v10 = vmul.f32 0.01, %v5213_v35  ;;  %10505 = vmatmul.mubr.msk.f32.gmra.mxu1 %vm5432_vm8, %v5402_v4 }
 0x440   :  { %v5070_v33 = vpop.permute.xlu1 %5069  ;;  %10507 = vmatprep.mubr.msk.f32.mxu1 %vm5432_vm8, %v5403_v0  ;;  %v5072_v46 = vpop.permute.xlu0 %5071  ;;  %v18817_v4 = vld [vmem:[#allocation85_spill] sm:$0xff] }
 0x441   :  { %v5214_v63 = vadd.f32 %v5070_v33, %v15338_v31  ;;  %v5215_v22 = vadd.f32 %v5072_v46, %v15367_v25  ;;  %v5405_v36 = vsel %vm5277_vm9, %v5213_v35, %v5341_v10  ;;  %v11119_v31 = vld [vmem:[%s18043_s0 + $0xd8] sm:$0xff]  ;;  %v5404_v42 = vsel %vm5276_vm7, %v5212_v56, %v5340_v49  ;;  %v10760_v35 = vld [vmem:[%s18049_s6 + $0x8] sm:$0xff]   ;;  %v18818_v46 = vld [vmem:[#allocation81_spill] sm:$0xff] }
 0x442   :  { %6446 = vmax.xlane.f32.xlu1 %v11118_v21  ;;  %6448 = vmax.xlane.f32.xlu0 %v11119_v31  ;;  %v11127_v21 = vld [vmem:[%s18043_s0 + $0x118] sm:$0xff] }
 0x443   :  { %v5342_v41 = vmul.f32 0.01, %v5214_v63  ;;  %vm5278_vm10 = vcmp.ge.f32.partialorder %v5214_v63, 0.0  ;;  %vm5279_vm11 = vcmp.ge.f32.partialorder %v5215_v22, 0.0  ;;  %v5343_v47 = vmul.f32 0.01, %v5215_v22  ;;  %10508 = vmatmul.mubr.msk.f32.gmra.mxu1 %vm5432_vm8, %v5404_v42  ;;  %10549 = vmatprep.subr.bf16.mxu0 %v10760_v35 }
 0x444   :  { %v5074_v50 = vpop.permute.xlu1 %5073  ;;  %10510 = vmatprep.mubr.msk.f32.mxu1 %vm5432_vm8, %v5405_v36  ;;  %v5076_v30 = vpop.permute.xlu0 %5075  ;;  %v11128_v36 = vld [vmem:[%s18043_s0 + $0x120] sm:$0xff]  ;;  %10550 = vmatpush3.bf16.msra.mxu0 %v10760_v35 }
 0x445   :  { %v5216_v59 = vadd.f32 %v5074_v50, %v15344_v62  ;;  %v5217_v11 = vadd.f32 %v5076_v30, %v15373_v17  ;;  %v5407_v27 = vsel %vm5279_vm11, %v5215_v22, %v5343_v47  ;;  %v11121_v62 = vld [vmem:[%s18043_s0 + $0xe8] sm:$0xff]  ;;  %v5406_v12 = vsel %vm5278_vm10, %v5214_v63, %v5342_v41 }
 0x446   :  { %6450 = vmax.xlane.f32.xlu1 %v11120_v24  ;;  %6452 = vmax.xlane.f32.xlu0 %v11121_v62  ;;  %v11129_v47 = vld [vmem:[%s18043_s0 + $0x128] sm:$0xff] }
 0x447   :  { %v5344_v23 = vmul.f32 0.01, %v5216_v59  ;;  %vm5280_vm12 = vcmp.ge.f32.partialorder %v5216_v59, 0.0  ;;  %vm5281_vm13 = vcmp.ge.f32.partialorder %v5217_v11, 0.0  ;;  %v5345_v54 = vmul.f32 0.01, %v5217_v11  ;;  %10511 = vmatmul.mubr.msk.f32.gmra.mxu1 %vm5432_vm8, %v5406_v12 }
 0x448   :  { %v5078_v25 = vpop.permute.xlu1 %5077  ;;  %10513 = vmatprep.mubr.msk.f32.mxu1 %vm5432_vm8, %v5407_v27  ;;  %v5080_v15 = vpop.permute.xlu0 %5079  ;;  %v11130_v27 = vld [vmem:[%s18043_s0 + $0x130] sm:$0xff] }
 0x449   :  { %v5218_v2 = vadd.f32 %v5078_v25, %v15370_v52  ;;  %v5219_v45 = vadd.f32 %v5080_v15, %v15379_v44  ;;  %v5409_v29 = vsel %vm5281_vm13, %v5217_v11, %v5345_v54  ;;  %v11123_v52 = vld [vmem:[%s18043_s0 + $0xf8] sm:$0xff]  ;;  %v5408_v61 = vsel %vm5280_vm12, %v5216_v59, %v5344_v23  ;;  %v11132_v15 = vld [vmem:[%s18043_s0 + $0x140] sm:$0xff] }
 0x44a   :  { %6454 = vmax.xlane.f32.xlu1 %v11122_v26  ;;  %6456 = vmax.xlane.f32.xlu0 %v11123_v52  ;;  %v18819_v52 = vld [vmem:[#allocation84_spill] sm:$0xff] }
 0x44b   :  { %v5346_v20 = vmul.f32 0.01, %v5218_v2  ;;  %vm5282_vm14 = vcmp.ge.f32.partialorder %v5218_v2, 0.0  ;;  %vm5283_vm15 = vcmp.ge.f32.partialorder %v5219_v45, 0.0  ;;  %v5347_v1 = vmul.f32 0.01, %v5219_v45  ;;  %10514 = vmatmul.mubr.msk.f32.gmra.mxu1 %vm5432_vm8, %v5408_v61 }
 0x44c   :  { %v5082_v17 = vpop.permute.xlu1 %5081  ;;  %10516 = vmatprep.mubr.msk.f32.mxu1 %vm5432_vm8, %v5409_v29  ;;  %v5084_v38 = vpop.permute.xlu0 %5083 }
 0x44d   :  { %v5220_v55 = vadd.f32 %v5082_v17, %v15376_v57  ;;  %v5221_v16 = vadd.f32 %v5084_v38, %v15385_v43  ;;  %v5411_v19 = vsel %vm5283_vm15, %v5219_v45, %v5347_v1  ;;  %v11125_v57 = vld [vmem:[%s18043_s0 + $0x108] sm:$0xff]  ;;  %v5410_v56 = vsel %vm5282_vm14, %v5218_v2, %v5346_v20  ;;  %v11134_v38 = vld [vmem:[%s18043_s0 + $0x150] sm:$0xff] }
 0x44e   :  { %6458 = vmax.xlane.f32.xlu1 %v11124_v34  ;;  %6460 = vmax.xlane.f32.xlu0 %v11125_v57  ;;  %v18820_v1 = vld [vmem:[#allocation54_spill] sm:$0xff] }
 0x44f   :  { %v5348_v37 = vmul.f32 0.01, %v5220_v55  ;;  %vm5284_vm0 = vcmp.ge.f32.partialorder %v5220_v55, 0.0  ;;  %vm5285_vm1 = vcmp.ge.f32.partialorder %v5221_v16, 0.0  ;;  %v5349_v43 = vmul.f32 0.01, %v5221_v16  ;;  %10517 = vmatmul.mubr.msk.f32.gmra.mxu1 %vm5432_vm8, %v5410_v56 }
 0x450   :  { %v5086_v44 = vpop.permute.xlu1 %5085  ;;  %10519 = vmatprep.mubr.msk.f32.mxu1 %vm5432_vm8, %v5411_v19  ;;  %v5088_v32 = vpop.permute.xlu0 %5087  ;;  %v10761_v19 = vld [vmem:[%s18049_s6] sm:$0xff]   ;;  %v11135_v56 = vld [vmem:[%s18043_s0 + $0x158] sm:$0xff] }
 0x451   :  { %v5222_v33 = vadd.f32 %v5086_v44, %v18816_v14  ;;  %v5223_v49 = vadd.f32 %v5088_v32, %v18817_v4  ;;  %v5413_v63 = vsel %vm5285_vm1, %v5221_v16, %v5349_v43  ;;  %v5412_v10 = vsel %vm5284_vm0, %v5220_v55, %v5348_v37  ;;  %10551 = vmatprep.subr.bf16.mxu0 %v10761_v19  ;;  %v11138_v43 = vld [vmem:[%s18043_s0 + $0x170] sm:$0xff]  ;;  %v11140_v32 = vld [vmem:[%s18043_s0 + $0x180] sm:$0xff]  ;;  %v11141_v4 = vld [vmem:[%s18043_s0 + $0x188] sm:$0xff] }
 0x452   :  { %6462 = vmax.xlane.f32.xlu1 %v11126_v60  ;;  %6464 = vmax.xlane.f32.xlu0 %v11127_v21  ;;  %v11137_v60 = vld [vmem:[%s18043_s0 + $0x168] sm:$0xff]  ;;  %v11144_v21 = vld [vmem:[%s18043_s0 + $0x1a0] sm:$0xff] }
 0x453   :  { %v5350_v50 = vmul.f32 0.01, %v5222_v33  ;;  %vm5286_vm2 = vcmp.ge.f32.partialorder %v5222_v33, 0.0  ;;  %vm5287_vm3 = vcmp.ge.f32.partialorder %v5223_v49, 0.0  ;;  %v5351_v31 = vmul.f32 0.01, %v5223_v49  ;;  %10520 = vmatmul.mubr.msk.f32.gmra.mxu1 %vm5432_vm8, %v5412_v10  ;;  %10552 = vmatpush3.bf16.msra.mxu0 %v10761_v19 }
 0x454   :  { %v5090_v0 = vpop.permute.xlu1 %5089  ;;  %10522 = vmatprep.mubr.msk.f32.mxu1 %vm5432_vm8, %v5413_v63  ;;  %v5092_v41 = vpop.permute.xlu0 %5091  ;;  %v11143_v63 = vld [vmem:[%s18043_s0 + $0x198] sm:$0xff]  ;;  %v11145_v10 = vld [vmem:[%s18043_s0 + $0x1a8] sm:$0xff] }
 0x455   :  { %v5224_v22 = vadd.f32 %v5090_v0, %v18818_v46  ;;  %v5225_v59 = vadd.f32 %v5092_v41, %v15415_v48  ;;  %v5415_v24 = vsel %vm5287_vm3, %v5223_v49, %v5351_v31  ;;  %v5414_v25 = vsel %vm5286_vm2, %v5222_v33, %v5350_v50  ;;  %v11136_v33 = vld [vmem:[%s18043_s0 + $0x160] sm:$0xff]  ;;  %v11139_v0 = vld [vmem:[%s18043_s0 + $0x178] sm:$0xff]  ;;  %v11142_v49 = vld [vmem:[%s18043_s0 + $0x190] sm:$0xff] }
 0x456   :  { %6466 = vmax.xlane.f32.xlu1 %v11128_v36  ;;  %6468 = vmax.xlane.f32.xlu0 %v11129_v47  ;;  %v11146_v50 = vld [vmem:[%s18043_s0 + $0x1b0] sm:$0xff]  ;;  %v11147_v46 = vld [vmem:[%s18043_s0 + $0x1b8] sm:$0xff]  ;;  %v11149_v36 = vld [vmem:[%s18043_s0 + $0x1c8] sm:$0xff] }
 0x457   :  { %v5352_v30 = vmul.f32 0.01, %v5224_v22  ;;  %vm5288_vm4 = vcmp.ge.f32.partialorder %v5224_v22, 0.0  ;;  %vm5289_vm5 = vcmp.ge.f32.partialorder %v5225_v59, 0.0  ;;  %v5353_v62 = vmul.f32 0.01, %v5225_v59  ;;  %10523 = vmatmul.mubr.msk.f32.gmra.mxu1 %vm5432_vm8, %v5414_v25 }
 0x458   :  { %v5094_v42 = vpop.permute.xlu1 %5093  ;;  %10525 = vmatprep.mubr.msk.f32.mxu1 %vm5432_vm8, %v5415_v24  ;;  %v5096_v12 = vpop.permute.xlu0 %5095  ;;  %v11150_v31 = vld [vmem:[%s18043_s0 + $0x1d0] sm:$0xff]  ;;  %v11152_v41 = vld [vmem:[%s18043_s0 + $0x1e0] sm:$0xff]  ;;  %v11155_v47 = vld [vmem:[%s18043_s0 + $0x1f8] sm:$0xff] }
 0x459   :  { %v5226_v11 = vadd.f32 %v5094_v42, %v15412_v39  ;;  %v5227_v23 = vadd.f32 %v5096_v12, %v15421_v13  ;;  %v5417_v2 = vsel %vm5289_vm5, %v5225_v59, %v5353_v62  ;;  %v11131_v39 = vld [vmem:[%s18043_s0 + $0x138] sm:$0xff]  ;;  %v5416_v26 = vsel %vm5288_vm4, %v5224_v22, %v5352_v30  ;;  %v11148_v22 = vld [vmem:[%s18043_s0 + $0x1c0] sm:$0xff]  ;;  %v11153_v59 = vld [vmem:[%s18043_s0 + $0x1e8] sm:$0xff] }
 0x45a   :  { %6470 = vmax.xlane.f32.xlu1 %v11130_v27  ;;  %6472 = vmax.xlane.f32.xlu0 %v11131_v39  ;;  %v11151_v42 = vld [vmem:[%s18043_s0 + $0x1d8] sm:$0xff]  ;;  %v11154_v24 = vld [vmem:[%s18043_s0 + $0x1f0] sm:$0xff] }
 0x45b   :  { %v5354_v54 = vmul.f32 0.01, %v5226_v11  ;;  %vm5290_vm6 = vcmp.ge.f32.partialorder %v5226_v11, 0.0  ;;  %vm5291_vm7 = vcmp.ge.f32.partialorder %v5227_v23, 0.0  ;;  %v5355_v45 = vmul.f32 0.01, %v5227_v23  ;;  %10526 = vmatmul.mubr.msk.f32.gmra.mxu1 %vm5432_vm8, %v5416_v26 }
 0x45c   :  { %v5098_v48 = vpop.permute.xlu1 %5097  ;;  %10528 = vmatprep.mubr.msk.f32.mxu1 %vm5432_vm8, %v5417_v2  ;;  %v5100_v29 = vpop.permute.xlu0 %5099  ;;  %v16004_v26 = vld [vmem:[%s18048_s5] ss:$0 sm:$0xff] }
 0x45d   :  { %v5228_v17 = vadd.f32 %v5098_v48, %v15418_v5  ;;  %v5229_v61 = vadd.f32 %v5100_v29, %v18819_v52  ;;  %v5419_v20 = vsel %vm5291_vm7, %v5227_v23, %v5355_v45  ;;  %v11133_v5 = vld [vmem:[%s18043_s0 + $0x148] sm:$0xff]  ;;  %v5418_v55 = vsel %vm5290_vm6, %v5226_v11, %v5354_v54 }
 0x45e   :  { %6474 = vmax.xlane.f32.xlu1 %v11132_v15  ;;  %6476 = vmax.xlane.f32.xlu0 %v11133_v5 }
 0x45f   :  { %v5356_v34 = vmul.f32 0.01, %v5228_v17  ;;  %vm5292_vm9 = vcmp.ge.f32.partialorder %v5228_v17, 0.0  ;;  %vm5293_vm10 = vcmp.ge.f32.partialorder %v5229_v61, 0.0  ;;  %v5357_v16 = vmul.f32 0.01, %v5229_v61  ;;  %10529 = vmatmul.mubr.msk.f32.gmra.mxu1 %vm5432_vm8, %v5418_v55 }
 0x460   :  { %v5102_v13 = vpop.permute.xlu1 %5101  ;;  %10531 = vmatprep.mubr.msk.f32.mxu1 %vm5432_vm8, %v5419_v20 }
 0x461   :  { %v5230_v44 = vadd.f32 %v5102_v13, %v18820_v1  ;;  %v5421_v57 = vsel %vm5293_vm10, %v5229_v61, %v5357_v16  ;;  %v5420_v37 = vsel %vm5292_vm9, %v5228_v17, %v5356_v34 }
 0x462   :  { %6478 = vmax.xlane.f32.xlu1 %v11134_v38  ;;  %6480 = vmax.xlane.f32.xlu0 %v11135_v56 }
 0x463   :  { %v5358_v14 = vmul.f32 0.01, %v5230_v44  ;;  %vm5294_vm11 = vcmp.ge.f32.partialorder %v5230_v44, 0.0  ;;  %10532 = vmatmul.mubr.msk.f32.gmra.mxu1 %vm5432_vm8, %v5420_v37 }
 0x464   :  { %10534 = vmatprep.mubr.msk.f32.mxu1 %vm5432_vm8, %v5421_v57 }
 0x465   :  { %v5422_v35 = vsel %vm5294_vm11, %v5230_v44, %v5358_v14 }
 0x466   :  { %6482 = vmax.xlane.f32.xlu1 %v11136_v33  ;;  %6484 = vmax.xlane.f32.xlu0 %v11137_v60 }
 0x467   :  { %10535 = vmatmul.mubr.msk.f32.gmra.mxu1 %vm5432_vm8, %v5422_v35 }
 0x46a   :  { %6486 = vmax.xlane.f32.xlu1 %v11138_v43  ;;  %6488 = vmax.xlane.f32.xlu0 %v11139_v0 }
 0x46e   :  { %6490 = vmax.xlane.f32.xlu1 %v11140_v32  ;;  %6492 = vmax.xlane.f32.xlu0 %v11141_v4 }
 0x472   :  { %6494 = vmax.xlane.f32.xlu1 %v11142_v49  ;;  %6496 = vmax.xlane.f32.xlu0 %v11143_v63 }
 0x476   :  { %6498 = vmax.xlane.f32.xlu1 %v11144_v21  ;;  %6500 = vmax.xlane.f32.xlu0 %v11145_v10 }
 0x47a   :  { %6502 = vmax.xlane.f32.xlu1 %v11146_v50  ;;  %6504 = vmax.xlane.f32.xlu0 %v11147_v46 }
 0x47e   :  { %6506 = vmax.xlane.f32.xlu1 %v11148_v22  ;;  %6508 = vmax.xlane.f32.xlu0 %v11149_v36 }
 0x482   :  { %6510 = vmax.xlane.f32.xlu1 %v11150_v31  ;;  %6512 = vmax.xlane.f32.xlu0 %v11151_v42 }
 0x486   :  { %6514 = vmax.xlane.f32.xlu1 %v11152_v41  ;;  %6516 = vmax.xlane.f32.xlu0 %v11153_v59 }
 0x48a   :  { %6518 = vmax.xlane.f32.xlu1 %v11154_v24  ;;  %6520 = vmax.xlane.f32.xlu0 %v11155_v47 }
 0x492   :  { %v15981_v25 = vpop.xlane.xlu0 %6394 }
 0x496   :  { %v15983_v30 = vpop.xlane.xlu0 %6398 }
 0x49a   :  { %v15987_v27 = vpop.xlane.xlu0 %6400 }
 0x49b   :  { %v15985_v11 = vpop.xlane.xlu1 %6396 }
 0x49e   :  { %v15991_v48 = vpop.xlane.xlu0 %6404 }
 0x49f   :  { %v15989_v62 = vpop.xlane.xlu1 %6402 }
 0x4a2   :  { %v15993_v12 = vpop.xlane.xlu0 %6408 }
 0x4a3   :  { %v15995_v23 = vpop.xlane.xlu1 %6406 }
 0x4a6   :  { %v15997_v2 = vpop.xlane.xlu0 %6412 }
 0x4a7   :  { %v15999_v39 = vpop.xlane.xlu1 %6410 }
 0x4ab   :  { %v10443_v54 = vpop.f32.mrf.mxu1  ;;  %v16007_v15 = vpop.xlane.xlu0 %6416 }
 0x4ac   :  { %v5697_v17 = vadd.f32 %v10443_v54, %v16004_v26  ;;  %v16010_v52 = vpop.xlane.xlu1 %6414 }
 0x4ad   :  { %v5691_v45 = vpop.f32.mrf.mxu1 }
 0x4ae   :  { %v9154_v13 = vmul.f32 -1.442695, %v5697_v17  ;;  %v5692_v29 = vadd.f32 %v16004_v26, %v5691_v45 }
 0x4af   :  { %v10446_v61 = vpop.f32.mrf.mxu1  ;;  %v16014_v44 = vpop.xlane.xlu0 %6420 }
 0x4b0   :  { %10764 = vpow2.f32 %v9154_v13  ;;  %v9153_v20 = vmul.f32 -1.442695, %v5692_v29  ;;  %v5707_v5 = vadd.f32 %v10446_v61, %v16004_v26  ;;  %v16017_v57 = vpop.xlane.xlu1 %6418 }
 0x4b1   :  { %v5701_v55 = vpop.f32.mrf.mxu1 }
 0x4b2   :  { %10766 = vpow2.f32 %v9153_v20  ;;  %v9156_v34 = vmul.f32 -1.442695, %v5707_v5  ;;  %v5702_v1 = vadd.f32 %v16004_v26, %v5701_v55 }
 0x4b3   :  { %v10449_v38 = vpop.f32.mrf.mxu1  ;;  %v16021_v43 = vpop.xlane.xlu0 %6424 }
 0x4b4   :  { %10768 = vpow2.f32 %v9156_v34  ;;  %v9155_v16 = vmul.f32 -1.442695, %v5702_v1  ;;  %v5717_v19 = vadd.f32 %v10449_v38, %v16004_v26  ;;  %v16024_v49 = vpop.xlane.xlu1 %6422 }
 0x4b5   :  { %v5711_v56 = vpop.f32.mrf.mxu1 }
 0x4b6   :  { %10770 = vpow2.f32 %v9155_v16  ;;  %v9158_v37 = vmul.f32 -1.442695, %v5717_v19  ;;  %v5712_v14 = vadd.f32 %v16004_v26, %v5711_v56 }
 0x4b7   :  { %v10452_v33 = vpop.f32.mrf.mxu1  ;;  %v16028_v42 = vpop.xlane.xlu0 %6428 }
 0x4b8   :  { %10772 = vpow2.f32 %v9158_v37  ;;  %v9157_v60 = vmul.f32 -1.442695, %v5712_v14  ;;  %v5727_v35 = vadd.f32 %v10452_v33, %v16004_v26  ;;  %v16031_v17 = vpop.xlane.xlu1 %6426 }
 0x4b9   :  { %v5721_v0 = vpop.f32.mrf.mxu1 }
 0x4ba   :  { %10774 = vpow2.f32 %v9157_v60  ;;  %v9160_v32 = vmul.f32 -1.442695, %v5727_v35  ;;  %v5722_v4 = vadd.f32 %v16004_v26, %v5721_v0 }
 0x4bb   :  { %v10455_v63 = vpop.f32.mrf.mxu1  ;;  %v16035_v16 = vpop.xlane.xlu0 %6432 }
 0x4bc   :  { %10776 = vpow2.f32 %v9160_v32  ;;  %v9159_v21 = vmul.f32 -1.442695, %v5722_v4  ;;  %v5737_v10 = vadd.f32 %v10455_v63, %v16004_v26  ;;  %v16038_v60 = vpop.xlane.xlu1 %6430 }
 0x4bd   :  { %v10765_v50 = vpop.eup %10764  ;;  %v5731_v46 = vpop.f32.mrf.mxu1 }
 0x4be   :  { %v6203_v22 = vadd.f32 1.0, %v10765_v50  ;;  %10778 = vpow2.f32 %v9159_v21  ;;  %v9162_v36 = vmul.f32 -1.442695, %v5737_v10  ;;  %v5732_v31 = vadd.f32 %v16004_v26, %v5731_v46 }
 0x4bf   :  { %v10767_v41 = vpop.eup %10766  ;;  %v10458_v59 = vpop.f32.mrf.mxu1 }
 0x4c0   :  { %10780 = vrcp.f32 %v6203_v22  ;;  %v6202_v24 = vadd.f32 1.0, %v10767_v41  ;;  %v9161_v47 = vmul.f32 -1.442695, %v5732_v31  ;;  %v5747_v54 = vadd.f32 %v10458_v59, %v16004_v26 }
 0x4c1   :  { %v10769_v45 = vpop.eup %10768  ;;  %10782 = vpow2.f32 %v9162_v36  ;;  %v5741_v13 = vpop.f32.mrf.mxu1 }
 0x4c2   :  { %10784 = vrcp.f32 %v6202_v24  ;;  %v6205_v29 = vadd.f32 1.0, %v10769_v45  ;;  %v9164_v61 = vmul.f32 -1.442695, %v5747_v54  ;;  %v5742_v20 = vadd.f32 %v16004_v26, %v5741_v13  ;;  %v16042_v36 = vpop.xlane.xlu0 %6436  ;;  %v16045_v54 = vpop.xlane.xlu1 %6434 }
 0x4c3   :  { %v10771_v5 = vpop.eup %10770  ;;  %10786 = vpow2.f32 %v9161_v47  ;;  %v10461_v55 = vpop.f32.mrf.mxu1 }
 0x4c4   :  { %10788 = vrcp.f32 %v6205_v29  ;;  %v6204_v34 = vadd.f32 1.0, %v10771_v5  ;;  %v9163_v1 = vmul.f32 -1.442695, %v5742_v20  ;;  %v5757_v38 = vadd.f32 %v10461_v55, %v16004_v26 }
 0x4c5   :  { %v10773_v19 = vpop.eup %10772  ;;  %10790 = vpow2.f32 %v9164_v61  ;;  %v5751_v56 = vpop.f32.mrf.mxu1 }
 0x4c6   :  { %10792 = vrcp.f32 %v6204_v34  ;;  %v6207_v37 = vadd.f32 1.0, %v10773_v19  ;;  %v9166_v14 = vmul.f32 -1.442695, %v5757_v38  ;;  %v5752_v33 = vadd.f32 %v16004_v26, %v5751_v56 }
 0x4c7   :  { %v10775_v35 = vpop.eup %10774  ;;  %10794 = vpow2.f32 %v9163_v1  ;;  %v10464_v0 = vpop.f32.mrf.mxu1 }
 0x4c8   :  { %10796 = vrcp.f32 %v6207_v37  ;;  %v6206_v32 = vadd.f32 1.0, %v10775_v35  ;;  %v9165_v4 = vmul.f32 -1.442695, %v5752_v33  ;;  %v5767_v63 = vadd.f32 %v10464_v0, %v16004_v26  ;;  %v16050_v37 = vpop.xlane.xlu0 %6440 }
 0x4c9   :  { %v10777_v21 = vpop.eup %10776  ;;  %10798 = vpow2.f32 %v9166_v14  ;;  %v5761_v10 = vpop.f32.mrf.mxu1 }
 0x4ca   :  { %10800 = vrcp.f32 %v6206_v32  ;;  %v6209_v50 = vadd.f32 1.0, %v10777_v21  ;;  %v9168_v46 = vmul.f32 -1.442695, %v5767_v63  ;;  %v5762_v22 = vadd.f32 %v16004_v26, %v5761_v10  ;;  %v16056_v21 = vpop.xlane.xlu1 %6438 }
 0x4cb   :  { %v10779_v31 = vpop.eup %10778  ;;  %10802 = vpow2.f32 %v9165_v4  ;;  %v10467_v41 = vpop.f32.mrf.mxu1 }
 0x4cc   :  { %10804 = vrcp.f32 %v6209_v50  ;;  %v6208_v59 = vadd.f32 1.0, %v10779_v31  ;;  %v9167_v24 = vmul.f32 -1.442695, %v5762_v22  ;;  %v5777_v47 = vadd.f32 %v10467_v41, %v16004_v26 }
 0x4cd   :  { %v10781_v45 = vpop.eup %10780  ;;  %10806 = vpow2.f32 %v9168_v46  ;;  %v5771_v13 = vpop.f32.mrf.mxu1 }
 0x4ce   :  { %v10783_v29 = vpop.eup %10782  ;;  %10808 = vrcp.f32 %v6208_v59  ;;  %v9170_v61 = vmul.f32 -1.442695, %v5777_v47  ;;  %v5772_v20 = vadd.f32 %v16004_v26, %v5771_v13  ;;  %v6523_v34 = vmul.f32 %v10781_v45, %v15985_v11 }
 0x4cf   :  { %v10785_v5 = vpop.eup %10784  ;;  %v6211_v55 = vadd.f32 1.0, %v10783_v29  ;;  %10810 = vpow2.f32 %v9167_v24  ;;  %v10470_v1 = vpop.f32.mrf.mxu1 }
 0x4d0   :  { %v10787_v38 = vpop.eup %10786  ;;  %v6522_v19 = vmul.f32 %v10785_v5, %v15981_v25  ;;  %10812 = vpow2.f32 %v9170_v61  ;;  %v9169_v56 = vmul.f32 -1.442695, %v5772_v20  ;;  %v5787_v35 = vadd.f32 %v10470_v1, %v16004_v26  ;;  %v16064_v5 = vpop.xlane.xlu0 %6444 }
 0x4d1   :  { %v10789_v14 = vpop.eup %10788  ;;  %10814 = vrcp.f32 %v6211_v55  ;;  %v6210_v33 = vadd.f32 1.0, %v10787_v38  ;;  %v5781_v0 = vpop.f32.mrf.mxu1  ;;  %v6587_v50 = vmul.f32 %v15680_v28, %v6523_v34 }
 0x4d2   :  { %v10791_v32 = vpop.eup %10790  ;;  %v6586_v4 = vmul.f32 %v15663_v58, %v6522_v19  ;;  %10816 = vpow2.f32 %v9169_v56  ;;  %v5782_v11 = vadd.f32 %v16004_v26, %v5781_v0  ;;  %v6525_v63 = vmul.f32 %v10789_v14, %v15987_v27 }
 0x4d3   :  { %v10793_v25 = vpop.eup %10792  ;;  %10818 = vrcp.f32 %v6210_v33  ;;  %v6213_v10 = vadd.f32 1.0, %v10791_v32  ;;  %v9172_v46 = vmul.f32 -1.442695, %v5787_v35  ;;  %v10473_v22 = vpop.f32.mrf.mxu1 }
 0x4d4   :  { %v10795_v31 = vpop.eup %10794  ;;  %v6524_v41 = vmul.f32 %v10793_v25, %v15983_v30  ;;  %v9171_v59 = vmul.f32 -1.442695, %v5782_v11  ;;  %v5797_v58 = vadd.f32 %v10473_v22, %v16004_v26  ;;  %v6589_v27 = vmul.f32 %v15689_v9, %v6525_v63 }
 0x4d5   :  { %v10797_v24 = vpop.eup %10796  ;;  %10820 = vrcp.f32 %v6213_v10  ;;  %v6212_v47 = vadd.f32 1.0, %v10795_v31  ;;  %v5791_v45 = vpop.f32.mrf.mxu1  ;;  %v6650_v13 = vpack.c.bf16 %v6587_v50, %v6586_v4 }
 0x4d6   :  { %v10799_v29 = vpop.eup %10798  ;;  %v6588_v61 = vmul.f32 %v15673_v8, %v6524_v41  ;;  %10822 = vpow2.f32 %v9172_v46  ;;  %v9174_v28 = vmul.f32 -1.442695, %v5797_v58  ;;  %v5792_v20 = vadd.f32 %v16004_v26, %v5791_v45  ;;  %v16068_v8 = vpop.xlane.xlu1 %6442 }
 0x4d7   :  { %v10801_v30 = vpop.eup %10800  ;;  %10824 = vrcp.f32 %v6212_v47  ;;  %v6215_v55 = vadd.f32 1.0, %v10799_v29  ;;  %v6527_v34 = vmul.f32 %v10797_v24, %v15991_v48  ;;  %10553 = vmatprep.mubr.bf16.mxu0 %v6650_v13  ;;  %v10476_v1 = vpop.f32.mrf.mxu1 }
 0x4d8   :  { %v10803_v38 = vpop.eup %10802  ;;  %10826 = vpow2.f32 %v9171_v59  ;;  %v6651_v9 = vpack.c.bf16 %v6589_v27, %v6588_v61  ;;  %v9173_v19 = vmul.f32 -1.442695, %v5792_v20  ;;  %v6526_v56 = vmul.f32 %v10801_v30, %v15989_v62 }
 0x4d9   :  { %v10805_v14 = vpop.eup %10804  ;;  %10828 = vrcp.f32 %v6215_v55  ;;  %v6214_v33 = vadd.f32 1.0, %v10803_v38  ;;  %v5807_v35 = vadd.f32 %v10476_v1, %v16004_v26  ;;  %v5801_v0 = vpop.f32.mrf.mxu1  ;;  %v6591_v25 = vmul.f32 %v15705_v53, %v6527_v34 }
 0x4da   :  { %v10807_v32 = vpop.eup %10806  ;;  %10830 = vpow2.f32 %v9174_v28  ;;  %v6590_v48 = vmul.f32 %v15696_v7, %v6526_v56  ;;  %v5802_v4 = vadd.f32 %v16004_v26, %v5801_v0  ;;  %v6529_v11 = vmul.f32 %v10805_v14, %v15993_v12  ;;  %10554 = vmatmul.mubr.bf16.vlgmr.msra.gmra.mxu0 %v6651_v9  ;;  %v16077_v7 = vpop.xlane.xlu0 %6448 }
 0x4db   :  { %v10809_v63 = vpop.eup %10808  ;;  %10832 = vrcp.f32 %v6214_v33  ;;  %v6217_v62 = vadd.f32 1.0, %v10807_v32  ;;  %v9176_v10 = vmul.f32 -1.442695, %v5807_v35  ;;  %v10479_v50 = vpop.f32.mrf.mxu1 }
 0x4dc   :  { %v10811_v46 = vpop.eup %10810  ;;  %10834 = vpow2.f32 %v9173_v19  ;;  %v9175_v22 = vmul.f32 -1.442695, %v5802_v4  ;;  %v6593_v31 = vmul.f32 %v15721_v18, %v6529_v11  ;;  %v6528_v41 = vmul.f32 %v10809_v63, %v15995_v23  ;;  %v16082_v29 = vpop.xlane.xlu1 %6446 }
 0x4dd   :  { %v10813_v59 = vpop.eup %10812  ;;  %10836 = vrcp.f32 %v6217_v62  ;;  %v6216_v12 = vadd.f32 1.0, %v10811_v46  ;;  %v5817_v58 = vadd.f32 %v10479_v50, %v16004_v26  ;;  %v5811_v24 = vpop.f32.mrf.mxu1  ;;  %v6652_v47 = vpack.c.bf16 %v6591_v25, %v6590_v48 }
 0x4de   :  { %v10815_v27 = vpop.eup %10814  ;;  %v6219_v53 = vadd.f32 1.0, %v10813_v59  ;;  %10838 = vpow2.f32 %v9176_v10  ;;  %v6592_v45 = vmul.f32 %v15712_v6, %v6528_v41  ;;  %v5812_v13 = vadd.f32 %v16004_v26, %v5811_v24  ;;  %v11156_v41 = vld [vmem:[%s18043_s0 + $0x50] sm:$0xff] }
 0x4df   :  { %v10817_v18 = vpop.eup %10816  ;;  %10840 = vrcp.f32 %v6216_v12  ;;  %v9178_v23 = vmul.f32 -1.442695, %v5817_v58  ;;  %v6531_v61 = vmul.f32 %v10815_v27, %v15997_v2  ;;  %10557 = vmatprep.mubr.bf16.mxu0 %v6652_v47  ;;  %v10482_v28 = vpop.f32.mrf.mxu1 }
 0x4e0   :  { %v10819_v20 = vpop.eup %10818  ;;  %10842 = vrcp.f32 %v6219_v53  ;;  %v6218_v30 = vadd.f32 1.0, %v10817_v18  ;;  %v6653_v55 = vpack.c.bf16 %v6593_v31, %v6592_v45  ;;  %v9177_v34 = vmul.f32 -1.442695, %v5812_v13  ;;  %v16089_v2 = vpop.xlane.xlu0 %6452 }
 0x4e1   :  { %10844 = vpow2.f32 %v9175_v22  ;;  %v6530_v1 = vmul.f32 %v10819_v20, %v15999_v39  ;;  %v5827_v6 = vadd.f32 %v10482_v28, %v16004_v26  ;;  %v5821_v38 = vpop.f32.mrf.mxu1  ;;  %v6595_v19 = vmul.f32 %v15737_v3, %v6531_v61  ;;  %v16094_v3 = vpop.xlane.xlu1 %6450 }
 0x4e2   :  { %v10821_v9 = vpop.eup %10820  ;;  %10846 = vrcp.f32 %v6218_v30  ;;  %v5822_v56 = vadd.f32 %v16004_v26, %v5821_v38  ;;  %10558 = vmatmul.mubr.bf16.gmra.mxu0 %v6653_v55  ;;  %v11157_v55 = vld [vmem:[%s18043_s0 + $0x68] sm:$0xff] }
 0x4e3   :  { %v10823_v14 = vpop.eup %10822  ;;  %10848 = vpow2.f32 %v9178_v23  ;;  %v6594_v33 = vmul.f32 %v15728_v51, %v6530_v1  ;;  %v9180_v35 = vmul.f32 -1.442695, %v5827_v6  ;;  %v6533_v0 = vmul.f32 %v10821_v9, %v16007_v15  ;;  %v10485_v39 = vpop.f32.mrf.mxu1 }
 0x4e4   :  { %v10825_v32 = vpop.eup %10824  ;;  %v6221_v48 = vadd.f32 1.0, %v10823_v14  ;;  %10850 = vpow2.f32 %v9177_v34  ;;  %v9179_v4 = vmul.f32 -1.442695, %v5822_v56  ;;  %v5837_v11 = vadd.f32 %v10485_v39, %v16004_v26  ;;  %v16104_v53 = vpop.xlane.xlu0 %6456 }
 0x4e5   :  { %v10827_v63 = vpop.eup %10826  ;;  %10852 = vpow2.f32 %v9180_v35  ;;  %v6532_v62 = vmul.f32 %v10825_v32, %v16010_v52  ;;  %v5831_v25 = vpop.f32.mrf.mxu1  ;;  %v6654_v10 = vpack.c.bf16 %v6595_v19, %v6594_v33  ;;  %v6597_v31 = vmul.f32 %v15750_v40, %v6533_v0 }
 0x4e6   :  { %v10829_v50 = vpop.eup %10828  ;;  %10854 = vrcp.f32 %v6221_v48  ;;  %v6220_v51 = vadd.f32 1.0, %v10827_v63  ;;  %v9182_v46 = vmul.f32 -1.442695, %v5837_v11  ;;  %v5832_v15 = vadd.f32 %v16004_v26, %v5831_v25  ;;  %v16108_v20 = vpop.xlane.xlu1 %6454 }
 0x4e7   :  { %v10831_v22 = vpop.eup %10830  ;;  %10856 = vpow2.f32 %v9179_v4  ;;  %v6596_v59 = vmul.f32 %v11156_v41, %v6532_v62  ;;  %v6535_v12 = vmul.f32 %v10829_v50, %v16014_v44  ;;  %10561 = vmatprep.mubr.bf16.mxu0 %v6654_v10  ;;  %v10488_v52 = vpop.f32.mrf.mxu1 }
 0x4e8   :  { %v10833_v58 = vpop.eup %10832  ;;  %10858 = vrcp.f32 %v6220_v51  ;;  %v6223_v24 = vadd.f32 1.0, %v10831_v22  ;;  %v9181_v47 = vmul.f32 -1.442695, %v5832_v15  ;;  %v5847_v27 = vadd.f32 %v10488_v52, %v16004_v26  ;;  %v16123_v63 = vpop.xlane.xlu0 %6460 }
 0x4e9   :  { %v10835_v45 = vpop.eup %10834  ;;  %v6655_v13 = vpack.c.bf16 %v6597_v31, %v6596_v59  ;;  %10860 = vpow2.f32 %v9182_v46  ;;  %v6534_v40 = vmul.f32 %v10833_v58, %v16017_v57  ;;  %v5841_v18 = vpop.f32.mrf.mxu1  ;;  %v6599_v34 = vmul.f32 %v11157_v55, %v6535_v12  ;;  %v11158_v57 = vld [vmem:[%s18043_s0 + $0x60] sm:$0xff] }
 0x4ea   :  { %v10837_v23 = vpop.eup %10836  ;;  %10862 = vrcp.f32 %v6223_v24  ;;  %v6222_v61 = vadd.f32 1.0, %v10835_v45  ;;  %v9184_v44 = vmul.f32 -1.442695, %v5847_v27  ;;  %v5842_v28 = vadd.f32 %v16004_v26, %v5841_v18  ;;  %v16130_v31 = vpop.xlane.xlu1 %6458 }
 0x4eb   :  { %v10839_v30 = vpop.eup %10838  ;;  %10864 = vpow2.f32 %v9181_v47  ;;  %v6598_v1 = vmul.f32 %v11158_v57, %v6534_v40  ;;  %v6537_v6 = vmul.f32 %v10837_v23, %v16021_v43  ;;  %10562 = vmatmul.mubr.bf16.gmra.mxu0 %v6655_v13  ;;  %v10491_v38 = vpop.f32.mrf.mxu1  ;;  %v11159_v43 = vld [vmem:[%s18043_s0 + $0x78] sm:$0xff]  ;;  %v11162_v40 = vld [vmem:[%s18043_s0 + $0x88] sm:$0xff] }
 0x4ec   :  { %v10841_v9 = vpop.eup %10840  ;;  %10866 = vrcp.f32 %v6222_v61  ;;  %v6225_v19 = vadd.f32 1.0, %v10839_v30  ;;  %v9183_v56 = vmul.f32 -1.442695, %v5842_v28  ;;  %v5857_v14 = vadd.f32 %v10491_v38, %v16004_v26 }
 0x4ed   :  { %v10843_v33 = vpop.eup %10842  ;;  %10868 = vpow2.f32 %v9184_v44  ;;  %v6536_v35 = vmul.f32 %v10841_v9, %v16024_v49  ;;  %v5851_v0 = vpop.f32.mrf.mxu1  ;;  %v6656_v39 = vpack.c.bf16 %v6599_v34, %v6598_v1  ;;  %v6601_v48 = vmul.f32 %v11159_v43, %v6537_v6  ;;  %v11160_v49 = vld [vmem:[%s18043_s0 + $0x70] sm:$0xff] }
 0x4ee   :  { %v10845_v32 = vpop.eup %10844  ;;  %10870 = vrcp.f32 %v6225_v19  ;;  %v9186_v4 = vmul.f32 -1.442695, %v5857_v14  ;;  %v5852_v11 = vadd.f32 %v16004_v26, %v5851_v0  ;;  %v6539_v50 = vmul.f32 %v10843_v33, %v16028_v42  ;;  %v11161_v42 = vld [vmem:[%s18043_s0 + $0x80] sm:$0xff]  ;;  %v16142_v34 = vpop.xlane.xlu0 %6464 }
 0x4ef   :  { %v10847_v62 = vpop.eup %10846  ;;  %v6224_v25 = vadd.f32 1.0, %v10845_v32  ;;  %10872 = vpow2.f32 %v9183_v56  ;;  %v6600_v10 = vmul.f32 %v11160_v49, %v6536_v35  ;;  %10565 = vmatprep.mubr.bf16.mxu0 %v6656_v39  ;;  %v10494_v51 = vpop.f32.mrf.mxu1  ;;  %v11163_v32 = vld [vmem:[%s18043_s0 + $0x98] sm:$0xff] }
 0x4f0   :  { %v10849_v46 = vpop.eup %10848  ;;  %10874 = vpow2.f32 %v9186_v4  ;;  %v9185_v15 = vmul.f32 -1.442695, %v5852_v11  ;;  %v6538_v22 = vmul.f32 %v10847_v62, %v16031_v17  ;;  %v5867_v52 = vadd.f32 %v10494_v51, %v16004_v26  ;;  %v16145_v14 = vpop.xlane.xlu1 %6462 }
 0x4f1   :  { %v10851_v41 = vpop.eup %10850  ;;  %10876 = vrcp.f32 %v6224_v25  ;;  %v6227_v59 = vadd.f32 1.0, %v10849_v46  ;;  %v6657_v12 = vpack.c.bf16 %v6601_v48, %v6600_v10  ;;  %v5861_v58 = vpop.f32.mrf.mxu1  ;;  %v6603_v18 = vmul.f32 %v11162_v40, %v6539_v50 }
 0x4f2   :  { %v10853_v24 = vpop.eup %10852  ;;  %v6226_v47 = vadd.f32 1.0, %v10851_v41  ;;  %10878 = vpow2.f32 %v9185_v15  ;;  %v6602_v27 = vmul.f32 %v11161_v42, %v6538_v22  ;;  %v5862_v45 = vadd.f32 %v16004_v26, %v5861_v58  ;;  %v16157_v15 = vpop.xlane.xlu0 %6468 }
 0x4f3   :  { %v10855_v17 = vpop.eup %10854  ;;  %10880 = vrcp.f32 %v6227_v59  ;;  %v6229_v13 = vadd.f32 1.0, %v10853_v24  ;;  %v9188_v23 = vmul.f32 -1.442695, %v5867_v52  ;;  %10566 = vmatmul.mubr.bf16.gmra.mxu0 %v6657_v12  ;;  %v10497_v61 = vpop.f32.mrf.mxu1 }
 0x4f4   :  { %v10857_v44 = vpop.eup %10856  ;;  %10882 = vrcp.f32 %v6226_v47  ;;  %v9187_v28 = vmul.f32 -1.442695, %v5862_v45  ;;  %v6541_v30 = vmul.f32 %v10855_v17, %v16035_v16  ;;  %v5877_v55 = vadd.f32 %v10497_v61, %v16004_v26  ;;  %v16165_v42 = vpop.xlane.xlu1 %6466  ;;  %v11166_v17 = vld [vmem:[%s18043_s0 + $0xa8] sm:$0xff] }
 0x4f5   :  { %v10859_v57 = vpop.eup %10858  ;;  %10884 = vrcp.f32 %v6229_v13  ;;  %v6228_v1 = vadd.f32 1.0, %v10857_v44  ;;  %v5871_v6 = vpop.f32.mrf.mxu1  ;;  %v6658_v38 = vpack.c.bf16 %v6603_v18, %v6602_v27 }
 0x4f6   :  { %v10861_v9 = vpop.eup %10860  ;;  %10886 = vpow2.f32 %v9188_v23  ;;  %v6540_v19 = vmul.f32 %v10859_v57, %v16038_v60  ;;  %v9190_v56 = vmul.f32 -1.442695, %v5877_v55  ;;  %v5872_v16 = vadd.f32 %v16004_v26, %v5871_v6  ;;  %v11164_v60 = vld [vmem:[%s18043_s0 + $0x90] sm:$0xff] }
 0x4f7   :  { %v10863_v33 = vpop.eup %10862  ;;  %10888 = vrcp.f32 %v6228_v1  ;;  %v6231_v35 = vadd.f32 1.0, %v10861_v9  ;;  %10569 = vmatprep.mubr.bf16.mxu0 %v6658_v38  ;;  %v10500_v0 = vpop.f32.mrf.mxu1  ;;  %v6605_v43 = vmul.f32 %v11163_v32, %v6541_v30  ;;  %v11167_v38 = vld [vmem:[%s18043_s0 + $0xb8] sm:$0xff] }
 0x4f8   :  { %v10865_v39 = vpop.eup %10864  ;;  %10890 = vpow2.f32 %v9187_v28  ;;  %v6604_v48 = vmul.f32 %v11164_v60, %v6540_v19  ;;  %v5887_v4 = vadd.f32 %v10500_v0, %v16004_v26  ;;  %v9189_v25 = vmul.f32 -1.442695, %v5872_v16 }
 0x4f9   :  { %v10867_v11 = vpop.eup %10866  ;;  %10892 = vrcp.f32 %v6231_v35  ;;  %v6230_v62 = vadd.f32 1.0, %v10865_v39  ;;  %v6543_v49 = vmul.f32 %v10863_v33, %v16042_v36  ;;  %v5881_v10 = vpop.f32.mrf.mxu1  ;;  %v11165_v36 = vld [vmem:[%s18043_s0 + $0xa0] sm:$0xff] }
 0x4fa   :  { %v10869_v50 = vpop.eup %10868  ;;  %v6659_v51 = vpack.c.bf16 %v6605_v43, %v6604_v48  ;;  %10894 = vpow2.f32 %v9190_v56  ;;  %v6542_v46 = vmul.f32 %v10867_v11, %v16045_v54  ;;  %v9192_v59 = vmul.f32 -1.442695, %v5887_v4  ;;  %v16176_v56 = vpop.xlane.xlu0 %6472 }
 0x4fb   :  { %v10871_v22 = vpop.eup %10870  ;;  %10896 = vrcp.f32 %v6230_v62  ;;  %v6233_v41 = vadd.f32 1.0, %v10869_v50  ;;  %v5882_v12 = vadd.f32 %v16004_v26, %v5881_v10  ;;  %v10503_v52 = vpop.f32.mrf.mxu1  ;;  %v6607_v13 = vmul.f32 %v11166_v17, %v6543_v49  ;;  %v11172_v17 = vld [vmem:[%s18043_s0 + $0xd0] sm:$0xff] }
 0x4fc   :  { %v10873_v58 = vpop.eup %10872  ;;  %10898 = vpow2.f32 %v9189_v25  ;;  %v6606_v24 = vmul.f32 %v11165_v36, %v6542_v46  ;;  %v6545_v47 = vmul.f32 %v10871_v22, %v16050_v37  ;;  %10570 = vmatmul.mubr.bf16.gmra.mxu0 %v6659_v51  ;;  %v5897_v54 = vadd.f32 %v10503_v52, %v16004_v26  ;;  %v16184_v4 = vpop.xlane.xlu1 %6470  ;;  %v11169_v25 = vld [vmem:[%s18043_s0 + $0xc8] sm:$0xff] }
 0x4fd   :  { %v10875_v27 = vpop.eup %10874  ;;  %10900 = vrcp.f32 %v6233_v41  ;;  %v6232_v45 = vadd.f32 1.0, %v10873_v58  ;;  %v9191_v40 = vmul.f32 -1.442695, %v5882_v12  ;;  %v5891_v18 = vpop.f32.mrf.mxu1 }
 0x4fe   :  { %v10877_v23 = vpop.eup %10876  ;;  %v6235_v61 = vadd.f32 1.0, %v10875_v27  ;;  %10902 = vpow2.f32 %v9192_v59  ;;  %v9194_v44 = vmul.f32 -1.442695, %v5897_v54  ;;  %v5892_v30 = vadd.f32 %v16004_v26, %v5891_v18  ;;  %v11171_v59 = vld [vmem:[%s18043_s0 + $0xd8] sm:$0xff]  ;;  %v16199_v27 = vpop.xlane.xlu0 %6476 }
 0x4ff   :  { %v10879_v37 = vpop.eup %10878  ;;  %10904 = vrcp.f32 %v6232_v45  ;;  %v6544_v28 = vmul.f32 %v10877_v23, %v16056_v21  ;;  %v6660_v55 = vpack.c.bf16 %v6607_v13, %v6606_v24  ;;  %v10506_v57 = vpop.f32.mrf.mxu1  ;;  %v6609_v9 = vmul.f32 %v11167_v38, %v6545_v47  ;;  %v11168_v21 = vld [vmem:[%s18043_s0 + $0xb0] sm:$0xff] }
 0x500   :  { %v10881_v1 = vpop.eup %10880  ;;  %10906 = vrcp.f32 %v6235_v61  ;;  %v6234_v6 = vadd.f32 1.0, %v10879_v37  ;;  %v5907_v19 = vadd.f32 %v10506_v57, %v16004_v26  ;;  %v9193_v16 = vmul.f32 -1.442695, %v5892_v30 }
 0x501   :  { %v10883_v33 = vpop.eup %10882  ;;  %10908 = vpow2.f32 %v9191_v40  ;;  %v6608_v35 = vmul.f32 %v11168_v21, %v6544_v28  ;;  %v6547_v0 = vmul.f32 %v10881_v1, %v16064_v5  ;;  %10573 = vmatprep.mubr.bf16.mxu0 %v6660_v55  ;;  %v5901_v39 = vpop.f32.mrf.mxu1 }
 0x502   :  { %v10885_v32 = vpop.eup %10884  ;;  %10910 = vrcp.f32 %v6234_v6  ;;  %v6546_v43 = vmul.f32 %v10883_v33, %v16068_v8  ;;  %v9196_v60 = vmul.f32 -1.442695, %v5907_v19  ;;  %v5902_v48 = vadd.f32 %v16004_v26, %v5901_v39  ;;  %v11170_v8 = vld [vmem:[%s18043_s0 + $0xc0] sm:$0xff]  ;;  %v16206_v28 = vpop.xlane.xlu1 %6474  ;;  %v11173_v33 = vld [vmem:[%s18043_s0 + $0xe8] sm:$0xff] }
 0x503   :  { %v10887_v11 = vpop.eup %10886  ;;  %v6661_v62 = vpack.c.bf16 %v6609_v9, %v6608_v35  ;;  %10912 = vpow2.f32 %v9194_v44  ;;  %v6611_v49 = vmul.f32 %v11169_v25, %v6547_v0  ;;  %v6549_v5 = vmul.f32 %v10885_v32, %v16077_v7  ;;  %v10509_v10 = vpop.f32.mrf.mxu1  ;;  %v11174_v35 = vld [vmem:[%s18043_s0 + $0xe0] sm:$0xff] }
 0x504   :  { %v10889_v50 = vpop.eup %10888  ;;  %v6237_v51 = vadd.f32 1.0, %v10887_v11  ;;  %10914 = vpow2.f32 %v9193_v16  ;;  %v6610_v46 = vmul.f32 %v11170_v8, %v6546_v43  ;;  %v9195_v22 = vmul.f32 -1.442695, %v5902_v48  ;;  %v16218_v48 = vpop.xlane.xlu0 %6480 }
 0x505   :  { %v10891_v41 = vpop.eup %10890  ;;  %10916 = vpow2.f32 %v9196_v60  ;;  %v6613_v12 = vmul.f32 %v11171_v59, %v6549_v5  ;;  %10574 = vmatmul.mubr.bf16.gmra.mxu0 %v6661_v62  ;;  %v6548_v7 = vmul.f32 %v10889_v50, %v16082_v29  ;;  %v5917_v52 = vadd.f32 %v10509_v10, %v16004_v26  ;;  %v5911_v58 = vpop.f32.mrf.mxu1 }
 0x506   :  { %v10893_v36 = vpop.eup %10892  ;;  %10918 = vrcp.f32 %v6237_v51  ;;  %v6236_v24 = vadd.f32 1.0, %v10891_v41  ;;  %v5912_v47 = vadd.f32 %v16004_v26, %v5911_v58  ;;  %v6662_v54 = vpack.c.bf16 %v6611_v49, %v6610_v46  ;;  %v16225_v8 = vpop.xlane.xlu1 %6478 }
 0x507   :  { %v10895_v45 = vpop.eup %10894  ;;  %10920 = vpow2.f32 %v9195_v22  ;;  %v6612_v13 = vmul.f32 %v11172_v17, %v6548_v7  ;;  %v9198_v40 = vmul.f32 -1.442695, %v5917_v52  ;;  %v6551_v29 = vmul.f32 %v10893_v36, %v16089_v2  ;;  %v10512_v18 = vpop.f32.mrf.mxu1 }
 0x508   :  { %v10897_v23 = vpop.eup %10896  ;;  %10922 = vrcp.f32 %v6236_v24  ;;  %v6239_v61 = vadd.f32 1.0, %v10895_v45  ;;  %v9197_v44 = vmul.f32 -1.442695, %v5912_v47  ;;  %10577 = vmatprep.mubr.bf16.mxu0 %v6662_v54  ;;  %v5927_v37 = vadd.f32 %v10512_v18, %v16004_v26  ;;  %v16237_v18 = vpop.xlane.xlu0 %6484 }
 0x509   :  { %v10899_v30 = vpop.eup %10898  ;;  %v6663_v55 = vpack.c.bf16 %v6613_v12, %v6612_v13  ;;  %10924 = vpow2.f32 %v9198_v40  ;;  %v6550_v57 = vmul.f32 %v10897_v23, %v16094_v3  ;;  %v5921_v1 = vpop.f32.mrf.mxu1  ;;  %v6615_v21 = vmul.f32 %v11173_v33, %v6551_v29 }
 0x50a   :  { %v10901_v6 = vpop.eup %10900  ;;  %10926 = vrcp.f32 %v6239_v61  ;;  %v6238_v38 = vadd.f32 1.0, %v10899_v30  ;;  %v9200_v2 = vmul.f32 -1.442695, %v5927_v37  ;;  %v5922_v9 = vadd.f32 %v16004_v26, %v5921_v1  ;;  %v11178_v61 = vld [vmem:[%s18043_s0 + $0x108] sm:$0xff] }
 0x50b   :  { %v10903_v19 = vpop.eup %10902  ;;  %10928 = vpow2.f32 %v9197_v44  ;;  %v6614_v16 = vmul.f32 %v11174_v35, %v6550_v57  ;;  %v6553_v3 = vmul.f32 %v10901_v6, %v16104_v53  ;;  %v10515_v0 = vpop.f32.mrf.mxu1  ;;  %v11175_v53 = vld [vmem:[%s18043_s0 + $0xf8] sm:$0xff] }
 0x50c   :  { %v10905_v39 = vpop.eup %10904  ;;  %10930 = vrcp.f32 %v6238_v38  ;;  %v6241_v32 = vadd.f32 1.0, %v10903_v19  ;;  %v9199_v43 = vmul.f32 -1.442695, %v5922_v9  ;;  %v5937_v60 = vadd.f32 %v10515_v0, %v16004_v26  ;;  %v16244_v38 = vpop.xlane.xlu1 %6482 }
 0x50d   :  { %v10907_v11 = vpop.eup %10906  ;;  %10932 = vpow2.f32 %v9200_v2  ;;  %10578 = vmatmul.mubr.bf16.gmra.mxu0 %v6663_v55  ;;  %v6552_v62 = vmul.f32 %v10905_v39, %v16108_v20  ;;  %v5931_v25 = vpop.f32.mrf.mxu1  ;;  %v6664_v49 = vpack.c.bf16 %v6615_v21, %v6614_v16  ;;  %v6617_v10 = vmul.f32 %v11175_v53, %v6553_v3  ;;  %v11176_v20 = vld [vmem:[%s18043_s0 + $0xf0] sm:$0xff] }
 0x50e   :  { %v10909_v5 = vpop.eup %10908  ;;  %10934 = vrcp.f32 %v6241_v32  ;;  %v9202_v50 = vmul.f32 -1.442695, %v5937_v60  ;;  %v5932_v51 = vadd.f32 %v16004_v26, %v5931_v25  ;;  %v6555_v59 = vmul.f32 %v10907_v11, %v16123_v63  ;;  %v11177_v63 = vld [vmem:[%s18043_s0 + $0x100] sm:$0xff]  ;;  %v11181_v60 = vld [vmem:[%s18043_s0 + $0x110] sm:$0xff]  ;;  %v16260_v25 = vpop.xlane.xlu0 %6488 }
 0x50f   :  { %v10911_v46 = vpop.eup %10910  ;;  %v6240_v22 = vadd.f32 1.0, %v10909_v5  ;;  %10936 = vpow2.f32 %v9199_v43  ;;  %v6616_v41 = vmul.f32 %v11176_v20, %v6552_v62  ;;  %10581 = vmatprep.mubr.bf16.mxu0 %v6664_v49  ;;  %v10518_v12 = vpop.f32.mrf.mxu1  ;;  %v11180_v43 = vld [vmem:[%s18043_s0 + $0x118] sm:$0xff] }
 0x510   :  { %v10913_v7 = vpop.eup %10912  ;;  %10938 = vpow2.f32 %v9202_v50  ;;  %v9201_v52 = vmul.f32 -1.442695, %v5932_v51  ;;  %v6554_v58 = vmul.f32 %v10911_v46, %v16130_v31  ;;  %v5947_v54 = vadd.f32 %v10518_v12, %v16004_v26  ;;  %v16264_v20 = vpop.xlane.xlu1 %6486 }
 0x511   :  { %v10915_v36 = vpop.eup %10914  ;;  %10940 = vrcp.f32 %v6240_v22  ;;  %v6243_v24 = vadd.f32 1.0, %v10913_v7  ;;  %v6665_v47 = vpack.c.bf16 %v6617_v10, %v6616_v41  ;;  %v5941_v45 = vpop.f32.mrf.mxu1  ;;  %v6619_v44 = vmul.f32 %v11178_v61, %v6555_v59 }
 0x512   :  { %v10917_v17 = vpop.eup %10916  ;;  %v6242_v13 = vadd.f32 1.0, %v10915_v36  ;;  %10942 = vpow2.f32 %v9201_v52  ;;  %v6618_v40 = vmul.f32 %v11177_v63, %v6554_v58  ;;  %v5942_v29 = vadd.f32 %v16004_v26, %v5941_v45  ;;  %v11183_v45 = vld [vmem:[%s18043_s0 + $0x128] sm:$0xff] }
 0x513   :  { %v10919_v31 = vpop.eup %10918  ;;  %10944 = vrcp.f32 %v6243_v24  ;;  %v6245_v23 = vadd.f32 1.0, %v10917_v17  ;;  %v9204_v37 = vmul.f32 -1.442695, %v5947_v54  ;;  %v10521_v30 = vpop.f32.mrf.mxu1 }
 0x514   :  { %v10921_v55 = vpop.eup %10920  ;;  %10946 = vrcp.f32 %v6242_v13  ;;  %v9203_v57 = vmul.f32 -1.442695, %v5942_v29  ;;  %v6557_v1 = vmul.f32 %v10919_v31, %v16142_v34  ;;  %v5957_v6 = vadd.f32 %v10521_v30, %v16004_v26  ;;  %v16250_v26 = vld [vmem:[%s18048_s5] ss:$0 sm:$0xff] }
 0x515   :  { %v10923_v2 = vpop.eup %10922  ;;  %10948 = vrcp.f32 %v6245_v23  ;;  %v6244_v9 = vadd.f32 1.0, %v10921_v55  ;;  %10582 = vmatmul.mubr.bf16.gmra.mxu0 %v6665_v47  ;;  %v5951_v19 = vpop.f32.mrf.mxu1  ;;  %v6666_v33 = vpack.c.bf16 %v6619_v44, %v6618_v40 }
 0x516   :  { %v10925_v21 = vpop.eup %10924  ;;  %10950 = vpow2.f32 %v9204_v37  ;;  %v6556_v35 = vmul.f32 %v10923_v2, %v16145_v14  ;;  %v9206_v16 = vmul.f32 -1.442695, %v5957_v6  ;;  %v5952_v34 = vadd.f32 %v16250_v26, %v5951_v19  ;;  %v16275_v23 = vpop.xlane.xlu0 %6492 }
 0x517   :  { %v10927_v3 = vpop.eup %10926  ;;  %10952 = vrcp.f32 %v6244_v9  ;;  %v6247_v0 = vadd.f32 1.0, %v10925_v21  ;;  %10585 = vmatprep.mubr.bf16.mxu0 %v6666_v33  ;;  %v10524_v39 = vpop.f32.mrf.mxu1  ;;  %v6621_v14 = vmul.f32 %v11180_v43, %v6557_v1  ;;  %v11184_v1 = vld [vmem:[%s18043_s0 + $0x138] sm:$0xff] }
 0x518   :  { %v10929_v32 = vpop.eup %10928  ;;  %10954 = vpow2.f32 %v9203_v57  ;;  %v6620_v11 = vmul.f32 %v11181_v60, %v6556_v35  ;;  %v5967_v62 = vadd.f32 %v16250_v26, %v10524_v39  ;;  %v9205_v53 = vmul.f32 -1.442695, %v5952_v34  ;;  %v16283_v9 = vpop.xlane.xlu1 %6490 }
 0x519   :  { %v10931_v49 = vpop.eup %10930  ;;  %10956 = vrcp.f32 %v6247_v0  ;;  %v6246_v5 = vadd.f32 1.0, %v10929_v32  ;;  %v6559_v10 = vmul.f32 %v10927_v3, %v16157_v15  ;;  %v5961_v50 = vpop.f32.mrf.mxu1  ;;  %v11182_v15 = vld [vmem:[%s18043_s0 + $0x120] sm:$0xff] }
 0x51a   :  { %v10933_v51 = vpop.eup %10932  ;;  %v6667_v46 = vpack.c.bf16 %v6621_v14, %v6620_v11  ;;  %10958 = vpow2.f32 %v9206_v16  ;;  %v6558_v22 = vmul.f32 %v10931_v49, %v16165_v42  ;;  %v9208_v12 = vmul.f32 -1.442695, %v5967_v62  ;;  %v11186_v14 = vld [vmem:[%s18043_s0 + $0x148] sm:$0xff] }
 0x51b   :  { %v10935_v41 = vpop.eup %10934  ;;  %10960 = vrcp.f32 %v6246_v5  ;;  %v6249_v59 = vadd.f32 1.0, %v10933_v51  ;;  %v5962_v7 = vadd.f32 %v16250_v26, %v5961_v50  ;;  %v10527_v52 = vpop.f32.mrf.mxu1  ;;  %v6623_v17 = vmul.f32 %v11183_v45, %v6559_v10  ;;  %v11188_v51 = vld [vmem:[%s18043_s0 + $0x158] sm:$0xff] }
 0x51c   :  { %v10937_v58 = vpop.eup %10936  ;;  %10962 = vpow2.f32 %v9205_v53  ;;  %v6622_v36 = vmul.f32 %v11182_v15, %v6558_v22  ;;  %v6561_v24 = vmul.f32 %v10935_v41, %v16176_v56  ;;  %v5977_v42 = vadd.f32 %v16250_v26, %v10527_v52  ;;  %v16298_v10 = vpop.xlane.xlu0 %6496 }
 0x51d   :  { %v10939_v47 = vpop.eup %10938  ;;  %10964 = vrcp.f32 %v6249_v59  ;;  %v6248_v54 = vadd.f32 1.0, %v10937_v58  ;;  %v9207_v13 = vmul.f32 -1.442695, %v5962_v7  ;;  %10586 = vmatmul.mubr.bf16.gmra.mxu0 %v6667_v46  ;;  %v5971_v63 = vpop.f32.mrf.mxu1 }
 0x51e   :  { %v10941_v40 = vpop.eup %10940  ;;  %v6251_v29 = vadd.f32 1.0, %v10939_v47  ;;  %10966 = vpow2.f32 %v9208_v12  ;;  %v9210_v31 = vmul.f32 -1.442695, %v5977_v42  ;;  %v5972_v44 = vadd.f32 %v16250_v26, %v5971_v63  ;;  %v16306_v58 = vpop.xlane.xlu1 %6494 }
 0x51f   :  { %v10943_v56 = vpop.eup %10942  ;;  %10968 = vrcp.f32 %v6248_v54  ;;  %v6560_v61 = vmul.f32 %v10941_v40, %v16184_v4  ;;  %v6668_v37 = vpack.c.bf16 %v6623_v17, %v6622_v36  ;;  %v10530_v30 = vpop.f32.mrf.mxu1  ;;  %v6625_v6 = vmul.f32 %v11184_v1, %v6561_v24  ;;  %v11185_v4 = vld [vmem:[%s18043_s0 + $0x130] sm:$0xff] }
 0x520   :  { %v10945_v55 = vpop.eup %10944  ;;  %10970 = vrcp.f32 %v6251_v29  ;;  %v6250_v57 = vadd.f32 1.0, %v10943_v56  ;;  %v5987_v2 = vadd.f32 %v16250_v26, %v10530_v30  ;;  %v9209_v21 = vmul.f32 -1.442695, %v5972_v44  ;;  %v11189_v36 = vld [vmem:[%s18043_s0 + $0x150] sm:$0xff] }
 0x521   :  { %v10947_v19 = vpop.eup %10946  ;;  %10972 = vpow2.f32 %v9207_v13  ;;  %v6624_v33 = vmul.f32 %v11185_v4, %v6560_v61  ;;  %v6563_v35 = vmul.f32 %v10945_v55, %v16199_v27  ;;  %10589 = vmatprep.mubr.bf16.mxu0 %v6668_v37  ;;  %v5981_v16 = vpop.f32.mrf.mxu1  ;;  %v11190_v55 = vld [vmem:[%s18043_s0 + $0x168] sm:$0xff] }
 0x522   :  { %v10949_v3 = vpop.eup %10948  ;;  %10974 = vrcp.f32 %v6250_v57  ;;  %v6562_v0 = vmul.f32 %v10947_v19, %v16206_v28  ;;  %v9212_v34 = vmul.f32 -1.442695, %v5987_v2  ;;  %v5982_v39 = vadd.f32 %v16250_v26, %v5981_v16  ;;  %v11187_v28 = vld [vmem:[%s18043_s0 + $0x140] sm:$0xff]  ;;  %v16315_v37 = vpop.xlane.xlu0 %6500 }
 0x523   :  { %v10951_v32 = vpop.eup %10950  ;;  %v6669_v43 = vpack.c.bf16 %v6625_v6, %v6624_v33  ;;  %10976 = vpow2.f32 %v9210_v31  ;;  %v6627_v60 = vmul.f32 %v11186_v14, %v6563_v35  ;;  %v6565_v11 = vmul.f32 %v10949_v3, %v16218_v48  ;;  %v10533_v27 = vpop.f32.mrf.mxu1 }
 0x524   :  { %v10953_v62 = vpop.eup %10952  ;;  %v6253_v49 = vadd.f32 1.0, %v10951_v32  ;;  %10978 = vpow2.f32 %v9209_v21  ;;  %v6626_v5 = vmul.f32 %v11187_v28, %v6562_v0  ;;  %v9211_v53 = vmul.f32 -1.442695, %v5982_v39  ;;  %v6499_v4 = vpop.xlane.xlu1 %6498  ;;  %v11193_v32 = vld [vmem:[%s18043_s0 + $0x170] sm:$0xff]  ;;  %v11194_v28 = vld [vmem:[%s18043_s0 + $0x188] sm:$0xff] }
 0x525   :  { %v10955_v50 = vpop.eup %10954  ;;  %10980 = vpow2.f32 %v9212_v34  ;;  %v6629_v46 = vmul.f32 %v11188_v51, %v6565_v11  ;;  %10590 = vmatmul.mubr.bf16.gmra.mxu0 %v6669_v43  ;;  %v6564_v48 = vmul.f32 %v10953_v62, %v16225_v8  ;;  %v5997_v22 = vadd.f32 %v16250_v26, %v10533_v27  ;;  %v5991_v41 = vpop.f32.mrf.mxu1 }
 0x526   :  { %v10957_v59 = vpop.eup %10956  ;;  %10982 = vrcp.f32 %v6253_v49  ;;  %v6252_v12 = vadd.f32 1.0, %v10955_v50  ;;  %v5992_v7 = vadd.f32 %v16250_v26, %v5991_v41  ;;  %v6670_v52 = vpack.c.bf16 %v6627_v60, %v6626_v5  ;;  %v6505_v60 = vpop.xlane.xlu0 %6504 }
 0x527   :  { %v10959_v15 = vpop.eup %10958  ;;  %10984 = vpow2.f32 %v9211_v53  ;;  %v6628_v24 = vmul.f32 %v11189_v36, %v6564_v48  ;;  %v9214_v42 = vmul.f32 -1.442695, %v5997_v22  ;;  %v6567_v8 = vmul.f32 %v10957_v59, %v16237_v18  ;;  %v10536_v47 = vpop.f32.mrf.mxu1  ;;  %v11195_v53 = vld [vmem:[%s18043_s0 + $0x180] sm:$0xff] }
 0x528   :  { %v10961_v54 = vpop.eup %10960  ;;  %10986 = vrcp.f32 %v6252_v12  ;;  %v6255_v45 = vadd.f32 1.0, %v10959_v15  ;;  %v9213_v17 = vmul.f32 -1.442695, %v5992_v7  ;;  %10593 = vmatprep.mubr.bf16.mxu0 %v6670_v52  ;;  %v6007_v13 = vadd.f32 %v16250_v26, %v10536_v47  ;;  %v6503_v51 = vpop.xlane.xlu1 %6502 }
 0x529   :  { %v10963_v63 = vpop.eup %10962  ;;  %v6671_v40 = vpack.c.bf16 %v6629_v46, %v6628_v24  ;;  %10988 = vpow2.f32 %v9214_v42  ;;  %v6566_v29 = vmul.f32 %v10961_v54, %v16244_v38  ;;  %v6001_v31 = vpop.f32.mrf.mxu1  ;;  %v6631_v57 = vmul.f32 %v11190_v55, %v6567_v8  ;;  %v11191_v38 = vld [vmem:[%s18043_s0 + $0x160] sm:$0xff]  ;;  %v11196_v8 = vld [vmem:[%s18043_s0 + $0x198] sm:$0xff] }
 0x52a   :  { %v10965_v56 = vpop.eup %10964  ;;  %10990 = vrcp.f32 %v6255_v45  ;;  %v6254_v61 = vadd.f32 1.0, %v10963_v63  ;;  %v9216_v44 = vmul.f32 -1.442695, %v6007_v13  ;;  %v6002_v18 = vadd.f32 %v16250_v26, %v6001_v31  ;;  %v6509_v15 = vpop.xlane.xlu0 %6508 }
 0x52b   :  { %v10967_v30 = vpop.eup %10966  ;;  %10992 = vpow2.f32 %v9213_v17  ;;  %v6630_v1 = vmul.f32 %v11191_v38, %v6566_v29  ;;  %v6569_v6 = vmul.f32 %v10965_v56, %v16260_v25  ;;  %v11192_v25 = vld [vmem:[%s18043_s0 + $0x178] sm:$0xff] }
 0x52c   :  { %v10969_v2 = vpop.eup %10968  ;;  %10994 = vrcp.f32 %v6254_v61  ;;  %v6257_v19 = vadd.f32 1.0, %v10967_v30  ;;  %v9215_v26 = vmul.f32 -1.442695, %v6002_v18  ;;  %v6507_v17 = vpop.xlane.xlu1 %6506 }
 0x52d   :  { %v10971_v33 = vpop.eup %10970  ;;  %10996 = vpow2.f32 %v9216_v44  ;;  %10594 = vmatmul.mubr.bf16.gmra.mxu0 %v6671_v40  ;;  %v6568_v21 = vmul.f32 %v10969_v2, %v16264_v20  ;;  %v6672_v35 = vpack.c.bf16 %v6631_v57, %v6630_v1  ;;  %v6633_v39 = vmul.f32 %v11192_v25, %v6569_v6  ;;  %v11198_v44 = vld [vmem:[%s18043_s0 + $0x1a8] sm:$0xff] }
 0x52e   :  { %v10973_v16 = vpop.eup %10972  ;;  %10998 = vrcp.f32 %v6257_v19  ;;  %v6571_v3 = vmul.f32 %v10971_v33, %v16275_v23  ;;  %v6513_v55 = vpop.xlane.xlu0 %6512  ;;  %v11200_v33 = vld [vmem:[%s18043_s0 + $0x1b8] sm:$0xff] }
 0x52f   :  { %v10975_v0 = vpop.eup %10974  ;;  %v6256_v34 = vadd.f32 1.0, %v10973_v16  ;;  %11000 = vpow2.f32 %v9215_v26  ;;  %v6632_v43 = vmul.f32 %v11193_v32, %v6568_v21  ;;  %10597 = vmatprep.mubr.bf16.mxu0 %v6672_v35  ;;  %v11201_v35 = vld [vmem:[%s18043_s0 + $0x1b0] sm:$0xff] }
 0x530   :  { %v10977_v20 = vpop.eup %10976  ;;  %v6570_v14 = vmul.f32 %v10975_v0, %v16283_v9  ;;  %v6635_v5 = vmul.f32 %v11194_v28, %v6571_v3  ;;  %v6511_v2 = vpop.xlane.xlu1 %6510  ;;  %v11204_v28 = vld [vmem:[%s18043_s0 + $0x1d8] sm:$0xff] }
 0x531   :  { %v10979_v11 = vpop.eup %10978  ;;  %11002 = vrcp.f32 %v6256_v34  ;;  %v6259_v23 = vadd.f32 1.0, %v10977_v20  ;;  %v6673_v27 = vpack.c.bf16 %v6633_v39, %v6632_v43  ;;  %v11202_v20 = vld [vmem:[%s18043_s0 + $0x1c8] sm:$0xff] }
 0x532   :  { %v10981_v62 = vpop.eup %10980  ;;  %v6258_v49 = vadd.f32 1.0, %v10979_v11  ;;  %v6634_v50 = vmul.f32 %v11195_v53, %v6570_v14  ;;  %v6517_v25 = vpop.xlane.xlu0 %6516  ;;  %v11205_v53 = vld [vmem:[%s18043_s0 + $0x1d0] sm:$0xff] }
 0x533   :  { %v10983_v46 = vpop.eup %10982  ;;  %11004 = vrcp.f32 %v6259_v23  ;;  %v6261_v9 = vadd.f32 1.0, %v10981_v62 }
 0x534   :  { %v10985_v48 = vpop.eup %10984  ;;  %11006 = vrcp.f32 %v6258_v49  ;;  %v6573_v22 = vmul.f32 %v10983_v46, %v16298_v10  ;;  %v6674_v41 = vpack.c.bf16 %v6635_v5, %v6634_v50  ;;  %v11197_v10 = vld [vmem:[%s18043_s0 + $0x190] sm:$0xff]  ;;  %v6515_v23 = vpop.xlane.xlu1 %6514 }
 0x535   :  { %v10987_v59 = vpop.eup %10986  ;;  %11008 = vrcp.f32 %v6261_v9  ;;  %v6260_v12 = vadd.f32 1.0, %v10985_v48  ;;  %10598 = vmatmul.mubr.bf16.gmra.mxu0 %v6673_v27 }
 0x536   :  { %v10989_v7 = vpop.eup %10988  ;;  %v6572_v52 = vmul.f32 %v10987_v59, %v16306_v58  ;;  %10601 = vmatprep.mubr.bf16.mxu0 %v6674_v41  ;;  %v6637_v47 = vmul.f32 %v11196_v8, %v6573_v22  ;;  %v6521_v9 = vpop.xlane.xlu0 %6520 }
 0x537   :  { %v10991_v36 = vpop.eup %10990  ;;  %11010 = vrcp.f32 %v6260_v12  ;;  %v6263_v24 = vadd.f32 1.0, %v10989_v7  ;;  %v11206_v12 = vld [vmem:[%s18043_s0 + $0x1e8] sm:$0xff] }
 0x538   :  { %v10993_v42 = vpop.eup %10992  ;;  %v6636_v54 = vmul.f32 %v11197_v10, %v6572_v52  ;;  %v6575_v45 = vmul.f32 %v10991_v36, %v16315_v37  ;;  %v11199_v37 = vld [vmem:[%s18043_s0 + $0x1a0] sm:$0xff]  ;;  %v6519_v59 = vpop.xlane.xlu1 %6518 }
 0x539   :  { %v10995_v58 = vpop.eup %10994  ;;  %11012 = vrcp.f32 %v6263_v24  ;;  %v6262_v13 = vadd.f32 1.0, %v10993_v42  ;;  %v11207_v52 = vld [vmem:[%s18043_s0 + $0x1e0] sm:$0xff] }
 0x53a   :  { %v10997_v63 = vpop.eup %10996  ;;  %v6675_v40 = vpack.c.bf16 %v6637_v47, %v6636_v54  ;;  %v6574_v29 = vmul.f32 %v10995_v58, %v6499_v4  ;;  %v6639_v18 = vmul.f32 %v11198_v44, %v6575_v45  ;;  %v11208_v47 = vld [vmem:[%s18043_s0 + $0x1f8] sm:$0xff]  ;;  %v11209_v54 = vld [vmem:[%s18043_s0 + $0x1f0] sm:$0xff] }
 0x53b   :  { %v10999_v31 = vpop.eup %10998  ;;  %11014 = vrcp.f32 %v6262_v13  ;;  %v6265_v56 = vadd.f32 1.0, %v10997_v63 }
 0x53c   :  { %v11001_v61 = vpop.eup %11000  ;;  %v6638_v30 = vmul.f32 %v11199_v37, %v6574_v29  ;;  %v6577_v38 = vmul.f32 %v10999_v31, %v6505_v60  ;;  %v11203_v60 = vld [vmem:[%s18043_s0 + $0x1c0] sm:$0xff] }
 0x53d   :  { %11016 = vrcp.f32 %v6265_v56  ;;  %v6264_v57 = vadd.f32 1.0, %v11001_v61  ;;  %10602 = vmatmul.mubr.bf16.gmra.mxu0 %v6675_v40 }
 0x53e   :  { %v11003_v1 = vpop.eup %11002  ;;  %v6676_v6 = vpack.c.bf16 %v6639_v18, %v6638_v30  ;;  %v6641_v21 = vmul.f32 %v11200_v33, %v6577_v38 }
 0x53f   :  { %11018 = vrcp.f32 %v6264_v57  ;;  %v6576_v19 = vmul.f32 %v11003_v1, %v6503_v51 }
 0x540   :  { %v11005_v26 = vpop.eup %11004  ;;  %10605 = vmatprep.mubr.bf16.mxu0 %v6676_v6 }
 0x541   :  { %v11007_v4 = vpop.eup %11006  ;;  %v6640_v16 = vmul.f32 %v11201_v35, %v6576_v19  ;;  %v6579_v3 = vmul.f32 %v11005_v26, %v6509_v15 }
 0x542   :  { %v11009_v0 = vpop.eup %11008  ;;  %v6578_v34 = vmul.f32 %v11007_v4, %v6507_v17 }
 0x543   :  { %v6677_v39 = vpack.c.bf16 %v6641_v21, %v6640_v16  ;;  %v6581_v32 = vmul.f32 %v11009_v0, %v6513_v55  ;;  %v6643_v14 = vmul.f32 %v11202_v20, %v6579_v3 }
 0x544   :  { %v11011_v43 = vpop.eup %11010  ;;  %v6642_v11 = vmul.f32 %v11203_v60, %v6578_v34 }
 0x545   :  { %10606 = vmatmul.mubr.bf16.gmra.mxu0 %v6677_v39  ;;  %v6580_v27 = vmul.f32 %v11011_v43, %v6511_v2  ;;  %v6645_v5 = vmul.f32 %v11204_v28, %v6581_v32 }
 0x546   :  { %v11013_v62 = vpop.eup %11012  ;;  %v6678_v49 = vpack.c.bf16 %v6643_v14, %v6642_v11 }
 0x547   :  { %v6644_v50 = vmul.f32 %v11205_v53, %v6580_v27  ;;  %v6583_v51 = vmul.f32 %v11013_v62, %v6517_v25 }
 0x548   :  { %v11015_v46 = vpop.eup %11014  ;;  %10609 = vmatprep.mubr.bf16.mxu0 %v6678_v49 }
 0x549   :  { %v6679_v48 = vpack.c.bf16 %v6645_v5, %v6644_v50  ;;  %v6582_v22 = vmul.f32 %v11015_v46, %v6515_v23  ;;  %v6647_v7 = vmul.f32 %v11206_v12, %v6583_v51 }
 0x54a   :  { %v11017_v41 = vpop.eup %11016 }
 0x54b   :  { %v6646_v15 = vmul.f32 %v11207_v52, %v6582_v22  ;;  %v6585_v36 = vmul.f32 %v11017_v41, %v6521_v9 }
 0x54c   :  { %v11019_v24 = vpop.eup %11018 }
 0x54d   :  { %10610 = vmatmul.mubr.bf16.gmra.mxu0 %v6679_v48  ;;  %v6584_v42 = vmul.f32 %v11019_v24, %v6519_v59  ;;  %v6680_v8 = vpack.c.bf16 %v6647_v7, %v6646_v15  ;;  %v6649_v10 = vmul.f32 %v11208_v47, %v6585_v36 }
 0x54f   :  { %v6648_v45 = vmul.f32 %v11209_v54, %v6584_v42  ;;  %10613 = vmatprep.mubr.bf16.mxu0 %v6680_v8 }
 0x551   :  { %v6681_v17 = vpack.c.bf16 %v6649_v10, %v6648_v45 }
 0x555   :  { %10614 = vmatmul.mubr.bf16.gmra.mxu0 %v6681_v17 }
 0x59a   :  { %v16384_v58 = vpop.f32.mrf.mxu0 }
 0x59b   :  { %v7109_v44 = vmul.f32 %v16384_v58, %v16384_v58 }
 0x59c   :  { %v16386_v13 = vpop.f32.mrf.mxu0 }
 0x59d   :  { %v7107_v29 = vmul.f32 %v16386_v13, %v16386_v13 }
 0x59e   :  { %v16388_v63 = vpop.f32.mrf.mxu0 }
 0x59f   :  { %v7110_v55 = vmul.f32 %v16388_v63, %v16388_v63 }
 0x5a0   :  { %v16390_v40 = vpop.f32.mrf.mxu0 }
 0x5a1   :  { %v7037_v31 = vadd.f32 %v16390_v40, %v16386_v13  ;;  %v7108_v56 = vmul.f32 %v16390_v40, %v16390_v40 }
 0x5a2   :  { %v16398_v61 = vpop.f32.mrf.mxu0 }
 0x5a3   :  { %18821 = vst [vmem:[#allocation80_spill] sm:$0xff] %v16398_v61  ;;  %v7038_v18 = vadd.f32 %v16384_v58, %v7037_v31  ;;  %v7171_v37 = vadd.f32 %v7108_v56, %v7107_v29  ;;  %v7113_v35 = vmul.f32 %v16398_v61, %v16398_v61 }
 0x5a4   :  { %v16403_v30 = vpop.f32.mrf.mxu0 }
 0x5a5   :  { %18822 = vst [vmem:[#allocation36_spill] sm:$0xff] %v16403_v30  ;;  %v7172_v57 = vadd.f32 %v7171_v37, %v7109_v44  ;;  %v7039_v38 = vadd.f32 %v16388_v63, %v7038_v18  ;;  %v7111_v2 = vmul.f32 %v16403_v30, %v16403_v30 }
 0x5a6   :  { %v16408_v1 = vpop.f32.mrf.mxu0 }
 0x5a7   :  { %18823 = vst [vmem:[#allocation16_spill] sm:$0xff] %v16408_v1  ;;  %v7040_v6 = vadd.f32 %v7039_v38, %v16403_v30  ;;  %v7173_v19 = vadd.f32 %v7172_v57, %v7110_v55  ;;  %v7114_v34 = vmul.f32 %v16408_v1, %v16408_v1 }
 0x5a8   :  { %v16413_v26 = vpop.f32.mrf.mxu0 }
 0x5a9   :  { %18824 = vst [vmem:[#allocation15_spill] sm:$0xff] %v16413_v26  ;;  %v7174_v4 = vadd.f32 %v7173_v19, %v7111_v2  ;;  %v7041_v33 = vadd.f32 %v7040_v6, %v16413_v26  ;;  %v7112_v21 = vmul.f32 %v16413_v26, %v16413_v26 }
 0x5ab   :  { %v7042_v16 = vadd.f32 %v16398_v61, %v7041_v33  ;;  %v7175_v3 = vadd.f32 %v7174_v4, %v7112_v21  ;;  %v16421_v0 = vpop.f32.mrf.mxu0 }
 0x5ac   :  { %18825 = vst [vmem:[#allocation6_spill] sm:$0xff] %v16421_v0  ;;  %v7117_v28 = vmul.f32 %v16421_v0, %v16421_v0 }
 0x5ad   :  { %v7176_v25 = vadd.f32 %v7175_v3, %v7113_v35  ;;  %v16425_v39 = vpop.f32.mrf.mxu0  ;;  %v7043_v32 = vadd.f32 %v16408_v1, %v7042_v16 }
 0x5ae   :  { %18826 = vst [vmem:[#allocation63_spill] sm:$0xff] %v16425_v39  ;;  %v7115_v20 = vmul.f32 %v16425_v39, %v16425_v39 }
 0x5af   :  { %v7044_v43 = vadd.f32 %v7043_v32, %v16425_v39  ;;  %v7177_v14 = vadd.f32 %v7176_v25, %v7114_v34  ;;  %v16431_v60 = vpop.f32.mrf.mxu0 }
 0x5b0   :  { %18827 = vst [vmem:[#allocation89_spill] sm:$0xff] %v16431_v60  ;;  %v7118_v51 = vmul.f32 %v16431_v60, %v16431_v60 }
 0x5b1   :  { %v7178_v11 = vadd.f32 %v7177_v14, %v7115_v20  ;;  %v16433_v23 = vpop.f32.mrf.mxu0 }
 0x5b2   :  { %18828 = vst [vmem:[#allocation19_spill] sm:$0xff] %v16433_v23  ;;  %v7045_v27 = vadd.f32 %v7044_v43, %v16433_v23  ;;  %v7116_v62 = vmul.f32 %v16433_v23, %v16433_v23 }
 0x5b3   :  { %v16438_v49 = vpop.f32.mrf.mxu0 }
 0x5b4   :  { %18829 = vst [vmem:[#allocation17_spill] sm:$0xff] %v16438_v49  ;;  %v7046_v5 = vadd.f32 %v16421_v0, %v7045_v27  ;;  %v7179_v53 = vadd.f32 %v7178_v11, %v7116_v62  ;;  %v7121_v36 = vmul.f32 %v16438_v49, %v16438_v49 }
 0x5b5   :  { %v16443_v50 = vpop.f32.mrf.mxu0 }
 0x5b6   :  { %18830 = vst [vmem:[#allocation66_spill] sm:$0xff] %v16443_v50  ;;  %v7180_v46 = vadd.f32 %v7179_v53, %v7117_v28  ;;  %v7047_v9 = vadd.f32 %v16431_v60, %v7046_v5  ;;  %v7119_v41 = vmul.f32 %v16443_v50, %v16443_v50 }
 0x5b7   :  { %v16448_v48 = vpop.f32.mrf.mxu0 }
 0x5b8   :  { %18831 = vst [vmem:[#allocation7_spill] sm:$0xff] %v16448_v48  ;;  %v7048_v22 = vadd.f32 %v7047_v9, %v16443_v50  ;;  %v7181_v59 = vadd.f32 %v7180_v46, %v7118_v51  ;;  %v7122_v47 = vmul.f32 %v16448_v48, %v16448_v48 }
 0x5b9   :  { %v16453_v12 = vpop.f32.mrf.mxu0 }
 0x5ba   :  { %18832 = vst [vmem:[#allocation21_spill] sm:$0xff] %v16453_v12  ;;  %v7182_v7 = vadd.f32 %v7181_v59, %v7119_v41  ;;  %v7049_v52 = vadd.f32 %v7048_v22, %v16453_v12  ;;  %v7120_v15 = vmul.f32 %v16453_v12, %v16453_v12 }
 0x5bc   :  { %v7050_v24 = vadd.f32 %v16438_v49, %v7049_v52  ;;  %v7183_v42 = vadd.f32 %v7182_v7, %v7120_v15  ;;  %v16461_v8 = vpop.f32.mrf.mxu0 }
 0x5bd   :  { %18833 = vst [vmem:[#allocation70_spill] sm:$0xff] %v16461_v8  ;;  %v7125_v57 = vmul.f32 %v16461_v8, %v16461_v8 }
 0x5be   :  { %v7184_v10 = vadd.f32 %v7183_v42, %v7121_v36  ;;  %v16465_v54 = vpop.f32.mrf.mxu0  ;;  %v7051_v45 = vadd.f32 %v16448_v48, %v7050_v24 }
 0x5bf   :  { %18834 = vst [vmem:[#allocation20_spill] sm:$0xff] %v16465_v54  ;;  %v7123_v29 = vmul.f32 %v16465_v54, %v16465_v54 }
 0x5c0   :  { %v7052_v17 = vadd.f32 %v7051_v45, %v16465_v54  ;;  %v7185_v31 = vadd.f32 %v7184_v10, %v7122_v47  ;;  %v16471_v56 = vpop.f32.mrf.mxu0 }
 0x5c1   :  { %18835 = vst [vmem:[#allocation32_spill] sm:$0xff] %v16471_v56  ;;  %v7126_v19 = vmul.f32 %v16471_v56, %v16471_v56 }
 0x5c2   :  { %v7186_v44 = vadd.f32 %v7185_v31, %v7123_v29  ;;  %v16473_v18 = vpop.f32.mrf.mxu0 }
 0x5c3   :  { %18836 = vst [vmem:[#allocation71_spill] sm:$0xff] %v16473_v18  ;;  %v7053_v37 = vadd.f32 %v7052_v17, %v16473_v18  ;;  %v7124_v55 = vmul.f32 %v16473_v18, %v16473_v18 }
 0x5c5   :  { %v7054_v38 = vadd.f32 %v16461_v8, %v7053_v37  ;;  %v7187_v6 = vadd.f32 %v7186_v44, %v7124_v55  ;;  %v16481_v2 = vpop.f32.mrf.mxu0 }
 0x5c6   :  { %18837 = vst [vmem:[#allocation31_spill] sm:$0xff] %v16481_v2  ;;  %v7129_v11 = vmul.f32 %v16481_v2, %v16481_v2 }
 0x5c7   :  { %v7188_v4 = vadd.f32 %v7187_v6, %v7125_v57  ;;  %v16485_v33 = vpop.f32.mrf.mxu0  ;;  %v7055_v21 = vadd.f32 %v16471_v56, %v7054_v38 }
 0x5c8   :  { %18838 = vst [vmem:[#allocation9_spill] sm:$0xff] %v16485_v33  ;;  %v7127_v16 = vmul.f32 %v16485_v33, %v16485_v33 }
 0x5c9   :  { %v7056_v35 = vadd.f32 %v7055_v21, %v16485_v33  ;;  %v7189_v3 = vadd.f32 %v7188_v4, %v7126_v19  ;;  %v16491_v34 = vpop.f32.mrf.mxu0 }
 0x5ca   :  { %18839 = vst [vmem:[#allocation22_spill] sm:$0xff] %v16491_v34  ;;  %v7130_v5 = vmul.f32 %v16491_v34, %v16491_v34 }
 0x5cb   :  { %v7190_v25 = vadd.f32 %v7189_v3, %v7127_v16  ;;  %v16493_v32 = vpop.f32.mrf.mxu0 }
 0x5cc   :  { %18840 = vst [vmem:[#allocation25_spill] sm:$0xff] %v16493_v32  ;;  %v7057_v43 = vadd.f32 %v7056_v35, %v16493_v32  ;;  %v7128_v20 = vmul.f32 %v16493_v32, %v16493_v32 }
 0x5cd   :  { %v16498_v14 = vpop.f32.mrf.mxu0 }
 0x5ce   :  { %18841 = vst [vmem:[#allocation73_spill] sm:$0xff] %v16498_v14  ;;  %v7058_v27 = vadd.f32 %v16481_v2, %v7057_v43  ;;  %v7191_v62 = vadd.f32 %v7190_v25, %v7128_v20  ;;  %v7133_v24 = vmul.f32 %v16498_v14, %v16498_v14 }
 0x5cf   :  { %v16503_v28 = vpop.f32.mrf.mxu0 }
 0x5d0   :  { %18842 = vst [vmem:[#allocation24_spill] sm:$0xff] %v16503_v28  ;;  %v7192_v53 = vadd.f32 %v7191_v62, %v7129_v11  ;;  %v7059_v51 = vadd.f32 %v16491_v34, %v7058_v27  ;;  %v7131_v22 = vmul.f32 %v16503_v28, %v16503_v28 }
 0x5d1   :  { %v16508_v46 = vpop.f32.mrf.mxu0 }
 0x5d2   :  { %v7060_v9 = vadd.f32 %v7059_v51, %v16503_v28  ;;  %v7193_v41 = vadd.f32 %v7192_v53, %v7130_v5  ;;  %v7134_v45 = vmul.f32 %v16508_v46, %v16508_v46 }
 0x5d3   :  { %v16513_v59 = vpop.f32.mrf.mxu0 }
 0x5d4   :  { %18843 = vst [vmem:[#allocation8_spill] sm:$0xff] %v16513_v59  ;;  %v7194_v7 = vadd.f32 %v7193_v41, %v7131_v22  ;;  %v7061_v52 = vadd.f32 %v7060_v9, %v16513_v59  ;;  %v7132_v15 = vmul.f32 %v16513_v59, %v16513_v59 }
 0x5d5   :  { %v16518_v36 = vpop.f32.mrf.mxu0 }
 0x5d6   :  { %v7062_v42 = vadd.f32 %v16498_v14, %v7061_v52  ;;  %v7195_v47 = vadd.f32 %v7194_v7, %v7132_v15  ;;  %v7137_v21 = vmul.f32 %v16518_v36, %v16518_v36 }
 0x5d7   :  { %v16523_v10 = vpop.f32.mrf.mxu0 }
 0x5d8   :  { %v7196_v17 = vadd.f32 %v7195_v47, %v7133_v24  ;;  %v7063_v29 = vadd.f32 %v16508_v46, %v7062_v42  ;;  %v7135_v37 = vmul.f32 %v16523_v10, %v16523_v10 }
 0x5d9   :  { %v16528_v31 = vpop.f32.mrf.mxu0 }
 0x5da   :  { %v7064_v44 = vadd.f32 %v7063_v29, %v16523_v10  ;;  %v7197_v55 = vadd.f32 %v7196_v17, %v7134_v45  ;;  %v7138_v25 = vmul.f32 %v16528_v31, %v16528_v31 }
 0x5db   :  { %v16533_v57 = vpop.f32.mrf.mxu0 }
 0x5dc   :  { %v7198_v38 = vadd.f32 %v7197_v55, %v7135_v37  ;;  %v7065_v6 = vadd.f32 %v7064_v44, %v16533_v57  ;;  %v7136_v19 = vmul.f32 %v16533_v57, %v16533_v57 }
 0x5dd   :  { %v16538_v4 = vpop.f32.mrf.mxu0 }
 0x5de   :  { %v7066_v35 = vadd.f32 %v16518_v36, %v7065_v6  ;;  %v7199_v16 = vadd.f32 %v7198_v38, %v7136_v19  ;;  %v7141_v7 = vmul.f32 %v16538_v4, %v16538_v4 }
 0x5df   :  { %v16543_v3 = vpop.f32.mrf.mxu0 }
 0x5e0   :  { %v7200_v43 = vadd.f32 %v7199_v16, %v7137_v21  ;;  %v7067_v20 = vadd.f32 %v16528_v31, %v7066_v35  ;;  %v7139_v62 = vmul.f32 %v16543_v3, %v16543_v3 }
 0x5e1   :  { %v16548_v11 = vpop.f32.mrf.mxu0 }
 0x5e2   :  { %v7068_v27 = vadd.f32 %v7067_v20, %v16543_v3  ;;  %v7201_v5 = vadd.f32 %v7200_v43, %v7138_v25  ;;  %v7142_v42 = vmul.f32 %v16548_v11, %v16548_v11 }
 0x5e3   :  { %v16553_v53 = vpop.f32.mrf.mxu0 }
 0x5e4   :  { %v7202_v51 = vadd.f32 %v7201_v5, %v7139_v62  ;;  %v7069_v9 = vadd.f32 %v7068_v27, %v16553_v53  ;;  %v7140_v22 = vmul.f32 %v16553_v53, %v16553_v53 }
 0x5e5   :  { %v16558_v41 = vpop.f32.mrf.mxu0 }
 0x5e6   :  { %v7070_v52 = vadd.f32 %v16538_v4, %v7069_v9  ;;  %v7203_v15 = vadd.f32 %v7202_v51, %v7140_v22  ;;  %v7145_v35 = vmul.f32 %v16558_v41, %v16558_v41 }
 0x5e7   :  { %v16563_v24 = vpop.f32.mrf.mxu0 }
 0x5e8   :  { %v7204_v47 = vadd.f32 %v7203_v15, %v7141_v7  ;;  %v7071_v45 = vadd.f32 %v16548_v11, %v7070_v52  ;;  %v7143_v44 = vmul.f32 %v16563_v24, %v16563_v24 }
 0x5e9   :  { %v16568_v17 = vpop.f32.mrf.mxu0 }
 0x5ea   :  { %v7072_v29 = vadd.f32 %v7071_v45, %v16563_v24  ;;  %v7205_v37 = vadd.f32 %v7204_v47, %v7142_v42  ;;  %v7146_v20 = vmul.f32 %v16568_v17, %v16568_v17 }
 0x5eb   :  { %v16573_v55 = vpop.f32.mrf.mxu0 }
 0x5ec   :  { %v7206_v38 = vadd.f32 %v7205_v37, %v7143_v44  ;;  %v7073_v6 = vadd.f32 %v7072_v29, %v16573_v55  ;;  %v7144_v19 = vmul.f32 %v16573_v55, %v16573_v55 }
 0x5ed   :  { %v16578_v21 = vpop.f32.mrf.mxu0 }
 0x5ee   :  { %v7074_v16 = vadd.f32 %v16558_v41, %v7073_v6  ;;  %v7207_v25 = vadd.f32 %v7206_v38, %v7144_v19  ;;  %v7149_v45 = vmul.f32 %v16578_v21, %v16578_v21 }
 0x5ef   :  { %v16583_v43 = vpop.f32.mrf.mxu0 }
 0x5f0   :  { %v7208_v27 = vadd.f32 %v7207_v25, %v7145_v35  ;;  %v7075_v62 = vadd.f32 %v16568_v17, %v7074_v16  ;;  %v7147_v9 = vmul.f32 %v16583_v43, %v16583_v43 }
 0x5f1   :  { %v16588_v5 = vpop.f32.mrf.mxu0 }
 0x5f2   :  { %v7076_v51 = vadd.f32 %v7075_v62, %v16583_v43  ;;  %v7209_v22 = vadd.f32 %v7208_v27, %v7146_v20  ;;  %v7150_v38 = vmul.f32 %v16588_v5, %v16588_v5 }
 0x5f3   :  { %v16593_v7 = vpop.f32.mrf.mxu0 }
 0x5f4   :  { %v7210_v52 = vadd.f32 %v7209_v22, %v7147_v9  ;;  %v7077_v15 = vadd.f32 %v7076_v51, %v16593_v7  ;;  %v7148_v42 = vmul.f32 %v16593_v7, %v16593_v7 }
 0x5f5   :  { %v16598_v47 = vpop.f32.mrf.mxu0 }
 0x5f6   :  { %v7078_v29 = vadd.f32 %v16578_v21, %v7077_v15  ;;  %v7211_v44 = vadd.f32 %v7210_v52, %v7148_v42  ;;  %v7153_v52 = vmul.f32 %v16598_v47, %v16598_v47 }
 0x5f7   :  { %v16603_v37 = vpop.f32.mrf.mxu0 }
 0x5f8   :  { %v7212_v6 = vadd.f32 %v7211_v44, %v7149_v45  ;;  %v7079_v19 = vadd.f32 %v16588_v5, %v7078_v29  ;;  %v7151_v25 = vmul.f32 %v16603_v37, %v16603_v37 }
 0x5f9   :  { %v16608_v35 = vpop.f32.mrf.mxu0 }
 0x5fa   :  { %v7080_v16 = vadd.f32 %v7079_v19, %v16603_v37  ;;  %v7213_v20 = vadd.f32 %v7212_v6, %v7150_v38  ;;  %v7154_v29 = vmul.f32 %v16608_v35, %v16608_v35 }
 0x5fb   :  { %v16613_v27 = vpop.f32.mrf.mxu0 }
 0x5fc   :  { %v7214_v62 = vadd.f32 %v7213_v20, %v7151_v25  ;;  %v7081_v51 = vadd.f32 %v7080_v16, %v16613_v27  ;;  %v7152_v9 = vmul.f32 %v16613_v27, %v16613_v27 }
 0x5fd   :  { %v16618_v22 = vpop.f32.mrf.mxu0 }
 0x5fe   :  { %v7082_v15 = vadd.f32 %v16598_v47, %v7081_v51  ;;  %v7215_v42 = vadd.f32 %v7214_v62, %v7152_v9 }
 0x5ff   :  { %v16623_v45 = vpop.f32.mrf.mxu0 }
 0x600   :  { %v7216_v44 = vadd.f32 %v7215_v42, %v7153_v52  ;;  %v7083_v38 = vadd.f32 %v16608_v35, %v7082_v15  ;;  %v7155_v16 = vmul.f32 %v16623_v45, %v16623_v45  ;;  %v7157_v52 = vmul.f32 %v16618_v22, %v16618_v22 }
 0x601   :  { %v16628_v6 = vpop.f32.mrf.mxu0 }
 0x602   :  { %v7084_v19 = vadd.f32 %v7083_v38, %v16623_v45  ;;  %v7217_v25 = vadd.f32 %v7216_v44, %v7154_v29  ;;  %v7158_v29 = vmul.f32 %v16628_v6, %v16628_v6 }
 0x603   :  { %v16633_v20 = vpop.f32.mrf.mxu0 }
 0x604   :  { %v7218_v51 = vadd.f32 %v7217_v25, %v7155_v16  ;;  %v7085_v62 = vadd.f32 %v7084_v19, %v16633_v20  ;;  %v7156_v9 = vmul.f32 %v16633_v20, %v16633_v20 }
 0x605   :  { %v16638_v14 = vpop.f32.mrf.mxu0 }
 0x606   :  { %v7086_v15 = vadd.f32 %v16618_v22, %v7085_v62  ;;  %v7219_v42 = vadd.f32 %v7218_v51, %v7156_v9 }
 0x607   :  { %v16643_v38 = vpop.f32.mrf.mxu0 }
 0x608   :  { %v7220_v44 = vadd.f32 %v7219_v42, %v7157_v52  ;;  %v7087_v16 = vadd.f32 %v16628_v6, %v7086_v15  ;;  %v7159_v59 = vmul.f32 %v16643_v38, %v16643_v38  ;;  %v7161_v52 = vmul.f32 %v16638_v14, %v16638_v14 }
 0x609   :  { %v16648_v19 = vpop.f32.mrf.mxu0 }
 0x60a   :  { %v7088_v25 = vadd.f32 %v7087_v16, %v16643_v38  ;;  %v7221_v28 = vadd.f32 %v7220_v44, %v7158_v29  ;;  %v7162_v29 = vmul.f32 %v16648_v19, %v16648_v19 }
 0x60b   :  { %v16653_v34 = vpop.f32.mrf.mxu0 }
 0x60c   :  { %v7222_v62 = vadd.f32 %v7221_v28, %v7159_v59  ;;  %v7089_v51 = vadd.f32 %v7088_v25, %v16653_v34  ;;  %v7160_v9 = vmul.f32 %v16653_v34, %v16653_v34 }
 0x60d   :  { %v16658_v2 = vpop.f32.mrf.mxu0 }
 0x60e   :  { %v7090_v15 = vadd.f32 %v16638_v14, %v7089_v51  ;;  %v7223_v42 = vadd.f32 %v7222_v62, %v7160_v9 }
 0x60f   :  { %v16663_v16 = vpop.f32.mrf.mxu0 }
 0x610   :  { %v7224_v44 = vadd.f32 %v7223_v42, %v7161_v52  ;;  %v7091_v28 = vadd.f32 %v16648_v19, %v7090_v15  ;;  %v7163_v32 = vmul.f32 %v16663_v16, %v16663_v16  ;;  %v7165_v52 = vmul.f32 %v16658_v2, %v16658_v2 }
 0x611   :  { %v10612_v59 = vpop.f32.mrf.mxu0 }
 0x612   :  { %v7092_v25 = vadd.f32 %v7091_v28, %v16663_v16  ;;  %v7225_v33 = vadd.f32 %v7224_v44, %v7162_v29  ;;  %v7166_v18 = vmul.f32 %v10612_v59, %v10612_v59 }
 0x613   :  { %v16671_v56 = vpop.f32.mrf.mxu0 }
 0x614   :  { %v7226_v8 = vadd.f32 %v7225_v33, %v7163_v32  ;;  %v7093_v62 = vadd.f32 %v7092_v25, %v16671_v56  ;;  %v7164_v51 = vmul.f32 %v16671_v56, %v16671_v56 }
 0x615   :  { %v10615_v9 = vpop.f32.mrf.mxu0 }
 0x616   :  { %v7094_v15 = vadd.f32 %v16658_v2, %v7093_v62  ;;  %v7227_v42 = vadd.f32 %v7226_v8, %v7164_v51  ;;  %v7169_v60 = vmul.f32 %v10615_v9, %v10615_v9 }
 0x617   :  { %v7020_v28 = vpop.f32.mrf.mxu0 }
 0x618   :  { %v7228_v54 = vadd.f32 %v7227_v42, %v7165_v52  ;;  %v7095_v48 = vadd.f32 %v10612_v59, %v7094_v15  ;;  %v7167_v49 = vmul.f32 %v7020_v28, %v7020_v28 }
 0x619   :  { %v10616_v29 = vpop.f32.mrf.mxu0 }
 0x61a   :  { %v7096_v44 = vadd.f32 %v7095_v48, %v7020_v28  ;;  %v7229_v33 = vadd.f32 %v7228_v54, %v7166_v18  ;;  %v7170_v39 = vmul.f32 %v10616_v29, %v10616_v29 }
 0x61b   :  { %v7023_v32 = vpop.f32.mrf.mxu0 }
 0x61c   :  { %v7230_v25 = vadd.f32 %v7229_v33, %v7167_v49  ;;  %v7097_v12 = vadd.f32 %v7096_v44, %v7023_v32  ;;  %v7168_v50 = vmul.f32 %v7023_v32, %v7023_v32 }
 0x61e   :  { %v7098_v0 = vadd.f32 %v10615_v9, %v7097_v12  ;;  %v7231_v23 = vadd.f32 %v7230_v25, %v7168_v50 }
 0x620   :  { %v7099_v1 = vadd.f32 %v10616_v29, %v7098_v0  ;;  %v7232_v61 = vadd.f32 %v7231_v23, %v7169_v60 }
 0x622   :  { %v7100_v62 = vrot.slane %v7099_v1, 4  ;;  %v7233_v8 = vadd.f32 %v7232_v61, %v7170_v39 }
 0x624   :  { %v7101_v51 = vadd.f32 %v7100_v62, %v7099_v1  ;;  %v7234_v26 = vrot.slane %v7233_v8, 4 }
 0x626   :  { %v7102_v52 = vrot.slane %v7101_v51, 2  ;;  %v7235_v15 = vadd.f32 %v7234_v26, %v7233_v8 }
 0x628   :  { %v7103_v42 = vadd.f32 %v7102_v52, %v7101_v51  ;;  %v7236_v48 = vrot.slane %v7235_v15, 2 }
 0x62a   :  { %v7104_v30 = vrot.slane %v7103_v42, 1  ;;  %v7237_v54 = vadd.f32 %v7236_v48, %v7235_v15  ;;  %v7796_v15 = vld [vmem:[%s18052_s9 + $0x70] sm:$0xff] }
 0x62c   :  { %v7105_v18 = vadd.f32 %v7104_v30, %v7103_v42  ;;  %v7238_v49 = vrot.slane %v7237_v54, 1  ;;  %v7795_v42 = vld [vmem:[%s18052_s9 + $0x68] sm:$0xff] }
 0x62e   :  { %v16679_v44 = vmul.f32 0.001953125, %v7105_v18  ;;  %v7239_v33 = vadd.f32 %v7238_v49, %v7237_v54  ;;  %v7794_v18 = vld [vmem:[%s18052_s9 + $0x60] sm:$0xff] }
 0x630   :  { %v7240_v12 = vmul.f32 0.001953125, %v7239_v33  ;;  %v7241_v0 = vmul.f32 %v16679_v44, %v16679_v44  ;;  %v7302_v30 = vsub.f32 %v10612_v59, %v16679_v44  ;;  %v7303_v39 = vsub.f32 %v7020_v28, %v16679_v44 }
 0x631   :  { %v7304_v23 = vsub.f32 %v7023_v32, %v16679_v44  ;;  %v7305_v50 = vsub.f32 %v10615_v9, %v16679_v44  ;;  %v7306_v25 = vsub.f32 %v10616_v29, %v16679_v44  ;;  %v7797_v29 = vld [vmem:[%s18052_s9 + $0x78] sm:$0xff]  ;;  %v18844_v32 = vmov 0.0  }
 0x632   :  { %v7242_v60 = vsub.f32 %v7240_v12, %v7241_v0  ;;  %10618 = vmatpush3.msra.mxu1 %v7797_v29  ;;  %v7275_v48 = vsub.f32 %v16543_v3, %v16679_v44  ;;  %v7276_v54 = vsub.f32 %v16553_v53, %v16679_v44  ;;  %v7793_v3 = vld [vmem:[%s18052_s9 + $0x58] sm:$0xff]  ;;  %v16739_v53 = vld [vmem:[%s18050_s7] ss:$0 sm:$0xff]  ;;  %v7277_v12 = vsub.f32 %v16538_v4, %v16679_v44  ;;  %v7792_v0 = vld [vmem:[%s18052_s9 + $0x50] sm:$0xff] }
 0x633   :  { %10619 = vmatprep.subr.mxu1 %v18844_v32  ;;  %v16756_v4 = vld [vmem:[%s18051_s8] ss:$0 sm:$0xff]  ;;  %v7270_v26 = vsub.f32 %v16508_v46, %v16679_v44 }
 0x634   :  { %v7307_v62 = vadd.f32 1e-05, %v7242_v60  ;;  %10620 = vmatpush3.msra.mxu1 %v7796_v15  ;;  %v7278_v60 = vsub.f32 %v16548_v11, %v16679_v44  ;;  %v7280_v11 = vsub.f32 %v16573_v55, %v16679_v44  ;;  %v7284_v55 = vsub.f32 %v16593_v7, %v16679_v44 }
 0x635   :  { %10621 = vmatprep.subr.mxu1 %v18844_v32  ;;  %v7290_v7 = vsub.f32 %v16608_v35, %v16679_v44  ;;  %v18866_v35 = vld [vmem:[#allocation63_spill] sm:$0xff] }
 0x636   :  { %11020 = vrsqrt.f32 %v7307_v62  ;;  %10622 = vmatpush3.msra.mxu1 %v7795_v42  ;;  %v7281_v62 = vsub.f32 %v16558_v41, %v16679_v44  ;;  %v7285_v41 = vsub.f32 %v16578_v21, %v16679_v44 }
 0x637   :  { %10623 = vmatprep.subr.mxu1 %v18844_v32 }
 0x638   :  { %10624 = vmatpush3.msra.mxu1 %v7794_v18  ;;  %v7286_v18 = vsub.f32 %v16588_v5, %v16679_v44 }
 0x639   :  { %10625 = vmatprep.subr.mxu1 %v18844_v32 }
 0x63a   :  { %10626 = vmatpush3.msra.mxu1 %v7793_v3 }
 0x63b   :  { %10627 = vmatprep.subr.mxu1 %v18844_v32 }
 0x63c   :  { %10628 = vmatpush3.msra.mxu1 %v7792_v0 }
 0x63d   :  { %10629 = vmatprep.subr.mxu1 %v18844_v32 }
 0x643   :  { %v16694_v8 = vpop.eup %11020 }
 0x644   :  { %v16697_v51 = vmul.f32 %v16694_v8, %v7302_v30  ;;  %v16700_v52 = vmul.f32 %v16694_v8, %v7303_v39  ;;  %v16703_v59 = vmul.f32 %v16694_v8, %v7304_v23  ;;  %v16706_v28 = vmul.f32 %v16694_v8, %v7305_v50 }
 0x645   :  { %v16709_v9 = vmul.f32 %v16694_v8, %v7306_v25  ;;  %v7341_v49 = vmul.f32 %v16694_v8, %v7275_v48  ;;  %v7342_v33 = vmul.f32 %v16694_v8, %v7276_v54  ;;  %v7343_v30 = vmul.f32 %v16694_v8, %v7277_v12 }
 0x646   :  { %v7279_v50 = vsub.f32 %v16563_v24, %v16679_v44  ;;  %v7344_v25 = vmul.f32 %v16694_v8, %v7278_v60  ;;  %v7282_v54 = vsub.f32 %v16568_v17, %v16679_v44  ;;  %v7283_v24 = vsub.f32 %v16583_v43, %v16679_v44 }
 0x647   :  { %v7411_v39 = vmul.f32 %v16739_v53, %v7341_v49  ;;  %v7412_v23 = vmul.f32 %v16739_v53, %v7342_v33  ;;  %v7413_v15 = vmul.f32 %v16739_v53, %v7343_v30  ;;  %v7287_v49 = vsub.f32 %v16603_v37, %v16679_v44  ;;  %v18879_v30 = vld [vmem:[#allocation32_spill] sm:$0xff] }
 0x648   :  { %v7345_v29 = vmul.f32 %v16694_v8, %v7279_v50  ;;  %v7346_v33 = vmul.f32 %v16694_v8, %v7280_v11  ;;  %v7414_v3 = vmul.f32 %v16739_v53, %v7344_v25  ;;  %v7288_v17 = vsub.f32 %v16613_v27, %v16679_v44  ;;  %v7790_v50 = vld [vmem:[%s18052_s9 + $0x40] sm:$0xff] }
 0x649   :  { %v7481_v42 = vadd.f32 %v16756_v4, %v7411_v39  ;;  %v7482_v48 = vadd.f32 %v16756_v4, %v7412_v23  ;;  %v7289_v43 = vsub.f32 %v16598_v47, %v16679_v44  ;;  %v7347_v21 = vmul.f32 %v16694_v8, %v7281_v62  ;;  %v7791_v23 = vld [vmem:[%s18052_s9 + $0x48] sm:$0xff] }
 0x64a   :  { %v7415_v5 = vmul.f32 %v16739_v53, %v7345_v29  ;;  %v7483_v12 = vadd.f32 %v16756_v4, %v7413_v15  ;;  %v7348_v11 = vmul.f32 %v16694_v8, %v7282_v54  ;;  %v7416_v62 = vmul.f32 %v16739_v53, %v7346_v33  ;;  %10630 = vmatpush3.msra.mxu1 %v7791_v23  ;;  %v7789_v54 = vld [vmem:[%s18052_s9 + $0x38] sm:$0xff] }
 0x64b   :  { %v7609_v0 = vmul.f32 0.01, %v7481_v42  ;;  %v7610_v60 = vmul.f32 0.01, %v7482_v48  ;;  %vm7545_vm8 = vcmp.ge.f32.partialorder %v7481_v42, 0.0  ;;  %vm7546_vm12 = vcmp.ge.f32.partialorder %v7482_v48, 0.0  ;;  %10631 = vmatprep.subr.mxu1 %v18844_v32 }
 0x64c   :  { %v7484_v29 = vadd.f32 %v16756_v4, %v7414_v3  ;;  %v7349_v1 = vmul.f32 %v16694_v8, %v7283_v24  ;;  %v7417_v61 = vmul.f32 %v16739_v53, %v7347_v21  ;;  %v7485_v33 = vadd.f32 %v16756_v4, %v7415_v5  ;;  %10632 = vmatpush3.msra.mxu1 %v7790_v50 }
 0x64d   :  { %v7611_v3 = vmul.f32 0.01, %v7483_v12  ;;  %v16819_v23 = vsel %vm7545_vm8, %v7481_v42, %v7609_v0  ;;  %v16822_v15 = vsel %vm7546_vm12, %v7482_v48, %v7610_v60  ;;  %v7350_v21 = vmul.f32 %v16694_v8, %v7284_v55  ;;  %10633 = vmatprep.subr.mxu1 %v18844_v32  ;;  %v7788_v42 = vld [vmem:[%s18052_s9 + $0x30] sm:$0xff] }
 0x64e   :  { %18845 = vst [vmem:[#allocation28_spill] sm:$0xff] %v16819_v23  ;;  %18846 = vst [vmem:[#allocation10_spill] sm:$0xff] %v16822_v15  ;;  %vm7547_vm13 = vcmp.ge.f32.partialorder %v7483_v12, 0.0  ;;  %v7418_v5 = vmul.f32 %v16739_v53, %v7348_v11  ;;  %v7486_v48 = vadd.f32 %v16756_v4, %v7416_v62  ;;  %v7612_v0 = vmul.f32 0.01, %v7484_v29  ;;  %10634 = vmatpush3.msra.mxu1 %v7789_v54  ;;  %v7787_v11 = vld [vmem:[%s18052_s9 + $0x28] sm:$0xff] }
 0x64f   :  { %v7271_v60 = vsub.f32 %v16523_v10, %v16679_v44  ;;  %v7351_v55 = vmul.f32 %v16694_v8, %v7285_v41  ;;  %vm7548_vm14 = vcmp.ge.f32.partialorder %v7484_v29, 0.0  ;;  %v7742_v46 = vadd.f32 %v16822_v15, %v16819_v23  ;;  %10635 = vmatprep.subr.mxu1 %v18844_v32  ;;  %v18885_v15 = vld [vmem:[#allocation24_spill] sm:$0xff] }
 0x650   :  { %v7272_v50 = vsub.f32 %v16533_v57, %v16679_v44  ;;  %v7419_v62 = vmul.f32 %v16739_v53, %v7349_v1  ;;  %v7487_v10 = vadd.f32 %v16756_v4, %v7417_v61  ;;  %v7613_v54 = vmul.f32 0.01, %v7485_v33  ;;  %10636 = vmatpush3.msra.mxu1 %v7788_v42  ;;  %v7786_v1 = vld [vmem:[%s18052_s9 + $0x20] sm:$0xff] }
 0x651   :  { %v16849_v41 = vsel %vm7547_vm13, %v7483_v12, %v7611_v3  ;;  %v7352_v24 = vmul.f32 %v16694_v8, %v7286_v18  ;;  %v7420_v25 = vmul.f32 %v16739_v53, %v7350_v21  ;;  %vm7549_vm15 = vcmp.ge.f32.partialorder %v7485_v33, 0.0  ;;  %10637 = vmatprep.subr.mxu1 %v18844_v32 }
 0x652   :  { %18847 = vst [vmem:[#allocation27_spill] sm:$0xff] %v16849_v41  ;;  %v7743_v57 = vadd.f32 %v7742_v46, %v16849_v41  ;;  %v7488_v61 = vadd.f32 %v16756_v4, %v7418_v5  ;;  %v7614_v39 = vmul.f32 0.01, %v7486_v48  ;;  %v16860_v12 = vsel %vm7548_vm14, %v7484_v29, %v7612_v0  ;;  %10638 = vmatpush3.msra.mxu1 %v7787_v11  ;;  %v7785_v29 = vld [vmem:[%s18052_s9 + $0x18] sm:$0xff]  ;;  %v18884_v41 = vld [vmem:[#allocation22_spill] sm:$0xff] }
 0x653   :  { %18848 = vst [vmem:[#allocation74_spill] sm:$0xff] %v16860_v12  ;;  %v7273_v18 = vsub.f32 %v16518_v36, %v16679_v44  ;;  %v7353_v3 = vmul.f32 %v16694_v8, %v7287_v49  ;;  %vm7550_vm0 = vcmp.ge.f32.partialorder %v7486_v48, 0.0  ;;  %v7274_v42 = vsub.f32 %v16528_v31, %v16679_v44  ;;  %10639 = vmatprep.subr.mxu1 %v18844_v32 }
 0x654   :  { %v7744_v21 = vadd.f32 %v7743_v57, %v16860_v12  ;;  %v7421_v36 = vmul.f32 %v16739_v53, %v7351_v55  ;;  %v7489_v5 = vadd.f32 %v16756_v4, %v7419_v62  ;;  %v7615_v0 = vmul.f32 0.01, %v7487_v10  ;;  %10640 = vmatpush3.msra.mxu1 %v7786_v1  ;;  %v7784_v55 = vld [vmem:[%s18052_s9 + $0x10] sm:$0xff] }
 0x655   :  { %v16878_v37 = vsel %vm7549_vm15, %v7485_v33, %v7613_v54  ;;  %v7422_v49 = vmul.f32 %v16739_v53, %v7352_v24  ;;  %v7490_v46 = vadd.f32 %v16756_v4, %v7420_v25  ;;  %vm7551_vm1 = vcmp.ge.f32.partialorder %v7487_v10, 0.0  ;;  %10641 = vmatprep.subr.mxu1 %v18844_v32 }
 0x656   :  { %18849 = vst [vmem:[#allocation26_spill] sm:$0xff] %v16878_v37  ;;  %v7745_v31 = vadd.f32 %v7744_v21, %v16878_v37  ;;  %vm7552_vm2 = vcmp.ge.f32.partialorder %v7488_v61, 0.0  ;;  %v7616_v11 = vmul.f32 0.01, %v7488_v61  ;;  %v16888_v62 = vsel %vm7550_vm0, %v7486_v48, %v7614_v39  ;;  %10642 = vmatpush3.msra.mxu1 %v7785_v29  ;;  %v7783_v39 = vld [vmem:[%s18052_s9 + $0x8] sm:$0xff]  ;;  %v18888_v37 = vld [vmem:[#allocation8_spill] sm:$0xff] }
 0x657   :  { %18850 = vst [vmem:[#allocation12_spill] sm:$0xff] %v16888_v62  ;;  %v16891_v33 = vmul.f32 %v16694_v8, %v7270_v26  ;;  %v16895_v24 = vmul.f32 %v16694_v8, %v7271_v60  ;;  %v16898_v54 = vmul.f32 %v16694_v8, %v7272_v50  ;;  %v16901_v57 = vmul.f32 %v16694_v8, %v7273_v18 }
 0x658   :  { %v7746_v25 = vadd.f32 %v7745_v31, %v16888_v62  ;;  %10643 = vmatprep.subr.mxu1 %v18844_v32  ;;  %v7491_v26 = vadd.f32 %v16756_v4, %v7421_v36  ;;  %v7617_v48 = vmul.f32 0.01, %v7489_v5  ;;  %v16909_v1 = vsel %vm7551_vm1, %v7487_v10, %v7615_v0  ;;  %v7782_v10 = vld [vmem:[%s18052_s9] sm:$0xff]  ;;  %v18868_v0 = vld [vmem:[#allocation6_spill] sm:$0xff] }
 0x659   :  { %18851 = vst [vmem:[#allocation33_spill] sm:$0xff] %v16891_v33  ;;  %18852 = vst [vmem:[#allocation29_spill] sm:$0xff] %v16895_v24  ;;  %v16912_v60 = vmul.f32 %v16694_v8, %v7274_v42  ;;  %10644 = vmatpush3.msra.mxu1 %v7784_v55  ;;  %v7354_v50 = vmul.f32 %v16694_v8, %v7288_v17  ;;  %v7423_v18 = vmul.f32 %v16739_v53, %v7353_v3 }
 0x65a   :  { %18853 = vst [vmem:[#allocation14_spill] sm:$0xff] %v16898_v54  ;;  %18854 = vst [vmem:[#allocation37_spill] sm:$0xff] %v16901_v57  ;;  %vm7553_vm3 = vcmp.ge.f32.partialorder %v7489_v5, 0.0  ;;  %v7747_v21 = vadd.f32 %v7746_v25, %v16909_v1  ;;  %10645 = vmatprep.subr.mxu1 %v18844_v32  ;;  %v7492_v29 = vadd.f32 %v16756_v4, %v7422_v49  ;;  %v7618_v36 = vmul.f32 0.01, %v7490_v46 }
 0x65b   :  { %18855 = vst [vmem:[#allocation39_spill] sm:$0xff] %v16909_v1  ;;  %18856 = vst [vmem:[#allocation13_spill] sm:$0xff] %v16912_v60  ;;  %v16928_v27 = vsel %vm7552_vm2, %v7488_v61, %v7616_v11  ;;  %10646 = vmatpush3.msra.mxu1 %v7783_v39  ;;  %vm7554_vm4 = vcmp.ge.f32.partialorder %v7490_v46, 0.0  ;;  %v7355_v49 = vmul.f32 %v16694_v8, %v7289_v43  ;;  %v7619_v31 = vmul.f32 0.01, %v7491_v26  ;;  %v18863_v43 = vld [vmem:[#allocation80_spill] sm:$0xff] }
 0x65c   :  { %18857 = vst [vmem:[#allocation40_spill] sm:$0xff] %v16928_v27  ;;  %v7748_v3 = vadd.f32 %v7747_v21, %v16928_v27  ;;  %10647 = vmatprep.subr.mxu1 %v18844_v32  ;;  %v16941_v61 = vsel %vm7553_vm3, %v7489_v5, %v7617_v48  ;;  %v7424_v11 = vmul.f32 %v16739_v53, %v7354_v50  ;;  %vm7555_vm5 = vcmp.ge.f32.partialorder %v7491_v26, 0.0  ;;  %v18860_v50 = vld [vmem:[#allocation36_spill] sm:$0xff] }
 0x65d   :  { %18858 = vst [vmem:[#allocation83_spill] sm:$0xff] %v16941_v61  ;;  %10648 = vmatpush3.msra.mxu1 %v7782_v10  ;;  %v7493_v25 = vadd.f32 %v16756_v4, %v7423_v18  ;;  %v7620_v47 = vmul.f32 0.01, %v7492_v29  ;;  %v16949_v21 = vsel %vm7554_vm4, %v7490_v46, %v7618_v36  ;;  %vm7556_vm6 = vcmp.ge.f32.partialorder %v7492_v29, 0.0  ;;  %v18861_v10 = vld [vmem:[#allocation15_spill] sm:$0xff]  ;;  %v18864_v5 = vld [vmem:[#allocation16_spill] sm:$0xff] }
 0x65e   :  { %v7749_v39 = vadd.f32 %v7748_v3, %v16941_v61  ;;  %10652 = vmatprep.subr.mxu1 %v18844_v32  ;;  %18859 = vst [vmem:[#allocation56_spill] sm:$0xff] %v16949_v21  ;;  %v7356_v46 = vmul.f32 %v16694_v8, %v7290_v7  ;;  %v16964_v36 = vsel %vm7555_vm5, %v7491_v26, %v7619_v31  ;;  %v18867_v26 = vld [vmem:[#allocation19_spill] sm:$0xff]  ;;  %v18872_v7 = vld [vmem:[#allocation21_spill] sm:$0xff] }
 0x65f   :  { %18862 = vst [vmem:[#allocation41_spill] sm:$0xff] %v16964_v36  ;;  %v7494_v18 = vadd.f32 %v16756_v4, %v7424_v11  ;;  %v7621_v17 = vmul.f32 0.01, %v7493_v25  ;;  %vm7557_vm7 = vcmp.ge.f32.partialorder %v7493_v25, 0.0  ;;  %v16973_v42 = vsel %vm7556_vm6, %v7492_v29, %v7620_v47  ;;  %v18873_v31 = vld [vmem:[#allocation17_spill] sm:$0xff] }
 0x660   :  { %v7750_v48 = vadd.f32 %v7749_v39, %v16949_v21  ;;  %v7425_v39 = vmul.f32 %v16739_v53, %v7355_v49  ;;  %18865 = vst [vmem:[#allocation42_spill] sm:$0xff] %v16973_v42  ;;  %v18869_v49 = vld [vmem:[#allocation89_spill] sm:$0xff]  ;;  %v18870_v21 = vld [vmem:[#allocation66_spill] sm:$0xff]  ;;  %v18871_v29 = vsub.f32 %v16623_v45, %v16679_v44  ;;  %v7426_v61 = vmul.f32 %v16739_v53, %v7356_v46 }
 0x661   :  { %v7622_v27 = vmul.f32 0.01, %v7494_v18  ;;  %vm7558_vm9 = vcmp.ge.f32.partialorder %v7494_v18, 0.0  ;;  %v18889_v46 = vsub.f32 %v16628_v6, %v16679_v44  ;;  %v18893_v6 = vsub.f32 %v16648_v19, %v16679_v44 }
 0x662   :  { %v7751_v3 = vadd.f32 %v7750_v48, %v16964_v36  ;;  %v7357_v47 = vmul.f32 %v16694_v8, %v18871_v29  ;;  %v7495_v11 = vadd.f32 %v16756_v4, %v7425_v39  ;;  %v16998_v48 = vsel %vm7557_vm7, %v7493_v25, %v7621_v17  ;;  %v18876_v29 = vld [vmem:[#allocation20_spill] sm:$0xff]  ;;  %v18877_v36 = vld [vmem:[#allocation71_spill] sm:$0xff]  ;;  %v18880_v39 = vld [vmem:[#allocation9_spill] sm:$0xff] }
 0x663   :  { %18875 = vst [vmem:[#allocation59_spill] sm:$0xff] %v16998_v48  ;;  %v18881_v17 = vld [vmem:[#allocation25_spill] sm:$0xff]  ;;  %v7496_v12 = vadd.f32 %v16756_v4, %v7426_v61  ;;  %v17025_v25 = vsel %vm7558_vm9, %v7494_v18, %v7622_v27  ;;  %v18890_v27 = vsub.f32 %v16643_v38, %v16679_v44  ;;  %v18894_v38 = vsub.f32 %v16663_v16, %v16679_v44 }
 0x664   :  { %v7752_v55 = vadd.f32 %v7751_v3, %v16973_v42  ;;  %v18874_v42 = vld [vmem:[#allocation7_spill] sm:$0xff]  ;;  %v18878_v3 = vld [vmem:[#allocation70_spill] sm:$0xff]  ;;  %v7427_v23 = vmul.f32 %v16739_v53, %v7357_v47  ;;  %v7623_v60 = vmul.f32 0.01, %v7495_v11  ;;  %18886 = vst [vmem:[#allocation62_spill] sm:$0xff] %v17025_v25  ;;  %vm7559_vm10 = vcmp.ge.f32.partialorder %v7495_v11, 0.0 }
 0x665   :  { %v7360_v47 = vmul.f32 %v16694_v8, %v18889_v46  ;;  %v7361_v61 = vmul.f32 %v16694_v8, %v18890_v27  ;;  %v7364_v46 = vmul.f32 %v16694_v8, %v18893_v6  ;;  %v7365_v27 = vmul.f32 %v16694_v8, %v18894_v38 }
 0x666   :  { %v7753_v45 = vadd.f32 %v7752_v55, %v16998_v48  ;;  %v18882_v55 = vsub.f32 %v16633_v20, %v16679_v44  ;;  %v18883_v48 = vld [vmem:[#allocation31_spill] sm:$0xff]  ;;  %v18887_v20 = vsub.f32 %v16618_v22, %v16679_v44  ;;  %v18891_v22 = vsub.f32 %v16653_v34, %v16679_v44 }
 0x667   :  { %v18895_v34 = vsub.f32 %v16671_v56, %v16679_v44  ;;  %v7497_v19 = vadd.f32 %v16756_v4, %v7427_v23  ;;  %v7624_v6 = vmul.f32 0.01, %v7496_v12  ;;  %vm7560_vm11 = vcmp.ge.f32.partialorder %v7496_v12, 0.0 }
 0x668   :  { %v7358_v1 = vmul.f32 %v16694_v8, %v18882_v55  ;;  %v7359_v55 = vmul.f32 %v16694_v8, %v18887_v20  ;;  %v7754_v62 = vadd.f32 %v7753_v45, %v17025_v25  ;;  %v7362_v18 = vmul.f32 %v16694_v8, %v18891_v22 }
 0x669   :  { %v18892_v45 = vsub.f32 %v16638_v14, %v16679_v44  ;;  %v7366_v22 = vmul.f32 %v16694_v8, %v18895_v34  ;;  %v18896_v14 = vsub.f32 %v16658_v2, %v16679_v44  ;;  %v17068_v25 = vsel %vm7559_vm10, %v7495_v11, %v7623_v60 }
 0x66a   :  { %v7428_v57 = vmul.f32 %v16739_v53, %v7358_v1  ;;  %18897 = vst [vmem:[#allocation43_spill] sm:$0xff] %v17068_v25  ;;  %v7429_v16 = vmul.f32 %v16739_v53, %v7359_v55  ;;  %v7755_v38 = vadd.f32 %v7754_v62, %v17068_v25  ;;  %v7430_v54 = vmul.f32 %v16739_v53, %v7360_v47 }
 0x66b   :  { %v7363_v20 = vmul.f32 %v16694_v8, %v18892_v45  ;;  %v7367_v45 = vmul.f32 %v16694_v8, %v18896_v14  ;;  %v7431_v2 = vmul.f32 %v16739_v53, %v7361_v61  ;;  %v7432_v14 = vmul.f32 %v16739_v53, %v7362_v18 }
 0x66c   :  { %v7434_v23 = vmul.f32 %v16739_v53, %v7364_v46  ;;  %v7435_v60 = vmul.f32 %v16739_v53, %v7365_v27  ;;  %v7436_v11 = vmul.f32 %v16739_v53, %v7366_v22  ;;  %v7438_v62 = vmul.f32 %v16739_v53, %v16697_v51 }
 0x66d   :  { %v7433_v1 = vmul.f32 %v16739_v53, %v7363_v20  ;;  %v7437_v55 = vmul.f32 %v16739_v53, %v7367_v45  ;;  %v7498_v34 = vadd.f32 %v16756_v4, %v7428_v57  ;;  %v7625_v47 = vmul.f32 0.01, %v7497_v19 }
 0x66e   :  { %v17085_v25 = vsel %vm7560_vm11, %v7496_v12, %v7624_v6  ;;  %v7439_v61 = vmul.f32 %v16739_v53, %v16700_v52  ;;  %v7440_v18 = vmul.f32 %v16739_v53, %v16703_v59  ;;  %vm7561_vm8 = vcmp.ge.f32.partialorder %v7497_v19, 0.0 }
 0x66f   :  { %18899 = vst [vmem:[#allocation65_spill] sm:$0xff] %v17085_v25  ;;  %v7756_v20 = vadd.f32 %v7755_v38, %v17085_v25  ;;  %v7441_v46 = vmul.f32 %v16739_v53, %v16706_v28  ;;  %v7442_v51 = vmul.f32 %v16739_v53, %v16709_v9  ;;  %v18900_v57 = vsub.f32 %v16386_v13, %v16679_v44 }
 0x670   :  { %v18901_v52 = vsub.f32 %v16390_v40, %v16679_v44  ;;  %v7499_v59 = vadd.f32 %v16756_v4, %v7429_v16  ;;  %v7500_v22 = vadd.f32 %v16756_v4, %v7430_v54  ;;  %v17107_v45 = vadd.f32 %v16756_v4, %v7431_v2 }
 0x671   :  { %v7309_v12 = vmul.f32 %v16694_v8, %v18900_v57  ;;  %v17110_v28 = vadd.f32 %v16756_v4, %v7432_v14  ;;  %v17113_v9 = vadd.f32 %v16756_v4, %v7433_v1  ;;  %v17116_v13 = vadd.f32 %v16756_v4, %v7434_v23 }
 0x672   :  { %v7310_v27 = vmul.f32 %v16694_v8, %v18901_v52  ;;  %v7626_v6 = vmul.f32 0.01, %v7498_v34  ;;  %v17118_v40 = vsel %vm7561_vm8, %v7497_v19, %v7625_v47  ;;  %v17121_v38 = vadd.f32 %v16756_v4, %v7435_v60 }
 0x673   :  { %18902 = vst [vmem:[#allocation48_spill] sm:$0xff] %v17118_v40  ;;  %v17124_v54 = vadd.f32 %v16756_v4, %v7436_v11  ;;  %vm7562_vm12 = vcmp.ge.f32.partialorder %v7498_v34, 0.0  ;;  %v7757_v16 = vadd.f32 %v7756_v20, %v17118_v40  ;;  %v17128_v2 = vadd.f32 %v16756_v4, %v7437_v55 }
 0x674   :  { %v18903_v14 = vsub.f32 %v16384_v58, %v16679_v44  ;;  %v7379_v19 = vmul.f32 %v16739_v53, %v7309_v12  ;;  %v7380_v23 = vmul.f32 %v16739_v53, %v7310_v27  ;;  %v17137_v60 = vadd.f32 %v16756_v4, %v7438_v62 }
 0x675   :  { %v17140_v11 = vadd.f32 %v16756_v4, %v7439_v61  ;;  %v17143_v47 = vadd.f32 %v16756_v4, %v7440_v18  ;;  %v17146_v55 = vadd.f32 %v16756_v4, %v7441_v46  ;;  %vm7563_vm13 = vcmp.ge.f32.partialorder %v7499_v59, 0.0 }
 0x676   :  { %v7311_v1 = vmul.f32 %v16694_v8, %v18903_v14  ;;  %v7627_v58 = vmul.f32 0.01, %v7499_v59  ;;  %v17148_v20 = vsel %vm7562_vm12, %v7498_v34, %v7626_v6  ;;  %v18905_v57 = vsub.f32 %v16388_v63, %v16679_v44 }
 0x677   :  { %18904 = vst [vmem:[#allocation46_spill] sm:$0xff] %v17148_v20  ;;  %vm7564_vm14 = vcmp.ge.f32.partialorder %v7500_v22, 0.0  ;;  %vm7565_vm15 = vcmp.ge.f32.partialorder %v17107_v45, 0.0  ;;  %v7628_v62 = vmul.f32 0.01, %v7500_v22  ;;  %v7758_v61 = vadd.f32 %v7757_v16, %v17148_v20 }
 0x678   :  { %v7312_v12 = vmul.f32 %v16694_v8, %v18905_v57  ;;  %v18906_v18 = vsub.f32 %v18860_v50, %v16679_v44  ;;  %v7381_v52 = vmul.f32 %v16739_v53, %v7311_v1  ;;  %v7449_v34 = vadd.f32 %v16756_v4, %v7379_v19 }
 0x679   :  { %v7450_v27 = vadd.f32 %v16756_v4, %v7380_v23  ;;  %v17164_v63 = vadd.f32 %v16756_v4, %v7442_v51  ;;  %v7629_v6 = vmul.f32 0.01, %v17107_v45  ;;  %v7630_v14 = vmul.f32 0.01, %v17110_v28 }
 0x67a   :  { %v7313_v46 = vmul.f32 %v16694_v8, %v18906_v18  ;;  %v17169_v16 = vmul.f32 0.01, %v17113_v9  ;;  %vm7566_vm0 = vcmp.ge.f32.partialorder %v17110_v28, 0.0  ;;  %v17173_v50 = vmul.f32 0.01, %v17116_v13 }
 0x67b   :  { %18907 = vst [vmem:[#allocation69_spill] sm:$0xff] %v17164_v63  ;;  %v17176_v1 = vsel %vm7563_vm13, %v7499_v59, %v7627_v58  ;;  %v18909_v19 = vsub.f32 %v18861_v10, %v16679_v44  ;;  %v7382_v23 = vmul.f32 %v16739_v53, %v7312_v12  ;;  %v17184_v57 = vmul.f32 0.01, %v17121_v38 }
 0x67c   :  { %18908 = vst [vmem:[#allocation72_spill] sm:$0xff] %v17176_v1  ;;  %v17187_v18 = vmul.f32 0.01, %v17124_v54  ;;  %v7759_v20 = vadd.f32 %v7758_v61, %v17176_v1  ;;  %v18910_v40 = vsub.f32 %v18863_v43, %v16679_v44  ;;  %v7383_v58 = vmul.f32 %v16739_v53, %v7313_v46 }
 0x67d   :  { %v7314_v51 = vmul.f32 %v16694_v8, %v18909_v19  ;;  %v7451_v10 = vadd.f32 %v16756_v4, %v7381_v52  ;;  %v7577_v19 = vmul.f32 0.01, %v7449_v34  ;;  %v7578_v25 = vmul.f32 0.01, %v7450_v27 }
 0x67e   :  { %v7315_v59 = vmul.f32 %v16694_v8, %v18910_v40  ;;  %v17197_v12 = vmul.f32 0.01, %v17128_v2  ;;  %v17200_v24 = vmul.f32 0.01, %v17137_v60  ;;  %vm7513_vm1 = vcmp.ge.f32.partialorder %v7449_v34, 0.0 }
 0x67f   :  { %vm7514_vm2 = vcmp.ge.f32.partialorder %v7450_v27, 0.0  ;;  %vm7567_vm3 = vcmp.ge.f32.partialorder %v17113_v9, 0.0  ;;  %v17204_v43 = vsel %vm7564_vm14, %v7500_v22, %v7628_v62  ;;  %v18912_v40 = vsub.f32 %v18864_v5, %v16679_v44 }
 0x680   :  { %18911 = vst [vmem:[#allocation45_spill] sm:$0xff] %v17204_v43  ;;  %v7384_v46 = vmul.f32 %v16739_v53, %v7314_v51  ;;  %v7452_v52 = vadd.f32 %v16756_v4, %v7382_v23  ;;  %v17213_v1 = vmul.f32 0.01, %v17140_v11  ;;  %v7760_v33 = vadd.f32 %v7759_v20, %v17204_v43 }
 0x681   :  { %v7316_v61 = vmul.f32 %v16694_v8, %v18912_v40  ;;  %v18913_v63 = vsub.f32 %v18866_v35, %v16679_v44  ;;  %v7385_v62 = vmul.f32 %v16739_v53, %v7315_v59  ;;  %v7453_v5 = vadd.f32 %v16756_v4, %v7383_v58 }
 0x682   :  { %v7579_v56 = vmul.f32 0.01, %v7451_v10  ;;  %v17222_v40 = vsel %vm7513_vm1, %v7449_v34, %v7577_v19  ;;  %v17224_v51 = vsel %vm7514_vm2, %v7450_v27, %v7578_v25  ;;  %v17227_v23 = vmul.f32 0.01, %v17143_v47 }
 0x683   :  { %v7317_v22 = vmul.f32 %v16694_v8, %v18913_v63  ;;  %v17232_v20 = vsel %vm7565_vm15, %v17107_v45, %v7629_v6  ;;  %v18914_v35 = vsub.f32 %v18867_v26, %v16679_v44  ;;  %vm7515_vm4 = vcmp.ge.f32.partialorder %v7451_v10, 0.0 }
 0x684   :  { %vm7568_vm5 = vcmp.ge.f32.partialorder %v17116_v13, 0.0  ;;  %v18915_v25 = vsub.f32 %v18868_v0, %v16679_v44  ;;  %v7386_v27 = vmul.f32 %v16739_v53, %v7316_v61  ;;  %v7454_v59 = vadd.f32 %v16756_v4, %v7384_v46 }
 0x685   :  { %v7318_v63 = vmul.f32 %v16694_v8, %v18914_v35  ;;  %v7580_v58 = vmul.f32 0.01, %v7452_v52  ;;  %v7761_v45 = vadd.f32 %v7760_v33, %v17232_v20  ;;  %vm7516_vm6 = vcmp.ge.f32.partialorder %v7452_v52, 0.0 }
 0x686   :  { %v7319_v34 = vmul.f32 %v16694_v8, %v18915_v25  ;;  %v7705_v26 = vadd.f32 %v17224_v51, %v17222_v40  ;;  %v7387_v6 = vmul.f32 %v16739_v53, %v7317_v22  ;;  %v7455_v19 = vadd.f32 %v16756_v4, %v7385_v62 }
 0x687   :  { %v7581_v35 = vmul.f32 0.01, %v7453_v5  ;;  %v17250_v43 = vsel %vm7515_vm4, %v7451_v10, %v7579_v56  ;;  %vm11300_vm7 = vmmov 0   ;;  %v17257_v0 = vsel %vm7566_vm0, %v17110_v28, %v7630_v14 }
 0x688   :  { %10649 = vmatprep.mubr.msk.f32.mxu1 %vm11300_vm7, %v18844_v32  ;;  %v18916_v33 = vsub.f32 %v18869_v49, %v16679_v44  ;;  %vm7517_vm9 = vcmp.ge.f32.partialorder %v7453_v5, 0.0  ;;  %v7706_v46 = vadd.f32 %v7705_v26, %v17250_v43  ;;  %vm7569_vm10 = vcmp.ge.f32.partialorder %v17121_v38, 0.0 }
 0x689   :  { %v7388_v56 = vmul.f32 %v16739_v53, %v7318_v63  ;;  %v7456_v10 = vadd.f32 %v16756_v4, %v7386_v27  ;;  %v7582_v22 = vmul.f32 0.01, %v7454_v59  ;;  %v17268_v62 = vsel %vm7516_vm6, %v7452_v52, %v7580_v58 }
 0x68a   :  { %v7320_v61 = vmul.f32 %v16694_v8, %v18916_v33  ;;  %v7762_v28 = vadd.f32 %v7761_v45, %v17257_v0  ;;  %v18917_v49 = vsub.f32 %v18870_v21, %v16679_v44  ;;  %vm7518_vm11 = vcmp.ge.f32.partialorder %v7454_v59, 0.0 }
 0x68b   :  { %v7707_v25 = vadd.f32 %v7706_v46, %v17268_v62  ;;  %v7389_v26 = vmul.f32 %v16739_v53, %v7319_v34  ;;  %v7457_v63 = vadd.f32 %v16756_v4, %v7387_v6  ;;  %v7583_v33 = vmul.f32 0.01, %v7455_v19 }
 0x68c   :  { %v7321_v14 = vmul.f32 %v16694_v8, %v18917_v49  ;;  %v17278_v27 = vsel %vm7517_vm9, %v7453_v5, %v7581_v35  ;;  %v17284_v52 = vsel %vm7567_vm3, %v17113_v9, %v17169_v16  ;;  %v18918_v21 = vsub.f32 %v18872_v7, %v16679_v44 }
 0x68d   :  { %vm7519_vm8 = vcmp.ge.f32.partialorder %v7455_v19, 0.0  ;;  %v7708_v45 = vadd.f32 %v7707_v25, %v17278_v27  ;;  %vm7570_vm12 = vcmp.ge.f32.partialorder %v17124_v54, 0.0  ;;  %v7390_v34 = vmul.f32 %v16739_v53, %v7320_v61 }
 0x68e   :  { %v7322_v58 = vmul.f32 %v16694_v8, %v18918_v21  ;;  %v7458_v5 = vadd.f32 %v16756_v4, %v7388_v56  ;;  %v7584_v6 = vmul.f32 0.01, %v7456_v10  ;;  %v17294_v35 = vsel %vm7518_vm11, %v7454_v59, %v7582_v22 }
 0x68f   :  { %v7763_v9 = vadd.f32 %v7762_v28, %v17284_v52  ;;  %v18919_v16 = vsub.f32 %v18873_v31, %v16679_v44  ;;  %vm7520_vm13 = vcmp.ge.f32.partialorder %v7456_v10, 0.0  ;;  %v7709_v46 = vadd.f32 %v7708_v45, %v17294_v35 }
 0x690   :  { %v7391_v49 = vmul.f32 %v16739_v53, %v7321_v14  ;;  %v7459_v25 = vadd.f32 %v16756_v4, %v7389_v26  ;;  %v7585_v61 = vmul.f32 0.01, %v7457_v63  ;;  %v17304_v21 = vsel %vm7519_vm8, %v7455_v19, %v7583_v33 }
 0x691   :  { %v7323_v7 = vmul.f32 %v16694_v8, %v18919_v16  ;;  %v17310_v59 = vsel %vm7568_vm5, %v17116_v13, %v17173_v50  ;;  %v18920_v31 = vsub.f32 %v18874_v42, %v16679_v44  ;;  %vm7521_vm14 = vcmp.ge.f32.partialorder %v7457_v63, 0.0 }
 0x692   :  { %v7710_v22 = vadd.f32 %v7709_v46, %v17304_v21  ;;  %vm7571_vm15 = vcmp.ge.f32.partialorder %v17128_v2, 0.0  ;;  %v7392_v28 = vmul.f32 %v16739_v53, %v7322_v58  ;;  %v7460_v19 = vadd.f32 %v16756_v4, %v7390_v34 }
 0x693   :  { %v7324_v56 = vmul.f32 %v16694_v8, %v18920_v31  ;;  %v7586_v14 = vmul.f32 0.01, %v7458_v5  ;;  %v17320_v26 = vsel %vm7520_vm13, %v7456_v10, %v7584_v6  ;;  %v7764_v13 = vadd.f32 %v7763_v9, %v17310_v59 }
 0x694   :  { %v18921_v50 = vsub.f32 %v18876_v29, %v16679_v44  ;;  %vm7522_vm0 = vcmp.ge.f32.partialorder %v7458_v5, 0.0  ;;  %v7711_v33 = vadd.f32 %v7710_v22, %v17320_v26  ;;  %v7393_v45 = vmul.f32 %v16739_v53, %v7323_v7 }
 0x695   :  { %v7461_v16 = vadd.f32 %v16756_v4, %v7391_v49  ;;  %v7587_v58 = vmul.f32 0.01, %v7459_v25  ;;  %v17330_v46 = vsel %vm7521_vm14, %v7457_v63, %v7585_v61  ;;  %v17336_v10 = vsel %vm7569_vm10, %v17121_v38, %v17184_v57 }
 0x696   :  { %v7325_v42 = vmul.f32 %v16694_v8, %v18921_v50  ;;  %v18922_v29 = vsub.f32 %v18877_v36, %v16679_v44  ;;  %vm7523_vm1 = vcmp.ge.f32.partialorder %v7459_v25, 0.0  ;;  %v7712_v6 = vadd.f32 %v7711_v33, %v17330_v46 }
 0x697   :  { %vm7572_vm2 = vcmp.ge.f32.partialorder %v17137_v60, 0.0  ;;  %v7394_v9 = vmul.f32 %v16739_v53, %v7324_v56  ;;  %v7462_v63 = vadd.f32 %v16756_v4, %v7392_v28  ;;  %v7588_v7 = vmul.f32 0.01, %v7460_v19 }
 0x698   :  { %v7326_v34 = vmul.f32 %v16694_v8, %v18922_v29  ;;  %v17346_v49 = vsel %vm7522_vm0, %v7458_v5, %v7586_v14  ;;  %v7765_v38 = vadd.f32 %v7764_v13, %v17336_v10  ;;  %v18923_v57 = vsub.f32 %v18878_v3, %v16679_v44 }
 0x699   :  { %vm7524_vm3 = vcmp.ge.f32.partialorder %v7460_v19, 0.0  ;;  %v7713_v61 = vadd.f32 %v7712_v6, %v17346_v49  ;;  %v7395_v31 = vmul.f32 %v16739_v53, %v7325_v42  ;;  %v7463_v22 = vadd.f32 %v16756_v4, %v7393_v45 }
 0x69a   :  { %v7327_v36 = vmul.f32 %v16694_v8, %v18923_v57  ;;  %v7589_v56 = vmul.f32 0.01, %v7461_v16  ;;  %v17356_v50 = vsel %vm7523_vm1, %v7459_v25, %v7587_v58  ;;  %v17362_v5 = vsel %vm7570_vm12, %v17124_v54, %v17187_v18 }
 0x69b   :  { %v18924_v3 = vsub.f32 %v18879_v30, %v16679_v44  ;;  %vm7525_vm4 = vcmp.ge.f32.partialorder %v7461_v16, 0.0  ;;  %v7714_v14 = vadd.f32 %v7713_v61, %v17356_v50  ;;  %vm7573_vm5 = vcmp.ge.f32.partialorder %v17140_v11, 0.0 }
 0x69c   :  { %v7396_v13 = vmul.f32 %v16739_v53, %v7326_v34  ;;  %v7464_v25 = vadd.f32 %v16756_v4, %v7394_v9  ;;  %v7590_v42 = vmul.f32 0.01, %v7462_v63  ;;  %v17372_v33 = vsel %vm7524_vm3, %v7460_v19, %v7588_v7 }
 0x69d   :  { %v7328_v28 = vmul.f32 %v16694_v8, %v18924_v3  ;;  %v7766_v54 = vadd.f32 %v7765_v38, %v17362_v5  ;;  %v18925_v18 = vsub.f32 %v18880_v39, %v16679_v44  ;;  %vm7526_vm6 = vcmp.ge.f32.partialorder %v7462_v63, 0.0 }
 0x69e   :  { %v7715_v45 = vadd.f32 %v7714_v14, %v17372_v33  ;;  %v7397_v58 = vmul.f32 %v16739_v53, %v7327_v36  ;;  %v7465_v29 = vadd.f32 %v16756_v4, %v7395_v31  ;;  %v7591_v34 = vmul.f32 0.01, %v7463_v22 }
 0x69f   :  { %v7329_v30 = vmul.f32 %v16694_v8, %v18925_v18  ;;  %v17382_v6 = vsel %vm7525_vm4, %v7461_v16, %v7589_v56  ;;  %v17388_v19 = vsel %vm7571_vm15, %v17128_v2, %v17197_v12  ;;  %v18926_v39 = vsub.f32 %v18881_v17, %v16679_v44 }
 0x6a0   :  { %vm7527_vm9 = vcmp.ge.f32.partialorder %v7463_v22, 0.0  ;;  %v7716_v7 = vadd.f32 %v7715_v45, %v17382_v6  ;;  %vm7574_vm10 = vcmp.ge.f32.partialorder %v17143_v47, 0.0  ;;  %v7398_v38 = vmul.f32 %v16739_v53, %v7328_v28 }
 0x6a1   :  { %v7330_v9 = vmul.f32 %v16694_v8, %v18926_v39  ;;  %v7466_v16 = vadd.f32 %v16756_v4, %v7396_v13  ;;  %v7592_v57 = vmul.f32 0.01, %v7464_v25  ;;  %v17398_v36 = vsel %vm7526_vm6, %v7462_v63, %v7590_v42 }
 0x6a2   :  { %v7767_v2 = vadd.f32 %v7766_v54, %v17388_v19  ;;  %v18927_v12 = vsub.f32 %v18883_v48, %v16679_v44  ;;  %vm7528_vm11 = vcmp.ge.f32.partialorder %v7464_v25, 0.0  ;;  %v7717_v61 = vadd.f32 %v7716_v7, %v17398_v36 }
 0x6a3   :  { %v7399_v31 = vmul.f32 %v16739_v53, %v7329_v30  ;;  %v7467_v56 = vadd.f32 %v16756_v4, %v7397_v58  ;;  %v7593_v3 = vmul.f32 0.01, %v7465_v29  ;;  %v17408_v28 = vsel %vm7527_vm9, %v7463_v22, %v7591_v34 }
 0x6a4   :  { %v7331_v17 = vmul.f32 %v16694_v8, %v18927_v12  ;;  %v17414_v63 = vsel %vm7572_vm2, %v17137_v60, %v17200_v24  ;;  %v18928_v48 = vsub.f32 %v18884_v41, %v16679_v44  ;;  %vm7529_vm8 = vcmp.ge.f32.partialorder %v7465_v29, 0.0 }
 0x6a5   :  { %v7718_v13 = vadd.f32 %v7717_v61, %v17408_v28  ;;  %vm7575_vm12 = vcmp.ge.f32.partialorder %v17146_v55, 0.0  ;;  %v7400_v42 = vmul.f32 %v16739_v53, %v7330_v9  ;;  %v7468_v22 = vadd.f32 %v16756_v4, %v7398_v38 }
 0x6a6   :  { %v7332_v14 = vmul.f32 %v16694_v8, %v18928_v48  ;;  %v7594_v54 = vmul.f32 0.01, %v7466_v16  ;;  %v17424_v18 = vsel %vm7528_vm11, %v7464_v25, %v7592_v57  ;;  %v7768_v24 = vadd.f32 %v7767_v2, %v17414_v63 }
 0x6a7   :  { %v18929_v60 = vsub.f32 %v18885_v15, %v16679_v44  ;;  %vm7530_vm13 = vcmp.ge.f32.partialorder %v7466_v16, 0.0  ;;  %v7719_v30 = vadd.f32 %v7718_v13, %v17424_v18  ;;  %v7401_v45 = vmul.f32 %v16739_v53, %v7331_v17  ;;  %v18931_v17 = vld [vmem:[#allocation73_spill] sm:$0xff] }
 0x6a8   :  { %v7469_v58 = vadd.f32 %v16756_v4, %v7399_v31  ;;  %v7595_v34 = vmul.f32 0.01, %v7467_v56  ;;  %v17434_v39 = vsel %vm7529_vm8, %v7465_v29, %v7593_v3  ;;  %v17440_v25 = vsel %vm7573_vm5, %v17140_v11, %v17213_v1 }
 0x6a9   :  { %v7333_v41 = vmul.f32 %v16694_v8, %v18929_v60  ;;  %v18930_v15 = vsub.f32 %v18888_v37, %v16679_v44  ;;  %vm7531_vm14 = vcmp.ge.f32.partialorder %v7467_v56, 0.0  ;;  %v7720_v7 = vadd.f32 %v7719_v30, %v17434_v39 }
 0x6aa   :  { %v7402_v38 = vmul.f32 %v16739_v53, %v7332_v14  ;;  %v7470_v57 = vadd.f32 %v16756_v4, %v7400_v42  ;;  %v7596_v29 = vmul.f32 0.01, %v7468_v22  ;;  %v17449_v2 = vsel %vm7530_vm13, %v7466_v16, %v7594_v54 }
 0x6ab   :  { %v7334_v9 = vmul.f32 %v16694_v8, %v18930_v15  ;;  %v7769_v12 = vadd.f32 %v7768_v24, %v17440_v25  ;;  %v18932_v11 = vsub.f32 %v18931_v17, %v16679_v44  ;;  %vm7532_vm15 = vcmp.ge.f32.partialorder %v7468_v22, 0.0  ;;  %v18934_v15 = vld [vmem:[#allocation33_spill] sm:$0xff] }
 0x6ac   :  { %v7721_v37 = vadd.f32 %v7720_v7, %v17449_v2  ;;  %v7403_v61 = vmul.f32 %v16739_v53, %v7333_v41  ;;  %v7471_v31 = vadd.f32 %v16756_v4, %v7401_v45  ;;  %v7597_v3 = vmul.f32 0.01, %v7469_v58  ;;  %v18935_v17 = vld [vmem:[#allocation29_spill] sm:$0xff] }
 0x6ad   :  { %v7335_v1 = vmul.f32 %v16694_v8, %v18932_v11  ;;  %v17459_v48 = vsel %vm7531_vm14, %v7467_v56, %v7595_v34  ;;  %v7639_v16 = vmul.f32 0.01, %v17146_v55  ;;  %v17466_v14 = vsel %vm7574_vm10, %v17143_v47, %v17227_v23  ;;  %v18933_v56 = vld [vmem:[#allocation69_spill] sm:$0xff] }
 0x6ae   :  { %vm7533_vm0 = vcmp.ge.f32.partialorder %v7469_v58, 0.0  ;;  %v7722_v44 = vadd.f32 %v7721_v37, %v17459_v48  ;;  %v7404_v8 = vmul.f32 %v16739_v53, %v7334_v9  ;;  %v7472_v13 = vadd.f32 %v16756_v4, %v7402_v38 }
 0x6af   :  { %v7598_v42 = vmul.f32 0.01, %v7470_v57  ;;  %v17471_v54 = vsel %vm7532_vm15, %v7468_v22, %v7596_v29  ;;  %vm7576_vm1 = vcmp.ge.f32.partialorder %v18933_v56, 0.0  ;;  %v7770_v24 = vadd.f32 %v7769_v12, %v17466_v14 }
 0x6b0   :  { %vm7534_vm2 = vcmp.ge.f32.partialorder %v7470_v57, 0.0  ;;  %v7723_v60 = vadd.f32 %v7722_v44, %v17471_v54  ;;  %v7405_v47 = vmul.f32 %v16739_v53, %v7335_v1  ;;  %v7473_v23 = vadd.f32 %v16756_v4, %v7403_v61 }
 0x6b1   :  { %v7599_v41 = vmul.f32 0.01, %v7471_v31  ;;  %v17478_v30 = vsel %vm7533_vm0, %v7469_v58, %v7597_v3  ;;  %v7640_v45 = vmul.f32 0.01, %v18933_v56  ;;  %v17484_v22 = vsel %vm7575_vm12, %v17146_v55, %v7639_v16  ;;  %v18937_v3 = vld [vmem:[#allocation14_spill] sm:$0xff] }
 0x6b2   :  { %vm7535_vm3 = vcmp.ge.f32.partialorder %v7471_v31, 0.0  ;;  %v7724_v34 = vadd.f32 %v7723_v60, %v17478_v30  ;;  %v7406_v9 = vmul.f32 %v16739_v53, %v18934_v15  ;;  %v7474_v7 = vadd.f32 %v16756_v4, %v7404_v8  ;;  %v18938_v60 = vld [vmem:[#allocation37_spill] sm:$0xff] }
 0x6b3   :  { %v7600_v38 = vmul.f32 0.01, %v7472_v13  ;;  %v17490_v29 = vsel %vm7534_vm2, %v7470_v57, %v7598_v42  ;;  %v7771_v58 = vadd.f32 %v7770_v24, %v17484_v22  ;;  %vm7536_vm4 = vcmp.ge.f32.partialorder %v7472_v13, 0.0  ;;  %v18939_v15 = vld [vmem:[#allocation13_spill] sm:$0xff] }
 0x6b4   :  { %v7725_v12 = vadd.f32 %v7724_v34, %v17490_v29  ;;  %v7407_v55 = vmul.f32 %v16739_v53, %v18935_v17  ;;  %v7475_v11 = vadd.f32 %v16756_v4, %v7405_v47  ;;  %v7601_v1 = vmul.f32 0.01, %v7473_v23 }
 0x6b5   :  { %v17497_v37 = vsel %vm7535_vm3, %v7471_v31, %v7599_v41  ;;  %v17502_v61 = vsel %vm7576_vm1, %v18933_v56, %v7640_v45  ;;  %vm7537_vm5 = vcmp.ge.f32.partialorder %v7473_v23, 0.0  ;;  %v7408_v16 = vmul.f32 %v16739_v53, %v18937_v3 }
 0x6b6   :  { %18936 = vst [vmem:[#allocation52_spill] sm:$0xff] %v17502_v61  ;;  %v7726_v57 = vadd.f32 %v7725_v12, %v17497_v37  ;;  %v7476_v44 = vadd.f32 %v16756_v4, %v7406_v9  ;;  %v7602_v8 = vmul.f32 0.01, %v7474_v7  ;;  %v17508_v42 = vsel %vm7536_vm4, %v7472_v13, %v7600_v38 }
 0x6b7   :  { %v7772_v24 = vadd.f32 %v7771_v58, %v17502_v61  ;;  %vm7538_vm6 = vcmp.ge.f32.partialorder %v7474_v7, 0.0  ;;  %v7409_v56 = vmul.f32 %v16739_v53, %v18938_v60  ;;  %v7477_v47 = vadd.f32 %v16756_v4, %v7407_v55 }
 0x6b8   :  { %v7727_v31 = vadd.f32 %v7726_v57, %v17508_v42  ;;  %v7603_v41 = vmul.f32 0.01, %v7475_v11  ;;  %v17515_v45 = vsel %vm7537_vm5, %v7473_v23, %v7601_v1  ;;  %vm7539_vm9 = vcmp.ge.f32.partialorder %v7475_v11, 0.0 }
 0x6b9   :  { %v7410_v13 = vmul.f32 %v16739_v53, %v18939_v15  ;;  %v7478_v9 = vadd.f32 %v16756_v4, %v7408_v16  ;;  %v7604_v38 = vmul.f32 0.01, %v7476_v44  ;;  %v17521_v58 = vsel %vm7538_vm6, %v7474_v7, %v7602_v8 }
 0x6ba   :  { %v7728_v34 = vadd.f32 %v7727_v31, %v17515_v45  ;;  %v7773_v12 = vrot.slane %v7772_v24, 4  ;;  %vm7540_vm10 = vcmp.ge.f32.partialorder %v7476_v44, 0.0  ;;  %v7479_v55 = vadd.f32 %v16756_v4, %v7409_v56 }
 0x6bb   :  { %v7605_v57 = vmul.f32 0.01, %v7477_v47  ;;  %v17525_v23 = vsel %vm7539_vm9, %v7475_v11, %v7603_v41  ;;  %vm7541_vm11 = vcmp.ge.f32.partialorder %v7477_v47, 0.0  ;;  %v7480_v3 = vadd.f32 %v16756_v4, %v7410_v13 }
 0x6bc   :  { %v7729_v17 = vadd.f32 %v7728_v34, %v17521_v58  ;;  %v7606_v53 = vmul.f32 0.01, %v7478_v9  ;;  %v17529_v31 = vsel %vm7540_vm10, %v7476_v44, %v7604_v38  ;;  %vm7542_vm8 = vcmp.ge.f32.partialorder %v7478_v9, 0.0 }
 0x6bd   :  { %v7774_v16 = vadd.f32 %v7773_v12, %v7772_v24  ;;  %v7607_v8 = vmul.f32 0.01, %v7479_v55  ;;  %v17532_v60 = vsel %vm7541_vm11, %v7477_v47, %v7605_v57  ;;  %vm7543_vm12 = vcmp.ge.f32.partialorder %v7479_v55, 0.0 }
 0x6be   :  { %v7730_v1 = vadd.f32 %v7729_v17, %v17525_v23  ;;  %v7608_v11 = vmul.f32 0.01, %v7480_v3  ;;  %v17535_v41 = vsel %vm7542_vm8, %v7478_v9, %v7606_v53  ;;  %vm7544_vm13 = vcmp.ge.f32.partialorder %v7480_v3, 0.0 }
 0x6bf   :  { %v7775_v4 = vrot.slane %v7774_v16, 2  ;;  %v17538_v15 = vsel %vm7543_vm12, %v7479_v55, %v7607_v8  ;;  %vm7807_vm14 = vcmask 1041409   ;;  %vm7893_vm15 = vcmask 1043456  }
 0x6c0   :  { %v7731_v7 = vadd.f32 %v7730_v1, %v17529_v31  ;;  %v17541_v13 = vsel %vm7544_vm13, %v7480_v3, %v7608_v11  ;;  %v7881_v3 = vld [vmem:[%s18054_s11] sm:$0xf]  ;;  %vm7889_vm0 = vcmask 31744  }
 0x6c1   :  { %v7776_v47 = vadd.f32 %v7775_v4, %v7774_v16  ;;  %v9227_v16 = vld [vmem:[%s18053_s10] ss:$0 sm:$0xff] }
 0x6c2   :  { %v7732_v56 = vadd.f32 %v7731_v7, %v17532_v60 }
 0x6c3   :  { %v7777_v17 = vrot.slane %v7776_v47, 1 }
 0x6c4   :  { %v7733_v34 = vadd.f32 %v7732_v56, %v17535_v41 }
 0x6c5   :  { %v7778_v9 = vadd.f32 %v7777_v17, %v7776_v47  ;;  %v11301_v17 = vmov 1966171168  }
 0x6c6   :  { %v7734_v44 = vadd.f32 %v7733_v34, %v17538_v15 }
 0x6c7   :  { %v7781_v61 = vmul.f32 0.00390625, %v7778_v9 }
 0x6c8   :  { %v7735_v24 = vadd.f32 %v7734_v44, %v17541_v13 }
 0x6ca   :  { %v7736_v38 = vrot.slane %v7735_v24, 4 }
 0x6cc   :  { %v7737_v12 = vadd.f32 %v7736_v38, %v7735_v24 }
 0x6ce   :  { %v7738_v57 = vrot.slane %v7737_v12, 2 }
 0x6d0   :  { %v7739_v1 = vadd.f32 %v7738_v57, %v7737_v12  ;;  %v7975_v57 = vunpack.c.l.s4 %v11301_v17 }
 0x6d2   :  { %v7740_v53 = vrot.slane %v7739_v1, 1  ;;  %v7976_v9 = vunpack.c.0.s8 %v7975_v57  ;;  %v18942_v57 = vld [vmem:[#allocation27_spill] sm:$0xff] }
 0x6d4   :  { %v7741_v7 = vadd.f32 %v7740_v53, %v7739_v1  ;;  %v7977_v1 = vlaneseq }
 0x6d6   :  { %v7780_v56 = vmul.f32 0.00390625, %v7741_v7  ;;  %v7978_v53 = vshrl.u32 %v7977_v1, 7 }
 0x6d8   :  { %v7808_v55 = vsel %vm7807_vm14, %v7781_v61, %v7780_v56  ;;  %v7979_v7 = vsub.s32 %v7976_v9, %v7978_v53  ;;  %v18945_v9 = vld [vmem:[#allocation12_spill] sm:$0xff] }
 0x6d9   :  { %10650 = vmatmul.mubr.f32.vlgmr.msra.gmra.mxu1 %v7808_v55 }
 0x6da   :  { %10654 = vmatprep.mubr.msk.f32.mxu1 %vm11300_vm7, %v18844_v32  ;;  %10653 = vmatpush3.msk.msra.mxu1 %vm7893_vm15, %v7881_v3  ;;  %v9228_v32 = vld [vmem:[%s18055_s12] ss:$0 sm:$0xff]  ;;  %v7998_v3 = vsub.s32 0, %v7978_v53 }
 0x799   :  { %v7876_v8 = vpop.f32.mrf.mxu1 }
 0x79a   :  { %v7877_v11 = vadd.f32 %v9227_v16, %v7876_v8 }
 0x79b   :  { %v10651_v34 = vpop.f32.mrf.mxu1 }
 0x79c   :  { %v7880_v4 = vmax.f32 %v7877_v11, 0.0 }
 0x79e   :  { %10655 = vmatmul.mubr.msk.f32.vlgmr.msra.gmra.mxu1 %vm7889_vm0, %v7880_v4 }
 0x85e   :  { %v7963_v61 = vpop.f32.mrf.mxu1 }
 0x85f   :  { %v7964_v44 = vadd.f32 %v9228_v32, %v7963_v61 }
 0x860   :  { %v10656_v24 = vpop.f32.mrf.mxu1 }
 0x861   :  { %v9231_v47 = vmul.f32 -1.442695, %v7964_v44 }
 0x863   :  { %11022 = vpow2.f32 %v9231_v47 }
 0x870   :  { %v11023_v38 = vpop.eup %11022 }
 0x871   :  { %v7970_v12 = vadd.f32 1.0, %v11023_v38 }
 0x873   :  { %11024 = vrcp.f32 %v7970_v12 }
 0x880   :  { %v11025_v56 = vpop.eup %11024 }
 0x881   :  { %v7980_v55 = vrot.slane %v11025_v56, %v7979_v7 }
 0x883   :  { %v7981_v16 = vcombine.high %v7980_v55, %v7980_v55  ;;  %v7988_v8 = vrot.slane %v7980_v55, %v7979_v7  ;;  %v18947_v55 = vld [vmem:[#allocation40_spill] sm:$0xff] }
 0x885   :  { %v7995_v11 = vrot.slane %v7981_v16, %v7979_v7  ;;  %v7999_v34 = vrot.slane %v7988_v8, %v7998_v3  ;;  %v18946_v7 = vld [vmem:[#allocation39_spill] sm:$0xff] }
 0x886   :  { %v18948_v16 = vld [vmem:[#allocation83_spill] sm:$0xff] }
 0x887   :  { %v17555_v4 = vrot.slane %v7995_v11, %v7998_v3  ;;  %v17558_v32 = vmul.f32 %v7999_v34, %v17222_v40  ;;  %v17561_v61 = vmul.f32 %v7999_v34, %v17224_v51  ;;  %v17564_v44 = vmul.f32 %v7999_v34, %v17250_v43  ;;  %v18949_v11 = vld [vmem:[#allocation56_spill] sm:$0xff] }
 0x888   :  { %v17567_v24 = vmul.f32 %v7999_v34, %v17268_v62  ;;  %v17570_v47 = vmul.f32 %v7999_v34, %v17278_v27  ;;  %v17573_v38 = vmul.f32 %v7999_v34, %v17294_v35  ;;  %v17576_v12 = vmul.f32 %v7999_v34, %v17304_v21 }
 0x889   :  { %v17579_v40 = vmul.f32 %v7999_v34, %v17320_v26  ;;  %v17582_v51 = vmul.f32 %v7999_v34, %v17330_v46  ;;  %v17585_v43 = vmul.f32 %v7999_v34, %v17346_v49  ;;  %v17588_v62 = vmul.f32 %v7999_v34, %v17356_v50 }
 0x88a   :  { %v17591_v27 = vmul.f32 %v7999_v34, %v17372_v33  ;;  %v17594_v35 = vmul.f32 %v7999_v34, %v17382_v6  ;;  %v17597_v21 = vmul.f32 %v7999_v34, %v17398_v36  ;;  %v17600_v26 = vmul.f32 %v7999_v34, %v17408_v28 }
 0x88b   :  { %v17603_v46 = vmul.f32 %v7999_v34, %v17424_v18  ;;  %v17606_v49 = vmul.f32 %v7999_v34, %v17434_v39  ;;  %v17609_v50 = vmul.f32 %v7999_v34, %v17449_v2  ;;  %v17612_v33 = vmul.f32 %v7999_v34, %v17459_v48 }
 0x88c   :  { %v17615_v6 = vmul.f32 %v7999_v34, %v17471_v54  ;;  %v17618_v36 = vmul.f32 %v7999_v34, %v17478_v30  ;;  %v17621_v28 = vmul.f32 %v7999_v34, %v17490_v29  ;;  %v17624_v18 = vmul.f32 %v7999_v34, %v17497_v37 }
 0x88d   :  { %v17627_v39 = vmul.f32 %v7999_v34, %v17508_v42  ;;  %v17630_v2 = vmul.f32 %v7999_v34, %v17515_v45  ;;  %v17633_v48 = vmul.f32 %v7999_v34, %v17521_v58  ;;  %v17636_v54 = vmul.f32 %v7999_v34, %v17525_v23  ;;  %v18940_v58 = vld [vmem:[#allocation28_spill] sm:$0xff]  ;;  %v18941_v23 = vld [vmem:[#allocation10_spill] sm:$0xff] }
 0x88e   :  { %v17639_v30 = vmul.f32 %v7999_v34, %v17529_v31  ;;  %v17642_v29 = vmul.f32 %v7999_v34, %v17532_v60  ;;  %v17645_v37 = vmul.f32 %v7999_v34, %v17535_v41  ;;  %v17648_v42 = vmul.f32 %v7999_v34, %v17538_v15  ;;  %v18943_v41 = vld [vmem:[#allocation74_spill] sm:$0xff] }
 0x88f   :  { %v17651_v45 = vmul.f32 %v7999_v34, %v17541_v13  ;;  %v17655_v17 = vmul.f32 %v17555_v4, %v18940_v58  ;;  %v17659_v31 = vmul.f32 %v17555_v4, %v18941_v23  ;;  %v17663_v60 = vmul.f32 %v17555_v4, %v18942_v57  ;;  %v18944_v15 = vld [vmem:[#allocation26_spill] sm:$0xff]  ;;  %v18951_v58 = vld [vmem:[#allocation41_spill] sm:$0xff] }
 0x890   :  { %v17667_v1 = vmul.f32 %v17555_v4, %v18943_v41  ;;  %v17671_v13 = vmul.f32 %v17555_v4, %v18944_v15  ;;  %v17675_v53 = vmul.f32 %v17555_v4, %v18945_v9  ;;  %v17679_v56 = vmul.f32 %v17555_v4, %v18946_v7  ;;  %v18953_v57 = vld [vmem:[#allocation42_spill] sm:$0xff]  ;;  %v18955_v15 = vld [vmem:[#allocation59_spill] sm:$0xff] }
 0x891   :  { %v17683_v3 = vmul.f32 %v17555_v4, %v18947_v55  ;;  %v17687_v8 = vmul.f32 %v17555_v4, %v18948_v16  ;;  %v17691_v34 = vmul.f32 %v17555_v4, %v18949_v11  ;;  %v17695_v23 = vmul.f32 %v17555_v4, %v18951_v58  ;;  %v18957_v7 = vld [vmem:[#allocation62_spill] sm:$0xff]  ;;  %v18959_v16 = vld [vmem:[#allocation43_spill] sm:$0xff] }
 0x892   :  { %v17699_v41 = vmul.f32 %v17555_v4, %v18953_v57  ;;  %v17703_v9 = vmul.f32 %v17555_v4, %v18955_v15  ;;  %v17707_v55 = vmul.f32 %v17555_v4, %v18957_v7  ;;  %v17711_v11 = vmul.f32 %v17555_v4, %v18959_v16 }
 0x893   :  { %18950 = vst [vmem:[#allocation50_spill] sm:$0xff] %v17691_v34  ;;  %18952 = vst [vmem:[#allocation75_spill] sm:$0xff] %v17695_v23  ;;  %v18960_v34 = vld [vmem:[#allocation65_spill] sm:$0xff]  ;;  %v18961_v23 = vld [vmem:[#allocation48_spill] sm:$0xff] }
 0x894   :  { %18954 = vst [vmem:[#allocation57_spill] sm:$0xff] %v17699_v41  ;;  %18956 = vst [vmem:[#allocation53_spill] sm:$0xff] %v17703_v9  ;;  %v17715_v58 = vmul.f32 %v17555_v4, %v18960_v34  ;;  %v17719_v57 = vmul.f32 %v17555_v4, %v18961_v23  ;;  %v18962_v41 = vld [vmem:[#allocation46_spill] sm:$0xff]  ;;  %v18963_v9 = vld [vmem:[#allocation72_spill] sm:$0xff]  ;;  %v17735_v34 = vmul.f32 %v17555_v4, %v17232_v20 }
 0x895   :  { %18958 = vst [vmem:[#allocation34_spill] sm:$0xff] %v17707_v55  ;;  %v17723_v15 = vmul.f32 %v17555_v4, %v18962_v41  ;;  %v17727_v7 = vmul.f32 %v17555_v4, %v18963_v9  ;;  %v18964_v55 = vld [vmem:[#allocation45_spill] sm:$0xff]  ;;  %v17739_v23 = vmul.f32 %v17555_v4, %v17257_v0  ;;  %v17743_v41 = vmul.f32 %v17555_v4, %v17284_v52 }
 0x896   :  { %v17731_v16 = vmul.f32 %v17555_v4, %v18964_v55  ;;  %v17747_v9 = vmul.f32 %v17555_v4, %v17310_v59  ;;  %v17751_v55 = vmul.f32 %v17555_v4, %v17336_v10  ;;  %v17755_v20 = vmul.f32 %v17555_v4, %v17362_v5 }
 0x897   :  { %v17759_v0 = vmul.f32 %v17555_v4, %v17388_v19  ;;  %v17763_v52 = vmul.f32 %v17555_v4, %v17414_v63  ;;  %v17767_v59 = vmul.f32 %v17555_v4, %v17440_v25  ;;  %v17771_v10 = vmul.f32 %v17555_v4, %v17466_v14  ;;  %v11210_v63 = vld [vmem:[%s18043_s0] sm:$0xff]  ;;  %v11211_v25 = vld [vmem:[%s18043_s0 + $0x8] sm:$0xff] }
 0x898   :  { %18965 = vst [vmem:[#allocation30_spill] sm:$0xff] %v17755_v20  ;;  %v17775_v5 = vmul.f32 %v17555_v4, %v17484_v22  ;;  %v18968_v20 = vld [vmem:[#allocation52_spill] sm:$0xff]  ;;  %v8071_v14 = vadd.f32 %v11211_v25, %v17561_v61  ;;  %v11212_v22 = vld [vmem:[%s18043_s0 + $0x10] sm:$0xff]  ;;  %v11215_v61 = vld [vmem:[%s18043_s0 + $0x28] sm:$0xff] }
 0x899   :  { %18966 = vst [vmem:[#allocation35_spill] sm:$0xff] %v17763_v52  ;;  %v17779_v19 = vmul.f32 %v17555_v4, %v18968_v20  ;;  %v8070_v52 = vadd.f32 %v11210_v63, %v17558_v32  ;;  %v11213_v4 = vld [vmem:[%s18043_s0 + $0x18] sm:$0xff]  ;;  %v11214_v32 = vld [vmem:[%s18043_s0 + $0x20] sm:$0xff]  ;;  %v8075_v25 = vadd.f32 %v11215_v61, %v17573_v38  ;;  %v11219_v38 = vld [vmem:[%s18043_s0 + $0x48] sm:$0xff] }
 0x89a   :  { %18967 = vst [vmem:[#allocation44_spill] sm:$0xff] %v17775_v5  ;;  %v8072_v5 = vadd.f32 %v11212_v22, %v17564_v44  ;;  %v8073_v20 = vadd.f32 %v11213_v4, %v17567_v24  ;;  %v8074_v63 = vadd.f32 %v11214_v32, %v17570_v47  ;;  %v11216_v44 = vld [vmem:[%s18043_s0 + $0x30] sm:$0xff]  ;;  %v11217_v24 = vld [vmem:[%s18043_s0 + $0x38] sm:$0xff]  ;;  %v11218_v47 = vld [vmem:[%s18043_s0 + $0x40] sm:$0xff]  ;;  %v8079_v61 = vadd.f32 %v11219_v38, %v17585_v43 }
 0x89b   :  { %v8076_v22 = vadd.f32 %v11216_v44, %v17576_v12  ;;  %v8077_v4 = vadd.f32 %v11217_v24, %v17579_v40  ;;  %v8078_v32 = vadd.f32 %v11218_v47, %v17582_v51  ;;  %v11220_v12 = vld [vmem:[%s18043_s0 + $0x50] sm:$0xff]  ;;  %8134 = vst [vmem:[#allocation2] sm:$0xff] %v8070_v52  ;;  %8135 = vst [vmem:[#allocation2 + $0x8] sm:$0xff] %v8071_v14  ;;  %v11221_v40 = vld [vmem:[%s18043_s0 + $0x58] sm:$0xff] }
 0x89c   :  { %v8080_v44 = vadd.f32 %v11220_v12, %v17588_v62  ;;  %8136 = vst [vmem:[#allocation2 + $0x10] sm:$0xff] %v8072_v5  ;;  %v8081_v51 = vadd.f32 %v11221_v40, %v17591_v27  ;;  %v11222_v24 = vld [vmem:[%s18043_s0 + $0x60] sm:$0xff]  ;;  %v11223_v47 = vld [vmem:[%s18043_s0 + $0x68] sm:$0xff]  ;;  %v11224_v52 = vld [vmem:[%s18043_s0 + $0x70] sm:$0xff] }
 0x89d   :  { %v8082_v43 = vadd.f32 %v11222_v24, %v17594_v35  ;;  %v8083_v62 = vadd.f32 %v11223_v47, %v17597_v21  ;;  %v8084_v5 = vadd.f32 %v11224_v52, %v17600_v26  ;;  %8137 = vst [vmem:[#allocation2 + $0x18] sm:$0xff] %v8073_v20  ;;  %8138 = vst [vmem:[#allocation2 + $0x20] sm:$0xff] %v8074_v63  ;;  %v11225_v27 = vld [vmem:[%s18043_s0 + $0x78] sm:$0xff]  ;;  %v11226_v21 = vld [vmem:[%s18043_s0 + $0x80] sm:$0xff] }
 0x89e   :  { %8139 = vst [vmem:[#allocation2 + $0x28] sm:$0xff] %v8075_v25  ;;  %8140 = vst [vmem:[#allocation2 + $0x30] sm:$0xff] %v8076_v22  ;;  %v8085_v35 = vadd.f32 %v11225_v27, %v17603_v46  ;;  %v8086_v14 = vadd.f32 %v11226_v21, %v17606_v49  ;;  %v11227_v26 = vld [vmem:[%s18043_s0 + $0x88] sm:$0xff]  ;;  %v11228_v63 = vld [vmem:[%s18043_s0 + $0x90] sm:$0xff] }
 0x89f   :  { %v8087_v20 = vadd.f32 %v11227_v26, %v17609_v50  ;;  %v8088_v25 = vadd.f32 %v11228_v63, %v17612_v33  ;;  %8141 = vst [vmem:[#allocation2 + $0x38] sm:$0xff] %v8077_v4  ;;  %8142 = vst [vmem:[#allocation2 + $0x40] sm:$0xff] %v8078_v32  ;;  %v11229_v46 = vld [vmem:[%s18043_s0 + $0x98] sm:$0xff]  ;;  %v11230_v50 = vld [vmem:[%s18043_s0 + $0xa0] sm:$0xff] }
 0x8a0   :  { %8143 = vst [vmem:[#allocation2 + $0x48] sm:$0xff] %v8079_v61  ;;  %8144 = vst [vmem:[#allocation2 + $0x50] sm:$0xff] %v8080_v44  ;;  %v8089_v49 = vadd.f32 %v11229_v46, %v17615_v6  ;;  %v8090_v22 = vadd.f32 %v11230_v50, %v17618_v36  ;;  %v11231_v33 = vld [vmem:[%s18043_s0 + $0xa8] sm:$0xff]  ;;  %v11232_v32 = vld [vmem:[%s18043_s0 + $0xb0] sm:$0xff] }
 0x8a1   :  { %v8091_v4 = vadd.f32 %v11231_v33, %v17621_v28  ;;  %v8092_v38 = vadd.f32 %v11232_v32, %v17624_v18  ;;  %8145 = vst [vmem:[#allocation2 + $0x58] sm:$0xff] %v8081_v51  ;;  %8146 = vst [vmem:[#allocation2 + $0x60] sm:$0xff] %v8082_v43  ;;  %v11233_v6 = vld [vmem:[%s18043_s0 + $0xb8] sm:$0xff]  ;;  %v11234_v28 = vld [vmem:[%s18043_s0 + $0xc0] sm:$0xff] }
 0x8a2   :  { %8147 = vst [vmem:[#allocation2 + $0x68] sm:$0xff] %v8083_v62  ;;  %8148 = vst [vmem:[#allocation2 + $0x70] sm:$0xff] %v8084_v5  ;;  %v8093_v36 = vadd.f32 %v11233_v6, %v17627_v39  ;;  %v8094_v61 = vadd.f32 %v11234_v28, %v17630_v2  ;;  %v11235_v18 = vld [vmem:[%s18043_s0 + $0xc8] sm:$0xff]  ;;  %v11236_v44 = vld [vmem:[%s18043_s0 + $0xd0] sm:$0xff] }
 0x8a3   :  { %v8095_v12 = vadd.f32 %v11235_v18, %v17633_v48  ;;  %v8096_v40 = vadd.f32 %v11236_v44, %v17636_v54  ;;  %8149 = vst [vmem:[#allocation2 + $0x78] sm:$0xff] %v8085_v35  ;;  %8150 = vst [vmem:[#allocation2 + $0x80] sm:$0xff] %v8086_v14  ;;  %v11237_v39 = vld [vmem:[%s18043_s0 + $0xd8] sm:$0xff]  ;;  %v11238_v48 = vld [vmem:[%s18043_s0 + $0xe0] sm:$0xff] }
 0x8a4   :  { %8151 = vst [vmem:[#allocation2 + $0x88] sm:$0xff] %v8087_v20  ;;  %8152 = vst [vmem:[#allocation2 + $0x90] sm:$0xff] %v8088_v25  ;;  %v8097_v2 = vadd.f32 %v11237_v39, %v17639_v30  ;;  %v8098_v51 = vadd.f32 %v11238_v48, %v17642_v29  ;;  %v11239_v54 = vld [vmem:[%s18043_s0 + $0xe8] sm:$0xff]  ;;  %v11240_v43 = vld [vmem:[%s18043_s0 + $0xf0] sm:$0xff] }
 0x8a5   :  { %v8099_v24 = vadd.f32 %v11239_v54, %v17645_v37  ;;  %v8100_v47 = vadd.f32 %v11240_v43, %v17648_v42  ;;  %8153 = vst [vmem:[#allocation2 + $0x98] sm:$0xff] %v8089_v49  ;;  %8154 = vst [vmem:[#allocation2 + $0xa0] sm:$0xff] %v8090_v22  ;;  %v11241_v30 = vld [vmem:[%s18043_s0 + $0xf8] sm:$0xff]  ;;  %v11242_v37 = vld [vmem:[%s18043_s0 + $0x100] sm:$0xff] }
 0x8a6   :  { %8155 = vst [vmem:[#allocation2 + $0xa8] sm:$0xff] %v8091_v4  ;;  %8156 = vst [vmem:[#allocation2 + $0xb0] sm:$0xff] %v8092_v38  ;;  %v8101_v29 = vadd.f32 %v11241_v30, %v17651_v45  ;;  %v8102_v62 = vadd.f32 %v11242_v37, %v17655_v17  ;;  %v11243_v42 = vld [vmem:[%s18043_s0 + $0x108] sm:$0xff]  ;;  %v11244_v5 = vld [vmem:[%s18043_s0 + $0x110] sm:$0xff] }
 0x8a7   :  { %v8103_v52 = vadd.f32 %v11243_v42, %v17659_v31  ;;  %v8104_v27 = vadd.f32 %v11244_v5, %v17663_v60  ;;  %8157 = vst [vmem:[#allocation2 + $0xb8] sm:$0xff] %v8093_v36  ;;  %8158 = vst [vmem:[#allocation2 + $0xc0] sm:$0xff] %v8094_v61  ;;  %v11245_v45 = vld [vmem:[%s18043_s0 + $0x118] sm:$0xff]  ;;  %v11246_v31 = vld [vmem:[%s18043_s0 + $0x120] sm:$0xff] }
 0x8a8   :  { %8159 = vst [vmem:[#allocation2 + $0xc8] sm:$0xff] %v8095_v12  ;;  %8160 = vst [vmem:[#allocation2 + $0xd0] sm:$0xff] %v8096_v40  ;;  %v8105_v17 = vadd.f32 %v11245_v45, %v17667_v1  ;;  %v8106_v35 = vadd.f32 %v11246_v31, %v17671_v13  ;;  %v11247_v60 = vld [vmem:[%s18043_s0 + $0x128] sm:$0xff]  ;;  %v11248_v14 = vld [vmem:[%s18043_s0 + $0x130] sm:$0xff] }
 0x8a9   :  { %v8107_v21 = vadd.f32 %v11247_v60, %v17675_v53  ;;  %v8108_v26 = vadd.f32 %v11248_v14, %v17679_v56  ;;  %8161 = vst [vmem:[#allocation2 + $0xd8] sm:$0xff] %v8097_v2  ;;  %8162 = vst [vmem:[#allocation2 + $0xe0] sm:$0xff] %v8098_v51  ;;  %v11249_v1 = vld [vmem:[%s18043_s0 + $0x138] sm:$0xff]  ;;  %v11250_v53 = vld [vmem:[%s18043_s0 + $0x140] sm:$0xff] }
 0x8aa   :  { %8163 = vst [vmem:[#allocation2 + $0xe8] sm:$0xff] %v8099_v24  ;;  %8164 = vst [vmem:[#allocation2 + $0xf0] sm:$0xff] %v8100_v47  ;;  %v8109_v13 = vadd.f32 %v11249_v1, %v17683_v3  ;;  %v8110_v20 = vadd.f32 %v11250_v53, %v17687_v8  ;;  %v11251_v56 = vld [vmem:[%s18043_s0 + $0x148] sm:$0xff]  ;;  %v11252_v46 = vld [vmem:[%s18043_s0 + $0x150] sm:$0xff] }
 0x8ab   :  { %v18969_v63 = vld [vmem:[#allocation50_spill] sm:$0xff]  ;;  %v18970_v49 = vld [vmem:[#allocation75_spill] sm:$0xff]  ;;  %8165 = vst [vmem:[#allocation2 + $0xf8] sm:$0xff] %v8101_v29  ;;  %8166 = vst [vmem:[#allocation2 + $0x100] sm:$0xff] %v8102_v62 }
 0x8ac   :  { %v8111_v25 = vadd.f32 %v11251_v56, %v18969_v63  ;;  %v8112_v50 = vadd.f32 %v11252_v46, %v18970_v49  ;;  %8167 = vst [vmem:[#allocation2 + $0x108] sm:$0xff] %v8103_v52  ;;  %8168 = vst [vmem:[#allocation2 + $0x110] sm:$0xff] %v8104_v27  ;;  %v11253_v3 = vld [vmem:[%s18043_s0 + $0x158] sm:$0xff]  ;;  %v18971_v8 = vld [vmem:[#allocation57_spill] sm:$0xff] }
 0x8ad   :  { %v8113_v22 = vadd.f32 %v11253_v3, %v18971_v8  ;;  %v11254_v33 = vld [vmem:[%s18043_s0 + $0x160] sm:$0xff]  ;;  %v11255_v38 = vld [vmem:[%s18043_s0 + $0x168] sm:$0xff]  ;;  %v11256_v28 = vld [vmem:[%s18043_s0 + $0x170] sm:$0xff]  ;;  %8169 = vst [vmem:[#allocation2 + $0x118] sm:$0xff] %v8105_v17 }
 0x8ae   :  { %v18972_v4 = vld [vmem:[#allocation53_spill] sm:$0xff]  ;;  %v18973_v6 = vld [vmem:[#allocation34_spill] sm:$0xff]  ;;  %v8116_v61 = vadd.f32 %v11256_v28, %v17711_v11  ;;  %8170 = vst [vmem:[#allocation2 + $0x120] sm:$0xff] %v8106_v35  ;;  %8171 = vst [vmem:[#allocation2 + $0x128] sm:$0xff] %v8107_v21 }
 0x8af   :  { %v8114_v32 = vadd.f32 %v11254_v33, %v18972_v4  ;;  %v8115_v36 = vadd.f32 %v11255_v38, %v18973_v6  ;;  %8172 = vst [vmem:[#allocation2 + $0x130] sm:$0xff] %v8108_v26  ;;  %v11257_v18 = vld [vmem:[%s18043_s0 + $0x178] sm:$0xff]  ;;  %v11258_v44 = vld [vmem:[%s18043_s0 + $0x180] sm:$0xff]  ;;  %v11259_v11 = vld [vmem:[%s18043_s0 + $0x188] sm:$0xff] }
 0x8b0   :  { %v8117_v12 = vadd.f32 %v11257_v18, %v17715_v58  ;;  %v8118_v40 = vadd.f32 %v11258_v44, %v17719_v57  ;;  %v8119_v39 = vadd.f32 %v11259_v11, %v17723_v15  ;;  %v11260_v2 = vld [vmem:[%s18043_s0 + $0x190] sm:$0xff]  ;;  %8173 = vst [vmem:[#allocation2 + $0x138] sm:$0xff] %v8109_v13  ;;  %8174 = vst [vmem:[#allocation2 + $0x140] sm:$0xff] %v8110_v20  ;;  %v11261_v58 = vld [vmem:[%s18043_s0 + $0x198] sm:$0xff] }
 0x8b1   :  { %v8120_v48 = vadd.f32 %v11260_v2, %v17727_v7  ;;  %8175 = vst [vmem:[#allocation2 + $0x148] sm:$0xff] %v8111_v25  ;;  %8176 = vst [vmem:[#allocation2 + $0x150] sm:$0xff] %v8112_v50  ;;  %v8121_v57 = vadd.f32 %v11261_v58, %v17731_v16  ;;  %v11262_v15 = vld [vmem:[%s18043_s0 + $0x1a0] sm:$0xff]  ;;  %v11263_v7 = vld [vmem:[%s18043_s0 + $0x1a8] sm:$0xff] }
 0x8b2   :  { %v8122_v51 = vadd.f32 %v11262_v15, %v17735_v34  ;;  %v8123_v54 = vadd.f32 %v11263_v7, %v17739_v23  ;;  %v11264_v24 = vld [vmem:[%s18043_s0 + $0x1b0] sm:$0xff]  ;;  %8177 = vst [vmem:[#allocation2 + $0x158] sm:$0xff] %v8113_v22  ;;  %8178 = vst [vmem:[#allocation2 + $0x160] sm:$0xff] %v8114_v32  ;;  %v11265_v16 = vld [vmem:[%s18043_s0 + $0x1b8] sm:$0xff] }
 0x8b3   :  { %v8124_v43 = vadd.f32 %v11264_v24, %v17743_v41  ;;  %8179 = vst [vmem:[#allocation2 + $0x168] sm:$0xff] %v8115_v36  ;;  %8180 = vst [vmem:[#allocation2 + $0x170] sm:$0xff] %v8116_v61  ;;  %v8125_v34 = vadd.f32 %v11265_v16, %v17747_v9  ;;  %v11266_v23 = vld [vmem:[%s18043_s0 + $0x1c0] sm:$0xff]  ;;  %v11267_v41 = vld [vmem:[%s18043_s0 + $0x1c8] sm:$0xff] }
 0x8b4   :  { %v8126_v47 = vadd.f32 %v11266_v23, %v17751_v55  ;;  %v18974_v30 = vld [vmem:[#allocation30_spill] sm:$0xff]  ;;  %v11268_v37 = vld [vmem:[%s18043_s0 + $0x1d0] sm:$0xff]  ;;  %8181 = vst [vmem:[#allocation2 + $0x178] sm:$0xff] %v8117_v12  ;;  %8182 = vst [vmem:[#allocation2 + $0x180] sm:$0xff] %v8118_v40 }
 0x8b5   :  { %v8127_v29 = vadd.f32 %v11267_v41, %v18974_v30  ;;  %v8128_v62 = vadd.f32 %v11268_v37, %v17759_v0  ;;  %8183 = vst [vmem:[#allocation2 + $0x188] sm:$0xff] %v8119_v39  ;;  %8184 = vst [vmem:[#allocation2 + $0x190] sm:$0xff] %v8120_v48  ;;  %v11269_v9 = vld [vmem:[%s18043_s0 + $0x1d8] sm:$0xff]  ;;  %v18975_v55 = vld [vmem:[#allocation35_spill] sm:$0xff] }
 0x8b6   :  { %v8129_v42 = vadd.f32 %v11269_v9, %v18975_v55  ;;  %v11270_v52 = vld [vmem:[%s18043_s0 + $0x1e0] sm:$0xff]  ;;  %v11271_v0 = vld [vmem:[%s18043_s0 + $0x1e8] sm:$0xff]  ;;  %v11272_v45 = vld [vmem:[%s18043_s0 + $0x1f0] sm:$0xff]  ;;  %8185 = vst [vmem:[#allocation2 + $0x198] sm:$0xff] %v8121_v57 }
 0x8b7   :  { %v8130_v5 = vadd.f32 %v11270_v52, %v17767_v59  ;;  %v8131_v27 = vadd.f32 %v11271_v0, %v17771_v10  ;;  %v18976_v17 = vld [vmem:[#allocation44_spill] sm:$0xff]  ;;  %8186 = vst [vmem:[#allocation2 + $0x1a0] sm:$0xff] %v8122_v51  ;;  %8187 = vst [vmem:[#allocation2 + $0x1a8] sm:$0xff] %v8123_v54 }
 0x8b8   :  { %v8132_v31 = vadd.f32 %v11272_v45, %v18976_v17  ;;  %8188 = vst [vmem:[#allocation2 + $0x1b0] sm:$0xff] %v8124_v43  ;;  %v11273_v59 = vld [vmem:[%s18043_s0 + $0x1f8] sm:$0xff]  ;;  %8189 = vst [vmem:[#allocation2 + $0x1b8] sm:$0xff] %v8125_v34 }
 0x8b9   :  { %v8133_v35 = vadd.f32 %v11273_v59, %v17779_v19  ;;  %8190 = vst [vmem:[#allocation2 + $0x1c0] sm:$0xff] %v8126_v47  ;;  %8191 = vst [vmem:[#allocation2 + $0x1c8] sm:$0xff] %v8127_v29 }
 0x8ba   :  { %8192 = vst [vmem:[#allocation2 + $0x1d0] sm:$0xff] %v8128_v62  ;;  %8193 = vst [vmem:[#allocation2 + $0x1d8] sm:$0xff] %v8129_v42 }
 0x8bb   :  { %8194 = vst [vmem:[#allocation2 + $0x1e0] sm:$0xff] %v8130_v5  ;;  %8195 = vst [vmem:[#allocation2 + $0x1e8] sm:$0xff] %v8131_v27 }
 0x8bc   :  { %8196 = vst [vmem:[#allocation2 + $0x1f0] sm:$0xff] %v8132_v31  ;;  %8197 = vst [vmem:[#allocation2 + $0x1f8] sm:$0xff] %v8133_v35 }
 0x8bd   :  { %11285 = shalt.err (!%p11282_p4)
}
 0x8be   :  { %s11303_s4 = smov 128   ;;  %s11304_s0 = smov 8  }
 0x8bf   :  { %8209 = dma.vmem_to_hbm [thread:$0]  %s8204_s22, 8192, %s18056_s13, [#allocation3], %s11303_s4, %s11303_s4, %s11304_s0  }
 0x8c0   :  { %11294 = dma.done.wait [#allocation3], 8192  }
 0x8c1   :  { %11295 = vsyncadd [#allocation3], 4294959104 }
 0x8c2   :  { %8213 = vsyncpa [#allocation3], 1 }

</bundles_post_ra>
